<compile_context>
chip_gen: v7x
topology: tpu7x:2x2x1
jax: 0.10.0
libtpu: 0.0.40
codegen_flags: <defaults>
</compile_context>

<pallas_src>
import numpy as np
import jax
import jax.numpy as jnp
from jax.experimental import pallas as pl
from jax.experimental.pallas import tpu as pltpu

# ----------------------------- hyper-parameters (small) -----------------------------
SRC_VOCAB = 16
TGT_VOCAB = 16
D_MODEL = 32
D_FF = 64
D_K = 8
D_V = 8
N_HEADS = 4
N_LAYERS = 2
SRC_LEN = 8
TGT_LEN = 8
BATCH = 8            # must equal SRC_LEN (reference PE broadcast quirk)
LN_EPS = 1e-5        # PyTorch nn.LayerNorm default
NEG_INF = -1e9
LOGIT_PAD = 128      # lane-dense logits store (real vocab columns sliced outside)

N_ATTN = 3 * N_LAYERS    # attention blocks: enc-self (NL) + dec-self (NL) + dec-cross (NL)
N_FFN = 2 * N_LAYERS     # FFN blocks: enc (NL) + dec (NL)
N_VEC32 = N_ATTN * 6 + N_FFN * 3   # packed 32-wide parameter rows


def _num_groups():
    """Grid size: 1 step with the full batch on single-TensorCore chips (v5e/v6e),
    2 'parallel' batch halves on megacore / dual-TC chips (v4/v5p/v7x)."""
    try:
        kind = jax.devices()[0].device_kind.lower()
    except Exception:
        return 1
    if any(t in kind for t in ("v5e", "v5 lite", "v5litepod", "v6e", "v6 lite")):
        return 1
    return 2


N_GROUPS = _num_groups()
BH = BATCH // N_GROUPS
BHS = BH * SRC_LEN           # rows per grid step (encoder side)
BHT = BH * TGT_LEN           # rows per grid step (decoder side)

assert BATCH % N_GROUPS == 0


# ----------------------------- the fused Pallas kernel -----------------------------
def _transformer_kernel(
    x_ref, y_ref, enc_m_ref, dec_sm_ref, dec_cm_ref,
    wq_ref, wk_ref, wv_ref, wo_ref, w1_ref, w2_ref,
    vec32_ref, vec64_ref, proj_ref,
    logits_ref, enc_attn_ref, dec_sattn_ref, dec_cattn_ref,
):
    """Whole Transformer forward (2 enc layers + 2 dec layers + projection) for one batch group."""
    scale = jnp.float32(1.0 / np.sqrt(D_K))

    def row32(r):
        # one packed 32-wide parameter row, kept 2-D for clean broadcasting
        return vec32_ref[pl.ds(r, 1), :]                       # (1, D_MODEL)

    def layer_norm(x, g, b):
        mean = jnp.mean(x, axis=-1, keepdims=True)
        var = jnp.mean((x - mean) ** 2, axis=-1, keepdims=True)
        return (x - mean) * jax.lax.rsqrt(var + LN_EPS) * g + b

    def mha(q2, kv2, mask_add, blk):
        """MultiHeadAttention + Linear + residual + LayerNorm.

        q2:       (Nq, d_model) flattened query activations for this batch group
        kv2:      (Nk, d_model) flattened key/value activations
        mask_add: (Nq, Nk) additive mask (0 / -1e9); also blocks cross-batch positions
        blk:      static index into the stacked attention weights
        Returns (normalised output (Nq, d_model), attention probs (Nq, H*Nk) lane-concat).
        """
        base = blk * 6
        # fused-head projections: one well-shaped matmul each
        q = jnp.dot(q2, wq_ref[blk], preferred_element_type=jnp.float32) + row32(base + 0)
        k = jnp.dot(kv2, wk_ref[blk], preferred_element_type=jnp.float32) + row32(base + 1)
        v = jnp.dot(kv2, wv_ref[blk], preferred_element_type=jnp.float32) + row32(base + 2)
        kt = jnp.transpose(k)                                   # (H*D_K, Nk): ONE transpose/block

        attn_heads, ctx_heads = [], []
        for h in range(N_HEADS):                                # static unroll, D_K = 8
            lo = h * D_K
            s = jnp.dot(q[:, lo:lo + D_K], kt[lo:lo + D_K, :],
                        preferred_element_type=jnp.float32) * scale + mask_add
            s = s - jnp.max(s, axis=-1, keepdims=True)
            e = jnp.exp(s)
            a = e / jnp.sum(e, axis=-1, keepdims=True)          # exact normalisation
            attn_heads.append(a)
            ctx_heads.append(jnp.dot(a, v[:, lo:lo + D_V],
                                     preferred_element_type=jnp.float32))

        attn = jnp.concatenate(attn_heads, axis=-1)             # (Nq, H*Nk): lane-dense store
        ctx = jnp.concatenate(ctx_heads, axis=-1)               # (Nq, H*D_V)
        out = jnp.dot(ctx, wo_ref[blk],
                      preferred_element_type=jnp.float32) + row32(base + 3)
        return layer_norm(out + q2, row32(base + 4), row32(base + 5)), attn

    def ffn(x2, f):
        """Pos-wise FFN (Conv1d k=1 == Linear) + residual + LayerNorm."""
        base = N_ATTN * 6 + f * 3
        h = jnp.dot(x2, w1_ref[f],
                    preferred_element_type=jnp.float32) + vec64_ref[pl.ds(f, 1), :]
        h = jnp.maximum(h, 0.0)
        o = jnp.dot(h, w2_ref[f], preferred_element_type=jnp.float32) + row32(base + 0)
        return layer_norm(o + x2, row32(base + 1), row32(base + 2))

    x2 = x_ref[...]                    # (BHS, D_MODEL), already flattened by the wrapper
    y2 = y_ref[...]                    # (BHT, D_MODEL)
    enc_mask = enc_m_ref[0]            # (BHS, BHS) additive, block-diagonal per example
    dec_smask = dec_sm_ref[0]          # (BHT, BHT)
    dec_cmask = dec_cm_ref[0]          # (BHT, BHS)

    ablk = 0
    fblk = 0

    # ---------- Encoder stack ----------
    enc = x2
    for l in range(N_LAYERS):
        enc, a = mha(enc, enc, enc_mask, ablk)
        ablk += 1
        enc_attn_ref[l, 0] = a
        enc = ffn(enc, fblk)
        fblk += 1

    # ---------- Decoder stack ----------
    dec = y2
    for l in range(N_LAYERS):
        dec, sa = mha(dec, dec, dec_smask, ablk)
        ablk += 1
        dec_sattn_ref[l, 0] = sa
        dec, ca = mha(dec, enc, dec_cmask, ablk)
        ablk += 1
        dec_cattn_ref[l, 0] = ca
        dec = ffn(dec, fblk)
        fblk += 1

    # ---------- final projection (bias-free Linear), 128-lane padded store ----------
    logits_ref[...] = jnp.dot(dec, proj_ref[...], preferred_element_type=jnp.float32)


# ----------------------------- pallas_call wrapper -----------------------------
def _fixed_spec(shape):
    """Full-array block that does not move across the grid (weights / packed params)."""
    n = len(shape)
    return pl.BlockSpec(shape, lambda g: (0,) * n)


def transformer_pallas(x2, y2, enc_m, dec_sm, dec_cm, p):
    grid_spec = pltpu.PrefetchScalarGridSpec(
        num_scalar_prefetch=0,
        grid=(N_GROUPS,),
        in_specs=[
            pl.BlockSpec((BHS, D_MODEL), lambda g: (g, 0)),         # enc activations
            pl.BlockSpec((BHT, D_MODEL), lambda g: (g, 0)),         # dec activations
            pl.BlockSpec((1, BHS, BHS), lambda g: (g, 0, 0)),       # enc self mask (additive)
            pl.BlockSpec((1, BHT, BHT), lambda g: (g, 0, 0)),       # dec self mask
            pl.BlockSpec((1, BHT, BHS), lambda g: (g, 0, 0)),       # dec cross mask
            _fixed_spec((N_ATTN, D_MODEL, N_HEADS * D_K)),          # wq (fused heads)
            _fixed_spec((N_ATTN, D_MODEL, N_HEADS * D_K)),          # wk
            _fixed_spec((N_ATTN, D_MODEL, N_HEADS * D_V)),          # wv
            _fixed_spec((N_ATTN, N_HEADS * D_V, D_MODEL)),          # wo (fused heads)
            _fixed_spec((N_FFN, D_MODEL, D_FF)),                    # w1
            _fixed_spec((N_FFN, D_FF, D_MODEL)),                    # w2
            _fixed_spec((N_VEC32, D_MODEL)),                        # packed 32-wide bias/LN rows
            _fixed_spec((N_FFN, D_FF)),                             # packed 64-wide rows (b1)
            _fixed_spec((D_MODEL, LOGIT_PAD)),                      # projection, zero-padded lanes
        ],
        out_specs=[
            pl.BlockSpec((BHT, LOGIT_PAD), lambda g: (g, 0)),
            pl.BlockSpec((N_LAYERS, 1, BHS, N_HEADS * BHS), lambda g: (0, g, 0, 0)),
            pl.BlockSpec((N_LAYERS, 1, BHT, N_HEADS * BHT), lambda g: (0, g, 0, 0)),
            pl.BlockSpec((N_LAYERS, 1, BHT, N_HEADS * BHS), lambda g: (0, g, 0, 0)),
        ],
    )
    out_shapes = (
        jax.ShapeDtypeStruct((BATCH * TGT_LEN, LOGIT_PAD), jnp.float32),
        jax.ShapeDtypeStruct((N_LAYERS, N_GROUPS, BHS, N_HEADS * BHS), jnp.float32),
        jax.ShapeDtypeStruct((N_LAYERS, N_GROUPS, BHT, N_HEADS * BHT), jnp.float32),
        jax.ShapeDtypeStruct((N_LAYERS, N_GROUPS, BHT, N_HEADS * BHS), jnp.float32),
    )
    return pl.pallas_call(
        _transformer_kernel,
        out_shape=out_shapes,
        grid_spec=grid_spec,
        compiler_params=pltpu.CompilerParams(dimension_semantics=("parallel",)),
    )(x2, y2, enc_m, dec_sm, dec_cm,
      p['wq'], p['wk'], p['wv'], p['wo'], p['w1'], p['w2'],
      p['vec32'], p['vec64'], p['proj_pad'])


# ----------------------------- glue: embeddings, masks, PE (plain JAX / numpy) -----------------------------
def get_sinusoid_encoding_table(n_position, d_model):
    pos = np.arange(n_position)[:, None].astype(np.float64)
    idx = np.arange(d_model)[None, :]
    angle = pos / np.power(10000, 2 * (idx // 2) / d_model)
    table = np.array(angle)
    table[:, 0::2] = np.sin(table[:, 0::2])
    table[:, 1::2] = np.cos(table[:, 1::2])
    return jnp.asarray(table, jnp.float32)


def positional_encoding(max_len, d_model):
    position = np.arange(max_len, dtype=np.float32)[:, None]
    div_term = np.exp(np.arange(0, d_model, 2, dtype=np.float32) * (-np.log(10000.0) / d_model))
    pe = np.zeros((max_len, d_model), np.float32)
    pe[:, 0::2] = np.sin(position * div_term)
    pe[:, 1::2] = np.cos(position * div_term)
    return jnp.asarray(pe)


def get_attn_pad_mask(seq_q, seq_k):
    B, Lq = seq_q.shape
    Lk = seq_k.shape[1]
    pad = (seq_k == 0)[:, None, :]                 # [B, 1, Lk]
    return jnp.broadcast_to(pad, (B, Lq, Lk))


def get_attn_subsequent_mask(L):
    return jnp.triu(jnp.ones((L, L), jnp.bool_), k=1)


def block_diag_additive(mask_bool):
    """(B, Lq, Lk) boolean mask -> (N_GROUPS, BH*Lq, BH*Lk) additive float mask.

    Diagonal batch blocks get the per-example additive mask (0 / -1e9); off-diagonal
    (cross-batch) blocks are fully masked so the in-kernel whole-group attention is exact.
    """
    _, Lq, Lk = mask_bool.shape
    m = mask_bool.reshape(N_GROUPS, BH, Lq, Lk)
    eye = jnp.eye(BH, dtype=bool)[None, :, None, :, None]        # (1, BH, 1, BH, 1)
    full = jnp.where(eye, m[:, :, :, None, :], True)             # (G, BH, Lq, BH, Lk)
    add = jnp.where(full, jnp.float32(NEG_INF), jnp.float32(0.0))
    return add.reshape(N_GROUPS, BH * Lq, BH * Lk)


def _extract_attn(full, Lq, Lk):
    """(NL, G, BH*Lq, H*BH*Lk) lane-concat block-diag attention -> (NL, B, H, Lq, Lk)."""
    r = full.reshape(N_LAYERS, N_GROUPS, BH, Lq, N_HEADS, BH, Lk)
    d = jnp.diagonal(r, axis1=2, axis2=5)            # (NL, G, Lq, H, Lk, BH)
    d = jnp.transpose(d, (0, 1, 5, 3, 2, 4))         # (NL, G, BH, H, Lq, Lk)
    return d.reshape(N_LAYERS, BATCH, N_HEADS, Lq, Lk)


def init_params(key):
    ks = iter(jax.random.split(key, 24))

    def normal(shape, scale=1.0):
        return jax.random.normal(next(ks), shape, jnp.float32) * scale

    p = {}
    p['src_emb'] = normal((SRC_VOCAB, D_MODEL))
    p['tgt_emb'] = normal((TGT_VOCAB, D_MODEL))
    p['enc_pe'] = positional_encoding(SRC_LEN, D_MODEL)
    p['dec_pos_table'] = get_sinusoid_encoding_table(TGT_LEN + 1, D_MODEL)

    # Attention blocks stacked in consumption order:
    #   [enc0.self, enc1.self, dec0.self, dec0.cross, dec1.self, dec1.cross]
    p['wq'] = normal((N_ATTN, D_MODEL, N_HEADS * D_K), 1.0 / np.sqrt(D_MODEL))
    p['bq'] = normal((N_ATTN, N_HEADS * D_K), 0.01)
    p['wk'] = normal((N_ATTN, D_MODEL, N_HEADS * D_K), 1.0 / np.sqrt(D_MODEL))
    p['bk'] = normal((N_ATTN, N_HEADS * D_K), 0.01)
    p['wv'] = normal((N_ATTN, D_MODEL, N_HEADS * D_V), 1.0 / np.sqrt(D_MODEL))
    p['bv'] = normal((N_ATTN, N_HEADS * D_V), 0.01)
    p['wo'] = normal((N_ATTN, N_HEADS * D_V, D_MODEL), 1.0 / np.sqrt(N_HEADS * D_V))
    p['bo'] = normal((N_ATTN, D_MODEL), 0.01)
    p['attn_ln_g'] = jnp.ones((N_ATTN, D_MODEL), jnp.float32)
    p['attn_ln_b'] = jnp.zeros((N_ATTN, D_MODEL), jnp.float32)

    # FFN blocks stacked in consumption order: [enc0, enc1, dec0, dec1]
    p['w1'] = normal((N_FFN, D_MODEL, D_FF), 1.0 / np.sqrt(D_MODEL))
    p['b1'] = normal((N_FFN, D_FF), 0.01)
    p['w2'] = normal((N_FFN, D_FF, D_MODEL), 1.0 / np.sqrt(D_FF))
    p['b2'] = normal((N_FFN, D_MODEL), 0.01)
    p['ffn_ln_g'] = jnp.ones((N_FFN, D_MODEL), jnp.float32)
    p['ffn_ln_b'] = jnp.zeros((N_FFN, D_MODEL), jnp.float32)

    p['proj_w'] = normal((D_MODEL, TGT_VOCAB), 1.0 / np.sqrt(D_MODEL))

    # ---- packed kernel-side layouts ----
    # 32-wide rows, per attn block b (rows b*6 .. b*6+5): [bq, bk, bv, bo, ln_g, ln_b];
    # then per FFN block f (rows N_ATTN*6 + f*3 ..): [b2, ln_g, ln_b].
    attn_rows = jnp.stack([p['bq'], p['bk'], p['bv'], p['bo'],
                           p['attn_ln_g'], p['attn_ln_b']], axis=1)       # (N_ATTN, 6, 32)
    ffn_rows = jnp.stack([p['b2'], p['ffn_ln_g'], p['ffn_ln_b']], axis=1)  # (N_FFN, 3, 32)
    p['vec32'] = jnp.concatenate([attn_rows.reshape(-1, D_MODEL),
                                  ffn_rows.reshape(-1, D_MODEL)], axis=0)  # (48, 32)
    p['vec64'] = p['b1']                                                    # (N_FFN, 64)
    p['proj_pad'] = jnp.zeros((D_MODEL, LOGIT_PAD), jnp.float32).at[:, :TGT_VOCAB].set(p['proj_w'])
    return p


def transformer_forward(params, enc_inputs, dec_inputs):
    B = enc_inputs.shape[0]

    # ---------- embeddings + positional encodings (reference quirks preserved) ----------
    x_emb = params['src_emb'][enc_inputs] + params['enc_pe'][:B]           # B == SRC_LEN
    y_emb = params['tgt_emb'][dec_inputs] + params['dec_pos_table'][dec_inputs]

    # ---------- additive masks, block-diagonalised per batch group ----------
    enc_self = get_attn_pad_mask(enc_inputs, enc_inputs)
    dec_self = jnp.logical_or(get_attn_pad_mask(dec_inputs, dec_inputs),
                              get_attn_subsequent_mask(dec_inputs.shape[1])[None])
    dec_enc = get_attn_pad_mask(dec_inputs, enc_inputs)

    enc_m = block_diag_additive(enc_self)
    dec_sm = block_diag_additive(dec_self)
    dec_cm = block_diag_additive(dec_enc)

    # flatten activations in XLA (free layout plumbing), not inside the kernel
    x2 = x_emb.astype(jnp.float32).reshape(BATCH * SRC_LEN, D_MODEL)
    y2 = y_emb.astype(jnp.float32).reshape(BATCH * TGT_LEN, D_MODEL)

    logits_pad, enc_attn_f, dec_sattn_f, dec_cattn_f = transformer_pallas(
        x2, y2, enc_m, dec_sm, dec_cm, params)

    dec_logits = logits_pad[:, :TGT_VOCAB]
    enc_attns = _extract_attn(enc_attn_f, SRC_LEN, SRC_LEN)
    dec_sattns = _extract_attn(dec_sattn_f, TGT_LEN, TGT_LEN)
    dec_cattns = _extract_attn(dec_cattn_f, TGT_LEN, SRC_LEN)

    return (dec_logits,
            [enc_attns[l] for l in range(N_LAYERS)],
            [dec_sattns[l] for l in range(N_LAYERS)],
            [dec_cattns[l] for l in range(N_LAYERS)])


# ----------------------------- pure-JAX reference (for numerical validation) -----------------------------
def _ref_layer_norm(x, g, b):
    mean = jnp.mean(x, axis=-1, keepdims=True)
    var = jnp.mean((x - mean) ** 2, axis=-1, keepdims=True)
    return (x - mean) / jnp.sqrt(var + LN_EPS) * g + b


def _ref_mha(p, blk, q_in, kv_in, mask_bool):
    B, Lq, _ = q_in.shape
    Lk = kv_in.shape[1]
    q = q_in @ p['wq'][blk] + p['bq'][blk]
    k = kv_in @ p['wk'][blk] + p['bk'][blk]
    v = kv_in @ p['wv'][blk] + p['bv'][blk]
    qh = q.reshape(B, Lq, N_HEADS, D_K).transpose(0, 2, 1, 3)
    kh = k.reshape(B, Lk, N_HEADS, D_K).transpose(0, 2, 1, 3)
    vh = v.reshape(B, Lk, N_HEADS, D_V).transpose(0, 2, 1, 3)
    scores = jnp.einsum('bhqd,bhkd->bhqk', qh, kh) / np.sqrt(D_K)
    scores = jnp.where(mask_bool[:, None, :, :], jnp.float32(NEG_INF), scores)
    attn = jax.nn.softmax(scores, axis=-1)
    ctx = jnp.einsum('bhqk,bhkd->bhqd', attn, vh)
    ctx = ctx.transpose(0, 2, 1, 3).reshape(B, Lq, N_HEADS * D_V)
    out = ctx @ p['wo'][blk] + p['bo'][blk]
    return _ref_layer_norm(out + q_in, p['attn_ln_g'][blk], p['attn_ln_b'][blk]), attn


def _ref_ffn(p, f, x):
    h = jnp.maximum(x @ p['w1'][f] + p['b1'][f], 0.0)
    o = h @ p['w2'][f] + p['b2'][f]
    return _ref_layer_norm(o + x, p['ffn_ln_g'][f], p['ffn_ln_b'][f])


def reference_forward(params, enc_inputs, dec_inputs):
    B = enc_inputs.shape[0]
    x = params['src_emb'][enc_inputs] + params['enc_pe'][:B]
    y = params['tgt_emb'][dec_inputs] + params['dec_pos_table'][dec_inputs]
    enc_mask = get_attn_pad_mask(enc_inputs, enc_inputs)
    dec_smask = jnp.logical_or(get_attn_pad_mask(dec_inputs, dec_inputs),
                               get_attn_subsequent_mask(dec_inputs.shape[1])[None])
    dec_cmask = get_attn_pad_mask(dec_inputs, enc_inputs)

    enc_attns, dec_sattns, dec_cattns = [], [], []
    enc_out = x
    for l in range(N_LAYERS):
        enc_out, a = _ref_mha(params, l, enc_out, enc_out, enc_mask)
        enc_attns.append(a)
        enc_out = _ref_ffn(params, l, enc_out)
    dec_out = y
    for l in range(N_LAYERS):
        dec_out, sa = _ref_mha(params, N_LAYERS + 2 * l, dec_out, dec_out, dec_smask)
        dec_sattns.append(sa)
        dec_out, ca = _ref_mha(params, N_LAYERS + 2 * l + 1, dec_out, enc_out, dec_cmask)
        dec_cattns.append(ca)
        dec_out = _ref_ffn(params, N_LAYERS + l, dec_out)
    logits = (dec_out @ params['proj_w']).reshape(-1, TGT_VOCAB)
    return logits, enc_attns, dec_sattns, dec_cattns


# ----------------------------- main -----------------------------
if __name__ == "__main__":
    root = jax.random.PRNGKey(0)
    k_params, k_enc, k_dec = jax.random.split(root, 3)

    params = init_params(k_params)

    # token ids; last position is padding (0) to exercise the pad masks
    enc_inputs = jax.random.randint(k_enc, (BATCH, SRC_LEN), 1, SRC_VOCAB, dtype=jnp.int32)
    enc_inputs = enc_inputs.at[:, -1].set(0)
    # dec token ids must stay <= TGT_LEN (sinusoid table has TGT_LEN+1 rows, indexed by token id)
    dec_inputs = jax.random.randint(k_dec, (BATCH, TGT_LEN), 1, TGT_LEN + 1, dtype=jnp.int32)
    dec_inputs = dec_inputs.at[:, -1].set(0)

    fwd = jax.jit(transformer_forward)
    dec_logits, enc_self_attns, dec_self_attns, dec_enc_attns = fwd(
        params, enc_inputs, dec_inputs)
    jax.block_until_ready((dec_logits, enc_self_attns, dec_self_attns, dec_enc_attns))

    assert dec_logits.shape == (BATCH * TGT_LEN, TGT_VOCAB)
    assert enc_self_attns[0].shape == (BATCH, N_HEADS, SRC_LEN, SRC_LEN)
    assert dec_self_attns[0].shape == (BATCH, N_HEADS, TGT_LEN, TGT_LEN)
    assert dec_enc_attns[0].shape == (BATCH, N_HEADS, TGT_LEN, SRC_LEN)
    assert bool(jnp.all(jnp.isfinite(dec_logits)))

    # numerical check against a straightforward pure-JAX (XLA) reference
    with jax.default_matmul_precision("highest"):
        ref_logits, ref_ea, ref_dsa, ref_dca = jax.jit(reference_forward)(
            params, enc_inputs, dec_inputs)
    jax.block_until_ready(ref_logits)

    assert bool(jnp.allclose(dec_logits, ref_logits, atol=2e-2, rtol=2e-2)), \
        float(jnp.max(jnp.abs(dec_logits - ref_logits)))
    for got, ref in zip(enc_self_attns + dec_self_attns + dec_enc_attns,
                        ref_ea + ref_dsa + ref_dca):
        assert bool(jnp.allclose(got, ref, atol=2e-2)), float(jnp.max(jnp.abs(got - ref)))

    print("KERNEL_OK")
</pallas_src>

<mosaic_0001>
module attributes {stable_mosaic.version = 11 : i64} {
  func.func @_transformer_kernel(%arg0: i32, %arg1: memref<32x32xf32, #tpu.memory_space<vmem>>, %arg2: memref<32x32xf32, #tpu.memory_space<vmem>>, %arg3: memref<1x32x32xf32, #tpu.memory_space<vmem>>, %arg4: memref<1x32x32xf32, #tpu.memory_space<vmem>>, %arg5: memref<1x32x32xf32, #tpu.memory_space<vmem>>, %arg6: memref<6x32x32xf32, #tpu.memory_space<vmem>>, %arg7: memref<6x32x32xf32, #tpu.memory_space<vmem>>, %arg8: memref<6x32x32xf32, #tpu.memory_space<vmem>>, %arg9: memref<6x32x32xf32, #tpu.memory_space<vmem>>, %arg10: memref<4x32x64xf32, #tpu.memory_space<vmem>>, %arg11: memref<4x64x32xf32, #tpu.memory_space<vmem>>, %arg12: memref<48x32xf32, #tpu.memory_space<vmem>>, %arg13: memref<4x64xf32, #tpu.memory_space<vmem>>, %arg14: memref<32x128xf32, #tpu.memory_space<vmem>>, %arg15: memref<32x128xf32, #tpu.memory_space<vmem>>, %arg16: memref<2x1x32x128xf32, #tpu.memory_space<vmem>>, %arg17: memref<2x1x32x128xf32, #tpu.memory_space<vmem>>, %arg18: memref<2x1x32x128xf32, #tpu.memory_space<vmem>>) attributes {dimension_semantics = [#tpu.dimension_semantics<parallel>], iteration_bounds = array<i64: 2>, scalar_prefetch = 0 : i64, scratch_operands = 0 : i64, tpu.core_type = #tpu.core_type<tc>, window_params = [{transform_indices = @transform_0, window_bounds = array<i64: 32, 32>}, {transform_indices = @transform_1, window_bounds = array<i64: 32, 32>}, {transform_indices = @transform_2, window_bounds = array<i64: 1, 32, 32>}, {transform_indices = @transform_3, window_bounds = array<i64: 1, 32, 32>}, {transform_indices = @transform_4, window_bounds = array<i64: 1, 32, 32>}, {pipeline_mode = #tpu.pipeline_mode<synchronous>, transform_indices = @transform_5, window_bounds = array<i64: 6, 32, 32>}, {pipeline_mode = #tpu.pipeline_mode<synchronous>, transform_indices = @transform_6, window_bounds = array<i64: 6, 32, 32>}, {pipeline_mode = #tpu.pipeline_mode<synchronous>, transform_indices = @transform_7, window_bounds = array<i64: 6, 32, 32>}, {pipeline_mode = #tpu.pipeline_mode<synchronous>, transform_indices = @transform_8, window_bounds = array<i64: 6, 32, 32>}, {pipeline_mode = #tpu.pipeline_mode<synchronous>, transform_indices = @transform_9, window_bounds = array<i64: 4, 32, 64>}, {pipeline_mode = #tpu.pipeline_mode<synchronous>, transform_indices = @transform_10, window_bounds = array<i64: 4, 64, 32>}, {pipeline_mode = #tpu.pipeline_mode<synchronous>, transform_indices = @transform_11, window_bounds = array<i64: 48, 32>}, {pipeline_mode = #tpu.pipeline_mode<synchronous>, transform_indices = @transform_12, window_bounds = array<i64: 4, 64>}, {pipeline_mode = #tpu.pipeline_mode<synchronous>, transform_indices = @transform_13, window_bounds = array<i64: 32, 128>}, {transform_indices = @transform_14, window_bounds = array<i64: 32, 128>}, {transform_indices = @transform_15, window_bounds = array<i64: 2, 1, 32, 128>}, {transform_indices = @transform_16, window_bounds = array<i64: 2, 1, 32, 128>}, {transform_indices = @transform_17, window_bounds = array<i64: 2, 1, 32, 128>}]} {
    %c0 = arith.constant 0 : index
    %c0_0 = arith.constant 0 : index
    %0 = vector.load %arg1[%c0, %c0_0] : memref<32x32xf32, #tpu.memory_space<vmem>>, vector<32x32xf32>
    %c0_1 = arith.constant 0 : index
    %c0_2 = arith.constant 0 : index
    %1 = vector.load %arg2[%c0_1, %c0_2] : memref<32x32xf32, #tpu.memory_space<vmem>>, vector<32x32xf32>
    %c0_3 = arith.constant 0 : index
    %c0_4 = arith.constant 0 : index
    %c0_5 = arith.constant 0 : index
    %2 = vector.load %arg3[%c0_3, %c0_4, %c0_5] : memref<1x32x32xf32, #tpu.memory_space<vmem>>, vector<1x32x32xf32>
    %3 = vector.shape_cast %2 : vector<1x32x32xf32> to vector<32x32xf32>
    %c0_6 = arith.constant 0 : index
    %c0_7 = arith.constant 0 : index
    %c0_8 = arith.constant 0 : index
    %4 = vector.load %arg4[%c0_6, %c0_7, %c0_8] : memref<1x32x32xf32, #tpu.memory_space<vmem>>, vector<1x32x32xf32>
    %5 = vector.shape_cast %4 : vector<1x32x32xf32> to vector<32x32xf32>
    %c0_9 = arith.constant 0 : index
    %c0_10 = arith.constant 0 : index
    %c0_11 = arith.constant 0 : index
    %6 = vector.load %arg5[%c0_9, %c0_10, %c0_11] : memref<1x32x32xf32, #tpu.memory_space<vmem>>, vector<1x32x32xf32>
    %7 = vector.shape_cast %6 : vector<1x32x32xf32> to vector<32x32xf32>
    %c0_12 = arith.constant 0 : index
    %c0_13 = arith.constant 0 : index
    %c0_14 = arith.constant 0 : index
    %8 = vector.load %arg6[%c0_12, %c0_13, %c0_14] : memref<6x32x32xf32, #tpu.memory_space<vmem>>, vector<1x32x32xf32>
    %9 = vector.shape_cast %8 : vector<1x32x32xf32> to vector<32x32xf32>
    %cst = arith.constant dense<0.000000e+00> : vector<32x32xf32>
    %10 = tpu.matmul %0, %9, %cst {dimension_numbers = #tpu.dot_dimension_numbers<[1], [0], [0], [1], [0, 0, 1, 1], [], []>} : vector<32x32xf32>, vector<32x32xf32>, vector<32x32xf32> -> vector<32x32xf32>
    %c0_15 = arith.constant 0 : index
    %c0_16 = arith.constant 0 : index
    %11 = vector.load %arg12[%c0_15, %c0_16] : memref<48x32xf32, #tpu.memory_space<vmem>>, vector<1x32xf32>
    %12 = vector.broadcast %11 : vector<1x32xf32> to vector<32x32xf32>
    %13 = arith.addf %10, %12 : vector<32x32xf32>
    %c0_17 = arith.constant 0 : index
    %c0_18 = arith.constant 0 : index
    %c0_19 = arith.constant 0 : index
    %14 = vector.load %arg7[%c0_17, %c0_18, %c0_19] : memref<6x32x32xf32, #tpu.memory_space<vmem>>, vector<1x32x32xf32>
    %15 = vector.shape_cast %14 : vector<1x32x32xf32> to vector<32x32xf32>
    %cst_20 = arith.constant dense<0.000000e+00> : vector<32x32xf32>
    %16 = tpu.matmul %0, %15, %cst_20 {dimension_numbers = #tpu.dot_dimension_numbers<[1], [0], [0], [1], [0, 0, 1, 1], [], []>} : vector<32x32xf32>, vector<32x32xf32>, vector<32x32xf32> -> vector<32x32xf32>
    %c1 = arith.constant 1 : index
    %c0_21 = arith.constant 0 : index
    %17 = vector.load %arg12[%c1, %c0_21] : memref<48x32xf32, #tpu.memory_space<vmem>>, vector<1x32xf32>
    %18 = vector.broadcast %17 : vector<1x32xf32> to vector<32x32xf32>
    %19 = arith.addf %16, %18 : vector<32x32xf32>
    %c0_22 = arith.constant 0 : index
    %c0_23 = arith.constant 0 : index
    %c0_24 = arith.constant 0 : index
    %20 = vector.load %arg8[%c0_22, %c0_23, %c0_24] : memref<6x32x32xf32, #tpu.memory_space<vmem>>, vector<1x32x32xf32>
    %21 = vector.shape_cast %20 : vector<1x32x32xf32> to vector<32x32xf32>
    %cst_25 = arith.constant dense<0.000000e+00> : vector<32x32xf32>
    %22 = tpu.matmul %0, %21, %cst_25 {dimension_numbers = #tpu.dot_dimension_numbers<[1], [0], [0], [1], [0, 0, 1, 1], [], []>} : vector<32x32xf32>, vector<32x32xf32>, vector<32x32xf32> -> vector<32x32xf32>
    %c2 = arith.constant 2 : index
    %c0_26 = arith.constant 0 : index
    %23 = vector.load %arg12[%c2, %c0_26] : memref<48x32xf32, #tpu.memory_space<vmem>>, vector<1x32xf32>
    %24 = vector.broadcast %23 : vector<1x32xf32> to vector<32x32xf32>
    %25 = arith.addf %22, %24 : vector<32x32xf32>
    %26 = tpu.transpose %19, [1, 0] : vector<32x32xf32> -> vector<32x32xf32>
    %27 = vector.extract_strided_slice %13 {offsets = [0, 0], sizes = [32, 8], strides = [1, 1]} : vector<32x32xf32> to vector<32x8xf32>
    %28 = vector.extract_strided_slice %26 {offsets = [0, 0], sizes = [8, 32], strides = [1, 1]} : vector<32x32xf32> to vector<8x32xf32>
    %cst_27 = arith.constant dense<0.000000e+00> : vector<32x32xf32>
    %29 = tpu.matmul %27, %28, %cst_27 {dimension_numbers = #tpu.dot_dimension_numbers<[1], [0], [0], [1], [0, 0, 1, 1], [], []>} : vector<32x8xf32>, vector<8x32xf32>, vector<32x32xf32> -> vector<32x32xf32>
    %cst_28 = arith.constant 0.353553385 : f32
    %30 = vector.broadcast %cst_28 : f32 to vector<32x32xf32>
    %31 = arith.mulf %29, %30 : vector<32x32xf32>
    %32 = arith.addf %31, %3 : vector<32x32xf32>
    %cst_29 = arith.constant dense<0xFF800000> : vector<32xf32>
    %33 = vector.multi_reduction <maximumf>, %32, %cst_29 [1] : vector<32x32xf32> to vector<32xf32>
    %34 = vector.shape_cast %33 : vector<32xf32> to vector<32x1xf32>
    %35 = vector.broadcast %34 : vector<32x1xf32> to vector<32x32xf32>
    %36 = arith.subf %32, %35 : vector<32x32xf32>
    %37 = math.exp %36 : vector<32x32xf32>
    %cst_30 = arith.constant dense<0.000000e+00> : vector<32xf32>
    %38 = vector.multi_reduction <add>, %37, %cst_30 [1] : vector<32x32xf32> to vector<32xf32>
    %39 = vector.shape_cast %38 : vector<32xf32> to vector<32x1xf32>
    %40 = vector.broadcast %39 : vector<32x1xf32> to vector<32x32xf32>
    %41 = arith.divf %37, %40 : vector<32x32xf32>
    %42 = vector.extract_strided_slice %25 {offsets = [0, 0], sizes = [32, 8], strides = [1, 1]} : vector<32x32xf32> to vector<32x8xf32>
    %cst_31 = arith.constant dense<0.000000e+00> : vector<32x8xf32>
    %43 = tpu.matmul %41, %42, %cst_31 {dimension_numbers = #tpu.dot_dimension_numbers<[1], [0], [0], [1], [0, 0, 1, 1], [], []>} : vector<32x32xf32>, vector<32x8xf32>, vector<32x8xf32> -> vector<32x8xf32>
    %44 = vector.extract_strided_slice %13 {offsets = [0, 8], sizes = [32, 8], strides = [1, 1]} : vector<32x32xf32> to vector<32x8xf32>
    %45 = vector.extract_strided_slice %26 {offsets = [8, 0], sizes = [8, 32], strides = [1, 1]} : vector<32x32xf32> to vector<8x32xf32>
    %cst_32 = arith.constant dense<0.000000e+00> : vector<32x32xf32>
    %46 = tpu.matmul %44, %45, %cst_32 {dimension_numbers = #tpu.dot_dimension_numbers<[1], [0], [0], [1], [0, 0, 1, 1], [], []>} : vector<32x8xf32>, vector<8x32xf32>, vector<32x32xf32> -> vector<32x32xf32>
    %cst_33 = arith.constant 0.353553385 : f32
    %47 = vector.broadcast %cst_33 : f32 to vector<32x32xf32>
    %48 = arith.mulf %46, %47 : vector<32x32xf32>
    %49 = arith.addf %48, %3 : vector<32x32xf32>
    %cst_34 = arith.constant dense<0xFF800000> : vector<32xf32>
    %50 = vector.multi_reduction <maximumf>, %49, %cst_34 [1] : vector<32x32xf32> to vector<32xf32>
    %51 = vector.shape_cast %50 : vector<32xf32> to vector<32x1xf32>
    %52 = vector.broadcast %51 : vector<32x1xf32> to vector<32x32xf32>
    %53 = arith.subf %49, %52 : vector<32x32xf32>
    %54 = math.exp %53 : vector<32x32xf32>
    %cst_35 = arith.constant dense<0.000000e+00> : vector<32xf32>
    %55 = vector.multi_reduction <add>, %54, %cst_35 [1] : vector<32x32xf32> to vector<32xf32>
    %56 = vector.shape_cast %55 : vector<32xf32> to vector<32x1xf32>
    %57 = vector.broadcast %56 : vector<32x1xf32> to vector<32x32xf32>
    %58 = arith.divf %54, %57 : vector<32x32xf32>
    %59 = vector.extract_strided_slice %25 {offsets = [0, 8], sizes = [32, 8], strides = [1, 1]} : vector<32x32xf32> to vector<32x8xf32>
    %cst_36 = arith.constant dense<0.000000e+00> : vector<32x8xf32>
    %60 = tpu.matmul %58, %59, %cst_36 {dimension_numbers = #tpu.dot_dimension_numbers<[1], [0], [0], [1], [0, 0, 1, 1], [], []>} : vector<32x32xf32>, vector<32x8xf32>, vector<32x8xf32> -> vector<32x8xf32>
    %61 = vector.extract_strided_slice %13 {offsets = [0, 16], sizes = [32, 8], strides = [1, 1]} : vector<32x32xf32> to vector<32x8xf32>
    %62 = vector.extract_strided_slice %26 {offsets = [16, 0], sizes = [8, 32], strides = [1, 1]} : vector<32x32xf32> to vector<8x32xf32>
    %cst_37 = arith.constant dense<0.000000e+00> : vector<32x32xf32>
    %63 = tpu.matmul %61, %62, %cst_37 {dimension_numbers = #tpu.dot_dimension_numbers<[1], [0], [0], [1], [0, 0, 1, 1], [], []>} : vector<32x8xf32>, vector<8x32xf32>, vector<32x32xf32> -> vector<32x32xf32>
    %cst_38 = arith.constant 0.353553385 : f32
    %64 = vector.broadcast %cst_38 : f32 to vector<32x32xf32>
    %65 = arith.mulf %63, %64 : vector<32x32xf32>
    %66 = arith.addf %65, %3 : vector<32x32xf32>
    %cst_39 = arith.constant dense<0xFF800000> : vector<32xf32>
    %67 = vector.multi_reduction <maximumf>, %66, %cst_39 [1] : vector<32x32xf32> to vector<32xf32>
    %68 = vector.shape_cast %67 : vector<32xf32> to vector<32x1xf32>
    %69 = vector.broadcast %68 : vector<32x1xf32> to vector<32x32xf32>
    %70 = arith.subf %66, %69 : vector<32x32xf32>
    %71 = math.exp %70 : vector<32x32xf32>
    %cst_40 = arith.constant dense<0.000000e+00> : vector<32xf32>
    %72 = vector.multi_reduction <add>, %71, %cst_40 [1] : vector<32x32xf32> to vector<32xf32>
    %73 = vector.shape_cast %72 : vector<32xf32> to vector<32x1xf32>
    %74 = vector.broadcast %73 : vector<32x1xf32> to vector<32x32xf32>
    %75 = arith.divf %71, %74 : vector<32x32xf32>
    %76 = vector.extract_strided_slice %25 {offsets = [0, 16], sizes = [32, 8], strides = [1, 1]} : vector<32x32xf32> to vector<32x8xf32>
    %cst_41 = arith.constant dense<0.000000e+00> : vector<32x8xf32>
    %77 = tpu.matmul %75, %76, %cst_41 {dimension_numbers = #tpu.dot_dimension_numbers<[1], [0], [0], [1], [0, 0, 1, 1], [], []>} : vector<32x32xf32>, vector<32x8xf32>, vector<32x8xf32> -> vector<32x8xf32>
    %78 = vector.extract_strided_slice %13 {offsets = [0, 24], sizes = [32, 8], strides = [1, 1]} : vector<32x32xf32> to vector<32x8xf32>
    %79 = vector.extract_strided_slice %26 {offsets = [24, 0], sizes = [8, 32], strides = [1, 1]} : vector<32x32xf32> to vector<8x32xf32>
    %cst_42 = arith.constant dense<0.000000e+00> : vector<32x32xf32>
    %80 = tpu.matmul %78, %79, %cst_42 {dimension_numbers = #tpu.dot_dimension_numbers<[1], [0], [0], [1], [0, 0, 1, 1], [], []>} : vector<32x8xf32>, vector<8x32xf32>, vector<32x32xf32> -> vector<32x32xf32>
    %cst_43 = arith.constant 0.353553385 : f32
    %81 = vector.broadcast %cst_43 : f32 to vector<32x32xf32>
    %82 = arith.mulf %80, %81 : vector<32x32xf32>
    %83 = arith.addf %82, %3 : vector<32x32xf32>
    %cst_44 = arith.constant dense<0xFF800000> : vector<32xf32>
    %84 = vector.multi_reduction <maximumf>, %83, %cst_44 [1] : vector<32x32xf32> to vector<32xf32>
    %85 = vector.shape_cast %84 : vector<32xf32> to vector<32x1xf32>
    %86 = vector.broadcast %85 : vector<32x1xf32> to vector<32x32xf32>
    %87 = arith.subf %83, %86 : vector<32x32xf32>
    %88 = math.exp %87 : vector<32x32xf32>
    %cst_45 = arith.constant dense<0.000000e+00> : vector<32xf32>
    %89 = vector.multi_reduction <add>, %88, %cst_45 [1] : vector<32x32xf32> to vector<32xf32>
    %90 = vector.shape_cast %89 : vector<32xf32> to vector<32x1xf32>
    %91 = vector.broadcast %90 : vector<32x1xf32> to vector<32x32xf32>
    %92 = arith.divf %88, %91 : vector<32x32xf32>
    %93 = vector.extract_strided_slice %25 {offsets = [0, 24], sizes = [32, 8], strides = [1, 1]} : vector<32x32xf32> to vector<32x8xf32>
    %cst_46 = arith.constant dense<0.000000e+00> : vector<32x8xf32>
    %94 = tpu.matmul %92, %93, %cst_46 {dimension_numbers = #tpu.dot_dimension_numbers<[1], [0], [0], [1], [0, 0, 1, 1], [], []>} : vector<32x32xf32>, vector<32x8xf32>, vector<32x8xf32> -> vector<32x8xf32>
    %95 = tpu.concatenate %41, %58, %75, %92 in 1 : vector<32x32xf32>, vector<32x32xf32>, vector<32x32xf32>, vector<32x32xf32> -> vector<32x128xf32>
    %96 = tpu.concatenate %43, %60, %77, %94 in 1 : vector<32x8xf32>, vector<32x8xf32>, vector<32x8xf32>, vector<32x8xf32> -> vector<32x32xf32>
    %c0_47 = arith.constant 0 : index
    %c0_48 = arith.constant 0 : index
    %c0_49 = arith.constant 0 : index
    %97 = vector.load %arg9[%c0_47, %c0_48, %c0_49] : memref<6x32x32xf32, #tpu.memory_space<vmem>>, vector<1x32x32xf32>
    %98 = vector.shape_cast %97 : vector<1x32x32xf32> to vector<32x32xf32>
    %cst_50 = arith.constant dense<0.000000e+00> : vector<32x32xf32>
    %99 = tpu.matmul %96, %98, %cst_50 {dimension_numbers = #tpu.dot_dimension_numbers<[1], [0], [0], [1], [0, 0, 1, 1], [], []>} : vector<32x32xf32>, vector<32x32xf32>, vector<32x32xf32> -> vector<32x32xf32>
    %c3 = arith.constant 3 : index
    %c0_51 = arith.constant 0 : index
    %100 = vector.load %arg12[%c3, %c0_51] : memref<48x32xf32, #tpu.memory_space<vmem>>, vector<1x32xf32>
    %101 = vector.broadcast %100 : vector<1x32xf32> to vector<32x32xf32>
    %102 = arith.addf %99, %101 : vector<32x32xf32>
    %103 = arith.addf %102, %0 : vector<32x32xf32>
    %c4 = arith.constant 4 : index
    %c0_52 = arith.constant 0 : index
    %104 = vector.load %arg12[%c4, %c0_52] : memref<48x32xf32, #tpu.memory_space<vmem>>, vector<1x32xf32>
    %c5 = arith.constant 5 : index
    %c0_53 = arith.constant 0 : index
    %105 = vector.load %arg12[%c5, %c0_53] : memref<48x32xf32, #tpu.memory_space<vmem>>, vector<1x32xf32>
    %cst_54 = arith.constant dense<0.000000e+00> : vector<32xf32>
    %106 = vector.multi_reduction <add>, %103, %cst_54 [1] : vector<32x32xf32> to vector<32xf32>
    %107 = vector.shape_cast %106 : vector<32xf32> to vector<32x1xf32>
    %cst_55 = arith.constant 3.200000e+01 : f32
    %108 = vector.broadcast %cst_55 : f32 to vector<32x1xf32>
    %109 = arith.divf %107, %108 : vector<32x1xf32>
    %110 = vector.broadcast %109 : vector<32x1xf32> to vector<32x32xf32>
    %111 = arith.subf %103, %110 : vector<32x32xf32>
    %112 = arith.mulf %111, %111 : vector<32x32xf32>
    %cst_56 = arith.constant dense<0.000000e+00> : vector<32xf32>
    %113 = vector.multi_reduction <add>, %112, %cst_56 [1] : vector<32x32xf32> to vector<32xf32>
    %114 = vector.shape_cast %113 : vector<32xf32> to vector<32x1xf32>
    %cst_57 = arith.constant 3.200000e+01 : f32
    %115 = vector.broadcast %cst_57 : f32 to vector<32x1xf32>
    %116 = arith.divf %114, %115 : vector<32x1xf32>
    %117 = vector.broadcast %109 : vector<32x1xf32> to vector<32x32xf32>
    %118 = arith.subf %103, %117 : vector<32x32xf32>
    %cst_58 = arith.constant 9.99999974E-6 : f32
    %119 = vector.broadcast %cst_58 : f32 to vector<32x1xf32>
    %120 = arith.addf %116, %119 : vector<32x1xf32>
    %121 = math.rsqrt %120 : vector<32x1xf32>
    %122 = vector.broadcast %121 : vector<32x1xf32> to vector<32x32xf32>
    %123 = arith.mulf %118, %122 : vector<32x32xf32>
    %124 = vector.broadcast %104 : vector<1x32xf32> to vector<32x32xf32>
    %125 = arith.mulf %123, %124 : vector<32x32xf32>
    %126 = vector.broadcast %105 : vector<1x32xf32> to vector<32x32xf32>
    %127 = arith.addf %125, %126 : vector<32x32xf32>
    %c0_59 = arith.constant 0 : index
    %c0_60 = arith.constant 0 : index
    %c0_61 = arith.constant 0 : index
    %c0_62 = arith.constant 0 : index
    %128 = vector.load %arg16[%c0_59, %c0_60, %c0_61, %c0_62] : memref<2x1x32x128xf32, #tpu.memory_space<vmem>>, vector<1x1x32x128xf32>
    %129 = vector.shape_cast %128 : vector<1x1x32x128xf32> to vector<32x128xf32>
    %130 = vector.shape_cast %95 : vector<32x128xf32> to vector<1x1x32x128xf32>
    tpu.vector_store %arg16[%c0_59, %c0_60, %c0_61, %c0_62], %130 {strides = array<i32>} : memref<2x1x32x128xf32, #tpu.memory_space<vmem>>, vector<1x1x32x128xf32>,
    %c0_63 = arith.constant 0 : index
    %c0_64 = arith.constant 0 : index
    %c0_65 = arith.constant 0 : index
    %131 = vector.load %arg10[%c0_63, %c0_64, %c0_65] : memref<4x32x64xf32, #tpu.memory_space<vmem>>, vector<1x32x64xf32>
    %132 = vector.shape_cast %131 : vector<1x32x64xf32> to vector<32x64xf32>
    %cst_66 = arith.constant dense<0.000000e+00> : vector<32x64xf32>
    %133 = tpu.matmul %127, %132, %cst_66 {dimension_numbers = #tpu.dot_dimension_numbers<[1], [0], [0], [1], [0, 0, 1, 1], [], []>} : vector<32x32xf32>, vector<32x64xf32>, vector<32x64xf32> -> vector<32x64xf32>
    %c0_67 = arith.constant 0 : index
    %c0_68 = arith.constant 0 : index
    %134 = vector.load %arg13[%c0_67, %c0_68] : memref<4x64xf32, #tpu.memory_space<vmem>>, vector<1x64xf32>
    %135 = vector.broadcast %134 : vector<1x64xf32> to vector<32x64xf32>
    %136 = arith.addf %133, %135 : vector<32x64xf32>
    %cst_69 = arith.constant 0.000000e+00 : f32
    %137 = vector.broadcast %cst_69 : f32 to vector<32x64xf32>
    %138 = arith.maximumf %136, %137 : vector<32x64xf32>
    %c0_70 = arith.constant 0 : index
    %c0_71 = arith.constant 0 : index
    %c0_72 = arith.constant 0 : index
    %139 = vector.load %arg11[%c0_70, %c0_71, %c0_72] : memref<4x64x32xf32, #tpu.memory_space<vmem>>, vector<1x64x32xf32>
    %140 = vector.shape_cast %139 : vector<1x64x32xf32> to vector<64x32xf32>
    %cst_73 = arith.constant dense<0.000000e+00> : vector<32x32xf32>
    %141 = tpu.matmul %138, %140, %cst_73 {dimension_numbers = #tpu.dot_dimension_numbers<[1], [0], [0], [1], [0, 0, 1, 1], [], []>} : vector<32x64xf32>, vector<64x32xf32>, vector<32x32xf32> -> vector<32x32xf32>
    %c36 = arith.constant 36 : index
    %c0_74 = arith.constant 0 : index
    %142 = vector.load %arg12[%c36, %c0_74] : memref<48x32xf32, #tpu.memory_space<vmem>>, vector<1x32xf32>
    %143 = vector.broadcast %142 : vector<1x32xf32> to vector<32x32xf32>
    %144 = arith.addf %141, %143 : vector<32x32xf32>
    %145 = arith.addf %144, %127 : vector<32x32xf32>
    %c37 = arith.constant 37 : index
    %c0_75 = arith.constant 0 : index
    %146 = vector.load %arg12[%c37, %c0_75] : memref<48x32xf32, #tpu.memory_space<vmem>>, vector<1x32xf32>
    %c38 = arith.constant 38 : index
    %c0_76 = arith.constant 0 : index
    %147 = vector.load %arg12[%c38, %c0_76] : memref<48x32xf32, #tpu.memory_space<vmem>>, vector<1x32xf32>
    %cst_77 = arith.constant dense<0.000000e+00> : vector<32xf32>
    %148 = vector.multi_reduction <add>, %145, %cst_77 [1] : vector<32x32xf32> to vector<32xf32>
    %149 = vector.shape_cast %148 : vector<32xf32> to vector<32x1xf32>
    %cst_78 = arith.constant 3.200000e+01 : f32
    %150 = vector.broadcast %cst_78 : f32 to vector<32x1xf32>
    %151 = arith.divf %149, %150 : vector<32x1xf32>
    %152 = vector.broadcast %151 : vector<32x1xf32> to vector<32x32xf32>
    %153 = arith.subf %145, %152 : vector<32x32xf32>
    %154 = arith.mulf %153, %153 : vector<32x32xf32>
    %cst_79 = arith.constant dense<0.000000e+00> : vector<32xf32>
    %155 = vector.multi_reduction <add>, %154, %cst_79 [1] : vector<32x32xf32> to vector<32xf32>
    %156 = vector.shape_cast %155 : vector<32xf32> to vector<32x1xf32>
    %cst_80 = arith.constant 3.200000e+01 : f32
    %157 = vector.broadcast %cst_80 : f32 to vector<32x1xf32>
    %158 = arith.divf %156, %157 : vector<32x1xf32>
    %159 = vector.broadcast %151 : vector<32x1xf32> to vector<32x32xf32>
    %160 = arith.subf %145, %159 : vector<32x32xf32>
    %cst_81 = arith.constant 9.99999974E-6 : f32
    %161 = vector.broadcast %cst_81 : f32 to vector<32x1xf32>
    %162 = arith.addf %158, %161 : vector<32x1xf32>
    %163 = math.rsqrt %162 : vector<32x1xf32>
    %164 = vector.broadcast %163 : vector<32x1xf32> to vector<32x32xf32>
    %165 = arith.mulf %160, %164 : vector<32x32xf32>
    %166 = vector.broadcast %146 : vector<1x32xf32> to vector<32x32xf32>
    %167 = arith.mulf %165, %166 : vector<32x32xf32>
    %168 = vector.broadcast %147 : vector<1x32xf32> to vector<32x32xf32>
    %169 = arith.addf %167, %168 : vector<32x32xf32>
    %c1_82 = arith.constant 1 : index
    %c0_83 = arith.constant 0 : index
    %c0_84 = arith.constant 0 : index
    %170 = vector.load %arg6[%c1_82, %c0_83, %c0_84] : memref<6x32x32xf32, #tpu.memory_space<vmem>>, vector<1x32x32xf32>
    %171 = vector.shape_cast %170 : vector<1x32x32xf32> to vector<32x32xf32>
    %cst_85 = arith.constant dense<0.000000e+00> : vector<32x32xf32>
    %172 = tpu.matmul %169, %171, %cst_85 {dimension_numbers = #tpu.dot_dimension_numbers<[1], [0], [0], [1], [0, 0, 1, 1], [], []>} : vector<32x32xf32>, vector<32x32xf32>, vector<32x32xf32> -> vector<32x32xf32>
    %c6 = arith.constant 6 : index
    %c0_86 = arith.constant 0 : index
    %173 = vector.load %arg12[%c6, %c0_86] : memref<48x32xf32, #tpu.memory_space<vmem>>, vector<1x32xf32>
    %174 = vector.broadcast %173 : vector<1x32xf32> to vector<32x32xf32>
    %175 = arith.addf %172, %174 : vector<32x32xf32>
    %c1_87 = arith.constant 1 : index
    %c0_88 = arith.constant 0 : index
    %c0_89 = arith.constant 0 : index
    %176 = vector.load %arg7[%c1_87, %c0_88, %c0_89] : memref<6x32x32xf32, #tpu.memory_space<vmem>>, vector<1x32x32xf32>
    %177 = vector.shape_cast %176 : vector<1x32x32xf32> to vector<32x32xf32>
    %cst_90 = arith.constant dense<0.000000e+00> : vector<32x32xf32>
    %178 = tpu.matmul %169, %177, %cst_90 {dimension_numbers = #tpu.dot_dimension_numbers<[1], [0], [0], [1], [0, 0, 1, 1], [], []>} : vector<32x32xf32>, vector<32x32xf32>, vector<32x32xf32> -> vector<32x32xf32>
    %c7 = arith.constant 7 : index
    %c0_91 = arith.constant 0 : index
    %179 = vector.load %arg12[%c7, %c0_91] : memref<48x32xf32, #tpu.memory_space<vmem>>, vector<1x32xf32>
    %180 = vector.broadcast %179 : vector<1x32xf32> to vector<32x32xf32>
    %181 = arith.addf %178, %180 : vector<32x32xf32>
    %c1_92 = arith.constant 1 : index
    %c0_93 = arith.constant 0 : index
    %c0_94 = arith.constant 0 : index
    %182 = vector.load %arg8[%c1_92, %c0_93, %c0_94] : memref<6x32x32xf32, #tpu.memory_space<vmem>>, vector<1x32x32xf32>
    %183 = vector.shape_cast %182 : vector<1x32x32xf32> to vector<32x32xf32>
    %cst_95 = arith.constant dense<0.000000e+00> : vector<32x32xf32>
    %184 = tpu.matmul %169, %183, %cst_95 {dimension_numbers = #tpu.dot_dimension_numbers<[1], [0], [0], [1], [0, 0, 1, 1], [], []>} : vector<32x32xf32>, vector<32x32xf32>, vector<32x32xf32> -> vector<32x32xf32>
    %c8 = arith.constant 8 : index
    %c0_96 = arith.constant 0 : index
    %185 = vector.load %arg12[%c8, %c0_96] : memref<48x32xf32, #tpu.memory_space<vmem>>, vector<1x32xf32>
    %186 = vector.broadcast %185 : vector<1x32xf32> to vector<32x32xf32>
    %187 = arith.addf %184, %186 : vector<32x32xf32>
    %188 = tpu.transpose %181, [1, 0] : vector<32x32xf32> -> vector<32x32xf32>
    %189 = vector.extract_strided_slice %175 {offsets = [0, 0], sizes = [32, 8], strides = [1, 1]} : vector<32x32xf32> to vector<32x8xf32>
    %190 = vector.extract_strided_slice %188 {offsets = [0, 0], sizes = [8, 32], strides = [1, 1]} : vector<32x32xf32> to vector<8x32xf32>
    %cst_97 = arith.constant dense<0.000000e+00> : vector<32x32xf32>
    %191 = tpu.matmul %189, %190, %cst_97 {dimension_numbers = #tpu.dot_dimension_numbers<[1], [0], [0], [1], [0, 0, 1, 1], [], []>} : vector<32x8xf32>, vector<8x32xf32>, vector<32x32xf32> -> vector<32x32xf32>
    %cst_98 = arith.constant 0.353553385 : f32
    %192 = vector.broadcast %cst_98 : f32 to vector<32x32xf32>
    %193 = arith.mulf %191, %192 : vector<32x32xf32>
    %194 = arith.addf %193, %3 : vector<32x32xf32>
    %cst_99 = arith.constant dense<0xFF800000> : vector<32xf32>
    %195 = vector.multi_reduction <maximumf>, %194, %cst_99 [1] : vector<32x32xf32> to vector<32xf32>
    %196 = vector.shape_cast %195 : vector<32xf32> to vector<32x1xf32>
    %197 = vector.broadcast %196 : vector<32x1xf32> to vector<32x32xf32>
    %198 = arith.subf %194, %197 : vector<32x32xf32>
    %199 = math.exp %198 : vector<32x32xf32>
    %cst_100 = arith.constant dense<0.000000e+00> : vector<32xf32>
    %200 = vector.multi_reduction <add>, %199, %cst_100 [1] : vector<32x32xf32> to vector<32xf32>
    %201 = vector.shape_cast %200 : vector<32xf32> to vector<32x1xf32>
    %202 = vector.broadcast %201 : vector<32x1xf32> to vector<32x32xf32>
    %203 = arith.divf %199, %202 : vector<32x32xf32>
    %204 = vector.extract_strided_slice %187 {offsets = [0, 0], sizes = [32, 8], strides = [1, 1]} : vector<32x32xf32> to vector<32x8xf32>
    %cst_101 = arith.constant dense<0.000000e+00> : vector<32x8xf32>
    %205 = tpu.matmul %203, %204, %cst_101 {dimension_numbers = #tpu.dot_dimension_numbers<[1], [0], [0], [1], [0, 0, 1, 1], [], []>} : vector<32x32xf32>, vector<32x8xf32>, vector<32x8xf32> -> vector<32x8xf32>
    %206 = vector.extract_strided_slice %175 {offsets = [0, 8], sizes = [32, 8], strides = [1, 1]} : vector<32x32xf32> to vector<32x8xf32>
    %207 = vector.extract_strided_slice %188 {offsets = [8, 0], sizes = [8, 32], strides = [1, 1]} : vector<32x32xf32> to vector<8x32xf32>
    %cst_102 = arith.constant dense<0.000000e+00> : vector<32x32xf32>
    %208 = tpu.matmul %206, %207, %cst_102 {dimension_numbers = #tpu.dot_dimension_numbers<[1], [0], [0], [1], [0, 0, 1, 1], [], []>} : vector<32x8xf32>, vector<8x32xf32>, vector<32x32xf32> -> vector<32x32xf32>
    %cst_103 = arith.constant 0.353553385 : f32
    %209 = vector.broadcast %cst_103 : f32 to vector<32x32xf32>
    %210 = arith.mulf %208, %209 : vector<32x32xf32>
    %211 = arith.addf %210, %3 : vector<32x32xf32>
    %cst_104 = arith.constant dense<0xFF800000> : vector<32xf32>
    %212 = vector.multi_reduction <maximumf>, %211, %cst_104 [1] : vector<32x32xf32> to vector<32xf32>
    %213 = vector.shape_cast %212 : vector<32xf32> to vector<32x1xf32>
    %214 = vector.broadcast %213 : vector<32x1xf32> to vector<32x32xf32>
    %215 = arith.subf %211, %214 : vector<32x32xf32>
    %216 = math.exp %215 : vector<32x32xf32>
    %cst_105 = arith.constant dense<0.000000e+00> : vector<32xf32>
    %217 = vector.multi_reduction <add>, %216, %cst_105 [1] : vector<32x32xf32> to vector<32xf32>
    %218 = vector.shape_cast %217 : vector<32xf32> to vector<32x1xf32>
    %219 = vector.broadcast %218 : vector<32x1xf32> to vector<32x32xf32>
    %220 = arith.divf %216, %219 : vector<32x32xf32>
    %221 = vector.extract_strided_slice %187 {offsets = [0, 8], sizes = [32, 8], strides = [1, 1]} : vector<32x32xf32> to vector<32x8xf32>
    %cst_106 = arith.constant dense<0.000000e+00> : vector<32x8xf32>
    %222 = tpu.matmul %220, %221, %cst_106 {dimension_numbers = #tpu.dot_dimension_numbers<[1], [0], [0], [1], [0, 0, 1, 1], [], []>} : vector<32x32xf32>, vector<32x8xf32>, vector<32x8xf32> -> vector<32x8xf32>
    %223 = vector.extract_strided_slice %175 {offsets = [0, 16], sizes = [32, 8], strides = [1, 1]} : vector<32x32xf32> to vector<32x8xf32>
    %224 = vector.extract_strided_slice %188 {offsets = [16, 0], sizes = [8, 32], strides = [1, 1]} : vector<32x32xf32> to vector<8x32xf32>
    %cst_107 = arith.constant dense<0.000000e+00> : vector<32x32xf32>
    %225 = tpu.matmul %223, %224, %cst_107 {dimension_numbers = #tpu.dot_dimension_numbers<[1], [0], [0], [1], [0, 0, 1, 1], [], []>} : vector<32x8xf32>, vector<8x32xf32>, vector<32x32xf32> -> vector<32x32xf32>
    %cst_108 = arith.constant 0.353553385 : f32
    %226 = vector.broadcast %cst_108 : f32 to vector<32x32xf32>
    %227 = arith.mulf %225, %226 : vector<32x32xf32>
    %228 = arith.addf %227, %3 : vector<32x32xf32>
    %cst_109 = arith.constant dense<0xFF800000> : vector<32xf32>
    %229 = vector.multi_reduction <maximumf>, %228, %cst_109 [1] : vector<32x32xf32> to vector<32xf32>
    %230 = vector.shape_cast %229 : vector<32xf32> to vector<32x1xf32>
    %231 = vector.broadcast %230 : vector<32x1xf32> to vector<32x32xf32>
    %232 = arith.subf %228, %231 : vector<32x32xf32>
    %233 = math.exp %232 : vector<32x32xf32>
    %cst_110 = arith.constant dense<0.000000e+00> : vector<32xf32>
    %234 = vector.multi_reduction <add>, %233, %cst_110 [1] : vector<32x32xf32> to vector<32xf32>
    %235 = vector.shape_cast %234 : vector<32xf32> to vector<32x1xf32>
    %236 = vector.broadcast %235 : vector<32x1xf32> to vector<32x32xf32>
    %237 = arith.divf %233, %236 : vector<32x32xf32>
    %238 = vector.extract_strided_slice %187 {offsets = [0, 16], sizes = [32, 8], strides = [1, 1]} : vector<32x32xf32> to vector<32x8xf32>
    %cst_111 = arith.constant dense<0.000000e+00> : vector<32x8xf32>
    %239 = tpu.matmul %237, %238, %cst_111 {dimension_numbers = #tpu.dot_dimension_numbers<[1], [0], [0], [1], [0, 0, 1, 1], [], []>} : vector<32x32xf32>, vector<32x8xf32>, vector<32x8xf32> -> vector<32x8xf32>
    %240 = vector.extract_strided_slice %175 {offsets = [0, 24], sizes = [32, 8], strides = [1, 1]} : vector<32x32xf32> to vector<32x8xf32>
    %241 = vector.extract_strided_slice %188 {offsets = [24, 0], sizes = [8, 32], strides = [1, 1]} : vector<32x32xf32> to vector<8x32xf32>
    %cst_112 = arith.constant dense<0.000000e+00> : vector<32x32xf32>
    %242 = tpu.matmul %240, %241, %cst_112 {dimension_numbers = #tpu.dot_dimension_numbers<[1], [0], [0], [1], [0, 0, 1, 1], [], []>} : vector<32x8xf32>, vector<8x32xf32>, vector<32x32xf32> -> vector<32x32xf32>
    %cst_113 = arith.constant 0.353553385 : f32
    %243 = vector.broadcast %cst_113 : f32 to vector<32x32xf32>
    %244 = arith.mulf %242, %243 : vector<32x32xf32>
    %245 = arith.addf %244, %3 : vector<32x32xf32>
    %cst_114 = arith.constant dense<0xFF800000> : vector<32xf32>
    %246 = vector.multi_reduction <maximumf>, %245, %cst_114 [1] : vector<32x32xf32> to vector<32xf32>
    %247 = vector.shape_cast %246 : vector<32xf32> to vector<32x1xf32>
    %248 = vector.broadcast %247 : vector<32x1xf32> to vector<32x32xf32>
    %249 = arith.subf %245, %248 : vector<32x32xf32>
    %250 = math.exp %249 : vector<32x32xf32>
    %cst_115 = arith.constant dense<0.000000e+00> : vector<32xf32>
    %251 = vector.multi_reduction <add>, %250, %cst_115 [1] : vector<32x32xf32> to vector<32xf32>
    %252 = vector.shape_cast %251 : vector<32xf32> to vector<32x1xf32>
    %253 = vector.broadcast %252 : vector<32x1xf32> to vector<32x32xf32>
    %254 = arith.divf %250, %253 : vector<32x32xf32>
    %255 = vector.extract_strided_slice %187 {offsets = [0, 24], sizes = [32, 8], strides = [1, 1]} : vector<32x32xf32> to vector<32x8xf32>
    %cst_116 = arith.constant dense<0.000000e+00> : vector<32x8xf32>
    %256 = tpu.matmul %254, %255, %cst_116 {dimension_numbers = #tpu.dot_dimension_numbers<[1], [0], [0], [1], [0, 0, 1, 1], [], []>} : vector<32x32xf32>, vector<32x8xf32>, vector<32x8xf32> -> vector<32x8xf32>
    %257 = tpu.concatenate %203, %220, %237, %254 in 1 : vector<32x32xf32>, vector<32x32xf32>, vector<32x32xf32>, vector<32x32xf32> -> vector<32x128xf32>
    %258 = tpu.concatenate %205, %222, %239, %256 in 1 : vector<32x8xf32>, vector<32x8xf32>, vector<32x8xf32>, vector<32x8xf32> -> vector<32x32xf32>
    %c1_117 = arith.constant 1 : index
    %c0_118 = arith.constant 0 : index
    %c0_119 = arith.constant 0 : index
    %259 = vector.load %arg9[%c1_117, %c0_118, %c0_119] : memref<6x32x32xf32, #tpu.memory_space<vmem>>, vector<1x32x32xf32>
    %260 = vector.shape_cast %259 : vector<1x32x32xf32> to vector<32x32xf32>
    %cst_120 = arith.constant dense<0.000000e+00> : vector<32x32xf32>
    %261 = tpu.matmul %258, %260, %cst_120 {dimension_numbers = #tpu.dot_dimension_numbers<[1], [0], [0], [1], [0, 0, 1, 1], [], []>} : vector<32x32xf32>, vector<32x32xf32>, vector<32x32xf32> -> vector<32x32xf32>
    %c9 = arith.constant 9 : index
    %c0_121 = arith.constant 0 : index
    %262 = vector.load %arg12[%c9, %c0_121] : memref<48x32xf32, #tpu.memory_space<vmem>>, vector<1x32xf32>
    %263 = vector.broadcast %262 : vector<1x32xf32> to vector<32x32xf32>
    %264 = arith.addf %261, %263 : vector<32x32xf32>
    %265 = arith.addf %264, %169 : vector<32x32xf32>
    %c10 = arith.constant 10 : index
    %c0_122 = arith.constant 0 : index
    %266 = vector.load %arg12[%c10, %c0_122] : memref<48x32xf32, #tpu.memory_space<vmem>>, vector<1x32xf32>
    %c11 = arith.constant 11 : index
    %c0_123 = arith.constant 0 : index
    %267 = vector.load %arg12[%c11, %c0_123] : memref<48x32xf32, #tpu.memory_space<vmem>>, vector<1x32xf32>
    %cst_124 = arith.constant dense<0.000000e+00> : vector<32xf32>
    %268 = vector.multi_reduction <add>, %265, %cst_124 [1] : vector<32x32xf32> to vector<32xf32>
    %269 = vector.shape_cast %268 : vector<32xf32> to vector<32x1xf32>
    %cst_125 = arith.constant 3.200000e+01 : f32
    %270 = vector.broadcast %cst_125 : f32 to vector<32x1xf32>
    %271 = arith.divf %269, %270 : vector<32x1xf32>
    %272 = vector.broadcast %271 : vector<32x1xf32> to vector<32x32xf32>
    %273 = arith.subf %265, %272 : vector<32x32xf32>
    %274 = arith.mulf %273, %273 : vector<32x32xf32>
    %cst_126 = arith.constant dense<0.000000e+00> : vector<32xf32>
    %275 = vector.multi_reduction <add>, %274, %cst_126 [1] : vector<32x32xf32> to vector<32xf32>
    %276 = vector.shape_cast %275 : vector<32xf32> to vector<32x1xf32>
    %cst_127 = arith.constant 3.200000e+01 : f32
    %277 = vector.broadcast %cst_127 : f32 to vector<32x1xf32>
    %278 = arith.divf %276, %277 : vector<32x1xf32>
    %279 = vector.broadcast %271 : vector<32x1xf32> to vector<32x32xf32>
    %280 = arith.subf %265, %279 : vector<32x32xf32>
    %cst_128 = arith.constant 9.99999974E-6 : f32
    %281 = vector.broadcast %cst_128 : f32 to vector<32x1xf32>
    %282 = arith.addf %278, %281 : vector<32x1xf32>
    %283 = math.rsqrt %282 : vector<32x1xf32>
    %284 = vector.broadcast %283 : vector<32x1xf32> to vector<32x32xf32>
    %285 = arith.mulf %280, %284 : vector<32x32xf32>
    %286 = vector.broadcast %266 : vector<1x32xf32> to vector<32x32xf32>
    %287 = arith.mulf %285, %286 : vector<32x32xf32>
    %288 = vector.broadcast %267 : vector<1x32xf32> to vector<32x32xf32>
    %289 = arith.addf %287, %288 : vector<32x32xf32>
    %c1_129 = arith.constant 1 : index
    %c0_130 = arith.constant 0 : index
    %c0_131 = arith.constant 0 : index
    %c0_132 = arith.constant 0 : index
    %290 = vector.load %arg16[%c1_129, %c0_130, %c0_131, %c0_132] : memref<2x1x32x128xf32, #tpu.memory_space<vmem>>, vector<1x1x32x128xf32>
    %291 = vector.shape_cast %290 : vector<1x1x32x128xf32> to vector<32x128xf32>
    %292 = vector.shape_cast %257 : vector<32x128xf32> to vector<1x1x32x128xf32>
    tpu.vector_store %arg16[%c1_129, %c0_130, %c0_131, %c0_132], %292 {strides = array<i32>} : memref<2x1x32x128xf32, #tpu.memory_space<vmem>>, vector<1x1x32x128xf32>,
    %c1_133 = arith.constant 1 : index
    %c0_134 = arith.constant 0 : index
    %c0_135 = arith.constant 0 : index
    %293 = vector.load %arg10[%c1_133, %c0_134, %c0_135] : memref<4x32x64xf32, #tpu.memory_space<vmem>>, vector<1x32x64xf32>
    %294 = vector.shape_cast %293 : vector<1x32x64xf32> to vector<32x64xf32>
    %cst_136 = arith.constant dense<0.000000e+00> : vector<32x64xf32>
    %295 = tpu.matmul %289, %294, %cst_136 {dimension_numbers = #tpu.dot_dimension_numbers<[1], [0], [0], [1], [0, 0, 1, 1], [], []>} : vector<32x32xf32>, vector<32x64xf32>, vector<32x64xf32> -> vector<32x64xf32>
    %c1_137 = arith.constant 1 : index
    %c0_138 = arith.constant 0 : index
    %296 = vector.load %arg13[%c1_137, %c0_138] : memref<4x64xf32, #tpu.memory_space<vmem>>, vector<1x64xf32>
    %297 = vector.broadcast %296 : vector<1x64xf32> to vector<32x64xf32>
    %298 = arith.addf %295, %297 : vector<32x64xf32>
    %cst_139 = arith.constant 0.000000e+00 : f32
    %299 = vector.broadcast %cst_139 : f32 to vector<32x64xf32>
    %300 = arith.maximumf %298, %299 : vector<32x64xf32>
    %c1_140 = arith.constant 1 : index
    %c0_141 = arith.constant 0 : index
    %c0_142 = arith.constant 0 : index
    %301 = vector.load %arg11[%c1_140, %c0_141, %c0_142] : memref<4x64x32xf32, #tpu.memory_space<vmem>>, vector<1x64x32xf32>
    %302 = vector.shape_cast %301 : vector<1x64x32xf32> to vector<64x32xf32>
    %cst_143 = arith.constant dense<0.000000e+00> : vector<32x32xf32>
    %303 = tpu.matmul %300, %302, %cst_143 {dimension_numbers = #tpu.dot_dimension_numbers<[1], [0], [0], [1], [0, 0, 1, 1], [], []>} : vector<32x64xf32>, vector<64x32xf32>, vector<32x32xf32> -> vector<32x32xf32>
    %c39 = arith.constant 39 : index
    %c0_144 = arith.constant 0 : index
    %304 = vector.load %arg12[%c39, %c0_144] : memref<48x32xf32, #tpu.memory_space<vmem>>, vector<1x32xf32>
    %305 = vector.broadcast %304 : vector<1x32xf32> to vector<32x32xf32>
    %306 = arith.addf %303, %305 : vector<32x32xf32>
    %307 = arith.addf %306, %289 : vector<32x32xf32>
    %c40 = arith.constant 40 : index
    %c0_145 = arith.constant 0 : index
    %308 = vector.load %arg12[%c40, %c0_145] : memref<48x32xf32, #tpu.memory_space<vmem>>, vector<1x32xf32>
    %c41 = arith.constant 41 : index
    %c0_146 = arith.constant 0 : index
    %309 = vector.load %arg12[%c41, %c0_146] : memref<48x32xf32, #tpu.memory_space<vmem>>, vector<1x32xf32>
    %cst_147 = arith.constant dense<0.000000e+00> : vector<32xf32>
    %310 = vector.multi_reduction <add>, %307, %cst_147 [1] : vector<32x32xf32> to vector<32xf32>
    %311 = vector.shape_cast %310 : vector<32xf32> to vector<32x1xf32>
    %cst_148 = arith.constant 3.200000e+01 : f32
    %312 = vector.broadcast %cst_148 : f32 to vector<32x1xf32>
    %313 = arith.divf %311, %312 : vector<32x1xf32>
    %314 = vector.broadcast %313 : vector<32x1xf32> to vector<32x32xf32>
    %315 = arith.subf %307, %314 : vector<32x32xf32>
    %316 = arith.mulf %315, %315 : vector<32x32xf32>
    %cst_149 = arith.constant dense<0.000000e+00> : vector<32xf32>
    %317 = vector.multi_reduction <add>, %316, %cst_149 [1] : vector<32x32xf32> to vector<32xf32>
    %318 = vector.shape_cast %317 : vector<32xf32> to vector<32x1xf32>
    %cst_150 = arith.constant 3.200000e+01 : f32
    %319 = vector.broadcast %cst_150 : f32 to vector<32x1xf32>
    %320 = arith.divf %318, %319 : vector<32x1xf32>
    %321 = vector.broadcast %313 : vector<32x1xf32> to vector<32x32xf32>
    %322 = arith.subf %307, %321 : vector<32x32xf32>
    %cst_151 = arith.constant 9.99999974E-6 : f32
    %323 = vector.broadcast %cst_151 : f32 to vector<32x1xf32>
    %324 = arith.addf %320, %323 : vector<32x1xf32>
    %325 = math.rsqrt %324 : vector<32x1xf32>
    %326 = vector.broadcast %325 : vector<32x1xf32> to vector<32x32xf32>
    %327 = arith.mulf %322, %326 : vector<32x32xf32>
    %328 = vector.broadcast %308 : vector<1x32xf32> to vector<32x32xf32>
    %329 = arith.mulf %327, %328 : vector<32x32xf32>
    %330 = vector.broadcast %309 : vector<1x32xf32> to vector<32x32xf32>
    %331 = arith.addf %329, %330 : vector<32x32xf32>
    %c2_152 = arith.constant 2 : index
    %c0_153 = arith.constant 0 : index
    %c0_154 = arith.constant 0 : index
    %332 = vector.load %arg6[%c2_152, %c0_153, %c0_154] : memref<6x32x32xf32, #tpu.memory_space<vmem>>, vector<1x32x32xf32>
    %333 = vector.shape_cast %332 : vector<1x32x32xf32> to vector<32x32xf32>
    %cst_155 = arith.constant dense<0.000000e+00> : vector<32x32xf32>
    %334 = tpu.matmul %1, %333, %cst_155 {dimension_numbers = #tpu.dot_dimension_numbers<[1], [0], [0], [1], [0, 0, 1, 1], [], []>} : vector<32x32xf32>, vector<32x32xf32>, vector<32x32xf32> -> vector<32x32xf32>
    %c12 = arith.constant 12 : index
    %c0_156 = arith.constant 0 : index
    %335 = vector.load %arg12[%c12, %c0_156] : memref<48x32xf32, #tpu.memory_space<vmem>>, vector<1x32xf32>
    %336 = vector.broadcast %335 : vector<1x32xf32> to vector<32x32xf32>
    %337 = arith.addf %334, %336 : vector<32x32xf32>
    %c2_157 = arith.constant 2 : index
    %c0_158 = arith.constant 0 : index
    %c0_159 = arith.constant 0 : index
    %338 = vector.load %arg7[%c2_157, %c0_158, %c0_159] : memref<6x32x32xf32, #tpu.memory_space<vmem>>, vector<1x32x32xf32>
    %339 = vector.shape_cast %338 : vector<1x32x32xf32> to vector<32x32xf32>
    %cst_160 = arith.constant dense<0.000000e+00> : vector<32x32xf32>
    %340 = tpu.matmul %1, %339, %cst_160 {dimension_numbers = #tpu.dot_dimension_numbers<[1], [0], [0], [1], [0, 0, 1, 1], [], []>} : vector<32x32xf32>, vector<32x32xf32>, vector<32x32xf32> -> vector<32x32xf32>
    %c13 = arith.constant 13 : index
    %c0_161 = arith.constant 0 : index
    %341 = vector.load %arg12[%c13, %c0_161] : memref<48x32xf32, #tpu.memory_space<vmem>>, vector<1x32xf32>
    %342 = vector.broadcast %341 : vector<1x32xf32> to vector<32x32xf32>
    %343 = arith.addf %340, %342 : vector<32x32xf32>
    %c2_162 = arith.constant 2 : index
    %c0_163 = arith.constant 0 : index
    %c0_164 = arith.constant 0 : index
    %344 = vector.load %arg8[%c2_162, %c0_163, %c0_164] : memref<6x32x32xf32, #tpu.memory_space<vmem>>, vector<1x32x32xf32>
    %345 = vector.shape_cast %344 : vector<1x32x32xf32> to vector<32x32xf32>
    %cst_165 = arith.constant dense<0.000000e+00> : vector<32x32xf32>
    %346 = tpu.matmul %1, %345, %cst_165 {dimension_numbers = #tpu.dot_dimension_numbers<[1], [0], [0], [1], [0, 0, 1, 1], [], []>} : vector<32x32xf32>, vector<32x32xf32>, vector<32x32xf32> -> vector<32x32xf32>
    %c14 = arith.constant 14 : index
    %c0_166 = arith.constant 0 : index
    %347 = vector.load %arg12[%c14, %c0_166] : memref<48x32xf32, #tpu.memory_space<vmem>>, vector<1x32xf32>
    %348 = vector.broadcast %347 : vector<1x32xf32> to vector<32x32xf32>
    %349 = arith.addf %346, %348 : vector<32x32xf32>
    %350 = tpu.transpose %343, [1, 0] : vector<32x32xf32> -> vector<32x32xf32>
    %351 = vector.extract_strided_slice %337 {offsets = [0, 0], sizes = [32, 8], strides = [1, 1]} : vector<32x32xf32> to vector<32x8xf32>
    %352 = vector.extract_strided_slice %350 {offsets = [0, 0], sizes = [8, 32], strides = [1, 1]} : vector<32x32xf32> to vector<8x32xf32>
    %cst_167 = arith.constant dense<0.000000e+00> : vector<32x32xf32>
    %353 = tpu.matmul %351, %352, %cst_167 {dimension_numbers = #tpu.dot_dimension_numbers<[1], [0], [0], [1], [0, 0, 1, 1], [], []>} : vector<32x8xf32>, vector<8x32xf32>, vector<32x32xf32> -> vector<32x32xf32>
    %cst_168 = arith.constant 0.353553385 : f32
    %354 = vector.broadcast %cst_168 : f32 to vector<32x32xf32>
    %355 = arith.mulf %353, %354 : vector<32x32xf32>
    %356 = arith.addf %355, %5 : vector<32x32xf32>
    %cst_169 = arith.constant dense<0xFF800000> : vector<32xf32>
    %357 = vector.multi_reduction <maximumf>, %356, %cst_169 [1] : vector<32x32xf32> to vector<32xf32>
    %358 = vector.shape_cast %357 : vector<32xf32> to vector<32x1xf32>
    %359 = vector.broadcast %358 : vector<32x1xf32> to vector<32x32xf32>
    %360 = arith.subf %356, %359 : vector<32x32xf32>
    %361 = math.exp %360 : vector<32x32xf32>
    %cst_170 = arith.constant dense<0.000000e+00> : vector<32xf32>
    %362 = vector.multi_reduction <add>, %361, %cst_170 [1] : vector<32x32xf32> to vector<32xf32>
    %363 = vector.shape_cast %362 : vector<32xf32> to vector<32x1xf32>
    %364 = vector.broadcast %363 : vector<32x1xf32> to vector<32x32xf32>
    %365 = arith.divf %361, %364 : vector<32x32xf32>
    %366 = vector.extract_strided_slice %349 {offsets = [0, 0], sizes = [32, 8], strides = [1, 1]} : vector<32x32xf32> to vector<32x8xf32>
    %cst_171 = arith.constant dense<0.000000e+00> : vector<32x8xf32>
    %367 = tpu.matmul %365, %366, %cst_171 {dimension_numbers = #tpu.dot_dimension_numbers<[1], [0], [0], [1], [0, 0, 1, 1], [], []>} : vector<32x32xf32>, vector<32x8xf32>, vector<32x8xf32> -> vector<32x8xf32>
    %368 = vector.extract_strided_slice %337 {offsets = [0, 8], sizes = [32, 8], strides = [1, 1]} : vector<32x32xf32> to vector<32x8xf32>
    %369 = vector.extract_strided_slice %350 {offsets = [8, 0], sizes = [8, 32], strides = [1, 1]} : vector<32x32xf32> to vector<8x32xf32>
    %cst_172 = arith.constant dense<0.000000e+00> : vector<32x32xf32>
    %370 = tpu.matmul %368, %369, %cst_172 {dimension_numbers = #tpu.dot_dimension_numbers<[1], [0], [0], [1], [0, 0, 1, 1], [], []>} : vector<32x8xf32>, vector<8x32xf32>, vector<32x32xf32> -> vector<32x32xf32>
    %cst_173 = arith.constant 0.353553385 : f32
    %371 = vector.broadcast %cst_173 : f32 to vector<32x32xf32>
    %372 = arith.mulf %370, %371 : vector<32x32xf32>
    %373 = arith.addf %372, %5 : vector<32x32xf32>
    %cst_174 = arith.constant dense<0xFF800000> : vector<32xf32>
    %374 = vector.multi_reduction <maximumf>, %373, %cst_174 [1] : vector<32x32xf32> to vector<32xf32>
    %375 = vector.shape_cast %374 : vector<32xf32> to vector<32x1xf32>
    %376 = vector.broadcast %375 : vector<32x1xf32> to vector<32x32xf32>
    %377 = arith.subf %373, %376 : vector<32x32xf32>
    %378 = math.exp %377 : vector<32x32xf32>
    %cst_175 = arith.constant dense<0.000000e+00> : vector<32xf32>
    %379 = vector.multi_reduction <add>, %378, %cst_175 [1] : vector<32x32xf32> to vector<32xf32>
    %380 = vector.shape_cast %379 : vector<32xf32> to vector<32x1xf32>
    %381 = vector.broadcast %380 : vector<32x1xf32> to vector<32x32xf32>
    %382 = arith.divf %378, %381 : vector<32x32xf32>
    %383 = vector.extract_strided_slice %349 {offsets = [0, 8], sizes = [32, 8], strides = [1, 1]} : vector<32x32xf32> to vector<32x8xf32>
    %cst_176 = arith.constant dense<0.000000e+00> : vector<32x8xf32>
    %384 = tpu.matmul %382, %383, %cst_176 {dimension_numbers = #tpu.dot_dimension_numbers<[1], [0], [0], [1], [0, 0, 1, 1], [], []>} : vector<32x32xf32>, vector<32x8xf32>, vector<32x8xf32> -> vector<32x8xf32>
    %385 = vector.extract_strided_slice %337 {offsets = [0, 16], sizes = [32, 8], strides = [1, 1]} : vector<32x32xf32> to vector<32x8xf32>
    %386 = vector.extract_strided_slice %350 {offsets = [16, 0], sizes = [8, 32], strides = [1, 1]} : vector<32x32xf32> to vector<8x32xf32>
    %cst_177 = arith.constant dense<0.000000e+00> : vector<32x32xf32>
    %387 = tpu.matmul %385, %386, %cst_177 {dimension_numbers = #tpu.dot_dimension_numbers<[1], [0], [0], [1], [0, 0, 1, 1], [], []>} : vector<32x8xf32>, vector<8x32xf32>, vector<32x32xf32> -> vector<32x32xf32>
    %cst_178 = arith.constant 0.353553385 : f32
    %388 = vector.broadcast %cst_178 : f32 to vector<32x32xf32>
    %389 = arith.mulf %387, %388 : vector<32x32xf32>
    %390 = arith.addf %389, %5 : vector<32x32xf32>
    %cst_179 = arith.constant dense<0xFF800000> : vector<32xf32>
    %391 = vector.multi_reduction <maximumf>, %390, %cst_179 [1] : vector<32x32xf32> to vector<32xf32>
    %392 = vector.shape_cast %391 : vector<32xf32> to vector<32x1xf32>
    %393 = vector.broadcast %392 : vector<32x1xf32> to vector<32x32xf32>
    %394 = arith.subf %390, %393 : vector<32x32xf32>
    %395 = math.exp %394 : vector<32x32xf32>
    %cst_180 = arith.constant dense<0.000000e+00> : vector<32xf32>
    %396 = vector.multi_reduction <add>, %395, %cst_180 [1] : vector<32x32xf32> to vector<32xf32>
    %397 = vector.shape_cast %396 : vector<32xf32> to vector<32x1xf32>
    %398 = vector.broadcast %397 : vector<32x1xf32> to vector<32x32xf32>
    %399 = arith.divf %395, %398 : vector<32x32xf32>
    %400 = vector.extract_strided_slice %349 {offsets = [0, 16], sizes = [32, 8], strides = [1, 1]} : vector<32x32xf32> to vector<32x8xf32>
    %cst_181 = arith.constant dense<0.000000e+00> : vector<32x8xf32>
    %401 = tpu.matmul %399, %400, %cst_181 {dimension_numbers = #tpu.dot_dimension_numbers<[1], [0], [0], [1], [0, 0, 1, 1], [], []>} : vector<32x32xf32>, vector<32x8xf32>, vector<32x8xf32> -> vector<32x8xf32>
    %402 = vector.extract_strided_slice %337 {offsets = [0, 24], sizes = [32, 8], strides = [1, 1]} : vector<32x32xf32> to vector<32x8xf32>
    %403 = vector.extract_strided_slice %350 {offsets = [24, 0], sizes = [8, 32], strides = [1, 1]} : vector<32x32xf32> to vector<8x32xf32>
    %cst_182 = arith.constant dense<0.000000e+00> : vector<32x32xf32>
    %404 = tpu.matmul %402, %403, %cst_182 {dimension_numbers = #tpu.dot_dimension_numbers<[1], [0], [0], [1], [0, 0, 1, 1], [], []>} : vector<32x8xf32>, vector<8x32xf32>, vector<32x32xf32> -> vector<32x32xf32>
    %cst_183 = arith.constant 0.353553385 : f32
    %405 = vector.broadcast %cst_183 : f32 to vector<32x32xf32>
    %406 = arith.mulf %404, %405 : vector<32x32xf32>
    %407 = arith.addf %406, %5 : vector<32x32xf32>
    %cst_184 = arith.constant dense<0xFF800000> : vector<32xf32>
    %408 = vector.multi_reduction <maximumf>, %407, %cst_184 [1] : vector<32x32xf32> to vector<32xf32>
    %409 = vector.shape_cast %408 : vector<32xf32> to vector<32x1xf32>
    %410 = vector.broadcast %409 : vector<32x1xf32> to vector<32x32xf32>
    %411 = arith.subf %407, %410 : vector<32x32xf32>
    %412 = math.exp %411 : vector<32x32xf32>
    %cst_185 = arith.constant dense<0.000000e+00> : vector<32xf32>
    %413 = vector.multi_reduction <add>, %412, %cst_185 [1] : vector<32x32xf32> to vector<32xf32>
    %414 = vector.shape_cast %413 : vector<32xf32> to vector<32x1xf32>
    %415 = vector.broadcast %414 : vector<32x1xf32> to vector<32x32xf32>
    %416 = arith.divf %412, %415 : vector<32x32xf32>
    %417 = vector.extract_strided_slice %349 {offsets = [0, 24], sizes = [32, 8], strides = [1, 1]} : vector<32x32xf32> to vector<32x8xf32>
    %cst_186 = arith.constant dense<0.000000e+00> : vector<32x8xf32>
    %418 = tpu.matmul %416, %417, %cst_186 {dimension_numbers = #tpu.dot_dimension_numbers<[1], [0], [0], [1], [0, 0, 1, 1], [], []>} : vector<32x32xf32>, vector<32x8xf32>, vector<32x8xf32> -> vector<32x8xf32>
    %419 = tpu.concatenate %365, %382, %399, %416 in 1 : vector<32x32xf32>, vector<32x32xf32>, vector<32x32xf32>, vector<32x32xf32> -> vector<32x128xf32>
    %420 = tpu.concatenate %367, %384, %401, %418 in 1 : vector<32x8xf32>, vector<32x8xf32>, vector<32x8xf32>, vector<32x8xf32> -> vector<32x32xf32>
    %c2_187 = arith.constant 2 : index
    %c0_188 = arith.constant 0 : index
    %c0_189 = arith.constant 0 : index
    %421 = vector.load %arg9[%c2_187, %c0_188, %c0_189] : memref<6x32x32xf32, #tpu.memory_space<vmem>>, vector<1x32x32xf32>
    %422 = vector.shape_cast %421 : vector<1x32x32xf32> to vector<32x32xf32>
    %cst_190 = arith.constant dense<0.000000e+00> : vector<32x32xf32>
    %423 = tpu.matmul %420, %422, %cst_190 {dimension_numbers = #tpu.dot_dimension_numbers<[1], [0], [0], [1], [0, 0, 1, 1], [], []>} : vector<32x32xf32>, vector<32x32xf32>, vector<32x32xf32> -> vector<32x32xf32>
    %c15 = arith.constant 15 : index
    %c0_191 = arith.constant 0 : index
    %424 = vector.load %arg12[%c15, %c0_191] : memref<48x32xf32, #tpu.memory_space<vmem>>, vector<1x32xf32>
    %425 = vector.broadcast %424 : vector<1x32xf32> to vector<32x32xf32>
    %426 = arith.addf %423, %425 : vector<32x32xf32>
    %427 = arith.addf %426, %1 : vector<32x32xf32>
    %c16 = arith.constant 16 : index
    %c0_192 = arith.constant 0 : index
    %428 = vector.load %arg12[%c16, %c0_192] : memref<48x32xf32, #tpu.memory_space<vmem>>, vector<1x32xf32>
    %c17 = arith.constant 17 : index
    %c0_193 = arith.constant 0 : index
    %429 = vector.load %arg12[%c17, %c0_193] : memref<48x32xf32, #tpu.memory_space<vmem>>, vector<1x32xf32>
    %cst_194 = arith.constant dense<0.000000e+00> : vector<32xf32>
    %430 = vector.multi_reduction <add>, %427, %cst_194 [1] : vector<32x32xf32> to vector<32xf32>
    %431 = vector.shape_cast %430 : vector<32xf32> to vector<32x1xf32>
    %cst_195 = arith.constant 3.200000e+01 : f32
    %432 = vector.broadcast %cst_195 : f32 to vector<32x1xf32>
    %433 = arith.divf %431, %432 : vector<32x1xf32>
    %434 = vector.broadcast %433 : vector<32x1xf32> to vector<32x32xf32>
    %435 = arith.subf %427, %434 : vector<32x32xf32>
    %436 = arith.mulf %435, %435 : vector<32x32xf32>
    %cst_196 = arith.constant dense<0.000000e+00> : vector<32xf32>
    %437 = vector.multi_reduction <add>, %436, %cst_196 [1] : vector<32x32xf32> to vector<32xf32>
    %438 = vector.shape_cast %437 : vector<32xf32> to vector<32x1xf32>
    %cst_197 = arith.constant 3.200000e+01 : f32
    %439 = vector.broadcast %cst_197 : f32 to vector<32x1xf32>
    %440 = arith.divf %438, %439 : vector<32x1xf32>
    %441 = vector.broadcast %433 : vector<32x1xf32> to vector<32x32xf32>
    %442 = arith.subf %427, %441 : vector<32x32xf32>
    %cst_198 = arith.constant 9.99999974E-6 : f32
    %443 = vector.broadcast %cst_198 : f32 to vector<32x1xf32>
    %444 = arith.addf %440, %443 : vector<32x1xf32>
    %445 = math.rsqrt %444 : vector<32x1xf32>
    %446 = vector.broadcast %445 : vector<32x1xf32> to vector<32x32xf32>
    %447 = arith.mulf %442, %446 : vector<32x32xf32>
    %448 = vector.broadcast %428 : vector<1x32xf32> to vector<32x32xf32>
    %449 = arith.mulf %447, %448 : vector<32x32xf32>
    %450 = vector.broadcast %429 : vector<1x32xf32> to vector<32x32xf32>
    %451 = arith.addf %449, %450 : vector<32x32xf32>
    %c0_199 = arith.constant 0 : index
    %c0_200 = arith.constant 0 : index
    %c0_201 = arith.constant 0 : index
    %c0_202 = arith.constant 0 : index
    %452 = vector.load %arg17[%c0_199, %c0_200, %c0_201, %c0_202] : memref<2x1x32x128xf32, #tpu.memory_space<vmem>>, vector<1x1x32x128xf32>
    %453 = vector.shape_cast %452 : vector<1x1x32x128xf32> to vector<32x128xf32>
    %454 = vector.shape_cast %419 : vector<32x128xf32> to vector<1x1x32x128xf32>
    tpu.vector_store %arg17[%c0_199, %c0_200, %c0_201, %c0_202], %454 {strides = array<i32>} : memref<2x1x32x128xf32, #tpu.memory_space<vmem>>, vector<1x1x32x128xf32>,
    %c3_203 = arith.constant 3 : index
    %c0_204 = arith.constant 0 : index
    %c0_205 = arith.constant 0 : index
    %455 = vector.load %arg6[%c3_203, %c0_204, %c0_205] : memref<6x32x32xf32, #tpu.memory_space<vmem>>, vector<1x32x32xf32>
    %456 = vector.shape_cast %455 : vector<1x32x32xf32> to vector<32x32xf32>
    %cst_206 = arith.constant dense<0.000000e+00> : vector<32x32xf32>
    %457 = tpu.matmul %451, %456, %cst_206 {dimension_numbers = #tpu.dot_dimension_numbers<[1], [0], [0], [1], [0, 0, 1, 1], [], []>} : vector<32x32xf32>, vector<32x32xf32>, vector<32x32xf32> -> vector<32x32xf32>
    %c18 = arith.constant 18 : index
    %c0_207 = arith.constant 0 : index
    %458 = vector.load %arg12[%c18, %c0_207] : memref<48x32xf32, #tpu.memory_space<vmem>>, vector<1x32xf32>
    %459 = vector.broadcast %458 : vector<1x32xf32> to vector<32x32xf32>
    %460 = arith.addf %457, %459 : vector<32x32xf32>
    %c3_208 = arith.constant 3 : index
    %c0_209 = arith.constant 0 : index
    %c0_210 = arith.constant 0 : index
    %461 = vector.load %arg7[%c3_208, %c0_209, %c0_210] : memref<6x32x32xf32, #tpu.memory_space<vmem>>, vector<1x32x32xf32>
    %462 = vector.shape_cast %461 : vector<1x32x32xf32> to vector<32x32xf32>
    %cst_211 = arith.constant dense<0.000000e+00> : vector<32x32xf32>
    %463 = tpu.matmul %331, %462, %cst_211 {dimension_numbers = #tpu.dot_dimension_numbers<[1], [0], [0], [1], [0, 0, 1, 1], [], []>} : vector<32x32xf32>, vector<32x32xf32>, vector<32x32xf32> -> vector<32x32xf32>
    %c19 = arith.constant 19 : index
    %c0_212 = arith.constant 0 : index
    %464 = vector.load %arg12[%c19, %c0_212] : memref<48x32xf32, #tpu.memory_space<vmem>>, vector<1x32xf32>
    %465 = vector.broadcast %464 : vector<1x32xf32> to vector<32x32xf32>
    %466 = arith.addf %463, %465 : vector<32x32xf32>
    %c3_213 = arith.constant 3 : index
    %c0_214 = arith.constant 0 : index
    %c0_215 = arith.constant 0 : index
    %467 = vector.load %arg8[%c3_213, %c0_214, %c0_215] : memref<6x32x32xf32, #tpu.memory_space<vmem>>, vector<1x32x32xf32>
    %468 = vector.shape_cast %467 : vector<1x32x32xf32> to vector<32x32xf32>
    %cst_216 = arith.constant dense<0.000000e+00> : vector<32x32xf32>
    %469 = tpu.matmul %331, %468, %cst_216 {dimension_numbers = #tpu.dot_dimension_numbers<[1], [0], [0], [1], [0, 0, 1, 1], [], []>} : vector<32x32xf32>, vector<32x32xf32>, vector<32x32xf32> -> vector<32x32xf32>
    %c20 = arith.constant 20 : index
    %c0_217 = arith.constant 0 : index
    %470 = vector.load %arg12[%c20, %c0_217] : memref<48x32xf32, #tpu.memory_space<vmem>>, vector<1x32xf32>
    %471 = vector.broadcast %470 : vector<1x32xf32> to vector<32x32xf32>
    %472 = arith.addf %469, %471 : vector<32x32xf32>
    %473 = tpu.transpose %466, [1, 0] : vector<32x32xf32> -> vector<32x32xf32>
    %474 = vector.extract_strided_slice %460 {offsets = [0, 0], sizes = [32, 8], strides = [1, 1]} : vector<32x32xf32> to vector<32x8xf32>
    %475 = vector.extract_strided_slice %473 {offsets = [0, 0], sizes = [8, 32], strides = [1, 1]} : vector<32x32xf32> to vector<8x32xf32>
    %cst_218 = arith.constant dense<0.000000e+00> : vector<32x32xf32>
    %476 = tpu.matmul %474, %475, %cst_218 {dimension_numbers = #tpu.dot_dimension_numbers<[1], [0], [0], [1], [0, 0, 1, 1], [], []>} : vector<32x8xf32>, vector<8x32xf32>, vector<32x32xf32> -> vector<32x32xf32>
    %cst_219 = arith.constant 0.353553385 : f32
    %477 = vector.broadcast %cst_219 : f32 to vector<32x32xf32>
    %478 = arith.mulf %476, %477 : vector<32x32xf32>
    %479 = arith.addf %478, %7 : vector<32x32xf32>
    %cst_220 = arith.constant dense<0xFF800000> : vector<32xf32>
    %480 = vector.multi_reduction <maximumf>, %479, %cst_220 [1] : vector<32x32xf32> to vector<32xf32>
    %481 = vector.shape_cast %480 : vector<32xf32> to vector<32x1xf32>
    %482 = vector.broadcast %481 : vector<32x1xf32> to vector<32x32xf32>
    %483 = arith.subf %479, %482 : vector<32x32xf32>
    %484 = math.exp %483 : vector<32x32xf32>
    %cst_221 = arith.constant dense<0.000000e+00> : vector<32xf32>
    %485 = vector.multi_reduction <add>, %484, %cst_221 [1] : vector<32x32xf32> to vector<32xf32>
    %486 = vector.shape_cast %485 : vector<32xf32> to vector<32x1xf32>
    %487 = vector.broadcast %486 : vector<32x1xf32> to vector<32x32xf32>
    %488 = arith.divf %484, %487 : vector<32x32xf32>
    %489 = vector.extract_strided_slice %472 {offsets = [0, 0], sizes = [32, 8], strides = [1, 1]} : vector<32x32xf32> to vector<32x8xf32>
    %cst_222 = arith.constant dense<0.000000e+00> : vector<32x8xf32>
    %490 = tpu.matmul %488, %489, %cst_222 {dimension_numbers = #tpu.dot_dimension_numbers<[1], [0], [0], [1], [0, 0, 1, 1], [], []>} : vector<32x32xf32>, vector<32x8xf32>, vector<32x8xf32> -> vector<32x8xf32>
    %491 = vector.extract_strided_slice %460 {offsets = [0, 8], sizes = [32, 8], strides = [1, 1]} : vector<32x32xf32> to vector<32x8xf32>
    %492 = vector.extract_strided_slice %473 {offsets = [8, 0], sizes = [8, 32], strides = [1, 1]} : vector<32x32xf32> to vector<8x32xf32>
    %cst_223 = arith.constant dense<0.000000e+00> : vector<32x32xf32>
    %493 = tpu.matmul %491, %492, %cst_223 {dimension_numbers = #tpu.dot_dimension_numbers<[1], [0], [0], [1], [0, 0, 1, 1], [], []>} : vector<32x8xf32>, vector<8x32xf32>, vector<32x32xf32> -> vector<32x32xf32>
    %cst_224 = arith.constant 0.353553385 : f32
    %494 = vector.broadcast %cst_224 : f32 to vector<32x32xf32>
    %495 = arith.mulf %493, %494 : vector<32x32xf32>
    %496 = arith.addf %495, %7 : vector<32x32xf32>
    %cst_225 = arith.constant dense<0xFF800000> : vector<32xf32>
    %497 = vector.multi_reduction <maximumf>, %496, %cst_225 [1] : vector<32x32xf32> to vector<32xf32>
    %498 = vector.shape_cast %497 : vector<32xf32> to vector<32x1xf32>
    %499 = vector.broadcast %498 : vector<32x1xf32> to vector<32x32xf32>
    %500 = arith.subf %496, %499 : vector<32x32xf32>
    %501 = math.exp %500 : vector<32x32xf32>
    %cst_226 = arith.constant dense<0.000000e+00> : vector<32xf32>
    %502 = vector.multi_reduction <add>, %501, %cst_226 [1] : vector<32x32xf32> to vector<32xf32>
    %503 = vector.shape_cast %502 : vector<32xf32> to vector<32x1xf32>
    %504 = vector.broadcast %503 : vector<32x1xf32> to vector<32x32xf32>
    %505 = arith.divf %501, %504 : vector<32x32xf32>
    %506 = vector.extract_strided_slice %472 {offsets = [0, 8], sizes = [32, 8], strides = [1, 1]} : vector<32x32xf32> to vector<32x8xf32>
    %cst_227 = arith.constant dense<0.000000e+00> : vector<32x8xf32>
    %507 = tpu.matmul %505, %506, %cst_227 {dimension_numbers = #tpu.dot_dimension_numbers<[1], [0], [0], [1], [0, 0, 1, 1], [], []>} : vector<32x32xf32>, vector<32x8xf32>, vector<32x8xf32> -> vector<32x8xf32>
    %508 = vector.extract_strided_slice %460 {offsets = [0, 16], sizes = [32, 8], strides = [1, 1]} : vector<32x32xf32> to vector<32x8xf32>
    %509 = vector.extract_strided_slice %473 {offsets = [16, 0], sizes = [8, 32], strides = [1, 1]} : vector<32x32xf32> to vector<8x32xf32>
    %cst_228 = arith.constant dense<0.000000e+00> : vector<32x32xf32>
    %510 = tpu.matmul %508, %509, %cst_228 {dimension_numbers = #tpu.dot_dimension_numbers<[1], [0], [0], [1], [0, 0, 1, 1], [], []>} : vector<32x8xf32>, vector<8x32xf32>, vector<32x32xf32> -> vector<32x32xf32>
    %cst_229 = arith.constant 0.353553385 : f32
    %511 = vector.broadcast %cst_229 : f32 to vector<32x32xf32>
    %512 = arith.mulf %510, %511 : vector<32x32xf32>
    %513 = arith.addf %512, %7 : vector<32x32xf32>
    %cst_230 = arith.constant dense<0xFF800000> : vector<32xf32>
    %514 = vector.multi_reduction <maximumf>, %513, %cst_230 [1] : vector<32x32xf32> to vector<32xf32>
    %515 = vector.shape_cast %514 : vector<32xf32> to vector<32x1xf32>
    %516 = vector.broadcast %515 : vector<32x1xf32> to vector<32x32xf32>
    %517 = arith.subf %513, %516 : vector<32x32xf32>
    %518 = math.exp %517 : vector<32x32xf32>
    %cst_231 = arith.constant dense<0.000000e+00> : vector<32xf32>
    %519 = vector.multi_reduction <add>, %518, %cst_231 [1] : vector<32x32xf32> to vector<32xf32>
    %520 = vector.shape_cast %519 : vector<32xf32> to vector<32x1xf32>
    %521 = vector.broadcast %520 : vector<32x1xf32> to vector<32x32xf32>
    %522 = arith.divf %518, %521 : vector<32x32xf32>
    %523 = vector.extract_strided_slice %472 {offsets = [0, 16], sizes = [32, 8], strides = [1, 1]} : vector<32x32xf32> to vector<32x8xf32>
    %cst_232 = arith.constant dense<0.000000e+00> : vector<32x8xf32>
    %524 = tpu.matmul %522, %523, %cst_232 {dimension_numbers = #tpu.dot_dimension_numbers<[1], [0], [0], [1], [0, 0, 1, 1], [], []>} : vector<32x32xf32>, vector<32x8xf32>, vector<32x8xf32> -> vector<32x8xf32>
    %525 = vector.extract_strided_slice %460 {offsets = [0, 24], sizes = [32, 8], strides = [1, 1]} : vector<32x32xf32> to vector<32x8xf32>
    %526 = vector.extract_strided_slice %473 {offsets = [24, 0], sizes = [8, 32], strides = [1, 1]} : vector<32x32xf32> to vector<8x32xf32>
    %cst_233 = arith.constant dense<0.000000e+00> : vector<32x32xf32>
    %527 = tpu.matmul %525, %526, %cst_233 {dimension_numbers = #tpu.dot_dimension_numbers<[1], [0], [0], [1], [0, 0, 1, 1], [], []>} : vector<32x8xf32>, vector<8x32xf32>, vector<32x32xf32> -> vector<32x32xf32>
    %cst_234 = arith.constant 0.353553385 : f32
    %528 = vector.broadcast %cst_234 : f32 to vector<32x32xf32>
    %529 = arith.mulf %527, %528 : vector<32x32xf32>
    %530 = arith.addf %529, %7 : vector<32x32xf32>
    %cst_235 = arith.constant dense<0xFF800000> : vector<32xf32>
    %531 = vector.multi_reduction <maximumf>, %530, %cst_235 [1] : vector<32x32xf32> to vector<32xf32>
    %532 = vector.shape_cast %531 : vector<32xf32> to vector<32x1xf32>
    %533 = vector.broadcast %532 : vector<32x1xf32> to vector<32x32xf32>
    %534 = arith.subf %530, %533 : vector<32x32xf32>
    %535 = math.exp %534 : vector<32x32xf32>
    %cst_236 = arith.constant dense<0.000000e+00> : vector<32xf32>
    %536 = vector.multi_reduction <add>, %535, %cst_236 [1] : vector<32x32xf32> to vector<32xf32>
    %537 = vector.shape_cast %536 : vector<32xf32> to vector<32x1xf32>
    %538 = vector.broadcast %537 : vector<32x1xf32> to vector<32x32xf32>
    %539 = arith.divf %535, %538 : vector<32x32xf32>
    %540 = vector.extract_strided_slice %472 {offsets = [0, 24], sizes = [32, 8], strides = [1, 1]} : vector<32x32xf32> to vector<32x8xf32>
    %cst_237 = arith.constant dense<0.000000e+00> : vector<32x8xf32>
    %541 = tpu.matmul %539, %540, %cst_237 {dimension_numbers = #tpu.dot_dimension_numbers<[1], [0], [0], [1], [0, 0, 1, 1], [], []>} : vector<32x32xf32>, vector<32x8xf32>, vector<32x8xf32> -> vector<32x8xf32>
    %542 = tpu.concatenate %488, %505, %522, %539 in 1 : vector<32x32xf32>, vector<32x32xf32>, vector<32x32xf32>, vector<32x32xf32> -> vector<32x128xf32>
    %543 = tpu.concatenate %490, %507, %524, %541 in 1 : vector<32x8xf32>, vector<32x8xf32>, vector<32x8xf32>, vector<32x8xf32> -> vector<32x32xf32>
    %c3_238 = arith.constant 3 : index
    %c0_239 = arith.constant 0 : index
    %c0_240 = arith.constant 0 : index
    %544 = vector.load %arg9[%c3_238, %c0_239, %c0_240] : memref<6x32x32xf32, #tpu.memory_space<vmem>>, vector<1x32x32xf32>
    %545 = vector.shape_cast %544 : vector<1x32x32xf32> to vector<32x32xf32>
    %cst_241 = arith.constant dense<0.000000e+00> : vector<32x32xf32>
    %546 = tpu.matmul %543, %545, %cst_241 {dimension_numbers = #tpu.dot_dimension_numbers<[1], [0], [0], [1], [0, 0, 1, 1], [], []>} : vector<32x32xf32>, vector<32x32xf32>, vector<32x32xf32> -> vector<32x32xf32>
    %c21 = arith.constant 21 : index
    %c0_242 = arith.constant 0 : index
    %547 = vector.load %arg12[%c21, %c0_242] : memref<48x32xf32, #tpu.memory_space<vmem>>, vector<1x32xf32>
    %548 = vector.broadcast %547 : vector<1x32xf32> to vector<32x32xf32>
    %549 = arith.addf %546, %548 : vector<32x32xf32>
    %550 = arith.addf %549, %451 : vector<32x32xf32>
    %c22 = arith.constant 22 : index
    %c0_243 = arith.constant 0 : index
    %551 = vector.load %arg12[%c22, %c0_243] : memref<48x32xf32, #tpu.memory_space<vmem>>, vector<1x32xf32>
    %c23 = arith.constant 23 : index
    %c0_244 = arith.constant 0 : index
    %552 = vector.load %arg12[%c23, %c0_244] : memref<48x32xf32, #tpu.memory_space<vmem>>, vector<1x32xf32>
    %cst_245 = arith.constant dense<0.000000e+00> : vector<32xf32>
    %553 = vector.multi_reduction <add>, %550, %cst_245 [1] : vector<32x32xf32> to vector<32xf32>
    %554 = vector.shape_cast %553 : vector<32xf32> to vector<32x1xf32>
    %cst_246 = arith.constant 3.200000e+01 : f32
    %555 = vector.broadcast %cst_246 : f32 to vector<32x1xf32>
    %556 = arith.divf %554, %555 : vector<32x1xf32>
    %557 = vector.broadcast %556 : vector<32x1xf32> to vector<32x32xf32>
    %558 = arith.subf %550, %557 : vector<32x32xf32>
    %559 = arith.mulf %558, %558 : vector<32x32xf32>
    %cst_247 = arith.constant dense<0.000000e+00> : vector<32xf32>
    %560 = vector.multi_reduction <add>, %559, %cst_247 [1] : vector<32x32xf32> to vector<32xf32>
    %561 = vector.shape_cast %560 : vector<32xf32> to vector<32x1xf32>
    %cst_248 = arith.constant 3.200000e+01 : f32
    %562 = vector.broadcast %cst_248 : f32 to vector<32x1xf32>
    %563 = arith.divf %561, %562 : vector<32x1xf32>
    %564 = vector.broadcast %556 : vector<32x1xf32> to vector<32x32xf32>
    %565 = arith.subf %550, %564 : vector<32x32xf32>
    %cst_249 = arith.constant 9.99999974E-6 : f32
    %566 = vector.broadcast %cst_249 : f32 to vector<32x1xf32>
    %567 = arith.addf %563, %566 : vector<32x1xf32>
    %568 = math.rsqrt %567 : vector<32x1xf32>
    %569 = vector.broadcast %568 : vector<32x1xf32> to vector<32x32xf32>
    %570 = arith.mulf %565, %569 : vector<32x32xf32>
    %571 = vector.broadcast %551 : vector<1x32xf32> to vector<32x32xf32>
    %572 = arith.mulf %570, %571 : vector<32x32xf32>
    %573 = vector.broadcast %552 : vector<1x32xf32> to vector<32x32xf32>
    %574 = arith.addf %572, %573 : vector<32x32xf32>
    %c0_250 = arith.constant 0 : index
    %c0_251 = arith.constant 0 : index
    %c0_252 = arith.constant 0 : index
    %c0_253 = arith.constant 0 : index
    %575 = vector.load %arg18[%c0_250, %c0_251, %c0_252, %c0_253] : memref<2x1x32x128xf32, #tpu.memory_space<vmem>>, vector<1x1x32x128xf32>
    %576 = vector.shape_cast %575 : vector<1x1x32x128xf32> to vector<32x128xf32>
    %577 = vector.shape_cast %542 : vector<32x128xf32> to vector<1x1x32x128xf32>
    tpu.vector_store %arg18[%c0_250, %c0_251, %c0_252, %c0_253], %577 {strides = array<i32>} : memref<2x1x32x128xf32, #tpu.memory_space<vmem>>, vector<1x1x32x128xf32>,
    %c2_254 = arith.constant 2 : index
    %c0_255 = arith.constant 0 : index
    %c0_256 = arith.constant 0 : index
    %578 = vector.load %arg10[%c2_254, %c0_255, %c0_256] : memref<4x32x64xf32, #tpu.memory_space<vmem>>, vector<1x32x64xf32>
    %579 = vector.shape_cast %578 : vector<1x32x64xf32> to vector<32x64xf32>
    %cst_257 = arith.constant dense<0.000000e+00> : vector<32x64xf32>
    %580 = tpu.matmul %574, %579, %cst_257 {dimension_numbers = #tpu.dot_dimension_numbers<[1], [0], [0], [1], [0, 0, 1, 1], [], []>} : vector<32x32xf32>, vector<32x64xf32>, vector<32x64xf32> -> vector<32x64xf32>
    %c2_258 = arith.constant 2 : index
    %c0_259 = arith.constant 0 : index
    %581 = vector.load %arg13[%c2_258, %c0_259] : memref<4x64xf32, #tpu.memory_space<vmem>>, vector<1x64xf32>
    %582 = vector.broadcast %581 : vector<1x64xf32> to vector<32x64xf32>
    %583 = arith.addf %580, %582 : vector<32x64xf32>
    %cst_260 = arith.constant 0.000000e+00 : f32
    %584 = vector.broadcast %cst_260 : f32 to vector<32x64xf32>
    %585 = arith.maximumf %583, %584 : vector<32x64xf32>
    %c2_261 = arith.constant 2 : index
    %c0_262 = arith.constant 0 : index
    %c0_263 = arith.constant 0 : index
    %586 = vector.load %arg11[%c2_261, %c0_262, %c0_263] : memref<4x64x32xf32, #tpu.memory_space<vmem>>, vector<1x64x32xf32>
    %587 = vector.shape_cast %586 : vector<1x64x32xf32> to vector<64x32xf32>
    %cst_264 = arith.constant dense<0.000000e+00> : vector<32x32xf32>
    %588 = tpu.matmul %585, %587, %cst_264 {dimension_numbers = #tpu.dot_dimension_numbers<[1], [0], [0], [1], [0, 0, 1, 1], [], []>} : vector<32x64xf32>, vector<64x32xf32>, vector<32x32xf32> -> vector<32x32xf32>
    %c42 = arith.constant 42 : index
    %c0_265 = arith.constant 0 : index
    %589 = vector.load %arg12[%c42, %c0_265] : memref<48x32xf32, #tpu.memory_space<vmem>>, vector<1x32xf32>
    %590 = vector.broadcast %589 : vector<1x32xf32> to vector<32x32xf32>
    %591 = arith.addf %588, %590 : vector<32x32xf32>
    %592 = arith.addf %591, %574 : vector<32x32xf32>
    %c43 = arith.constant 43 : index
    %c0_266 = arith.constant 0 : index
    %593 = vector.load %arg12[%c43, %c0_266] : memref<48x32xf32, #tpu.memory_space<vmem>>, vector<1x32xf32>
    %c44 = arith.constant 44 : index
    %c0_267 = arith.constant 0 : index
    %594 = vector.load %arg12[%c44, %c0_267] : memref<48x32xf32, #tpu.memory_space<vmem>>, vector<1x32xf32>
    %cst_268 = arith.constant dense<0.000000e+00> : vector<32xf32>
    %595 = vector.multi_reduction <add>, %592, %cst_268 [1] : vector<32x32xf32> to vector<32xf32>
    %596 = vector.shape_cast %595 : vector<32xf32> to vector<32x1xf32>
    %cst_269 = arith.constant 3.200000e+01 : f32
    %597 = vector.broadcast %cst_269 : f32 to vector<32x1xf32>
    %598 = arith.divf %596, %597 : vector<32x1xf32>
    %599 = vector.broadcast %598 : vector<32x1xf32> to vector<32x32xf32>
    %600 = arith.subf %592, %599 : vector<32x32xf32>
    %601 = arith.mulf %600, %600 : vector<32x32xf32>
    %cst_270 = arith.constant dense<0.000000e+00> : vector<32xf32>
    %602 = vector.multi_reduction <add>, %601, %cst_270 [1] : vector<32x32xf32> to vector<32xf32>
    %603 = vector.shape_cast %602 : vector<32xf32> to vector<32x1xf32>
    %cst_271 = arith.constant 3.200000e+01 : f32
    %604 = vector.broadcast %cst_271 : f32 to vector<32x1xf32>
    %605 = arith.divf %603, %604 : vector<32x1xf32>
    %606 = vector.broadcast %598 : vector<32x1xf32> to vector<32x32xf32>
    %607 = arith.subf %592, %606 : vector<32x32xf32>
    %cst_272 = arith.constant 9.99999974E-6 : f32
    %608 = vector.broadcast %cst_272 : f32 to vector<32x1xf32>
    %609 = arith.addf %605, %608 : vector<32x1xf32>
    %610 = math.rsqrt %609 : vector<32x1xf32>
    %611 = vector.broadcast %610 : vector<32x1xf32> to vector<32x32xf32>
    %612 = arith.mulf %607, %611 : vector<32x32xf32>
    %613 = vector.broadcast %593 : vector<1x32xf32> to vector<32x32xf32>
    %614 = arith.mulf %612, %613 : vector<32x32xf32>
    %615 = vector.broadcast %594 : vector<1x32xf32> to vector<32x32xf32>
    %616 = arith.addf %614, %615 : vector<32x32xf32>
    %c4_273 = arith.constant 4 : index
    %c0_274 = arith.constant 0 : index
    %c0_275 = arith.constant 0 : index
    %617 = vector.load %arg6[%c4_273, %c0_274, %c0_275] : memref<6x32x32xf32, #tpu.memory_space<vmem>>, vector<1x32x32xf32>
    %618 = vector.shape_cast %617 : vector<1x32x32xf32> to vector<32x32xf32>
    %cst_276 = arith.constant dense<0.000000e+00> : vector<32x32xf32>
    %619 = tpu.matmul %616, %618, %cst_276 {dimension_numbers = #tpu.dot_dimension_numbers<[1], [0], [0], [1], [0, 0, 1, 1], [], []>} : vector<32x32xf32>, vector<32x32xf32>, vector<32x32xf32> -> vector<32x32xf32>
    %c24 = arith.constant 24 : index
    %c0_277 = arith.constant 0 : index
    %620 = vector.load %arg12[%c24, %c0_277] : memref<48x32xf32, #tpu.memory_space<vmem>>, vector<1x32xf32>
    %621 = vector.broadcast %620 : vector<1x32xf32> to vector<32x32xf32>
    %622 = arith.addf %619, %621 : vector<32x32xf32>
    %c4_278 = arith.constant 4 : index
    %c0_279 = arith.constant 0 : index
    %c0_280 = arith.constant 0 : index
    %623 = vector.load %arg7[%c4_278, %c0_279, %c0_280] : memref<6x32x32xf32, #tpu.memory_space<vmem>>, vector<1x32x32xf32>
    %624 = vector.shape_cast %623 : vector<1x32x32xf32> to vector<32x32xf32>
    %cst_281 = arith.constant dense<0.000000e+00> : vector<32x32xf32>
    %625 = tpu.matmul %616, %624, %cst_281 {dimension_numbers = #tpu.dot_dimension_numbers<[1], [0], [0], [1], [0, 0, 1, 1], [], []>} : vector<32x32xf32>, vector<32x32xf32>, vector<32x32xf32> -> vector<32x32xf32>
    %c25 = arith.constant 25 : index
    %c0_282 = arith.constant 0 : index
    %626 = vector.load %arg12[%c25, %c0_282] : memref<48x32xf32, #tpu.memory_space<vmem>>, vector<1x32xf32>
    %627 = vector.broadcast %626 : vector<1x32xf32> to vector<32x32xf32>
    %628 = arith.addf %625, %627 : vector<32x32xf32>
    %c4_283 = arith.constant 4 : index
    %c0_284 = arith.constant 0 : index
    %c0_285 = arith.constant 0 : index
    %629 = vector.load %arg8[%c4_283, %c0_284, %c0_285] : memref<6x32x32xf32, #tpu.memory_space<vmem>>, vector<1x32x32xf32>
    %630 = vector.shape_cast %629 : vector<1x32x32xf32> to vector<32x32xf32>
    %cst_286 = arith.constant dense<0.000000e+00> : vector<32x32xf32>
    %631 = tpu.matmul %616, %630, %cst_286 {dimension_numbers = #tpu.dot_dimension_numbers<[1], [0], [0], [1], [0, 0, 1, 1], [], []>} : vector<32x32xf32>, vector<32x32xf32>, vector<32x32xf32> -> vector<32x32xf32>
    %c26 = arith.constant 26 : index
    %c0_287 = arith.constant 0 : index
    %632 = vector.load %arg12[%c26, %c0_287] : memref<48x32xf32, #tpu.memory_space<vmem>>, vector<1x32xf32>
    %633 = vector.broadcast %632 : vector<1x32xf32> to vector<32x32xf32>
    %634 = arith.addf %631, %633 : vector<32x32xf32>
    %635 = tpu.transpose %628, [1, 0] : vector<32x32xf32> -> vector<32x32xf32>
    %636 = vector.extract_strided_slice %622 {offsets = [0, 0], sizes = [32, 8], strides = [1, 1]} : vector<32x32xf32> to vector<32x8xf32>
    %637 = vector.extract_strided_slice %635 {offsets = [0, 0], sizes = [8, 32], strides = [1, 1]} : vector<32x32xf32> to vector<8x32xf32>
    %cst_288 = arith.constant dense<0.000000e+00> : vector<32x32xf32>
    %638 = tpu.matmul %636, %637, %cst_288 {dimension_numbers = #tpu.dot_dimension_numbers<[1], [0], [0], [1], [0, 0, 1, 1], [], []>} : vector<32x8xf32>, vector<8x32xf32>, vector<32x32xf32> -> vector<32x32xf32>
    %cst_289 = arith.constant 0.353553385 : f32
    %639 = vector.broadcast %cst_289 : f32 to vector<32x32xf32>
    %640 = arith.mulf %638, %639 : vector<32x32xf32>
    %641 = arith.addf %640, %5 : vector<32x32xf32>
    %cst_290 = arith.constant dense<0xFF800000> : vector<32xf32>
    %642 = vector.multi_reduction <maximumf>, %641, %cst_290 [1] : vector<32x32xf32> to vector<32xf32>
    %643 = vector.shape_cast %642 : vector<32xf32> to vector<32x1xf32>
    %644 = vector.broadcast %643 : vector<32x1xf32> to vector<32x32xf32>
    %645 = arith.subf %641, %644 : vector<32x32xf32>
    %646 = math.exp %645 : vector<32x32xf32>
    %cst_291 = arith.constant dense<0.000000e+00> : vector<32xf32>
    %647 = vector.multi_reduction <add>, %646, %cst_291 [1] : vector<32x32xf32> to vector<32xf32>
    %648 = vector.shape_cast %647 : vector<32xf32> to vector<32x1xf32>
    %649 = vector.broadcast %648 : vector<32x1xf32> to vector<32x32xf32>
    %650 = arith.divf %646, %649 : vector<32x32xf32>
    %651 = vector.extract_strided_slice %634 {offsets = [0, 0], sizes = [32, 8], strides = [1, 1]} : vector<32x32xf32> to vector<32x8xf32>
    %cst_292 = arith.constant dense<0.000000e+00> : vector<32x8xf32>
    %652 = tpu.matmul %650, %651, %cst_292 {dimension_numbers = #tpu.dot_dimension_numbers<[1], [0], [0], [1], [0, 0, 1, 1], [], []>} : vector<32x32xf32>, vector<32x8xf32>, vector<32x8xf32> -> vector<32x8xf32>
    %653 = vector.extract_strided_slice %622 {offsets = [0, 8], sizes = [32, 8], strides = [1, 1]} : vector<32x32xf32> to vector<32x8xf32>
    %654 = vector.extract_strided_slice %635 {offsets = [8, 0], sizes = [8, 32], strides = [1, 1]} : vector<32x32xf32> to vector<8x32xf32>
    %cst_293 = arith.constant dense<0.000000e+00> : vector<32x32xf32>
    %655 = tpu.matmul %653, %654, %cst_293 {dimension_numbers = #tpu.dot_dimension_numbers<[1], [0], [0], [1], [0, 0, 1, 1], [], []>} : vector<32x8xf32>, vector<8x32xf32>, vector<32x32xf32> -> vector<32x32xf32>
    %cst_294 = arith.constant 0.353553385 : f32
    %656 = vector.broadcast %cst_294 : f32 to vector<32x32xf32>
    %657 = arith.mulf %655, %656 : vector<32x32xf32>
    %658 = arith.addf %657, %5 : vector<32x32xf32>
    %cst_295 = arith.constant dense<0xFF800000> : vector<32xf32>
    %659 = vector.multi_reduction <maximumf>, %658, %cst_295 [1] : vector<32x32xf32> to vector<32xf32>
    %660 = vector.shape_cast %659 : vector<32xf32> to vector<32x1xf32>
    %661 = vector.broadcast %660 : vector<32x1xf32> to vector<32x32xf32>
    %662 = arith.subf %658, %661 : vector<32x32xf32>
    %663 = math.exp %662 : vector<32x32xf32>
    %cst_296 = arith.constant dense<0.000000e+00> : vector<32xf32>
    %664 = vector.multi_reduction <add>, %663, %cst_296 [1] : vector<32x32xf32> to vector<32xf32>
    %665 = vector.shape_cast %664 : vector<32xf32> to vector<32x1xf32>
    %666 = vector.broadcast %665 : vector<32x1xf32> to vector<32x32xf32>
    %667 = arith.divf %663, %666 : vector<32x32xf32>
    %668 = vector.extract_strided_slice %634 {offsets = [0, 8], sizes = [32, 8], strides = [1, 1]} : vector<32x32xf32> to vector<32x8xf32>
    %cst_297 = arith.constant dense<0.000000e+00> : vector<32x8xf32>
    %669 = tpu.matmul %667, %668, %cst_297 {dimension_numbers = #tpu.dot_dimension_numbers<[1], [0], [0], [1], [0, 0, 1, 1], [], []>} : vector<32x32xf32>, vector<32x8xf32>, vector<32x8xf32> -> vector<32x8xf32>
    %670 = vector.extract_strided_slice %622 {offsets = [0, 16], sizes = [32, 8], strides = [1, 1]} : vector<32x32xf32> to vector<32x8xf32>
    %671 = vector.extract_strided_slice %635 {offsets = [16, 0], sizes = [8, 32], strides = [1, 1]} : vector<32x32xf32> to vector<8x32xf32>
    %cst_298 = arith.constant dense<0.000000e+00> : vector<32x32xf32>
    %672 = tpu.matmul %670, %671, %cst_298 {dimension_numbers = #tpu.dot_dimension_numbers<[1], [0], [0], [1], [0, 0, 1, 1], [], []>} : vector<32x8xf32>, vector<8x32xf32>, vector<32x32xf32> -> vector<32x32xf32>
    %cst_299 = arith.constant 0.353553385 : f32
    %673 = vector.broadcast %cst_299 : f32 to vector<32x32xf32>
    %674 = arith.mulf %672, %673 : vector<32x32xf32>
    %675 = arith.addf %674, %5 : vector<32x32xf32>
    %cst_300 = arith.constant dense<0xFF800000> : vector<32xf32>
    %676 = vector.multi_reduction <maximumf>, %675, %cst_300 [1] : vector<32x32xf32> to vector<32xf32>
    %677 = vector.shape_cast %676 : vector<32xf32> to vector<32x1xf32>
    %678 = vector.broadcast %677 : vector<32x1xf32> to vector<32x32xf32>
    %679 = arith.subf %675, %678 : vector<32x32xf32>
    %680 = math.exp %679 : vector<32x32xf32>
    %cst_301 = arith.constant dense<0.000000e+00> : vector<32xf32>
    %681 = vector.multi_reduction <add>, %680, %cst_301 [1] : vector<32x32xf32> to vector<32xf32>
    %682 = vector.shape_cast %681 : vector<32xf32> to vector<32x1xf32>
    %683 = vector.broadcast %682 : vector<32x1xf32> to vector<32x32xf32>
    %684 = arith.divf %680, %683 : vector<32x32xf32>
    %685 = vector.extract_strided_slice %634 {offsets = [0, 16], sizes = [32, 8], strides = [1, 1]} : vector<32x32xf32> to vector<32x8xf32>
    %cst_302 = arith.constant dense<0.000000e+00> : vector<32x8xf32>
    %686 = tpu.matmul %684, %685, %cst_302 {dimension_numbers = #tpu.dot_dimension_numbers<[1], [0], [0], [1], [0, 0, 1, 1], [], []>} : vector<32x32xf32>, vector<32x8xf32>, vector<32x8xf32> -> vector<32x8xf32>
    %687 = vector.extract_strided_slice %622 {offsets = [0, 24], sizes = [32, 8], strides = [1, 1]} : vector<32x32xf32> to vector<32x8xf32>
    %688 = vector.extract_strided_slice %635 {offsets = [24, 0], sizes = [8, 32], strides = [1, 1]} : vector<32x32xf32> to vector<8x32xf32>
    %cst_303 = arith.constant dense<0.000000e+00> : vector<32x32xf32>
    %689 = tpu.matmul %687, %688, %cst_303 {dimension_numbers = #tpu.dot_dimension_numbers<[1], [0], [0], [1], [0, 0, 1, 1], [], []>} : vector<32x8xf32>, vector<8x32xf32>, vector<32x32xf32> -> vector<32x32xf32>
    %cst_304 = arith.constant 0.353553385 : f32
    %690 = vector.broadcast %cst_304 : f32 to vector<32x32xf32>
    %691 = arith.mulf %689, %690 : vector<32x32xf32>
    %692 = arith.addf %691, %5 : vector<32x32xf32>
    %cst_305 = arith.constant dense<0xFF800000> : vector<32xf32>
    %693 = vector.multi_reduction <maximumf>, %692, %cst_305 [1] : vector<32x32xf32> to vector<32xf32>
    %694 = vector.shape_cast %693 : vector<32xf32> to vector<32x1xf32>
    %695 = vector.broadcast %694 : vector<32x1xf32> to vector<32x32xf32>
    %696 = arith.subf %692, %695 : vector<32x32xf32>
    %697 = math.exp %696 : vector<32x32xf32>
    %cst_306 = arith.constant dense<0.000000e+00> : vector<32xf32>
    %698 = vector.multi_reduction <add>, %697, %cst_306 [1] : vector<32x32xf32> to vector<32xf32>
    %699 = vector.shape_cast %698 : vector<32xf32> to vector<32x1xf32>
    %700 = vector.broadcast %699 : vector<32x1xf32> to vector<32x32xf32>
    %701 = arith.divf %697, %700 : vector<32x32xf32>
    %702 = vector.extract_strided_slice %634 {offsets = [0, 24], sizes = [32, 8], strides = [1, 1]} : vector<32x32xf32> to vector<32x8xf32>
    %cst_307 = arith.constant dense<0.000000e+00> : vector<32x8xf32>
    %703 = tpu.matmul %701, %702, %cst_307 {dimension_numbers = #tpu.dot_dimension_numbers<[1], [0], [0], [1], [0, 0, 1, 1], [], []>} : vector<32x32xf32>, vector<32x8xf32>, vector<32x8xf32> -> vector<32x8xf32>
    %704 = tpu.concatenate %650, %667, %684, %701 in 1 : vector<32x32xf32>, vector<32x32xf32>, vector<32x32xf32>, vector<32x32xf32> -> vector<32x128xf32>
    %705 = tpu.concatenate %652, %669, %686, %703 in 1 : vector<32x8xf32>, vector<32x8xf32>, vector<32x8xf32>, vector<32x8xf32> -> vector<32x32xf32>
    %c4_308 = arith.constant 4 : index
    %c0_309 = arith.constant 0 : index
    %c0_310 = arith.constant 0 : index
    %706 = vector.load %arg9[%c4_308, %c0_309, %c0_310] : memref<6x32x32xf32, #tpu.memory_space<vmem>>, vector<1x32x32xf32>
    %707 = vector.shape_cast %706 : vector<1x32x32xf32> to vector<32x32xf32>
    %cst_311 = arith.constant dense<0.000000e+00> : vector<32x32xf32>
    %708 = tpu.matmul %705, %707, %cst_311 {dimension_numbers = #tpu.dot_dimension_numbers<[1], [0], [0], [1], [0, 0, 1, 1], [], []>} : vector<32x32xf32>, vector<32x32xf32>, vector<32x32xf32> -> vector<32x32xf32>
    %c27 = arith.constant 27 : index
    %c0_312 = arith.constant 0 : index
    %709 = vector.load %arg12[%c27, %c0_312] : memref<48x32xf32, #tpu.memory_space<vmem>>, vector<1x32xf32>
    %710 = vector.broadcast %709 : vector<1x32xf32> to vector<32x32xf32>
    %711 = arith.addf %708, %710 : vector<32x32xf32>
    %712 = arith.addf %711, %616 : vector<32x32xf32>
    %c28 = arith.constant 28 : index
    %c0_313 = arith.constant 0 : index
    %713 = vector.load %arg12[%c28, %c0_313] : memref<48x32xf32, #tpu.memory_space<vmem>>, vector<1x32xf32>
    %c29 = arith.constant 29 : index
    %c0_314 = arith.constant 0 : index
    %714 = vector.load %arg12[%c29, %c0_314] : memref<48x32xf32, #tpu.memory_space<vmem>>, vector<1x32xf32>
    %cst_315 = arith.constant dense<0.000000e+00> : vector<32xf32>
    %715 = vector.multi_reduction <add>, %712, %cst_315 [1] : vector<32x32xf32> to vector<32xf32>
    %716 = vector.shape_cast %715 : vector<32xf32> to vector<32x1xf32>
    %cst_316 = arith.constant 3.200000e+01 : f32
    %717 = vector.broadcast %cst_316 : f32 to vector<32x1xf32>
    %718 = arith.divf %716, %717 : vector<32x1xf32>
    %719 = vector.broadcast %718 : vector<32x1xf32> to vector<32x32xf32>
    %720 = arith.subf %712, %719 : vector<32x32xf32>
    %721 = arith.mulf %720, %720 : vector<32x32xf32>
    %cst_317 = arith.constant dense<0.000000e+00> : vector<32xf32>
    %722 = vector.multi_reduction <add>, %721, %cst_317 [1] : vector<32x32xf32> to vector<32xf32>
    %723 = vector.shape_cast %722 : vector<32xf32> to vector<32x1xf32>
    %cst_318 = arith.constant 3.200000e+01 : f32
    %724 = vector.broadcast %cst_318 : f32 to vector<32x1xf32>
    %725 = arith.divf %723, %724 : vector<32x1xf32>
    %726 = vector.broadcast %718 : vector<32x1xf32> to vector<32x32xf32>
    %727 = arith.subf %712, %726 : vector<32x32xf32>
    %cst_319 = arith.constant 9.99999974E-6 : f32
    %728 = vector.broadcast %cst_319 : f32 to vector<32x1xf32>
    %729 = arith.addf %725, %728 : vector<32x1xf32>
    %730 = math.rsqrt %729 : vector<32x1xf32>
    %731 = vector.broadcast %730 : vector<32x1xf32> to vector<32x32xf32>
    %732 = arith.mulf %727, %731 : vector<32x32xf32>
    %733 = vector.broadcast %713 : vector<1x32xf32> to vector<32x32xf32>
    %734 = arith.mulf %732, %733 : vector<32x32xf32>
    %735 = vector.broadcast %714 : vector<1x32xf32> to vector<32x32xf32>
    %736 = arith.addf %734, %735 : vector<32x32xf32>
    %c1_320 = arith.constant 1 : index
    %c0_321 = arith.constant 0 : index
    %c0_322 = arith.constant 0 : index
    %c0_323 = arith.constant 0 : index
    %737 = vector.load %arg17[%c1_320, %c0_321, %c0_322, %c0_323] : memref<2x1x32x128xf32, #tpu.memory_space<vmem>>, vector<1x1x32x128xf32>
    %738 = vector.shape_cast %737 : vector<1x1x32x128xf32> to vector<32x128xf32>
    %739 = vector.shape_cast %704 : vector<32x128xf32> to vector<1x1x32x128xf32>
    tpu.vector_store %arg17[%c1_320, %c0_321, %c0_322, %c0_323], %739 {strides = array<i32>} : memref<2x1x32x128xf32, #tpu.memory_space<vmem>>, vector<1x1x32x128xf32>,
    %c5_324 = arith.constant 5 : index
    %c0_325 = arith.constant 0 : index
    %c0_326 = arith.constant 0 : index
    %740 = vector.load %arg6[%c5_324, %c0_325, %c0_326] : memref<6x32x32xf32, #tpu.memory_space<vmem>>, vector<1x32x32xf32>
    %741 = vector.shape_cast %740 : vector<1x32x32xf32> to vector<32x32xf32>
    %cst_327 = arith.constant dense<0.000000e+00> : vector<32x32xf32>
    %742 = tpu.matmul %736, %741, %cst_327 {dimension_numbers = #tpu.dot_dimension_numbers<[1], [0], [0], [1], [0, 0, 1, 1], [], []>} : vector<32x32xf32>, vector<32x32xf32>, vector<32x32xf32> -> vector<32x32xf32>
    %c30 = arith.constant 30 : index
    %c0_328 = arith.constant 0 : index
    %743 = vector.load %arg12[%c30, %c0_328] : memref<48x32xf32, #tpu.memory_space<vmem>>, vector<1x32xf32>
    %744 = vector.broadcast %743 : vector<1x32xf32> to vector<32x32xf32>
    %745 = arith.addf %742, %744 : vector<32x32xf32>
    %c5_329 = arith.constant 5 : index
    %c0_330 = arith.constant 0 : index
    %c0_331 = arith.constant 0 : index
    %746 = vector.load %arg7[%c5_329, %c0_330, %c0_331] : memref<6x32x32xf32, #tpu.memory_space<vmem>>, vector<1x32x32xf32>
    %747 = vector.shape_cast %746 : vector<1x32x32xf32> to vector<32x32xf32>
    %cst_332 = arith.constant dense<0.000000e+00> : vector<32x32xf32>
    %748 = tpu.matmul %331, %747, %cst_332 {dimension_numbers = #tpu.dot_dimension_numbers<[1], [0], [0], [1], [0, 0, 1, 1], [], []>} : vector<32x32xf32>, vector<32x32xf32>, vector<32x32xf32> -> vector<32x32xf32>
    %c31 = arith.constant 31 : index
    %c0_333 = arith.constant 0 : index
    %749 = vector.load %arg12[%c31, %c0_333] : memref<48x32xf32, #tpu.memory_space<vmem>>, vector<1x32xf32>
    %750 = vector.broadcast %749 : vector<1x32xf32> to vector<32x32xf32>
    %751 = arith.addf %748, %750 : vector<32x32xf32>
    %c5_334 = arith.constant 5 : index
    %c0_335 = arith.constant 0 : index
    %c0_336 = arith.constant 0 : index
    %752 = vector.load %arg8[%c5_334, %c0_335, %c0_336] : memref<6x32x32xf32, #tpu.memory_space<vmem>>, vector<1x32x32xf32>
    %753 = vector.shape_cast %752 : vector<1x32x32xf32> to vector<32x32xf32>
    %cst_337 = arith.constant dense<0.000000e+00> : vector<32x32xf32>
    %754 = tpu.matmul %331, %753, %cst_337 {dimension_numbers = #tpu.dot_dimension_numbers<[1], [0], [0], [1], [0, 0, 1, 1], [], []>} : vector<32x32xf32>, vector<32x32xf32>, vector<32x32xf32> -> vector<32x32xf32>
    %c32 = arith.constant 32 : index
    %c0_338 = arith.constant 0 : index
    %755 = vector.load %arg12[%c32, %c0_338] : memref<48x32xf32, #tpu.memory_space<vmem>>, vector<1x32xf32>
    %756 = vector.broadcast %755 : vector<1x32xf32> to vector<32x32xf32>
    %757 = arith.addf %754, %756 : vector<32x32xf32>
    %758 = tpu.transpose %751, [1, 0] : vector<32x32xf32> -> vector<32x32xf32>
    %759 = vector.extract_strided_slice %745 {offsets = [0, 0], sizes = [32, 8], strides = [1, 1]} : vector<32x32xf32> to vector<32x8xf32>
    %760 = vector.extract_strided_slice %758 {offsets = [0, 0], sizes = [8, 32], strides = [1, 1]} : vector<32x32xf32> to vector<8x32xf32>
    %cst_339 = arith.constant dense<0.000000e+00> : vector<32x32xf32>
    %761 = tpu.matmul %759, %760, %cst_339 {dimension_numbers = #tpu.dot_dimension_numbers<[1], [0], [0], [1], [0, 0, 1, 1], [], []>} : vector<32x8xf32>, vector<8x32xf32>, vector<32x32xf32> -> vector<32x32xf32>
    %cst_340 = arith.constant 0.353553385 : f32
    %762 = vector.broadcast %cst_340 : f32 to vector<32x32xf32>
    %763 = arith.mulf %761, %762 : vector<32x32xf32>
    %764 = arith.addf %763, %7 : vector<32x32xf32>
    %cst_341 = arith.constant dense<0xFF800000> : vector<32xf32>
    %765 = vector.multi_reduction <maximumf>, %764, %cst_341 [1] : vector<32x32xf32> to vector<32xf32>
    %766 = vector.shape_cast %765 : vector<32xf32> to vector<32x1xf32>
    %767 = vector.broadcast %766 : vector<32x1xf32> to vector<32x32xf32>
    %768 = arith.subf %764, %767 : vector<32x32xf32>
    %769 = math.exp %768 : vector<32x32xf32>
    %cst_342 = arith.constant dense<0.000000e+00> : vector<32xf32>
    %770 = vector.multi_reduction <add>, %769, %cst_342 [1] : vector<32x32xf32> to vector<32xf32>
    %771 = vector.shape_cast %770 : vector<32xf32> to vector<32x1xf32>
    %772 = vector.broadcast %771 : vector<32x1xf32> to vector<32x32xf32>
    %773 = arith.divf %769, %772 : vector<32x32xf32>
    %774 = vector.extract_strided_slice %757 {offsets = [0, 0], sizes = [32, 8], strides = [1, 1]} : vector<32x32xf32> to vector<32x8xf32>
    %cst_343 = arith.constant dense<0.000000e+00> : vector<32x8xf32>
    %775 = tpu.matmul %773, %774, %cst_343 {dimension_numbers = #tpu.dot_dimension_numbers<[1], [0], [0], [1], [0, 0, 1, 1], [], []>} : vector<32x32xf32>, vector<32x8xf32>, vector<32x8xf32> -> vector<32x8xf32>
    %776 = vector.extract_strided_slice %745 {offsets = [0, 8], sizes = [32, 8], strides = [1, 1]} : vector<32x32xf32> to vector<32x8xf32>
    %777 = vector.extract_strided_slice %758 {offsets = [8, 0], sizes = [8, 32], strides = [1, 1]} : vector<32x32xf32> to vector<8x32xf32>
    %cst_344 = arith.constant dense<0.000000e+00> : vector<32x32xf32>
    %778 = tpu.matmul %776, %777, %cst_344 {dimension_numbers = #tpu.dot_dimension_numbers<[1], [0], [0], [1], [0, 0, 1, 1], [], []>} : vector<32x8xf32>, vector<8x32xf32>, vector<32x32xf32> -> vector<32x32xf32>
    %cst_345 = arith.constant 0.353553385 : f32
    %779 = vector.broadcast %cst_345 : f32 to vector<32x32xf32>
    %780 = arith.mulf %778, %779 : vector<32x32xf32>
    %781 = arith.addf %780, %7 : vector<32x32xf32>
    %cst_346 = arith.constant dense<0xFF800000> : vector<32xf32>
    %782 = vector.multi_reduction <maximumf>, %781, %cst_346 [1] : vector<32x32xf32> to vector<32xf32>
    %783 = vector.shape_cast %782 : vector<32xf32> to vector<32x1xf32>
    %784 = vector.broadcast %783 : vector<32x1xf32> to vector<32x32xf32>
    %785 = arith.subf %781, %784 : vector<32x32xf32>
    %786 = math.exp %785 : vector<32x32xf32>
    %cst_347 = arith.constant dense<0.000000e+00> : vector<32xf32>
    %787 = vector.multi_reduction <add>, %786, %cst_347 [1] : vector<32x32xf32> to vector<32xf32>
    %788 = vector.shape_cast %787 : vector<32xf32> to vector<32x1xf32>
    %789 = vector.broadcast %788 : vector<32x1xf32> to vector<32x32xf32>
    %790 = arith.divf %786, %789 : vector<32x32xf32>
    %791 = vector.extract_strided_slice %757 {offsets = [0, 8], sizes = [32, 8], strides = [1, 1]} : vector<32x32xf32> to vector<32x8xf32>
    %cst_348 = arith.constant dense<0.000000e+00> : vector<32x8xf32>
    %792 = tpu.matmul %790, %791, %cst_348 {dimension_numbers = #tpu.dot_dimension_numbers<[1], [0], [0], [1], [0, 0, 1, 1], [], []>} : vector<32x32xf32>, vector<32x8xf32>, vector<32x8xf32> -> vector<32x8xf32>
    %793 = vector.extract_strided_slice %745 {offsets = [0, 16], sizes = [32, 8], strides = [1, 1]} : vector<32x32xf32> to vector<32x8xf32>
    %794 = vector.extract_strided_slice %758 {offsets = [16, 0], sizes = [8, 32], strides = [1, 1]} : vector<32x32xf32> to vector<8x32xf32>
    %cst_349 = arith.constant dense<0.000000e+00> : vector<32x32xf32>
    %795 = tpu.matmul %793, %794, %cst_349 {dimension_numbers = #tpu.dot_dimension_numbers<[1], [0], [0], [1], [0, 0, 1, 1], [], []>} : vector<32x8xf32>, vector<8x32xf32>, vector<32x32xf32> -> vector<32x32xf32>
    %cst_350 = arith.constant 0.353553385 : f32
    %796 = vector.broadcast %cst_350 : f32 to vector<32x32xf32>
    %797 = arith.mulf %795, %796 : vector<32x32xf32>
    %798 = arith.addf %797, %7 : vector<32x32xf32>
    %cst_351 = arith.constant dense<0xFF800000> : vector<32xf32>
    %799 = vector.multi_reduction <maximumf>, %798, %cst_351 [1] : vector<32x32xf32> to vector<32xf32>
    %800 = vector.shape_cast %799 : vector<32xf32> to vector<32x1xf32>
    %801 = vector.broadcast %800 : vector<32x1xf32> to vector<32x32xf32>
    %802 = arith.subf %798, %801 : vector<32x32xf32>
    %803 = math.exp %802 : vector<32x32xf32>
    %cst_352 = arith.constant dense<0.000000e+00> : vector<32xf32>
    %804 = vector.multi_reduction <add>, %803, %cst_352 [1] : vector<32x32xf32> to vector<32xf32>
    %805 = vector.shape_cast %804 : vector<32xf32> to vector<32x1xf32>
    %806 = vector.broadcast %805 : vector<32x1xf32> to vector<32x32xf32>
    %807 = arith.divf %803, %806 : vector<32x32xf32>
    %808 = vector.extract_strided_slice %757 {offsets = [0, 16], sizes = [32, 8], strides = [1, 1]} : vector<32x32xf32> to vector<32x8xf32>
    %cst_353 = arith.constant dense<0.000000e+00> : vector<32x8xf32>
    %809 = tpu.matmul %807, %808, %cst_353 {dimension_numbers = #tpu.dot_dimension_numbers<[1], [0], [0], [1], [0, 0, 1, 1], [], []>} : vector<32x32xf32>, vector<32x8xf32>, vector<32x8xf32> -> vector<32x8xf32>
    %810 = vector.extract_strided_slice %745 {offsets = [0, 24], sizes = [32, 8], strides = [1, 1]} : vector<32x32xf32> to vector<32x8xf32>
    %811 = vector.extract_strided_slice %758 {offsets = [24, 0], sizes = [8, 32], strides = [1, 1]} : vector<32x32xf32> to vector<8x32xf32>
    %cst_354 = arith.constant dense<0.000000e+00> : vector<32x32xf32>
    %812 = tpu.matmul %810, %811, %cst_354 {dimension_numbers = #tpu.dot_dimension_numbers<[1], [0], [0], [1], [0, 0, 1, 1], [], []>} : vector<32x8xf32>, vector<8x32xf32>, vector<32x32xf32> -> vector<32x32xf32>
    %cst_355 = arith.constant 0.353553385 : f32
    %813 = vector.broadcast %cst_355 : f32 to vector<32x32xf32>
    %814 = arith.mulf %812, %813 : vector<32x32xf32>
    %815 = arith.addf %814, %7 : vector<32x32xf32>
    %cst_356 = arith.constant dense<0xFF800000> : vector<32xf32>
    %816 = vector.multi_reduction <maximumf>, %815, %cst_356 [1] : vector<32x32xf32> to vector<32xf32>
    %817 = vector.shape_cast %816 : vector<32xf32> to vector<32x1xf32>
    %818 = vector.broadcast %817 : vector<32x1xf32> to vector<32x32xf32>
    %819 = arith.subf %815, %818 : vector<32x32xf32>
    %820 = math.exp %819 : vector<32x32xf32>
    %cst_357 = arith.constant dense<0.000000e+00> : vector<32xf32>
    %821 = vector.multi_reduction <add>, %820, %cst_357 [1] : vector<32x32xf32> to vector<32xf32>
    %822 = vector.shape_cast %821 : vector<32xf32> to vector<32x1xf32>
    %823 = vector.broadcast %822 : vector<32x1xf32> to vector<32x32xf32>
    %824 = arith.divf %820, %823 : vector<32x32xf32>
    %825 = vector.extract_strided_slice %757 {offsets = [0, 24], sizes = [32, 8], strides = [1, 1]} : vector<32x32xf32> to vector<32x8xf32>
    %cst_358 = arith.constant dense<0.000000e+00> : vector<32x8xf32>
    %826 = tpu.matmul %824, %825, %cst_358 {dimension_numbers = #tpu.dot_dimension_numbers<[1], [0], [0], [1], [0, 0, 1, 1], [], []>} : vector<32x32xf32>, vector<32x8xf32>, vector<32x8xf32> -> vector<32x8xf32>
    %827 = tpu.concatenate %773, %790, %807, %824 in 1 : vector<32x32xf32>, vector<32x32xf32>, vector<32x32xf32>, vector<32x32xf32> -> vector<32x128xf32>
    %828 = tpu.concatenate %775, %792, %809, %826 in 1 : vector<32x8xf32>, vector<32x8xf32>, vector<32x8xf32>, vector<32x8xf32> -> vector<32x32xf32>
    %c5_359 = arith.constant 5 : index
    %c0_360 = arith.constant 0 : index
    %c0_361 = arith.constant 0 : index
    %829 = vector.load %arg9[%c5_359, %c0_360, %c0_361] : memref<6x32x32xf32, #tpu.memory_space<vmem>>, vector<1x32x32xf32>
    %830 = vector.shape_cast %829 : vector<1x32x32xf32> to vector<32x32xf32>
    %cst_362 = arith.constant dense<0.000000e+00> : vector<32x32xf32>
    %831 = tpu.matmul %828, %830, %cst_362 {dimension_numbers = #tpu.dot_dimension_numbers<[1], [0], [0], [1], [0, 0, 1, 1], [], []>} : vector<32x32xf32>, vector<32x32xf32>, vector<32x32xf32> -> vector<32x32xf32>
    %c33 = arith.constant 33 : index
    %c0_363 = arith.constant 0 : index
    %832 = vector.load %arg12[%c33, %c0_363] : memref<48x32xf32, #tpu.memory_space<vmem>>, vector<1x32xf32>
    %833 = vector.broadcast %832 : vector<1x32xf32> to vector<32x32xf32>
    %834 = arith.addf %831, %833 : vector<32x32xf32>
    %835 = arith.addf %834, %736 : vector<32x32xf32>
    %c34 = arith.constant 34 : index
    %c0_364 = arith.constant 0 : index
    %836 = vector.load %arg12[%c34, %c0_364] : memref<48x32xf32, #tpu.memory_space<vmem>>, vector<1x32xf32>
    %c35 = arith.constant 35 : index
    %c0_365 = arith.constant 0 : index
    %837 = vector.load %arg12[%c35, %c0_365] : memref<48x32xf32, #tpu.memory_space<vmem>>, vector<1x32xf32>
    %cst_366 = arith.constant dense<0.000000e+00> : vector<32xf32>
    %838 = vector.multi_reduction <add>, %835, %cst_366 [1] : vector<32x32xf32> to vector<32xf32>
    %839 = vector.shape_cast %838 : vector<32xf32> to vector<32x1xf32>
    %cst_367 = arith.constant 3.200000e+01 : f32
    %840 = vector.broadcast %cst_367 : f32 to vector<32x1xf32>
    %841 = arith.divf %839, %840 : vector<32x1xf32>
    %842 = vector.broadcast %841 : vector<32x1xf32> to vector<32x32xf32>
    %843 = arith.subf %835, %842 : vector<32x32xf32>
    %844 = arith.mulf %843, %843 : vector<32x32xf32>
    %cst_368 = arith.constant dense<0.000000e+00> : vector<32xf32>
    %845 = vector.multi_reduction <add>, %844, %cst_368 [1] : vector<32x32xf32> to vector<32xf32>
    %846 = vector.shape_cast %845 : vector<32xf32> to vector<32x1xf32>
    %cst_369 = arith.constant 3.200000e+01 : f32
    %847 = vector.broadcast %cst_369 : f32 to vector<32x1xf32>
    %848 = arith.divf %846, %847 : vector<32x1xf32>
    %849 = vector.broadcast %841 : vector<32x1xf32> to vector<32x32xf32>
    %850 = arith.subf %835, %849 : vector<32x32xf32>
    %cst_370 = arith.constant 9.99999974E-6 : f32
    %851 = vector.broadcast %cst_370 : f32 to vector<32x1xf32>
    %852 = arith.addf %848, %851 : vector<32x1xf32>
    %853 = math.rsqrt %852 : vector<32x1xf32>
    %854 = vector.broadcast %853 : vector<32x1xf32> to vector<32x32xf32>
    %855 = arith.mulf %850, %854 : vector<32x32xf32>
    %856 = vector.broadcast %836 : vector<1x32xf32> to vector<32x32xf32>
    %857 = arith.mulf %855, %856 : vector<32x32xf32>
    %858 = vector.broadcast %837 : vector<1x32xf32> to vector<32x32xf32>
    %859 = arith.addf %857, %858 : vector<32x32xf32>
    %c1_371 = arith.constant 1 : index
    %c0_372 = arith.constant 0 : index
    %c0_373 = arith.constant 0 : index
    %c0_374 = arith.constant 0 : index
    %860 = vector.load %arg18[%c1_371, %c0_372, %c0_373, %c0_374] : memref<2x1x32x128xf32, #tpu.memory_space<vmem>>, vector<1x1x32x128xf32>
    %861 = vector.shape_cast %860 : vector<1x1x32x128xf32> to vector<32x128xf32>
    %862 = vector.shape_cast %827 : vector<32x128xf32> to vector<1x1x32x128xf32>
    tpu.vector_store %arg18[%c1_371, %c0_372, %c0_373, %c0_374], %862 {strides = array<i32>} : memref<2x1x32x128xf32, #tpu.memory_space<vmem>>, vector<1x1x32x128xf32>,
    %c3_375 = arith.constant 3 : index
    %c0_376 = arith.constant 0 : index
    %c0_377 = arith.constant 0 : index
    %863 = vector.load %arg10[%c3_375, %c0_376, %c0_377] : memref<4x32x64xf32, #tpu.memory_space<vmem>>, vector<1x32x64xf32>
    %864 = vector.shape_cast %863 : vector<1x32x64xf32> to vector<32x64xf32>
    %cst_378 = arith.constant dense<0.000000e+00> : vector<32x64xf32>
    %865 = tpu.matmul %859, %864, %cst_378 {dimension_numbers = #tpu.dot_dimension_numbers<[1], [0], [0], [1], [0, 0, 1, 1], [], []>} : vector<32x32xf32>, vector<32x64xf32>, vector<32x64xf32> -> vector<32x64xf32>
    %c3_379 = arith.constant 3 : index
    %c0_380 = arith.constant 0 : index
    %866 = vector.load %arg13[%c3_379, %c0_380] : memref<4x64xf32, #tpu.memory_space<vmem>>, vector<1x64xf32>
    %867 = vector.broadcast %866 : vector<1x64xf32> to vector<32x64xf32>
    %868 = arith.addf %865, %867 : vector<32x64xf32>
    %cst_381 = arith.constant 0.000000e+00 : f32
    %869 = vector.broadcast %cst_381 : f32 to vector<32x64xf32>
    %870 = arith.maximumf %868, %869 : vector<32x64xf32>
    %c3_382 = arith.constant 3 : index
    %c0_383 = arith.constant 0 : index
    %c0_384 = arith.constant 0 : index
    %871 = vector.load %arg11[%c3_382, %c0_383, %c0_384] : memref<4x64x32xf32, #tpu.memory_space<vmem>>, vector<1x64x32xf32>
    %872 = vector.shape_cast %871 : vector<1x64x32xf32> to vector<64x32xf32>
    %cst_385 = arith.constant dense<0.000000e+00> : vector<32x32xf32>
    %873 = tpu.matmul %870, %872, %cst_385 {dimension_numbers = #tpu.dot_dimension_numbers<[1], [0], [0], [1], [0, 0, 1, 1], [], []>} : vector<32x64xf32>, vector<64x32xf32>, vector<32x32xf32> -> vector<32x32xf32>
    %c45 = arith.constant 45 : index
    %c0_386 = arith.constant 0 : index
    %874 = vector.load %arg12[%c45, %c0_386] : memref<48x32xf32, #tpu.memory_space<vmem>>, vector<1x32xf32>
    %875 = vector.broadcast %874 : vector<1x32xf32> to vector<32x32xf32>
    %876 = arith.addf %873, %875 : vector<32x32xf32>
    %877 = arith.addf %876, %859 : vector<32x32xf32>
    %c46 = arith.constant 46 : index
    %c0_387 = arith.constant 0 : index
    %878 = vector.load %arg12[%c46, %c0_387] : memref<48x32xf32, #tpu.memory_space<vmem>>, vector<1x32xf32>
    %c47 = arith.constant 47 : index
    %c0_388 = arith.constant 0 : index
    %879 = vector.load %arg12[%c47, %c0_388] : memref<48x32xf32, #tpu.memory_space<vmem>>, vector<1x32xf32>
    %cst_389 = arith.constant dense<0.000000e+00> : vector<32xf32>
    %880 = vector.multi_reduction <add>, %877, %cst_389 [1] : vector<32x32xf32> to vector<32xf32>
    %881 = vector.shape_cast %880 : vector<32xf32> to vector<32x1xf32>
    %cst_390 = arith.constant 3.200000e+01 : f32
    %882 = vector.broadcast %cst_390 : f32 to vector<32x1xf32>
    %883 = arith.divf %881, %882 : vector<32x1xf32>
    %884 = vector.broadcast %883 : vector<32x1xf32> to vector<32x32xf32>
    %885 = arith.subf %877, %884 : vector<32x32xf32>
    %886 = arith.mulf %885, %885 : vector<32x32xf32>
    %cst_391 = arith.constant dense<0.000000e+00> : vector<32xf32>
    %887 = vector.multi_reduction <add>, %886, %cst_391 [1] : vector<32x32xf32> to vector<32xf32>
    %888 = vector.shape_cast %887 : vector<32xf32> to vector<32x1xf32>
    %cst_392 = arith.constant 3.200000e+01 : f32
    %889 = vector.broadcast %cst_392 : f32 to vector<32x1xf32>
    %890 = arith.divf %888, %889 : vector<32x1xf32>
    %891 = vector.broadcast %883 : vector<32x1xf32> to vector<32x32xf32>
    %892 = arith.subf %877, %891 : vector<32x32xf32>
    %cst_393 = arith.constant 9.99999974E-6 : f32
    %893 = vector.broadcast %cst_393 : f32 to vector<32x1xf32>
    %894 = arith.addf %890, %893 : vector<32x1xf32>
    %895 = math.rsqrt %894 : vector<32x1xf32>
    %896 = vector.broadcast %895 : vector<32x1xf32> to vector<32x32xf32>
    %897 = arith.mulf %892, %896 : vector<32x32xf32>
    %898 = vector.broadcast %878 : vector<1x32xf32> to vector<32x32xf32>
    %899 = arith.mulf %897, %898 : vector<32x32xf32>
    %900 = vector.broadcast %879 : vector<1x32xf32> to vector<32x32xf32>
    %901 = arith.addf %899, %900 : vector<32x32xf32>
    %c0_394 = arith.constant 0 : index
    %c0_395 = arith.constant 0 : index
    %902 = vector.load %arg14[%c0_394, %c0_395] : memref<32x128xf32, #tpu.memory_space<vmem>>, vector<32x128xf32>
    %cst_396 = arith.constant dense<0.000000e+00> : vector<32x128xf32>
    %903 = tpu.matmul %901, %902, %cst_396 {dimension_numbers = #tpu.dot_dimension_numbers<[1], [0], [0], [1], [0, 0, 1, 1], [], []>} : vector<32x32xf32>, vector<32x128xf32>, vector<32x128xf32> -> vector<32x128xf32>
    %c0_397 = arith.constant 0 : index
    %c0_398 = arith.constant 0 : index
    %904 = vector.load %arg15[%c0_397, %c0_398] : memref<32x128xf32, #tpu.memory_space<vmem>>, vector<32x128xf32>
    tpu.vector_store %arg15[%c0_397, %c0_398], %903 {strides = array<i32>} : memref<32x128xf32, #tpu.memory_space<vmem>>, vector<32x128xf32>,
    return
  }
  func.func @transform_0(%arg0: i32) -> (i32, i32) {
    %c0_i32 = arith.constant 0 : i32
    %c0_i32_0 = arith.constant 0 : i32
    return %arg0, %c0_i32 : i32, i32
  }
  func.func @transform_1(%arg0: i32) -> (i32, i32) {
    %c0_i32 = arith.constant 0 : i32
    %c0_i32_0 = arith.constant 0 : i32
    return %arg0, %c0_i32 : i32, i32
  }
  func.func @transform_2(%arg0: i32) -> (i32, i32, i32) {
    %c0_i32 = arith.constant 0 : i32
    %c0_i32_0 = arith.constant 0 : i32
    %c0_i32_1 = arith.constant 0 : i32
    return %arg0, %c0_i32, %c0_i32_0 : i32, i32, i32
  }
  func.func @transform_3(%arg0: i32) -> (i32, i32, i32) {
    %c0_i32 = arith.constant 0 : i32
    %c0_i32_0 = arith.constant 0 : i32
    %c0_i32_1 = arith.constant 0 : i32
    return %arg0, %c0_i32, %c0_i32_0 : i32, i32, i32
  }
  func.func @transform_4(%arg0: i32) -> (i32, i32, i32) {
    %c0_i32 = arith.constant 0 : i32
    %c0_i32_0 = arith.constant 0 : i32
    %c0_i32_1 = arith.constant 0 : i32
    return %arg0, %c0_i32, %c0_i32_0 : i32, i32, i32
  }
  func.func @transform_5(%arg0: i32) -> (i32, i32, i32) {
    %c0_i32 = arith.constant 0 : i32
    %c0_i32_0 = arith.constant 0 : i32
    %c0_i32_1 = arith.constant 0 : i32
    %c0_i32_2 = arith.constant 0 : i32
    return %c0_i32, %c0_i32_0, %c0_i32_1 : i32, i32, i32
  }
  func.func @transform_6(%arg0: i32) -> (i32, i32, i32) {
    %c0_i32 = arith.constant 0 : i32
    %c0_i32_0 = arith.constant 0 : i32
    %c0_i32_1 = arith.constant 0 : i32
    %c0_i32_2 = arith.constant 0 : i32
    return %c0_i32, %c0_i32_0, %c0_i32_1 : i32, i32, i32
  }
  func.func @transform_7(%arg0: i32) -> (i32, i32, i32) {
    %c0_i32 = arith.constant 0 : i32
    %c0_i32_0 = arith.constant 0 : i32
    %c0_i32_1 = arith.constant 0 : i32
    %c0_i32_2 = arith.constant 0 : i32
    return %c0_i32, %c0_i32_0, %c0_i32_1 : i32, i32, i32
  }
  func.func @transform_8(%arg0: i32) -> (i32, i32, i32) {
    %c0_i32 = arith.constant 0 : i32
    %c0_i32_0 = arith.constant 0 : i32
    %c0_i32_1 = arith.constant 0 : i32
    %c0_i32_2 = arith.constant 0 : i32
    return %c0_i32, %c0_i32_0, %c0_i32_1 : i32, i32, i32
  }
  func.func @transform_9(%arg0: i32) -> (i32, i32, i32) {
    %c0_i32 = arith.constant 0 : i32
    %c0_i32_0 = arith.constant 0 : i32
    %c0_i32_1 = arith.constant 0 : i32
    %c0_i32_2 = arith.constant 0 : i32
    return %c0_i32, %c0_i32_0, %c0_i32_1 : i32, i32, i32
  }
  func.func @transform_10(%arg0: i32) -> (i32, i32, i32) {
    %c0_i32 = arith.constant 0 : i32
    %c0_i32_0 = arith.constant 0 : i32
    %c0_i32_1 = arith.constant 0 : i32
    %c0_i32_2 = arith.constant 0 : i32
    return %c0_i32, %c0_i32_0, %c0_i32_1 : i32, i32, i32
  }
  func.func @transform_11(%arg0: i32) -> (i32, i32) {
    %c0_i32 = arith.constant 0 : i32
    %c0_i32_0 = arith.constant 0 : i32
    %c0_i32_1 = arith.constant 0 : i32
    return %c0_i32, %c0_i32_0 : i32, i32
  }
  func.func @transform_12(%arg0: i32) -> (i32, i32) {
    %c0_i32 = arith.constant 0 : i32
    %c0_i32_0 = arith.constant 0 : i32
    %c0_i32_1 = arith.constant 0 : i32
    return %c0_i32, %c0_i32_0 : i32, i32
  }
  func.func @transform_13(%arg0: i32) -> (i32, i32) {
    %c0_i32 = arith.constant 0 : i32
    %c0_i32_0 = arith.constant 0 : i32
    %c0_i32_1 = arith.constant 0 : i32
    return %c0_i32, %c0_i32_0 : i32, i32
  }
  func.func @transform_14(%arg0: i32) -> (i32, i32) {
    %c0_i32 = arith.constant 0 : i32
    %c0_i32_0 = arith.constant 0 : i32
    return %arg0, %c0_i32 : i32, i32
  }
  func.func @transform_15(%arg0: i32) -> (i32, i32, i32, i32) {
    %c0_i32 = arith.constant 0 : i32
    %c0_i32_0 = arith.constant 0 : i32
    %c0_i32_1 = arith.constant 0 : i32
    %c0_i32_2 = arith.constant 0 : i32
    return %c0_i32, %arg0, %c0_i32_0, %c0_i32_1 : i32, i32, i32, i32
  }
  func.func @transform_16(%arg0: i32) -> (i32, i32, i32, i32) {
    %c0_i32 = arith.constant 0 : i32
    %c0_i32_0 = arith.constant 0 : i32
    %c0_i32_1 = arith.constant 0 : i32
    %c0_i32_2 = arith.constant 0 : i32
    return %c0_i32, %arg0, %c0_i32_0, %c0_i32_1 : i32, i32, i32, i32
  }
  func.func @transform_17(%arg0: i32) -> (i32, i32, i32, i32) {
    %c0_i32 = arith.constant 0 : i32
    %c0_i32_0 = arith.constant 0 : i32
    %c0_i32_1 = arith.constant 0 : i32
    %c0_i32_2 = arith.constant 0 : i32
    return %c0_i32, %arg0, %c0_i32_0, %c0_i32_1 : i32, i32, i32, i32
  }
}

</mosaic_0001>

<bundles_post_ra>
// kernel: transformer_forward.1
= control target key start
LH: loop header
LB: loop body
LE: loop exit
PB: predicated region body
PF: predicated region fallthrough
CT: control target
= control target key end

     0   :  { %s20052_s0 = inlined_call_operand.vmem [shape: f32[64,32], index: 0, kind: input, shape index: {}]   ;;  %s20053_s1 = inlined_call_operand.vmem [shape: f32[64,32], index: 1, kind: input, shape index: {}]   ;;  %s20054_s2 = inlined_call_operand.vmem [shape: f32[2,32,32], index: 2, kind: input, shape index: {}, may-alias: {2,4}]   ;;  %s20055_s3 = inlined_call_operand.vmem [shape: f32[2,32,32], index: 3, kind: input, shape index: {}]   ;;  %s20056_s4 = inlined_call_operand.vmem [shape: f32[2,32,32], index: 4, kind: input, shape index: {}, may-alias: {2,4}]   ;;  %s20057_s5 = inlined_call_operand.vmem [shape: f32[6,32,32], index: 5, kind: input, shape index: {}]   ;;  %s20058_s6 = inlined_call_operand.vmem [shape: f32[6,32,32], index: 6, kind: input, shape index: {}]   ;;  %s20059_s7 = inlined_call_operand.vmem [shape: f32[6,32,32], index: 7, kind: input, shape index: {}]   ;;  %s20060_s8 = inlined_call_operand.vmem [shape: f32[6,32,32], index: 8, kind: input, shape index: {}]   ;;  %s20061_s9 = inlined_call_operand.vmem [shape: f32[4,32,64], index: 9, kind: input, shape index: {}]   ;;  %s20062_s10 = inlined_call_operand.vmem [shape: f32[4,64,32], index: 10, kind: input, shape index: {}]   ;;  %s20063_s11 = inlined_call_operand.vmem [shape: f32[48,32], index: 11, kind: input, shape index: {}]   ;;  %s20064_s12 = inlined_call_operand.vmem [shape: f32[4,64], index: 12, kind: input, shape index: {}]   ;;  %s20065_s13 = inlined_call_operand.vmem [shape: f32[32,128], index: 13, kind: input, shape index: {}]   ;;  %s20066_s14 = inlined_call_operand.vmem [shape: f32[64,128], index: 14, kind: output, shape index: {0}]   ;;  %s20067_s15 = inlined_call_operand.vmem [shape: f32[2,2,32,128], index: 15, kind: output, shape index: {1}]   ;;  %s20068_s16 = inlined_call_operand.vmem [shape: f32[2,2,32,128], index: 16, kind: output, shape index: {2}]   ;;  %s20069_s17 = inlined_call_operand.vmem [shape: f32[2,2,32,128], index: 17, kind: output, shape index: {3}]  }
   0x1   :  { %20152 = sst [smem:[#allocation75_spill]] %s20052_s0 }
   0x2   :  { %20153 = sst [smem:[#allocation76_spill]] %s20053_s1 }
   0x3   :  { %20154 = sst [smem:[#allocation77_spill]] %s20054_s2 }
   0x4   :  { %20155 = sst [smem:[#allocation78_spill]] %s20055_s3 }
   0x5   :  { %20156 = sst [smem:[#allocation79_spill]] %s20067_s15 }
   0x6   :  { %20157 = sst [smem:[#allocation80_spill]] %s20068_s16 }
   0x7   :  { %20158 = sst [smem:[#allocation81_spill]] %s20069_s17 }
   0x8   :  { %s16735_s24 = smov 0   ;;  %s16737_s25 = smov 0  }
   0x9   :  { %s16739_s26 = smov 0  }
   0xa LB: > { %20159 = sst [smem:[#allocation5_spill]] %s16630_s25  ;;  %s16748_s27 = sadd.s32 4294967295, %s16634_s26   ;;  %s16634_s26 = sphi %s16739_s26, %s20316_s26   ;;  %s16630_s25 = sphi %s16737_s25, %s20318_s25   ;;  %s16626_s24 = sphi %s16735_s24, %s20317_s24  }
   0xb   : > { %20160 = sst [smem:[#allocation6_spill]] %s16748_s27  ;;  %s16750_s28 = sadd.s32 1, %s16634_s26  }
   0xc   : > { %20161 = sst [smem:[#allocation7_spill]] %s16750_s28  ;;  %s377_s29 = ssub.s32 %s16634_s26, %s16750_s28 }
   0xd   : > { %s380_s0 = sadd.s32 1, %s16630_s25  ;;  %p378_p0 = scmp.eq.s32.totalorder %s377_s29, 0 }
   0xe   : > { %p390_p1 = scmp.ne.s32.totalorder %s16630_s25, %s16626_s24  ;;  %p391_p2 = scmp.eq.s32.totalorder %s16748_s27, 1 }
   0xf   : > { %p12496_p3 = scmp.ge.s32.totalorder %s16634_s26, 1  ;;  %p536_p5 = scmp.lt.s32.totalorder %s16634_s26, 3 }
  0x10   : > { %s16758_s30 = scalar_select %p378_p0, %s16630_s25, %s380_s0  }
  0x11   : > { %p16760_p4 = por %p391_p2, %p390_p1  ;;  %p537_p6 = pnand %p12496_p3, %p536_p5 }
  0x12   : > { %20162 = sst [smem:[#allocation8_spill]] %s16758_s30 }
  0x13   : > { %s20163_s18 = scalar_select %p16760_p4, 1, 0 }
  0x14   : > { %540 = sbr.rel (%p537_p6) target bundleno = 22775 (0x58f7), region = 76 }
  0x15   : > { %20164 = sst [smem:[#allocation9_spill]] %s20163_s18 }
  0x1b   : > { %v780_v0 = vld [vmem:[%s20058_s6] sm:$0xff]  ;;  %v781_v1 = vld [vmem:[%s20058_s6 + $0x8] sm:$0xff]  ;;  %v782_v2 = vld [vmem:[%s20058_s6 + $0x10] sm:$0xff]  ;;  %s12500_s29 = sshll.u32 %s16748_s27, 2  ;;  %vm682_vm0 = vcmask 261120   ;;  %s20165_s26 = sld [smem:[#allocation75_spill]] }
  0x1c   : > { %v14967_v3 = vpack.c.bf16 %v781_v1, %v780_v0  ;;  %v783_v4 = vld [vmem:[%s20058_s6 + $0x18] sm:$0xff]  ;;  %p621_p7 = scmp.lt.s32.totalorder %s12500_s29, 7  ;;  %v673_v5 = vld [vmem:[%s20057_s5] sm:$0xff]  ;;  %v674_v6 = vld [vmem:[%s20057_s5 + $0x8] sm:$0xff]  ;;  %vm968_vm1 = vcmask 64512   ;;  %p632_p8 = scmp.lt.s32.totalorder %s16748_s27, 1 }
  0x1d   : > { %v14971_v7 = vpack.c.bf16 %v783_v4, %v782_v2  ;;  %v14959_v8 = vpack.c.bf16 %v674_v6, %v673_v5  ;;  %v675_v9 = vld [vmem:[%s20057_s5 + $0x10] sm:$0xff]  ;;  %v676_v10 = vld [vmem:[%s20057_s5 + $0x18] sm:$0xff]  ;;  %v12517_v16 = vld [vmem:[%s20063_s11 + $0x1] ss:$0 sm:$0xff]  ;;  %s20168_s2 = sld [smem:[#allocation77_spill]]  ;;  %s20079_s1 = smov 120  }
  0x1e   : > { %14968 = vmatprep.subr.bf16.mxu1 %v14967_v3  ;;  %s20320_s29 = smov (!%p621_p7, %s12500_s29), 7  ;;  %v14963_v11 = vpack.c.bf16 %v676_v10, %v675_v9  ;;  %v12512_v18 = vld [vmem:[%s20063_s11] ss:$0 sm:$0xff]  ;;  %vm16818_vm2 = vmpackc.low %vm968_vm1, %vm968_vm1  ;;  %v875_v40 = vld [vmem:[%s20059_s7 + $0x8] sm:$0xff]  ;;  %s20077_s20 = smov 112   ;;  %vm2167_vm3 = vcmask 130048  }
  0x1f   : > { %14970 = vmatpush3.bf16.msra.mxu1 %v14967_v3  ;;  %14960 = vmatprep.subr.bf16.mxu0 %v14959_v8  ;;  %s16789_s25 = sshll.u32 %s20320_s29, 3  ;;  %v874_v39 = vld [vmem:[%s20059_s7] sm:$0xff]  ;;  %v876_v41 = vld [vmem:[%s20059_s7 + $0x10] sm:$0xff]  ;;  %v877_v43 = vld [vmem:[%s20059_s7 + $0x18] sm:$0xff]  ;;  %s20073_s23 = smov 8   ;;  %vm2172_vm4 = vcmask 195584  }
  0x20   : > { %14972 = vmatprep.subr.bf16.mxu1 %v14971_v7  ;;  %14962 = vmatpush3.bf16.msra.mxu0 %v14959_v8  ;;  %v14975_v42 = vpack.c.bf16 %v875_v40, %v874_v39  ;;  %v14979_v44 = vpack.c.bf16 %v877_v43, %v876_v41  ;;  %s633_s21 = scalar_select %p632_p8, %s16748_s27, 1  ;;  %vm2105_vm5 = vcmask 523264   ;;  %vm2110_vm6 = vcmask 785408  }
  0x21   : > { %s16795_s19 = scalar_lea.vmem %s20165_s26, %s16789_s25  ;;  %14964 = vmatprep.subr.bf16.mxu0 %v14963_v11  ;;  %s20071_s30 = smov 16  }
  0x22   : > { %v653_v12 = vld [vmem:[%s16795_s19] sm:$0xff]  ;;  %v654_v13 = vld [vmem:[%s16795_s19 + $0x8] sm:$0xff]  ;;  %v655_v14 = vld [vmem:[%s16795_s19 + $0x10] sm:$0xff]  ;;  %s16867_s22 = sshll.u32 %s633_s21, 5  ;;  %s20075_s21 = smov 104  }
  0x23   : > { %14974 = vmatpush3.bf16.msra.mxu1 %v14971_v7  ;;  %13815 = vmatprep.mubr.msk.f32.mxu1 %vm682_vm0, %v653_v12  ;;  %v656_v15 = vld [vmem:[%s16795_s19 + $0x18] sm:$0xff]  ;;  %s16873_s0 = scalar_lea.vmem %s20168_s2, %s16867_s22  ;;  %s20081_s26 = smov 24  }
  0x24   : > { %14966 = vmatpush3.bf16.msra.mxu0 %v14963_v11  ;;  %13801 = vmatprep.mubr.msk.f32.mxu0 %vm682_vm0, %v653_v12  ;;  %v16876_v47 = vld [vmem:[%s16873_s0] sm:$0xff]  ;;  %v16879_v50 = vld [vmem:[%s16873_s0 + $0x8] sm:$0xff]  ;;  %v16883_v54 = vld [vmem:[%s16873_s0 + $0x10] sm:$0xff]  ;;  %s20178_s2 = smov 112   ;;  %s20187_s28 = smov 24  }
  0x25   : > { %14976 = vmatprep.subr.bf16.mxu0 %v14975_v42  ;;  %v16888_v59 = vld [vmem:[%s16873_s0 + $0x18] sm:$0xff]  ;;  %s20189_s3 = sld [smem:[#allocation78_spill]]  ;;  %s16643_s16 = smov 64  }
  0x26   : > { %13816 = vmatmul.mubr.msk.f32.vlgmr.msra.gmra.mrb[0].mxu1 %vm682_vm0, %v654_v13  ;;  %s651_s17 = scalar_lea.vmem %s20066_s14, %s16789_s25  ;;  %s20309_s29 = sld [smem:[#allocation79_spill]] (%p16760_p4) }
  0x27   : > { %13818 = vmatprep.mubr.msk.f32.mxu1 %vm682_vm0, %v655_v14  ;;  %13802 = vmatmul.mubr.msk.f32.vlgmr.msra.gmra.mrb[0].mxu0 %vm682_vm0, %v654_v13 }
  0x28   : > { %13804 = vmatprep.mubr.msk.f32.mxu0 %vm682_vm0, %v655_v14  ;;  %14978 = vmatpush3.bf16.msra.mxu0 %v14975_v42 }
  0x29   : > { %14980 = vmatprep.subr.bf16.mxu0 %v14979_v44 }
  0x2a   : > { %13819 = vmatmul.mubr.msk.f32.gmra.mrb[2].mxu1 %vm682_vm0, %v656_v15 }
  0x2b   : > { %13805 = vmatmul.mubr.msk.f32.gmra.mrb[2].mxu0 %vm682_vm0, %v656_v15  ;;  %s17879_s15 = scalar_lea.vmem %s20189_s3, %s16867_s22 }
  0x2c   : > { %13829 = vmatprep.mubr.msk.f32.mxu0 %vm682_vm0, %v653_v12  ;;  %14982 = vmatpush3.bf16.msra.mxu0 %v14979_v44 }
  0x2f   : > { %13830 = vmatmul.mubr.msk.f32.vlgmr.msra.gmra.mrb[4].mxu0 %vm682_vm0, %v654_v13 }
  0x30   : > { %13832 = vmatprep.mubr.msk.f32.mxu0 %vm682_vm0, %v655_v14 }
  0x33   : > { %13833 = vmatmul.mubr.msk.f32.gmra.mrb[6].mxu0 %vm682_vm0, %v656_v15 }
  0xf9   : > { %v13817_v17 = vpop.f32.mrb[0].mxu1 }
  0xfa   : > { %v861_v19 = vadd.f32 %v13817_v17, %v12517_v16  ;;  %v855_v20 = vpop.f32.mrb[1].mxu1  ;;  %v13803_v21 = vpop.f32.mrb[0].mxu0 }
  0xfb   : > { %v856_v22 = vadd.f32 %v12517_v16, %v855_v20  ;;  %v761_v23 = vpop.f32.mrb[1].mxu0  ;;  %v16840_v37 = vadd.f32 %v13803_v21, %v12512_v18 }
  0xfc   : > { %v16822_v25 = vadd.f32 %v12512_v18, %v761_v23 }
  0xfd   : > { %v14983_v26 = vpack.c.bf16 %v861_v19, %v856_v22  ;;  %v13820_v27 = vpop.f32.mrb[2].mxu1  ;;  %v16824_v28 = vpack.i.bf16 %v861_v19, %v856_v22 }
  0xfe   : > { %v871_v29 = vadd.f32 %v13820_v27, %v12517_v16  ;;  %v865_v30 = vpop.f32.mrb[3].mxu1  ;;  %13843 = vmatprep.mubr.msk.f32.mxu1 %vm968_vm1, %v16822_v25  ;;  %v13806_v31 = vpop.f32.mrb[2].mxu0 }
  0xff   : > { %14985 = vmatprep.subr.msk.bf16.mxu1 %vm16818_vm2, %v14983_v26  ;;  %v866_v32 = vadd.f32 %v12517_v16, %v865_v30  ;;  %v771_v33 = vpop.f32.mrb[3].mxu0  ;;  %v16842_v38 = vadd.f32 %v13806_v31, %v12512_v18 }
 0x100   : > { %14988 = vmatpush3.bf16.xpose.msk.msra.mxu1 %vm16818_vm2, %v14983_v26  ;;  %v16838_v36 = vadd.f32 %v12512_v18, %v771_v33  ;;  %v12522_v26 = vld [vmem:[%s20063_s11 + $0x2] ss:$0 sm:$0xff] }
 0x101   : > { %v14989_v34 = vpack.c.bf16 %v871_v29, %v866_v32  ;;  %v16832_v35 = vpack.i.bf16 %v871_v29, %v866_v32 }
 0x102   : > { %v13831_v1 = vpop.f32.mrb[4].mxu0 }
 0x103   : > { %14991 = vmatprep.subr.msk.bf16.mxu1 %vm16818_vm2, %v14989_v34  ;;  %v949_v2 = vpop.f32.mrb[5].mxu0  ;;  %v955_v27 = vadd.f32 %v13831_v1, %v12522_v26 }
 0x104   : > { %v950_v29 = vadd.f32 %v12522_v26, %v949_v2 }
 0x106   : > { %v13834_v3 = vpop.f32.mrb[6].mxu0  ;;  %v14995_v32 = vpack.c.bf16 %v955_v27, %v950_v29 }
 0x107   : > { %v965_v30 = vadd.f32 %v13834_v3, %v12522_v26  ;;  %v959_v31 = vpop.f32.mrb[7].mxu0 }
 0x108   : > { %14994 = vmatpush3.bf16.xpose.msk.msra.mxu1 %vm16818_vm2, %v14989_v34  ;;  %v960_v33 = vadd.f32 %v12522_v26, %v959_v31  ;;  %v16902_v34 = vpack.i.bf16 %v955_v27, %v950_v29  ;;  %14996 = vmatprep.subr.bf16.mxu0 %v14995_v32 }
 0x109   : > { %14998 = vmatpush3.bf16.msra.mxu0 %v14995_v32 }
 0x10a   : > { %v14999_v39 = vpack.c.bf16 %v965_v30, %v960_v33  ;;  %v16904_v40 = vpack.i.bf16 %v965_v30, %v960_v33 }
 0x10c   : > { %15000 = vmatprep.subr.bf16.mxu0 %v14999_v39 }
 0x10d   : > { %15002 = vmatpush3.bf16.msra.mxu0 %v14999_v39 }
 0x10f   : > { %13844 = vmatmul.mubr.msk.f32.vlgmr.msra.gmra.mrb[4].mxu1 %vm968_vm1, %v16840_v37 }
 0x110   : > { %13846 = vmatprep.mubr.msk.f32.mxu1 %vm968_vm1, %v16838_v36 }
 0x113   : > { %13847 = vmatmul.mubr.msk.f32.gmra.mrb[6].mxu1 %vm968_vm1, %v16842_v38 }
 0x1e2   : > { %v13845_v45 = vpop.f32.mrb[4].mxu1 }
 0x1e3   : > { %v1059_v46 = vpop.f32.mrb[5].mxu1  ;;  %v1079_v48 = vmul.f32 0.35355338, %v13845_v45 }
 0x1e4   : > { %v1078_v49 = vmul.f32 0.35355338, %v1059_v46 }
 0x1e5   : > { %v1083_v58 = vadd.f32 %v1079_v48, %v16879_v50 }
 0x1e6   : > { %v13848_v51 = vpop.f32.mrb[6].mxu1  ;;  %v1082_v52 = vadd.f32 %v1078_v49, %v16876_v47 }
 0x1e7   : > { %v1069_v53 = vpop.f32.mrb[7].mxu1  ;;  %v1081_v55 = vmul.f32 0.35355338, %v13848_v51  ;;  %v1089_v61 = vsel %vm682_vm0, %v1083_v58, -inf }
 0x1e8   : > { %v1080_v56 = vmul.f32 0.35355338, %v1069_v53  ;;  %v1086_v57 = vsel %vm682_vm0, %v1082_v52, -inf }
 0x1e9   : > { %1087 = vmax.xlane.f32.xlu0 %v1086_v57  ;;  %v1085_v63 = vadd.f32 %v1081_v55, %v16888_v59 }
 0x1ea   : > { %v1084_v60 = vadd.f32 %v1080_v56, %v16883_v54 }
 0x1eb   : > { %v1095_v0 = vsel %vm682_vm0, %v1085_v63, -inf }
 0x1ec   : > { %v1092_v62 = vsel %vm682_vm0, %v1084_v60, -inf }
 0x1ed   : > { %1090 = vmax.xlane.f32.xlu0 %v1089_v61  ;;  %1093 = vmax.xlane.f32.xlu1 %v1092_v62 }
 0x1f1   : > { %1096 = vmax.xlane.f32.xlu1 %v1095_v0 }
 0x276   : > { %v1088_v4 = vpop.xlane.xlu0 %1087 }
 0x277   : > { %v1098_v5 = vsub.f32 %v1082_v52, %v1088_v4 }
 0x279   : > { %v1102_v6 = vmul.f32 1.442695, %v1098_v5 }
 0x27a   : > { %v1091_v7 = vpop.xlane.xlu0 %1090  ;;  %v1094_v8 = vpop.xlane.xlu1 %1093 }
 0x27b   : > { %16128 = vpow2.f32 %v1102_v6  ;;  %v1099_v9 = vsub.f32 %v1083_v58, %v1091_v7  ;;  %v1100_v10 = vsub.f32 %v1084_v60, %v1094_v8 }
 0x27d   : > { %v1104_v11 = vmul.f32 1.442695, %v1099_v9  ;;  %v1106_v12 = vmul.f32 1.442695, %v1100_v10 }
 0x27e   : > { %v1097_v13 = vpop.xlane.xlu1 %1096 }
 0x27f   : > { %16130 = vpow2.f32 %v1104_v11  ;;  %v1101_v14 = vsub.f32 %v1085_v63, %v1097_v13 }
 0x280   : > { %16132 = vpow2.f32 %v1106_v12 }
 0x281   : > { %v1108_v15 = vmul.f32 1.442695, %v1101_v14 }
 0x283   : > { %16134 = vpow2.f32 %v1108_v15 }
 0x285   : > { %v16129_v16 = vpop.eup %16128 }
 0x286   : > { %v1110_v17 = vsel %vm682_vm0, %v16129_v16, 0.0 }
 0x287   : > { %1111 = vadd.xlane.f32.xlu0 %v1110_v17 }
 0x289   : > { %v16131_v18 = vpop.eup %16130 }
 0x28a   : > { %v16133_v19 = vpop.eup %16132  ;;  %v1113_v20 = vsel %vm682_vm0, %v16131_v18, 0.0 }
 0x28b   : > { %1114 = vadd.xlane.f32.xlu1 %v1113_v20  ;;  %v1116_v21 = vsel %vm682_vm0, %v16133_v19, 0.0 }
 0x28c   : > { %1117 = vadd.xlane.f32.xlu0 %v1116_v21 }
 0x28d   : > { %v16135_v22 = vpop.eup %16134 }
 0x28e   : > { %v1119_v23 = vsel %vm682_vm0, %v16135_v22, 0.0 }
 0x28f   : > { %1120 = vadd.xlane.f32.xlu1 %v1119_v23 }
 0x2a0   : > { %15774 = vrot.lane.b32.xlu1 %v16832_v35, %s20079_s1 }
 0x2a2   : > { %15769 = vrot.lane.b32.xlu0 %v16824_v28, %s20079_s1 }
 0x2a4   : > { %1227 = vrot.lane.b32.xlu1 %v16822_v25, %s20079_s1 }
 0x2a6   : > { %1231 = vrot.lane.b32.xlu0 %v16838_v36, %s20079_s1 }
 0x2a8   : > { %1229 = vrot.lane.b32.xlu1 %v16840_v37, %s20079_s1 }
 0x2ac   : > { %1233 = vrot.lane.b32.xlu1 %v16842_v38, %s20079_s1 }
 0x314   : > { %v1112_v41 = vpop.xlane.xlu0 %1111 }
 0x315   : > { %16136 = vrcp.f32 %v1112_v41 }
 0x318   : > { %v1115_v42 = vpop.xlane.xlu1 %1114 }
 0x319   : > { %v1118_v43 = vpop.xlane.xlu0 %1117  ;;  %16138 = vrcp.f32 %v1115_v42 }
 0x31a   : > { %16140 = vrcp.f32 %v1118_v43 }
 0x31c   : > { %v1121_v44 = vpop.xlane.xlu1 %1120 }
 0x31d   : > { %v15770_v45 = vpop.permute.xlu0 %15769  ;;  %16142 = vrcp.f32 %v1121_v44 }
 0x31e   : > { %v15772_v46 = vunpack.i.h.bf16 %v15770_v45  ;;  %v15771_v48 = vunpack.i.l.bf16 %v15770_v45 }
 0x31f   : > { %v16137_v49 = vpop.eup %16136 }
 0x320   : > { %v15003_v51 = vpack.c.bf16 %v15772_v46, %v15771_v48  ;;  %v15775_v52 = vpop.permute.xlu1 %15774  ;;  %v16918_v53 = vmul.f32 %v16137_v49, %v16129_v16 }
 0x321   : > { %v15777_v55 = vunpack.i.h.bf16 %v15775_v52  ;;  %v15776_v56 = vunpack.i.l.bf16 %v15775_v52  ;;  %v1232_v3 = vpop.permute.xlu0 %1231 }
 0x322   : > { %20169 = vst [vmem:[#allocation10_spill] sm:$0xff] %v16918_v53  ;;  %15005 = vmatprep.subr.msk.bf16.mxu0 %vm16818_vm2, %v15003_v51  ;;  %13857 = vmatprep.mubr.msk.f32.mxu0 %vm682_vm0, %v16918_v53 }
 0x323   : > { %v16139_v57 = vpop.eup %16138  ;;  %v15009_v62 = vpack.c.bf16 %v15777_v55, %v15776_v56 }
 0x324   : > { %v16141_v58 = vpop.eup %16140  ;;  %v16924_v60 = vmul.f32 %v16139_v57, %v16131_v18  ;;  %v1228_v1 = vpop.permute.xlu1 %1227 }
 0x325   : > { %v16926_v61 = vmul.f32 %v16141_v58, %v16133_v19 }
 0x326   : > { %20170 = vst [vmem:[#allocation11_spill] sm:$0xff] %v16924_v60  ;;  %13858 = vmatmul.mubr.msk.f32.vlgmr.msra.gmra.mrb[8].mxu0 %vm682_vm0, %v16924_v60 }
 0x327   : > { %20171 = vst [vmem:[#allocation12_spill] sm:$0xff] %v16926_v61  ;;  %v16143_v63 = vpop.eup %16142  ;;  %15008 = vmatpush3.bf16.xpose.msk.msra.mxu0 %vm16818_vm2, %v15003_v51  ;;  %13860 = vmatprep.mubr.msk.f32.mxu0 %vm682_vm0, %v16926_v61 }
 0x328   : > { %15011 = vmatprep.subr.msk.bf16.mxu0 %vm16818_vm2, %v15009_v62  ;;  %v16936_v0 = vmul.f32 %v16143_v63, %v16135_v22  ;;  %v1230_v2 = vpop.permute.xlu1 %1229 }
 0x32a   : > { %20172 = vst [vmem:[#allocation13_spill] sm:$0xff] %v16936_v0  ;;  %13861 = vmatmul.mubr.msk.f32.gmra.mrb[10].mxu0 %vm682_vm0, %v16936_v0 }
 0x32b   : > { %13871 = vmatprep.mubr.msk.f32.mxu0 %vm968_vm1, %v1228_v1 }
 0x32c   : > { %v1234_v4 = vpop.permute.xlu1 %1233 }
 0x32f   : > { %15014 = vmatpush3.bf16.xpose.msk.msra.mxu0 %vm16818_vm2, %v15009_v62 }
 0x336   : > { %13872 = vmatmul.mubr.msk.f32.vlgmr.msra.gmra.mrb[12].mxu0 %vm968_vm1, %v1230_v2 }
 0x337   : > { %13874 = vmatprep.mubr.msk.f32.mxu0 %vm968_vm1, %v1232_v3 }
 0x33a   : > { %13875 = vmatmul.mubr.msk.f32.gmra.mrb[14].mxu0 %vm968_vm1, %v1234_v4 }
 0x3f9   : > { %v16946_v5 = vpop.f32.mrb[8].mxu0 }
 0x3fa   : > { %v16948_v6 = vpop.f32.mrb[9].mxu0 }
 0x3fd   : > { %v16950_v7 = vpop.f32.mrb[10].mxu0 }
 0x3fe   : > { %v16952_v8 = vpop.f32.mrb[11].mxu0 }
 0x409   : > { %v13873_v9 = vpop.f32.mrb[12].mxu0 }
 0x40a   : > { %v1345_v10 = vmul.f32 0.35355338, %v13873_v9  ;;  %v1325_v11 = vpop.f32.mrb[13].mxu0 }
 0x40b   : > { %v1344_v12 = vmul.f32 0.35355338, %v1325_v11 }
 0x40c   : > { %v1349_v13 = vadd.f32 %v1345_v10, %v16879_v50 }
 0x40d   : > { %v13876_v14 = vpop.f32.mrb[14].mxu0  ;;  %v1348_v15 = vadd.f32 %v1344_v12, %v16876_v47 }
 0x40e   : > { %v1335_v16 = vpop.f32.mrb[15].mxu0  ;;  %v1355_v17 = vsel %vm682_vm0, %v1349_v13, -inf  ;;  %v1347_v18 = vmul.f32 0.35355338, %v13876_v14 }
 0x40f   : > { %v1346_v19 = vmul.f32 0.35355338, %v1335_v16  ;;  %1356 = vmax.xlane.f32.xlu1 %v1355_v17  ;;  %v1352_v20 = vsel %vm682_vm0, %v1348_v15, -inf }
 0x410   : > { %1353 = vmax.xlane.f32.xlu0 %v1352_v20  ;;  %v1351_v23 = vadd.f32 %v1347_v18, %v16888_v59 }
 0x411   : > { %v1350_v21 = vadd.f32 %v1346_v19, %v16883_v54 }
 0x412   : > { %v1361_v26 = vsel %vm682_vm0, %v1351_v23, -inf }
 0x413   : > { %v1358_v22 = vsel %vm682_vm0, %v1350_v21, -inf }
 0x414   : > { %1359 = vmax.xlane.f32.xlu0 %v1358_v22 }
 0x418   : > { %1362 = vmax.xlane.f32.xlu0 %v1361_v26 }
 0x49c   : > { %v1357_v27 = vpop.xlane.xlu1 %1356 }
 0x49d   : > { %v1365_v29 = vsub.f32 %v1349_v13, %v1357_v27  ;;  %v1354_v30 = vpop.xlane.xlu0 %1353 }
 0x49e   : > { %v1364_v31 = vsub.f32 %v1348_v15, %v1354_v30 }
 0x49f   : > { %v1370_v32 = vmul.f32 1.442695, %v1365_v29 }
 0x4a0   : > { %v1368_v33 = vmul.f32 1.442695, %v1364_v31 }
 0x4a1   : > { %16144 = vpow2.f32 %v1370_v32  ;;  %v1360_v44 = vpop.xlane.xlu0 %1359 }
 0x4a2   : > { %16146 = vpow2.f32 %v1368_v33  ;;  %v1366_v45 = vsub.f32 %v1350_v21, %v1360_v44 }
 0x4a4   : > { %v1372_v46 = vmul.f32 1.442695, %v1366_v45 }
 0x4a5   : > { %v1363_v48 = vpop.xlane.xlu0 %1362 }
 0x4a6   : > { %v1367_v49 = vsub.f32 %v1351_v23, %v1363_v48  ;;  %16148 = vpow2.f32 %v1372_v46 }
 0x4a8   : > { %v1374_v51 = vmul.f32 1.442695, %v1367_v49 }
 0x4aa   : > { %16150 = vpow2.f32 %v1374_v51 }
 0x4ab   : > { %v16145_v39 = vpop.eup %16144 }
 0x4ac   : > { %v16147_v41 = vpop.eup %16146  ;;  %v1379_v42 = vsel %vm682_vm0, %v16145_v39, 0.0 }
 0x4ad   : > { %1380 = vadd.xlane.f32.xlu1 %v1379_v42  ;;  %v1376_v43 = vsel %vm682_vm0, %v16147_v41, 0.0 }
 0x4ae   : > { %1377 = vadd.xlane.f32.xlu0 %v1376_v43 }
 0x4b0   : > { %v16149_v52 = vpop.eup %16148 }
 0x4b1   : > { %v1382_v55 = vsel %vm682_vm0, %v16149_v52, 0.0 }
 0x4b4   : > { %v16151_v56 = vpop.eup %16150 }
 0x4b5   : > { %v1385_v57 = vsel %vm682_vm0, %v16151_v56, 0.0 }
 0x4be   : > { %15784 = vrot.lane.b32.xlu1 %v16904_v40, %s20079_s1 }
 0x4c2   : > { %15789 = vrot.lane.b32.xlu1 %v16824_v28, %s20077_s20 }
 0x4c4   : > { %15779 = vrot.lane.b32.xlu0 %v16902_v34, %s20079_s1  ;;  %s20179_s1 = smov 104  }
 0x4c6   : > { %15794 = vrot.lane.b32.xlu1 %v16832_v35, %s20077_s20 }
 0x4e3   : > { %1383 = vadd.xlane.f32.xlu0 %v1382_v55 }
 0x4ea   : > { %1386 = vadd.xlane.f32.xlu1 %v1385_v57 }
 0x4f9   : > { %1509 = vrot.lane.b32.xlu0 %v16822_v25, %s20077_s20 }
 0x4fb   : > { %1511 = vrot.lane.b32.xlu1 %v16840_v37, %s20077_s20 }
 0x4fd   : > { %1513 = vrot.lane.b32.xlu0 %v16838_v36, %s20077_s20 }
 0x4ff   : > { %1515 = vrot.lane.b32.xlu1 %v16842_v38, %s20077_s20 }
 0x53a   : > { %v1381_v58 = vpop.xlane.xlu1 %1380 }
 0x53b   : > { %v1378_v62 = vpop.xlane.xlu0 %1377 }
 0x53c   : > { %16152 = vrcp.f32 %v1378_v62 }
 0x53d   : > { %16154 = vrcp.f32 %v1381_v58 }
 0x53e   : > { %v15785_v63 = vpop.permute.xlu1 %15784 }
 0x53f   : > { %v15780_v1 = vpop.permute.xlu0 %15779  ;;  %v15787_v2 = vunpack.i.h.bf16 %v15785_v63  ;;  %v15786_v3 = vunpack.i.l.bf16 %v15785_v63 }
 0x540   : > { %v15782_v4 = vunpack.i.h.bf16 %v15780_v1  ;;  %v15781_v9 = vunpack.i.l.bf16 %v15780_v1 }
 0x541   : > { %v15019_v14 = vpack.c.bf16 %v15787_v2, %v15786_v3 }
 0x542   : > { %v15790_v10 = vpop.permute.xlu1 %15789  ;;  %v15015_v11 = vpack.c.bf16 %v15782_v4, %v15781_v9 }
 0x543   : > { %v15792_v12 = vunpack.i.h.bf16 %v15790_v10  ;;  %v15791_v13 = vunpack.i.l.bf16 %v15790_v10 }
 0x544   : > { %15016 = vmatprep.subr.bf16.mxu1 %v15015_v11 }
 0x545   : > { %15018 = vmatpush3.bf16.msra.mxu1 %v15015_v11  ;;  %v15023_v18 = vpack.c.bf16 %v15792_v12, %v15791_v13 }
 0x546   : > { %v16153_v15 = vpop.eup %16152  ;;  %15020 = vmatprep.subr.bf16.mxu1 %v15019_v14  ;;  %v15795_v20 = vpop.permute.xlu1 %15794 }
 0x547   : > { %v16155_v16 = vpop.eup %16154  ;;  %v16982_v17 = vmul.f32 %v16153_v15, %v16147_v41  ;;  %v15797_v21 = vunpack.i.h.bf16 %v15795_v20  ;;  %v15796_v22 = vunpack.i.l.bf16 %v15795_v20 }
 0x548   : > { %v16986_v19 = vmul.f32 %v16155_v16, %v16145_v39 }
 0x549   : > { %15022 = vmatpush3.bf16.msra.mxu1 %v15019_v14  ;;  %13885 = vmatprep.mubr.msk.f32.mxu1 %vm682_vm0, %v16982_v17  ;;  %v15029_v23 = vpack.c.bf16 %v15797_v21, %v15796_v22 }
 0x54a   : > { %15025 = vmatprep.subr.msk.bf16.mxu1 %vm16818_vm2, %v15023_v18 }
 0x54c   : > { %13886 = vmatmul.mubr.msk.f32.vlgmr.msra.gmra.mrb[8].mxu1 %vm682_vm0, %v16986_v19 }
 0x552   : > { %15028 = vmatpush3.bf16.xpose.msk.msra.mxu1 %vm16818_vm2, %v15023_v18 }
 0x553   : > { %15031 = vmatprep.subr.msk.bf16.mxu1 %vm16818_vm2, %v15029_v23 }
 0x55a   : > { %15034 = vmatpush3.bf16.xpose.msk.msra.mxu1 %vm16818_vm2, %v15029_v23 }
 0x570   : > { %v1384_v26 = vpop.xlane.xlu0 %1383 }
 0x571   : > { %16156 = vrcp.f32 %v1384_v26 }
 0x574   : > { %v1510_v32 = vpop.permute.xlu0 %1509 }
 0x577   : > { %v1387_v27 = vpop.xlane.xlu1 %1386 }
 0x578   : > { %16158 = vrcp.f32 %v1387_v27  ;;  %v1514_v41 = vpop.permute.xlu0 %1513 }
 0x57b   : > { %v16157_v29 = vpop.eup %16156  ;;  %v1512_v39 = vpop.permute.xlu1 %1511 }
 0x57c   : > { %v16998_v30 = vmul.f32 %v16157_v29, %v16149_v52 }
 0x57e   : > { %13888 = vmatprep.mubr.msk.f32.mxu1 %vm682_vm0, %v16998_v30 }
 0x57f   : > { %v1516_v42 = vpop.permute.xlu1 %1515 }
 0x582   : > { %v16159_v31 = vpop.eup %16158 }
 0x583   : > { %v17002_v33 = vmul.f32 %v16159_v31, %v16151_v56 }
 0x585   : > { %13889 = vmatmul.mubr.msk.f32.gmra.mrb[10].mxu1 %vm682_vm0, %v17002_v33 }
 0x586   : > { %13899 = vmatprep.mubr.msk.f32.mxu1 %vm968_vm1, %v1510_v32 }
 0x589   : > { %13900 = vmatmul.mubr.msk.f32.vlgmr.msra.gmra.mrb[12].mxu1 %vm968_vm1, %v1512_v39 }
 0x58a   : > { %13902 = vmatprep.mubr.msk.f32.mxu1 %vm968_vm1, %v1514_v41 }
 0x58d   : > { %13903 = vmatmul.mubr.msk.f32.gmra.mrb[14].mxu1 %vm968_vm1, %v1516_v42 }
 0x61f   : > { %v17010_v43 = vpop.f32.mrb[8].mxu1 }
 0x620   : > { %v17012_v44 = vpop.f32.mrb[9].mxu1 }
 0x658   : > { %v17014_v45 = vpop.f32.mrb[10].mxu1 }
 0x659   : > { %v17016_v46 = vpop.f32.mrb[11].mxu1 }
 0x65c   : > { %v13901_v48 = vpop.f32.mrb[12].mxu1 }
 0x65d   : > { %v1627_v49 = vmul.f32 0.35355338, %v13901_v48  ;;  %v1607_v51 = vpop.f32.mrb[13].mxu1 }
 0x65e   : > { %v1626_v52 = vmul.f32 0.35355338, %v1607_v51 }
 0x65f   : > { %v1631_v55 = vadd.f32 %v1627_v49, %v16879_v50 }
 0x660   : > { %v13904_v56 = vpop.f32.mrb[14].mxu1  ;;  %v1630_v57 = vadd.f32 %v1626_v52, %v16876_v47 }
 0x661   : > { %v1617_v58 = vpop.f32.mrb[15].mxu1  ;;  %v1637_v62 = vsel %vm682_vm0, %v1631_v55, -inf  ;;  %v1629_v63 = vmul.f32 0.35355338, %v13904_v56 }
 0x662   : > { %v1628_v1 = vmul.f32 0.35355338, %v1617_v58  ;;  %1638 = vmax.xlane.f32.xlu1 %v1637_v62  ;;  %v1634_v2 = vsel %vm682_vm0, %v1630_v57, -inf }
 0x663   : > { %1635 = vmax.xlane.f32.xlu0 %v1634_v2  ;;  %v1633_v9 = vadd.f32 %v1629_v63, %v16888_v59 }
 0x664   : > { %v1632_v3 = vadd.f32 %v1628_v1, %v16883_v54 }
 0x665   : > { %v1643_v10 = vsel %vm682_vm0, %v1633_v9, -inf }
 0x666   : > { %v1640_v4 = vsel %vm682_vm0, %v1632_v3, -inf }
 0x667   : > { %1641 = vmax.xlane.f32.xlu0 %v1640_v4 }
 0x66b   : > { %1644 = vmax.xlane.f32.xlu0 %v1643_v10 }
 0x6ef   : > { %v1639_v11 = vpop.xlane.xlu1 %1638 }
 0x6f0   : > { %v1647_v12 = vsub.f32 %v1631_v55, %v1639_v11  ;;  %v1636_v13 = vpop.xlane.xlu0 %1635 }
 0x6f1   : > { %v1646_v14 = vsub.f32 %v1630_v57, %v1636_v13 }
 0x6f2   : > { %v1652_v15 = vmul.f32 1.442695, %v1647_v12 }
 0x6f3   : > { %v1650_v16 = vmul.f32 1.442695, %v1646_v14 }
 0x6f4   : > { %16160 = vpow2.f32 %v1652_v15  ;;  %v1642_v23 = vpop.xlane.xlu0 %1641 }
 0x6f5   : > { %16162 = vpow2.f32 %v1650_v16  ;;  %v1648_v26 = vsub.f32 %v1632_v3, %v1642_v23 }
 0x6f7   : > { %v1654_v27 = vmul.f32 1.442695, %v1648_v26 }
 0x6f8   : > { %v1645_v29 = vpop.xlane.xlu0 %1644 }
 0x6f9   : > { %v1649_v31 = vsub.f32 %v1633_v9, %v1645_v29  ;;  %16164 = vpow2.f32 %v1654_v27 }
 0x6fb   : > { %v1656_v32 = vmul.f32 1.442695, %v1649_v31 }
 0x6fd   : > { %16166 = vpow2.f32 %v1656_v32 }
 0x6fe   : > { %v16161_v18 = vpop.eup %16160 }
 0x6ff   : > { %v16163_v20 = vpop.eup %16162  ;;  %v1661_v21 = vsel %vm682_vm0, %v16161_v18, 0.0 }
 0x700   : > { %1662 = vadd.xlane.f32.xlu1 %v1661_v21  ;;  %v1658_v22 = vsel %vm682_vm0, %v16163_v20, 0.0 }
 0x701   : > { %1659 = vadd.xlane.f32.xlu0 %v1658_v22 }
 0x703   : > { %v16165_v39 = vpop.eup %16164 }
 0x704   : > { %v1664_v41 = vsel %vm682_vm0, %v16165_v39, 0.0 }
 0x707   : > { %v16167_v42 = vpop.eup %16166 }
 0x711   : > { %15804 = vrot.lane.b32.xlu1 %v16904_v40, %s20077_s20 }
 0x715   : > { %15809 = vrot.lane.b32.xlu1 %v16824_v28, %s20075_s21  ;;  %v1667_v28 = vsel %vm682_vm0, %v16167_v42, 0.0 }
 0x717   : > { %15799 = vrot.lane.b32.xlu0 %v16902_v34, %s20077_s20  ;;  %s20182_s20 = smov 16  }
 0x719   : > { %15814 = vrot.lane.b32.xlu1 %v16832_v35, %s20075_s21 }
 0x736   : > { %1665 = vadd.xlane.f32.xlu0 %v1664_v41 }
 0x73d   : > { %1668 = vadd.xlane.f32.xlu1 %v1667_v28 }
 0x74c   : > { %1787 = vrot.lane.b32.xlu0 %v16822_v25, %s20075_s21 }
 0x74e   : > { %1789 = vrot.lane.b32.xlu1 %v16840_v37, %s20075_s21 }
 0x750   : > { %1791 = vrot.lane.b32.xlu0 %v16838_v36, %s20075_s21 }
 0x752   : > { %1793 = vrot.lane.b32.xlu1 %v16842_v38, %s20075_s21 }
 0x78d   : > { %v1663_v35 = vpop.xlane.xlu1 %1662 }
 0x78e   : > { %v1660_v48 = vpop.xlane.xlu0 %1659 }
 0x78f   : > { %16168 = vrcp.f32 %v1660_v48 }
 0x790   : > { %16170 = vrcp.f32 %v1663_v35 }
 0x791   : > { %v15805_v49 = vpop.permute.xlu1 %15804 }
 0x792   : > { %v15800_v51 = vpop.permute.xlu0 %15799  ;;  %v15807_v52 = vunpack.i.h.bf16 %v15805_v49  ;;  %v15806_v55 = vunpack.i.l.bf16 %v15805_v49 }
 0x793   : > { %v15802_v56 = vunpack.i.h.bf16 %v15800_v51  ;;  %v15801_v57 = vunpack.i.l.bf16 %v15800_v51 }
 0x794   : > { %v15039_v63 = vpack.c.bf16 %v15807_v52, %v15806_v55 }
 0x795   : > { %v15810_v25 = vpop.permute.xlu1 %15809  ;;  %v15035_v58 = vpack.c.bf16 %v15802_v56, %v15801_v57 }
 0x796   : > { %v15812_v62 = vunpack.i.h.bf16 %v15810_v25  ;;  %v15811_v37 = vunpack.i.l.bf16 %v15810_v25 }
 0x797   : > { %15036 = vmatprep.subr.bf16.mxu0 %v15035_v58 }
 0x798   : > { %15038 = vmatpush3.bf16.msra.mxu0 %v15035_v58  ;;  %v15043_v2 = vpack.c.bf16 %v15812_v62, %v15811_v37 }
 0x799   : > { %v16169_v36 = vpop.eup %16168  ;;  %15040 = vmatprep.subr.bf16.mxu0 %v15039_v63  ;;  %v15815_v4 = vpop.permute.xlu1 %15814 }
 0x79a   : > { %v16171_v38 = vpop.eup %16170  ;;  %v17046_v1 = vmul.f32 %v16169_v36, %v16163_v20  ;;  %v15817_v9 = vunpack.i.h.bf16 %v15815_v4  ;;  %v15816_v10 = vunpack.i.l.bf16 %v15815_v4 }
 0x79b   : > { %v17050_v3 = vmul.f32 %v16171_v38, %v16161_v18 }
 0x79c   : > { %15042 = vmatpush3.bf16.msra.mxu0 %v15039_v63  ;;  %13913 = vmatprep.mubr.msk.f32.mxu0 %vm682_vm0, %v17046_v1  ;;  %v15049_v11 = vpack.c.bf16 %v15817_v9, %v15816_v10 }
 0x79d   : > { %15045 = vmatprep.subr.msk.bf16.mxu0 %vm16818_vm2, %v15043_v2 }
 0x79f   : > { %13914 = vmatmul.mubr.msk.f32.vlgmr.msra.gmra.mrb[16].mxu0 %vm682_vm0, %v17050_v3 }
 0x7a5   : > { %15048 = vmatpush3.bf16.xpose.msk.msra.mxu0 %vm16818_vm2, %v15043_v2 }
 0x7a6   : > { %15051 = vmatprep.subr.msk.bf16.mxu0 %vm16818_vm2, %v15049_v11 }
 0x7ad   : > { %15054 = vmatpush3.bf16.xpose.msk.msra.mxu0 %vm16818_vm2, %v15049_v11 }
 0x7c3   : > { %v1666_v12 = vpop.xlane.xlu0 %1665 }
 0x7c4   : > { %16172 = vrcp.f32 %v1666_v12 }
 0x7c7   : > { %v1788_v18 = vpop.permute.xlu0 %1787 }
 0x7ca   : > { %v1669_v13 = vpop.xlane.xlu1 %1668 }
 0x7cb   : > { %16174 = vrcp.f32 %v1669_v13  ;;  %v1792_v22 = vpop.permute.xlu0 %1791 }
 0x7ce   : > { %v16173_v14 = vpop.eup %16172  ;;  %v1790_v21 = vpop.permute.xlu1 %1789 }
 0x7cf   : > { %v17062_v15 = vmul.f32 %v16173_v14, %v16165_v39 }
 0x7d1   : > { %13916 = vmatprep.mubr.msk.f32.mxu0 %vm682_vm0, %v17062_v15 }
 0x7d2   : > { %v1794_v23 = vpop.permute.xlu1 %1793 }
 0x7d5   : > { %v16175_v16 = vpop.eup %16174 }
 0x7d6   : > { %v17066_v20 = vmul.f32 %v16175_v16, %v16167_v42 }
 0x7d8   : > { %13917 = vmatmul.mubr.msk.f32.gmra.mrb[18].mxu0 %vm682_vm0, %v17066_v20 }
 0x7d9   : > { %13927 = vmatprep.mubr.msk.f32.mxu0 %vm968_vm1, %v1788_v18 }
 0x7dc   : > { %13928 = vmatmul.mubr.msk.f32.vlgmr.msra.gmra.mrb[20].mxu0 %vm968_vm1, %v1790_v21 }
 0x7dd   : > { %13930 = vmatprep.mubr.msk.f32.mxu0 %vm968_vm1, %v1792_v22 }
 0x7e0   : > { %13931 = vmatmul.mubr.msk.f32.gmra.mrb[22].mxu0 %vm968_vm1, %v1794_v23 }
 0x872   : > { %v13915_v26 = vpop.f32.mrb[16].mxu0 }
 0x873   : > { %v1768_v27 = vpop.f32.mrb[17].mxu0 }
 0x8ab   : > { %v13918_v29 = vpop.f32.mrb[18].mxu0 }
 0x8ac   : > { %v1778_v31 = vpop.f32.mrb[19].mxu0 }
 0x8af   : > { %v13929_v32 = vpop.f32.mrb[20].mxu0 }
 0x8b0   : > { %v1905_v39 = vmul.f32 0.35355338, %v13929_v32  ;;  %v1885_v41 = vpop.f32.mrb[21].mxu0 }
 0x8b1   : > { %v1904_v42 = vmul.f32 0.35355338, %v1885_v41 }
 0x8b2   : > { %v1909_v28 = vadd.f32 %v1905_v39, %v16879_v50 }
 0x8b3   : > { %v13932_v35 = vpop.f32.mrb[22].mxu0  ;;  %v1908_v48 = vadd.f32 %v1904_v42, %v16876_v47 }
 0x8b4   : > { %v1895_v49 = vpop.f32.mrb[23].mxu0  ;;  %v1915_v51 = vsel %vm682_vm0, %v1909_v28, -inf  ;;  %v1907_v52 = vmul.f32 0.35355338, %v13932_v35 }
 0x8b5   : > { %v1906_v55 = vmul.f32 0.35355338, %v1895_v49  ;;  %1916 = vmax.xlane.f32.xlu1 %v1915_v51  ;;  %v1912_v56 = vsel %vm682_vm0, %v1908_v48, -inf }
 0x8b6   : > { %1913 = vmax.xlane.f32.xlu0 %v1912_v56  ;;  %v1911_v58 = vadd.f32 %v1907_v52, %v16888_v59  ;;  %v2177_v52 = vld [vmem:[%s20060_s8] sm:$0xff]  ;;  %v2179_v56 = vld [vmem:[%s20060_s8 + $0x10] sm:$0xff] }
 0x8b7   : > { %v1910_v57 = vadd.f32 %v1906_v55, %v16883_v54  ;;  %v2178_v55 = vld [vmem:[%s20060_s8 + $0x8] sm:$0xff] }
 0x8b8   : > { %v1921_v50 = vsel %vm682_vm0, %v1911_v58, -inf }
 0x8b9   : > { %v1918_v25 = vsel %vm682_vm0, %v1910_v57, -inf }
 0x8ba   : > { %1919 = vmax.xlane.f32.xlu0 %v1918_v25  ;;  %v2180_v25 = vld [vmem:[%s20060_s8 + $0x18] sm:$0xff] }
 0x8be   : > { %1922 = vmax.xlane.f32.xlu0 %v1921_v50 }
 0x942   : > { %v1917_v47 = vpop.xlane.xlu1 %1916 }
 0x943   : > { %v1925_v62 = vsub.f32 %v1909_v28, %v1917_v47  ;;  %v1914_v37 = vpop.xlane.xlu0 %1913 }
 0x944   : > { %v1924_v63 = vsub.f32 %v1908_v48, %v1914_v37 }
 0x945   : > { %v1930_v36 = vmul.f32 1.442695, %v1925_v62 }
 0x946   : > { %v1928_v38 = vmul.f32 1.442695, %v1924_v63 }
 0x947   : > { %16176 = vpow2.f32 %v1930_v36  ;;  %v1920_v2 = vpop.xlane.xlu0 %1919 }
 0x948   : > { %16178 = vpow2.f32 %v1928_v38  ;;  %v1926_v4 = vsub.f32 %v1910_v57, %v1920_v2  ;;  %v15063_v57 = vpack.c.bf16 %v2178_v55, %v2177_v52 }
 0x94a   : > { %v1932_v9 = vmul.f32 1.442695, %v1926_v4 }
 0x94b   : > { %v1923_v54 = vpop.xlane.xlu0 %1922 }
 0x94c   : > { %16180 = vpow2.f32 %v1932_v9  ;;  %v1927_v10 = vsub.f32 %v1911_v58, %v1923_v54  ;;  %v15067_v58 = vpack.c.bf16 %v2180_v25, %v2179_v56  ;;  %v16594_v56 = vld [vmem:[%s16795_s19 + $0x10] sm:$0xff] }
 0x94e   : > { %v1934_v11 = vmul.f32 1.442695, %v1927_v10 }
 0x950   : > { %16182 = vpow2.f32 %v1934_v11 }
 0x951   : > { %v16177_v59 = vpop.eup %16176 }
 0x952   : > { %v16179_v12 = vpop.eup %16178  ;;  %v1939_v13 = vsel %vm682_vm0, %v16177_v59, 0.0 }
 0x953   : > { %1940 = vadd.xlane.f32.xlu1 %v1939_v13  ;;  %v1936_v14 = vsel %vm682_vm0, %v16179_v12, 0.0 }
 0x954   : > { %1937 = vadd.xlane.f32.xlu0 %v1936_v14 }
 0x956   : > { %v16181_v16 = vpop.eup %16180 }
 0x957   : > { %v1942_v18 = vsel %vm682_vm0, %v16181_v16, 0.0 }
 0x958   : > { %1943 = vadd.xlane.f32.xlu0 %v1942_v18 }
 0x95a   : > { %v16183_v21 = vpop.eup %16182 }
 0x95b   : > { %v1945_v22 = vsel %vm682_vm0, %v16183_v21, 0.0 }
 0x95c   : > { %1946 = vadd.xlane.f32.xlu1 %v1945_v22 }
 0x96d   : > { %15824 = vrot.lane.b32.xlu1 %v16904_v40, %s20075_s21 }
 0x96e   : > { %15819 = vrot.lane.b32.xlu0 %v16902_v34, %s20075_s21 }
 0x971   : > { %2119 = vrot.lane.b32.xlu1 %v17012_v44, %s20073_s23 }
 0x972   : > { %2135 = vrot.lane.b32.xlu0 %v1768_v27, %s20071_s30 }
 0x975   : > { %2121 = vrot.lane.b32.xlu1 %v17010_v43, %s20073_s23 }
 0x976   : > { %2123 = vrot.lane.b32.xlu0 %v17016_v46, %s20073_s23 }
 0x979   : > { %2137 = vrot.lane.b32.xlu1 %v13915_v26, %s20071_s30 }
 0x97a   : > { %2139 = vrot.lane.b32.xlu0 %v1778_v31, %s20071_s30 }
 0x97d   : > { %2125 = vrot.lane.b32.xlu1 %v17014_v45, %s20073_s23  ;;  %s20308_s23 = sld [smem:[#allocation6_spill]] (%p16760_p4) }
 0x981   : > { %2141 = vrot.lane.b32.xlu1 %v13918_v29, %s20071_s30 }
 0x9e0   : > { %v1941_v40 = vpop.xlane.xlu1 %1940 }
 0x9e1   : > { %v1938_v34 = vpop.xlane.xlu0 %1937 }
 0x9e2   : > { %16184 = vrcp.f32 %v1938_v34 }
 0x9e3   : > { %16186 = vrcp.f32 %v1941_v40 }
 0x9e5   : > { %v1944_v44 = vpop.xlane.xlu0 %1943 }
 0x9e6   : > { %16188 = vrcp.f32 %v1944_v44 }
 0x9e9   : > { %v1947_v23 = vpop.xlane.xlu1 %1946  ;;  %v15820_v43 = vpop.permute.xlu0 %15819 }
 0x9ea   : > { %v15822_v27 = vunpack.i.h.bf16 %v15820_v43  ;;  %v15821_v32 = vunpack.i.l.bf16 %v15820_v43  ;;  %16190 = vrcp.f32 %v1947_v23 }
 0x9ec   : > { %v16185_v46 = vpop.eup %16184  ;;  %v15055_v26 = vpack.c.bf16 %v15822_v27, %v15821_v32 }
 0x9ed   : > { %v15825_v39 = vpop.permute.xlu1 %15824  ;;  %v17102_v31 = vmul.f32 %v16185_v46, %v16179_v12  ;;  %v16187_v42 = vpop.eup %16186 }
 0x9ee   : > { %v15827_v41 = vunpack.i.h.bf16 %v15825_v39  ;;  %v15826_v45 = vunpack.i.l.bf16 %v15825_v39  ;;  %15056 = vmatprep.subr.bf16.mxu1 %v15055_v26  ;;  %v17106_v35 = vmul.f32 %v16187_v42, %v16177_v59  ;;  %v2136_v2 = vpop.permute.xlu0 %2135 }
 0x9ef   : > { %15058 = vmatpush3.bf16.msra.mxu1 %v15055_v26  ;;  %13941 = vmatprep.mubr.msk.f32.mxu1 %vm682_vm0, %v17102_v31  ;;  %v16592_v26 = vld [vmem:[%s16795_s19 + $0x8] sm:$0xff] }
 0x9f0   : > { %v15059_v29 = vpack.c.bf16 %v15827_v41, %v15826_v45  ;;  %v16189_v28 = vpop.eup %16188  ;;  %v16593_v45 = vld [vmem:[%s16795_s19] sm:$0xff] }
 0x9f1   : > { %v17108_v49 = vmul.f32 %v16189_v28, %v16181_v16  ;;  %v2120_v63 = vpop.permute.xlu1 %2119 }
 0x9f2   : > { %15060 = vmatprep.subr.bf16.mxu1 %v15059_v29  ;;  %v2124_v9 = vpop.permute.xlu0 %2123  ;;  %v2163_v11 = vsel %vm968_vm1, %v16948_v6, %v2120_v63 }
 0x9f3   : > { %15062 = vmatpush3.bf16.msra.mxu1 %v15059_v29  ;;  %v2168_v13 = vsel %vm2167_vm3, %v2163_v11, %v2136_v2  ;;  %v2165_v6 = vsel %vm968_vm1, %v16952_v8, %v2124_v9  ;;  %v12575_v8 = vld [vmem:[%s20063_s11 + $0x3] ss:$0 sm:$0xff] }
 0x9f4   : > { %v16191_v48 = vpop.eup %16190  ;;  %15064 = vmatprep.subr.bf16.mxu1 %v15063_v57 }
 0x9f5   : > { %v17114_v51 = vmul.f32 %v16191_v48, %v16183_v21  ;;  %v2122_v36 = vpop.permute.xlu1 %2121 }
 0x9f6   : > { %13942 = vmatmul.mubr.msk.f32.vlgmr.msra.gmra.mrb[16].mxu1 %vm682_vm0, %v17106_v35  ;;  %v2140_v10 = vpop.permute.xlu0 %2139  ;;  %v2164_v12 = vsel %vm968_vm1, %v16946_v5, %v2122_v36 }
 0x9f7   : > { %13944 = vmatprep.mubr.msk.f32.mxu1 %vm682_vm0, %v17108_v49  ;;  %15066 = vmatpush3.bf16.msra.mxu1 %v15063_v57  ;;  %v2170_v5 = vsel %vm2167_vm3, %v2165_v6, %v2140_v10 }
 0x9f8   : > { %15068 = vmatprep.subr.bf16.mxu1 %v15067_v58 }
 0x9f9   : > { %v2138_v38 = vpop.permute.xlu1 %2137 }
 0x9fa   : > { %13945 = vmatmul.mubr.msk.f32.gmra.mrb[18].mxu1 %vm682_vm0, %v17114_v51  ;;  %v2169_v16 = vsel %vm2167_vm3, %v2164_v12, %v2138_v38 }
 0x9fb   : > { %15070 = vmatpush3.bf16.msra.mxu1 %v15067_v58  ;;  %v16595_v58 = vld [vmem:[%s16795_s19 + $0x18] sm:$0xff]  ;;  %s20181_s19 = smov 8  }
 0x9fd   : > { %v2126_v4 = vpop.permute.xlu1 %2125 }
 0x9fe   : > { %v2166_v34 = vsel %vm968_vm1, %v16950_v7, %v2126_v4 }
 0xa01   : > { %v2142_v54 = vpop.permute.xlu1 %2141 }
 0xa02   : > { %v2171_v44 = vsel %vm2167_vm3, %v2166_v34, %v2142_v54  ;;  %v2363_v34 = vld [vmem:[%s20061_s9 + $0x8] sm:$0xff] }
 0xac9   : > { %v13943_v50 = vpop.f32.mrb[16].mxu1 }
 0xaca   : > { %2153 = vrot.lane.b32.xlu1 %v13943_v50, %s20081_s26  ;;  %v2046_v47 = vpop.f32.mrb[17].mxu1 }
 0xacb   : > { %2151 = vrot.lane.b32.xlu0 %v2046_v47, %s20081_s26 }
 0xacd   : > { %v13946_v62 = vpop.f32.mrb[18].mxu1 }
 0xace   : > { %2157 = vrot.lane.b32.xlu1 %v13946_v62, %s20081_s26  ;;  %v2056_v37 = vpop.f32.mrb[19].mxu1 }
 0xacf   : > { %2155 = vrot.lane.b32.xlu0 %v2056_v37, %s20081_s26  ;;  %s20188_s26 = sld [smem:[#allocation76_spill]] }
 0xad5   : > { %s17763_s21 = scalar_lea.vmem %s20188_s26, %s16789_s25  ;;  %s18385_s26 = scalar_lea.vmem %s20056_s4, %s16867_s22 }
 0xad6   : > { %s13126_s25 = sshll.u32 (%p16760_p4), %s20308_s23, 5 }
 0xb3c   : > { %v2154_v59 = vpop.permute.xlu1 %2153 }
 0xb3d   : > { %v2152_v14 = vpop.permute.xlu0 %2151  ;;  %v2174_v21 = vsel %vm2172_vm4, %v2169_v16, %v2154_v59 }
 0xb3e   : > { %v2173_v18 = vsel %vm2172_vm4, %v2168_v13, %v2152_v14 }
 0xb3f   : > { %13955 = vmatprep.mubr.msk.f32.mxu1 %vm682_vm0, %v2173_v18 }
 0xb40   : > { %13956 = vmatmul.mubr.msk.f32.vlgmr.msra.gmra.mrb[20].mxu1 %vm682_vm0, %v2174_v21  ;;  %v2158_v22 = vpop.permute.xlu1 %2157 }
 0xb41   : > { %v2156_v40 = vpop.permute.xlu0 %2155  ;;  %v2176_v43 = vsel %vm2172_vm4, %v2171_v44, %v2158_v22  ;;  %v2364_v44 = vld [vmem:[%s20061_s9 + $0x10] sm:$0xff] }
 0xb42   : > { %v2175_v23 = vsel %vm2172_vm4, %v2170_v5, %v2156_v40  ;;  %v2362_v5 = vld [vmem:[%s20061_s9] sm:$0xff] }
 0xb43   : > { %13958 = vmatprep.mubr.msk.f32.mxu1 %vm682_vm0, %v2175_v23  ;;  %v15071_v40 = vpack.c.bf16 %v2363_v34, %v2362_v5  ;;  %v2365_v23 = vld [vmem:[%s20061_s9 + $0x18] sm:$0xff] }
 0xb44   : > { %13959 = vmatmul.mubr.msk.f32.gmra.mrb[22].mxu1 %vm682_vm0, %v2176_v43  ;;  %v15075_v43 = vpack.c.bf16 %v2365_v23, %v2364_v44  ;;  %v2479_v5 = vld [vmem:[%s20062_s10 + $0x38] sm:$0xff] }
 0xb45   : > { %15072 = vmatprep.subr.bf16.mxu0 %v15071_v40 }
 0xb46   : > { %15074 = vmatpush3.bf16.msra.mxu0 %v15071_v40 }
 0xb47   : > { %15076 = vmatprep.subr.bf16.mxu0 %v15075_v43 }
 0xb4a   : > { %15078 = vmatpush3.bf16.msra.mxu0 %v15075_v43 }
 0xc13   : > { %v13957_v27 = vpop.f32.mrb[20].mxu1 }
 0xc14   : > { %v2270_v32 = vadd.f32 %v13957_v27, %v12575_v8  ;;  %v2264_v46 = vpop.f32.mrb[21].mxu1  ;;  %v2473_v27 = vld [vmem:[%s20062_s10 + $0x8] sm:$0xff] }
 0xc15   : > { %v2265_v7 = vadd.f32 %v12575_v8, %v2264_v46 }
 0xc16   : > { %v2284_v39 = vadd.f32 %v16592_v26, %v2270_v32  ;;  %v2474_v32 = vld [vmem:[%s20062_s10 + $0x10] sm:$0xff] }
 0xc17   : > { %v13960_v41 = vpop.f32.mrb[22].mxu1  ;;  %v2283_v29 = vadd.f32 %v16593_v45, %v2265_v7  ;;  %v2475_v7 = vld [vmem:[%s20062_s10 + $0x18] sm:$0xff] }
 0xc18   : > { %v2274_v42 = vpop.f32.mrb[23].mxu1  ;;  %v2292_v28 = vsel %vm682_vm0, %v2284_v39, 0.0  ;;  %v2280_v48 = vadd.f32 %v13960_v41, %v12575_v8  ;;  %v15083_v26 = vpack.c.bf16 %v2475_v7, %v2474_v32  ;;  %v2477_v41 = vld [vmem:[%s20062_s10 + $0x28] sm:$0xff] }
 0xc19   : > { %v2275_v52 = vadd.f32 %v12575_v8, %v2274_v42  ;;  %2293 = vadd.xlane.f32.xlu1 %v2292_v28  ;;  %v2289_v55 = vsel %vm682_vm0, %v2283_v29, 0.0  ;;  %v2472_v8 = vld [vmem:[%s20062_s10] sm:$0xff] }
 0xc1a   : > { %2290 = vadd.xlane.f32.xlu0 %v2289_v55  ;;  %v2286_v50 = vadd.f32 %v16595_v58, %v2280_v48  ;;  %v15079_v46 = vpack.c.bf16 %v2473_v27, %v2472_v8 }
 0xc1b   : > { %v2285_v57 = vadd.f32 %v16594_v56, %v2275_v52 }
 0xc1c   : > { %v2298_v47 = vsel %vm682_vm0, %v2286_v50, 0.0  ;;  %15080 = vmatprep.subr.bf16.mxu1 %v15079_v46 }
 0xc1d   : > { %v2295_v25 = vsel %vm682_vm0, %v2285_v57, 0.0  ;;  %15082 = vmatpush3.bf16.msra.mxu1 %v15079_v46 }
 0xc1e   : > { %2296 = vadd.xlane.f32.xlu0 %v2295_v25  ;;  %15084 = vmatprep.subr.bf16.mxu1 %v15083_v26 }
 0xc21   : > { %15086 = vmatpush3.bf16.msra.mxu1 %v15083_v26 }
 0xc22   : > { %2299 = vadd.xlane.f32.xlu0 %v2298_v47 }
 0xca6   : > { %v2294_v62 = vpop.xlane.xlu1 %2293 }
 0xca7   : > { %v2303_v37 = vmul.f32 0.03125, %v2294_v62  ;;  %v2291_v63 = vpop.xlane.xlu0 %2290 }
 0xca8   : > { %v2302_v36 = vmul.f32 0.03125, %v2291_v63 }
 0xca9   : > { %v17165_v38 = vsub.f32 %v2284_v39, %v2303_v37  ;;  %v2476_v39 = vld [vmem:[%s20062_s10 + $0x20] sm:$0xff] }
 0xcaa   : > { %v17167_v2 = vsub.f32 %v2283_v29, %v2302_v36  ;;  %v15087_v45 = vpack.c.bf16 %v2477_v41, %v2476_v39  ;;  %v12580_v37 = vld [vmem:[%s20063_s11 + $0x4] ss:$0 sm:$0xff] }
 0xcab   : > { %v2297_v4 = vpop.xlane.xlu0 %2296  ;;  %v2311_v9 = vmul.f32 %v17165_v38, %v17165_v38 }
 0xcac   : > { %v2304_v54 = vmul.f32 0.03125, %v2297_v4  ;;  %v2310_v10 = vmul.f32 %v17167_v2, %v17167_v2  ;;  %15088 = vmatprep.subr.bf16.mxu1 %v15087_v45 }
 0xcad   : > { %v2317_v11 = vsel %vm682_vm0, %v2311_v9, 0.0  ;;  %15090 = vmatpush3.bf16.msra.mxu1 %v15087_v45  ;;  %v12581_v9 = vld [vmem:[%s20063_s11 + $0x5] ss:$0 sm:$0xff]  ;;  %v12587_v45 = vld [vmem:[%s20063_s11 + $0x24] ss:$0 sm:$0xff] }
 0xcae   : > { %v17174_v59 = vsub.f32 %v2285_v57, %v2304_v54  ;;  %2318 = vadd.xlane.f32.xlu1 %v2317_v11  ;;  %v2314_v12 = vsel %vm682_vm0, %v2310_v10, 0.0 }
 0xcaf   : > { %2315 = vadd.xlane.f32.xlu0 %v2314_v12  ;;  %v2300_v13 = vpop.xlane.xlu0 %2299 }
 0xcb0   : > { %v2305_v14 = vmul.f32 0.03125, %v2300_v13  ;;  %v2312_v16 = vmul.f32 %v17174_v59, %v17174_v59 }
 0xcb2   : > { %v17179_v18 = vsub.f32 %v2286_v50, %v2305_v14  ;;  %v2320_v21 = vsel %vm682_vm0, %v2312_v16, 0.0 }
 0xcb3   : > { %2321 = vadd.xlane.f32.xlu0 %v2320_v21 }
 0xcb4   : > { %v2313_v6 = vmul.f32 %v17179_v18, %v17179_v18 }
 0xcb6   : > { %v2323_v22 = vsel %vm682_vm0, %v2313_v6, 0.0 }
 0xcb7   : > { %2324 = vadd.xlane.f32.xlu1 %v2323_v22 }
 0xd3b   : > { %v2319_v29 = vpop.xlane.xlu1 %2318 }
 0xd3c   : > { %v2327_v42 = vmul.f32 0.03125, %v2319_v29  ;;  %v2316_v28 = vpop.xlane.xlu0 %2315 }
 0xd3d   : > { %v2326_v48 = vmul.f32 0.03125, %v2316_v28 }
 0xd3e   : > { %v2331_v52 = vadd.f32 1e-05, %v2327_v42 }
 0xd3f   : > { %v2330_v55 = vadd.f32 1e-05, %v2326_v48 }
 0xd40   : > { %16192 = vrsqrt.f32 %v2331_v52  ;;  %v2322_v56 = vpop.xlane.xlu0 %2321 }
 0xd41   : > { %16194 = vrsqrt.f32 %v2330_v55  ;;  %v2328_v57 = vmul.f32 0.03125, %v2322_v56 }
 0xd43   : > { %v2332_v25 = vadd.f32 1e-05, %v2328_v57 }
 0xd44   : > { %v2325_v58 = vpop.xlane.xlu1 %2324 }
 0xd45   : > { %16196 = vrsqrt.f32 %v2332_v25  ;;  %v2329_v50 = vmul.f32 0.03125, %v2325_v58 }
 0xd47   : > { %v2333_v47 = vadd.f32 1e-05, %v2329_v50 }
 0xd49   : > { %16198 = vrsqrt.f32 %v2333_v47 }
 0xd4a   : > { %v16193_v62 = vpop.eup %16192 }
 0xd4b   : > { %v16195_v63 = vpop.eup %16194  ;;  %v2339_v36 = vmul.f32 %v16193_v62, %v17165_v38 }
 0xd4c   : > { %v2338_v4 = vmul.f32 %v16195_v63, %v17167_v2 }
 0xd4d   : > { %v2347_v54 = vmul.f32 %v12580_v37, %v2339_v36 }
 0xd4e   : > { %v2346_v10 = vmul.f32 %v12580_v37, %v2338_v4 }
 0xd4f   : > { %v16197_v11 = vpop.eup %16196  ;;  %v2355_v14 = vadd.f32 %v12581_v9, %v2347_v54 }
 0xd50   : > { %v2354_v12 = vadd.f32 %v12581_v9, %v2346_v10  ;;  %v2340_v13 = vmul.f32 %v16197_v11, %v17174_v59  ;;  %v2478_v59 = vld [vmem:[%s20062_s10 + $0x30] sm:$0xff] }
 0xd51   : > { %v15091_v34 = vpack.c.bf16 %v2479_v5, %v2478_v59 }
 0xd52   : > { %13969 = vmatprep.mubr.msk.f32.mxu0 %vm682_vm0, %v2354_v12  ;;  %v2348_v16 = vmul.f32 %v12580_v37, %v2340_v13 }
 0xd53   : > { %v16199_v21 = vpop.eup %16198  ;;  %13970 = vmatmul.mubr.msk.f32.vlgmr.msra.gmra.mrb[24].mxu0 %vm682_vm0, %v2355_v14  ;;  %15092 = vmatprep.subr.bf16.mxu1 %v15091_v34 }
 0xd54   : > { %v2356_v38 = vadd.f32 %v12581_v9, %v2348_v16  ;;  %v2341_v2 = vmul.f32 %v16199_v21, %v17179_v18  ;;  %15094 = vmatpush3.bf16.msra.mxu1 %v15091_v34  ;;  %v12582_v18 = vld [vmem:[%s20064_s12] ss:$0 sm:$0xff] }
 0xd56   : > { %13972 = vmatprep.mubr.msk.f32.mxu0 %vm682_vm0, %v2356_v38  ;;  %v2349_v6 = vmul.f32 %v12580_v37, %v2341_v2 }
 0xd58   : > { %v2357_v22 = vadd.f32 %v12581_v9, %v2349_v6 }
 0xd5a   : > { %13973 = vmatmul.mubr.msk.f32.gmra.mrb[26].mxu0 %vm682_vm0, %v2357_v22 }
 0xe26   : > { %v13971_v40 = vpop.f32.mrb[24].mxu0 }
 0xe27   : > { %v2455_v44 = vadd.f32 %v13971_v40, %v12582_v18  ;;  %v2449_v23 = vpop.f32.mrb[25].mxu0 }
 0xe28   : > { %v2450_v43 = vadd.f32 %v12582_v18, %v2449_v23  ;;  %v12594_v23 = vld [vmem:[%s20057_s5 + $0x20] sm:$0xff] }
 0xe29   : > { %v2469_v27 = vmax.f32 %v2455_v44, 0.0 }
 0xe2a   : > { %v2468_v8 = vmax.f32 %v2450_v43, 0.0  ;;  %v12595_v43 = vld [vmem:[%s20057_s5 + $0x28] sm:$0xff] }
 0xe2c   : > { %13991 = vmatprep.mubr.msk.f32.mxu1 %vm2105_vm5, %v2468_v8  ;;  %v12612_v8 = vld [vmem:[%s20059_s7 + $0x20] sm:$0xff] }
 0xe2d   : > { %v13974_v32 = vpop.f32.mrb[26].mxu0  ;;  %13992 = vmatmul.mubr.msk.f32.vlgmr.msra.gmra.mrb[24].mxu1 %vm2105_vm5, %v2469_v27  ;;  %v15095_v27 = vpack.c.bf16 %v12595_v43, %v12594_v23 }
 0xe2e   : > { %v2465_v46 = vadd.f32 %v13974_v32, %v12582_v18  ;;  %v2459_v7 = vpop.f32.mrb[27].mxu0  ;;  %v12613_v32 = vld [vmem:[%s20059_s7 + $0x28] sm:$0xff] }
 0xe2f   : > { %v2460_v26 = vadd.f32 %v12582_v18, %v2459_v7  ;;  %15096 = vmatprep.subr.bf16.mxu0 %v15095_v27  ;;  %v12596_v7 = vld [vmem:[%s20057_s5 + $0x30] sm:$0xff] }
 0xe30   : > { %v2471_v41 = vmax.f32 %v2465_v46, 0.0  ;;  %v15111_v46 = vpack.c.bf16 %v12613_v32, %v12612_v8  ;;  %15098 = vmatpush3.bf16.msra.mxu0 %v15095_v27 }
 0xe31   : > { %v2470_v39 = vmax.f32 %v2460_v26, 0.0  ;;  %v12597_v26 = vld [vmem:[%s20057_s5 + $0x38] sm:$0xff] }
 0xe32   : > { %15112 = vmatprep.subr.bf16.mxu1 %v15111_v46 }
 0xe33   : > { %13994 = vmatprep.mubr.msk.f32.mxu1 %vm2105_vm5, %v2470_v39  ;;  %v12614_v39 = vld [vmem:[%s20059_s7 + $0x30] sm:$0xff]  ;;  %15114 = vmatpush3.bf16.msra.mxu1 %v15111_v46 }
 0xe34   : > { %13995 = vmatmul.mubr.msk.f32.gmra.mrb[26].mxu1 %vm2105_vm5, %v2471_v41  ;;  %v15099_v41 = vpack.c.bf16 %v12597_v26, %v12596_v7 }
 0xe36   : > { %15100 = vmatprep.subr.bf16.mxu0 %v15099_v41 }
 0xe37   : > { %15102 = vmatpush3.bf16.msra.mxu0 %v15099_v41 }
 0xf00   : > { %v13993_v29 = vpop.f32.mrb[24].mxu1 }
 0xf01   : > { %v2569_v42 = vadd.f32 %v13993_v29, %v12587_v45  ;;  %v2563_v28 = vpop.f32.mrb[25].mxu1 }
 0xf02   : > { %v2564_v48 = vadd.f32 %v12587_v45, %v2563_v28  ;;  %v12604_v28 = vld [vmem:[%s20058_s6 + $0x28] sm:$0xff] }
 0xf03   : > { %v2583_v52 = vadd.f32 %v2569_v42, %v2355_v14  ;;  %v12603_v42 = vld [vmem:[%s20058_s6 + $0x20] sm:$0xff] }
 0xf04   : > { %v2582_v55 = vadd.f32 %v2564_v48, %v2354_v12  ;;  %v15103_v48 = vpack.c.bf16 %v12604_v28, %v12603_v42 }
 0xf05   : > { %v2591_v56 = vsel %vm682_vm0, %v2583_v52, 0.0 }
 0xf06   : > { %2592 = vadd.xlane.f32.xlu1 %v2591_v56  ;;  %v2588_v57 = vsel %vm682_vm0, %v2582_v55, 0.0  ;;  %15104 = vmatprep.subr.bf16.mxu0 %v15103_v48 }
 0xf07   : > { %2589 = vadd.xlane.f32.xlu0 %v2588_v57  ;;  %v13996_v25 = vpop.f32.mrb[26].mxu1 }
 0xf08   : > { %v2579_v58 = vadd.f32 %v13996_v25, %v12587_v45  ;;  %v2573_v50 = vpop.f32.mrb[27].mxu1 }
 0xf09   : > { %v2574_v47 = vadd.f32 %v12587_v45, %v2573_v50  ;;  %v12615_v45 = vld [vmem:[%s20059_s7 + $0x38] sm:$0xff] }
 0xf0a   : > { %v2585_v62 = vadd.f32 %v2579_v58, %v2357_v22  ;;  %v15115_v29 = vpack.c.bf16 %v12615_v45, %v12614_v39 }
 0xf0b   : > { %v2584_v37 = vadd.f32 %v2574_v47, %v2356_v38 }
 0xf0c   : > { %v2597_v63 = vsel %vm682_vm0, %v2585_v62, 0.0  ;;  %15116 = vmatprep.subr.bf16.mxu1 %v15115_v29 }
 0xf0d   : > { %2598 = vadd.xlane.f32.xlu1 %v2597_v63  ;;  %v2594_v36 = vsel %vm682_vm0, %v2584_v37, 0.0  ;;  %15118 = vmatpush3.bf16.msra.mxu1 %v15115_v29 }
 0xf0e   : > { %2595 = vadd.xlane.f32.xlu0 %v2594_v36 }
 0xf93   : > { %v2593_v4 = vpop.xlane.xlu1 %2592 }
 0xf94   : > { %v2601_v9 = vmul.f32 0.03125, %v2593_v4  ;;  %v2590_v54 = vpop.xlane.xlu0 %2589 }
 0xf95   : > { %v2600_v10 = vmul.f32 0.03125, %v2590_v54 }
 0xf96   : > { %v17249_v11 = vsub.f32 %v2583_v52, %v2601_v9  ;;  %v12592_v9 = vld [vmem:[%s20063_s11 + $0x25] ss:$0 sm:$0xff] }
 0xf97   : > { %v17251_v12 = vsub.f32 %v2582_v55, %v2600_v10 }
 0xf98   : > { %v2609_v13 = vmul.f32 %v17249_v11, %v17249_v11 }
 0xf99   : > { %v2608_v14 = vmul.f32 %v17251_v12, %v17251_v12 }
 0xf9a   : > { %v2599_v16 = vpop.xlane.xlu1 %2598  ;;  %v2615_v21 = vsel %vm682_vm0, %v2609_v13, 0.0 }
 0xf9b   : > { %v2603_v38 = vmul.f32 0.03125, %v2599_v16  ;;  %2616 = vadd.xlane.f32.xlu1 %v2615_v21  ;;  %v2596_v2 = vpop.xlane.xlu0 %2595  ;;  %v2612_v6 = vsel %vm682_vm0, %v2608_v14, 0.0  ;;  %v12593_v14 = vld [vmem:[%s20063_s11 + $0x26] ss:$0 sm:$0xff] }
 0xf9c   : > { %v2602_v22 = vmul.f32 0.03125, %v2596_v2  ;;  %2613 = vadd.xlane.f32.xlu0 %v2612_v6  ;;  %v12606_v2 = vld [vmem:[%s20058_s6 + $0x38] sm:$0xff] }
 0xf9d   : > { %v17259_v59 = vsub.f32 %v2585_v62, %v2603_v38  ;;  %v12605_v38 = vld [vmem:[%s20058_s6 + $0x30] sm:$0xff] }
 0xf9e   : > { %v17261_v5 = vsub.f32 %v2584_v37, %v2602_v22 }
 0xf9f   : > { %v2611_v34 = vmul.f32 %v17259_v59, %v17259_v59 }
 0xfa0   : > { %v2610_v18 = vmul.f32 %v17261_v5, %v17261_v5 }
 0xfa1   : > { %v2621_v40 = vsel %vm682_vm0, %v2611_v34, 0.0 }
 0xfa2   : > { %2622 = vadd.xlane.f32.xlu1 %v2621_v40  ;;  %v2618_v44 = vsel %vm682_vm0, %v2610_v18, 0.0 }
 0xfa3   : > { %2619 = vadd.xlane.f32.xlu0 %v2618_v44 }
0x1028   : > { %v2617_v52 = vpop.xlane.xlu1 %2616 }
0x1029   : > { %v2625_v55 = vmul.f32 0.03125, %v2617_v52  ;;  %v2614_v56 = vpop.xlane.xlu0 %2613 }
0x102a   : > { %v2624_v57 = vmul.f32 0.03125, %v2614_v56 }
0x102b   : > { %v2629_v25 = vadd.f32 1e-05, %v2625_v55 }
0x102c   : > { %v2628_v58 = vadd.f32 1e-05, %v2624_v57  ;;  %v12607_v57 = vld [vmem:[%s20063_s11 + $0x7] ss:$0 sm:$0xff] }
0x102d   : > { %16200 = vrsqrt.f32 %v2629_v25 }
0x102e   : > { %16202 = vrsqrt.f32 %v2628_v58 }
0x102f   : > { %v2623_v50 = vpop.xlane.xlu1 %2622 }
0x1030   : > { %v2627_v47 = vmul.f32 0.03125, %v2623_v50  ;;  %v2620_v62 = vpop.xlane.xlu0 %2619 }
0x1031   : > { %v2626_v37 = vmul.f32 0.03125, %v2620_v62 }
0x1032   : > { %v2631_v63 = vadd.f32 1e-05, %v2627_v47 }
0x1033   : > { %v2630_v36 = vadd.f32 1e-05, %v2626_v37 }
0x1034   : > { %16204 = vrsqrt.f32 %v2631_v63 }
0x1035   : > { %16206 = vrsqrt.f32 %v2630_v36 }
0x1037   : > { %v16201_v4 = vpop.eup %16200 }
0x1038   : > { %v16203_v54 = vpop.eup %16202  ;;  %v2637_v10 = vmul.f32 %v16201_v4, %v17249_v11 }
0x1039   : > { %v2636_v13 = vmul.f32 %v16203_v54, %v17251_v12  ;;  %v15107_v12 = vpack.c.bf16 %v12606_v2, %v12605_v38 }
0x103a   : > { %v2645_v16 = vmul.f32 %v12592_v9, %v2637_v10 }
0x103b   : > { %v2644_v21 = vmul.f32 %v12592_v9, %v2636_v13 }
0x103c   : > { %v17315_v11 = vadd.f32 %v12593_v14, %v2645_v16 }
0x103d   : > { %v17313_v6 = vadd.f32 %v12593_v14, %v2644_v21 }
0x103e   : > { %v16205_v22 = vpop.eup %16204 }
0x103f   : > { %v16207_v34 = vpop.eup %16206  ;;  %14005 = vmatprep.mubr.msk.f32.mxu0 %vm682_vm0, %v17313_v6  ;;  %14033 = vmatprep.mubr.msk.f32.mxu1 %vm682_vm0, %v17313_v6  ;;  %v2639_v18 = vmul.f32 %v16205_v22, %v17259_v59  ;;  %v12616_v59 = vld [vmem:[%s20063_s11 + $0x8] ss:$0 sm:$0xff] }
0x1040   : > { %14006 = vmatmul.mubr.msk.f32.vlgmr.msra.gmra.mrb[28].mxu0 %vm682_vm0, %v17315_v11  ;;  %14034 = vmatmul.mubr.msk.f32.vlgmr.msra.gmra.mrb[28].mxu1 %vm682_vm0, %v17315_v11  ;;  %v2638_v40 = vmul.f32 %v16207_v34, %v17261_v5  ;;  %v12598_v5 = vld [vmem:[%s20063_s11 + $0x6] ss:$0 sm:$0xff] }
0x1041   : > { %15106 = vmatpush3.bf16.msra.mxu0 %v15103_v48  ;;  %v2647_v44 = vmul.f32 %v12592_v9, %v2639_v18  ;;  %v17389_v18 = vld [vmem:[%s16873_s0 + $0x8] sm:$0xff] }
0x1042   : > { %v2646_v23 = vmul.f32 %v12592_v9, %v2638_v40  ;;  %15108 = vmatprep.subr.bf16.mxu0 %v15107_v12 }
0x1043   : > { %v17329_v8 = vadd.f32 %v12593_v14, %v2647_v44 }
0x1044   : > { %v17327_v43 = vadd.f32 %v12593_v14, %v2646_v23  ;;  %v17393_v23 = vld [vmem:[%s16873_s0] sm:$0xff] }
0x1045   : > { %15110 = vmatpush3.bf16.msra.mxu0 %v15107_v12 }
0x1046   : > { %14008 = vmatprep.mubr.msk.f32.mxu0 %vm682_vm0, %v17327_v43  ;;  %14036 = vmatprep.mubr.msk.f32.mxu1 %vm682_vm0, %v17327_v43 }
0x1047   : > { %14009 = vmatmul.mubr.msk.f32.gmra.mrb[30].mxu0 %vm682_vm0, %v17329_v8  ;;  %14037 = vmatmul.mubr.msk.f32.gmra.mrb[30].mxu1 %vm682_vm0, %v17329_v8 }
0x1048   : > { %14019 = vmatprep.mubr.msk.f32.mxu0 %vm682_vm0, %v17313_v6 }
0x104b   : > { %14020 = vmatmul.mubr.msk.f32.vlgmr.msra.gmra.mrb[32].mxu0 %vm682_vm0, %v17315_v11 }
0x104c   : > { %14022 = vmatprep.mubr.msk.f32.mxu0 %vm682_vm0, %v17327_v43 }
0x104f   : > { %14023 = vmatmul.mubr.msk.f32.gmra.mrb[34].mxu0 %vm682_vm0, %v17329_v8 }
0x1113   : > { %v14007_v27 = vpop.f32.mrb[28].mxu0  ;;  %v14035_v32 = vpop.f32.mrb[28].mxu1 }
0x1114   : > { %v2940_v46 = vadd.f32 %v14035_v32, %v12616_v59  ;;  %v2744_v7 = vpop.f32.mrb[29].mxu0  ;;  %v2934_v26 = vpop.f32.mrb[29].mxu1  ;;  %v17376_v16 = vadd.f32 %v14007_v27, %v12598_v5 }
0x1115   : > { %v17353_v39 = vadd.f32 %v12598_v5, %v2744_v7  ;;  %v2935_v41 = vadd.f32 %v12616_v59, %v2934_v26  ;;  %v17399_v26 = vld [vmem:[%s16873_s0 + $0x18] sm:$0xff] }
0x1117   : > { %14047 = vmatprep.mubr.msk.f32.mxu0 %vm968_vm1, %v17353_v39  ;;  %v15131_v45 = vpack.c.bf16 %v2940_v46, %v2935_v41  ;;  %v17357_v29 = vpack.i.bf16 %v2940_v46, %v2935_v41 }
0x1119   : > { %15132 = vmatprep.subr.bf16.mxu1 %v15131_v45 }
0x111a   : > { %v14010_v42 = vpop.f32.mrb[30].mxu0  ;;  %v14038_v28 = vpop.f32.mrb[30].mxu1  ;;  %15134 = vmatpush3.bf16.msra.mxu1 %v15131_v45  ;;  %v17403_v45 = vld [vmem:[%s16873_s0 + $0x10] sm:$0xff]  ;;  %s20173_s0 = smov 120  }
0x111b   : > { %v2950_v48 = vadd.f32 %v14038_v28, %v12616_v59  ;;  %v2754_v52 = vpop.f32.mrb[31].mxu0  ;;  %v2944_v55 = vpop.f32.mrb[31].mxu1  ;;  %v17384_v38 = vadd.f32 %v14010_v42, %v12598_v5 }
0x111c   : > { %v2945_v56 = vadd.f32 %v12616_v59, %v2944_v55  ;;  %v17378_v21 = vadd.f32 %v12598_v5, %v2754_v52 }
0x111e   : > { %v14021_v25 = vpop.f32.mrb[32].mxu0  ;;  %v15135_v58 = vpack.c.bf16 %v2950_v48, %v2945_v56  ;;  %v17362_v50 = vpack.i.bf16 %v2950_v48, %v2945_v56 }
0x111f   : > { %v2845_v47 = vadd.f32 %v14021_v25, %v12607_v57  ;;  %v2839_v62 = vpop.f32.mrb[33].mxu0 }
0x1120   : > { %v2840_v37 = vadd.f32 %v12607_v57, %v2839_v62  ;;  %15136 = vmatprep.subr.bf16.mxu1 %v15135_v58 }
0x1121   : > { %15138 = vmatpush3.bf16.msra.mxu1 %v15135_v58 }
0x1122   : > { %v14024_v63 = vpop.f32.mrb[34].mxu0  ;;  %v15119_v36 = vpack.c.bf16 %v2845_v47, %v2840_v37  ;;  %v17364_v4 = vpack.i.bf16 %v2845_v47, %v2840_v37 }
0x1123   : > { %v2855_v9 = vadd.f32 %v14024_v63, %v12607_v57  ;;  %v2849_v54 = vpop.f32.mrb[35].mxu0 }
0x1124   : > { %v2850_v10 = vadd.f32 %v12607_v57, %v2849_v54  ;;  %15121 = vmatprep.subr.msk.bf16.mxu0 %vm16818_vm2, %v15119_v36 }
0x1125   : > { %15124 = vmatpush3.bf16.xpose.msk.msra.mxu0 %vm16818_vm2, %v15119_v36 }
0x1126   : > { %v15125_v13 = vpack.c.bf16 %v2855_v9, %v2850_v10  ;;  %v17370_v14 = vpack.i.bf16 %v2855_v9, %v2850_v10 }
0x1128   : > { %15127 = vmatprep.subr.msk.bf16.mxu0 %vm16818_vm2, %v15125_v13 }
0x112d   : > { %15130 = vmatpush3.bf16.xpose.msk.msra.mxu0 %vm16818_vm2, %v15125_v13 }
0x1134   : > { %14048 = vmatmul.mubr.msk.f32.vlgmr.msra.gmra.mrb[36].mxu0 %vm968_vm1, %v17376_v16 }
0x1135   : > { %14050 = vmatprep.mubr.msk.f32.mxu0 %vm968_vm1, %v17378_v21 }
0x1138   : > { %14051 = vmatmul.mubr.msk.f32.gmra.mrb[38].mxu0 %vm968_vm1, %v17384_v38 }
0x1207   : > { %v14049_v2 = vpop.f32.mrb[36].mxu0 }
0x1208   : > { %v3063_v22 = vmul.f32 0.35355338, %v14049_v2  ;;  %v3043_v12 = vpop.f32.mrb[37].mxu0 }
0x1209   : > { %v3062_v34 = vmul.f32 0.35355338, %v3043_v12 }
0x120a   : > { %v3067_v40 = vadd.f32 %v17389_v18, %v3063_v22 }
0x120b   : > { %v14052_v44 = vpop.f32.mrb[38].mxu0  ;;  %v3066_v59 = vadd.f32 %v17393_v23, %v3062_v34 }
0x120c   : > { %v3065_v5 = vmul.f32 0.35355338, %v14052_v44  ;;  %v3053_v27 = vpop.f32.mrb[39].mxu0  ;;  %v3073_v32 = vsel %vm682_vm0, %v3067_v40, -inf }
0x120d   : > { %v3064_v46 = vmul.f32 0.35355338, %v3053_v27  ;;  %3074 = vmax.xlane.f32.xlu1 %v3073_v32  ;;  %v3070_v7 = vsel %vm682_vm0, %v3066_v59, -inf }
0x120e   : > { %3071 = vmax.xlane.f32.xlu0 %v3070_v7  ;;  %v3069_v41 = vadd.f32 %v17399_v26, %v3065_v5 }
0x120f   : > { %v3068_v42 = vadd.f32 %v17403_v45, %v3064_v46 }
0x1210   : > { %v3079_v28 = vsel %vm682_vm0, %v3069_v41, -inf }
0x1211   : > { %3080 = vmax.xlane.f32.xlu1 %v3079_v28  ;;  %v3076_v48 = vsel %vm682_vm0, %v3068_v42, -inf }
0x1212   : > { %3077 = vmax.xlane.f32.xlu0 %v3076_v48 }
0x129a   : > { %v3075_v52 = vpop.xlane.xlu1 %3074 }
0x129b   : > { %v3083_v55 = vsub.f32 %v3067_v40, %v3075_v52  ;;  %v3072_v56 = vpop.xlane.xlu0 %3071 }
0x129c   : > { %v3082_v57 = vsub.f32 %v3066_v59, %v3072_v56 }
0x129d   : > { %v3088_v25 = vmul.f32 1.442695, %v3083_v55 }
0x129e   : > { %v3086_v58 = vmul.f32 1.442695, %v3082_v57  ;;  %v3081_v47 = vpop.xlane.xlu1 %3080 }
0x129f   : > { %16208 = vpow2.f32 %v3088_v25  ;;  %v3085_v62 = vsub.f32 %v3069_v41, %v3081_v47  ;;  %v3078_v37 = vpop.xlane.xlu0 %3077 }
0x12a0   : > { %16210 = vpow2.f32 %v3086_v58  ;;  %v3084_v63 = vsub.f32 %v3068_v42, %v3078_v37 }
0x12a1   : > { %v3092_v36 = vmul.f32 1.442695, %v3085_v62 }
0x12a2   : > { %v3090_v9 = vmul.f32 1.442695, %v3084_v63 }
0x12a3   : > { %16212 = vpow2.f32 %v3092_v36 }
0x12a4   : > { %16214 = vpow2.f32 %v3090_v9 }
0x12a9   : > { %v16209_v54 = vpop.eup %16208 }
0x12aa   : > { %v16211_v10 = vpop.eup %16210  ;;  %v3097_v13 = vsel %vm682_vm0, %v16209_v54, 0.0 }
0x12ab   : > { %3098 = vadd.xlane.f32.xlu1 %v3097_v13  ;;  %v3094_v2 = vsel %vm682_vm0, %v16211_v10, 0.0 }
0x12ac   : > { %3095 = vadd.xlane.f32.xlu0 %v3094_v2 }
0x12ad   : > { %v16213_v22 = vpop.eup %16212 }
0x12ae   : > { %v16215_v12 = vpop.eup %16214  ;;  %v3103_v34 = vsel %vm682_vm0, %v16213_v22, 0.0 }
0x12af   : > { %3104 = vadd.xlane.f32.xlu1 %v3103_v34  ;;  %v3100_v40 = vsel %vm682_vm0, %v16215_v12, 0.0 }
0x12b0   : > { %3101 = vadd.xlane.f32.xlu0 %v3100_v40 }
0x12c0   : > { %15834 = vrot.lane.b32.xlu1 %v17370_v14, %s20173_s0 }
0x12c4   : > { %3211 = vrot.lane.b32.xlu1 %v17353_v39, %s20173_s0 }
0x12c6   : > { %15829 = vrot.lane.b32.xlu0 %v17364_v4, %s20173_s0 }
0x12c8   : > { %3213 = vrot.lane.b32.xlu1 %v17376_v16, %s20173_s0 }
0x12ca   : > { %3215 = vrot.lane.b32.xlu0 %v17378_v21, %s20173_s0 }
0x12cc   : > { %3217 = vrot.lane.b32.xlu1 %v17384_v38, %s20173_s0 }
0x1338   : > { %v3099_v44 = vpop.xlane.xlu1 %3098 }
0x1339   : > { %16216 = vrcp.f32 %v3099_v44  ;;  %v3096_v59 = vpop.xlane.xlu0 %3095 }
0x133a   : > { %16218 = vrcp.f32 %v3096_v59 }
0x133c   : > { %v3105_v5 = vpop.xlane.xlu1 %3104 }
0x133d   : > { %16220 = vrcp.f32 %v3105_v5  ;;  %v3102_v27 = vpop.xlane.xlu0 %3101 }
0x133e   : > { %16222 = vrcp.f32 %v3102_v27 }
0x1340   : > { %v15835_v32 = vpop.permute.xlu1 %15834 }
0x1341   : > { %v15830_v46 = vpop.permute.xlu0 %15829  ;;  %v15837_v48 = vunpack.i.h.bf16 %v15835_v32  ;;  %v15836_v52 = vunpack.i.l.bf16 %v15835_v32 }
0x1342   : > { %v15832_v7 = vunpack.i.h.bf16 %v15830_v46  ;;  %v15831_v41 = vunpack.i.l.bf16 %v15830_v46 }
0x1343   : > { %v16217_v42 = vpop.eup %16216  ;;  %v15145_v47 = vpack.c.bf16 %v15837_v48, %v15836_v52 }
0x1344   : > { %v16219_v28 = vpop.eup %16218  ;;  %v15139_v55 = vpack.c.bf16 %v15832_v7, %v15831_v41  ;;  %v17426_v57 = vmul.f32 %v16217_v42, %v16209_v54  ;;  %v3212_v63 = vpop.permute.xlu1 %3211 }
0x1345   : > { %v17424_v56 = vmul.f32 %v16219_v28, %v16211_v10  ;;  %v3216_v9 = vpop.permute.xlu0 %3215 }
0x1346   : > { %20175 = vst [vmem:[#allocation15_spill] sm:$0xff] %v17426_v57  ;;  %15141 = vmatprep.subr.msk.bf16.mxu1 %vm16818_vm2, %v15139_v55 }
0x1347   : > { %20174 = vst [vmem:[#allocation14_spill] sm:$0xff] %v17424_v56  ;;  %v16221_v25 = vpop.eup %16220  ;;  %14061 = vmatprep.mubr.msk.f32.mxu1 %vm682_vm0, %v17424_v56 }
0x1348   : > { %v16223_v58 = vpop.eup %16222  ;;  %14062 = vmatmul.mubr.msk.f32.vlgmr.msra.gmra.mrb[32].mxu1 %vm682_vm0, %v17426_v57  ;;  %v17440_v37 = vmul.f32 %v16221_v25, %v16213_v22  ;;  %v3214_v36 = vpop.permute.xlu1 %3213 }
0x1349   : > { %15144 = vmatpush3.bf16.xpose.msk.msra.mxu1 %vm16818_vm2, %v15139_v55  ;;  %v17436_v62 = vmul.f32 %v16223_v58, %v16215_v12 }
0x134a   : > { %15147 = vmatprep.subr.msk.bf16.mxu1 %vm16818_vm2, %v15145_v47  ;;  %20177 = vst [vmem:[#allocation17_spill] sm:$0xff] %v17440_v37 }
0x134b   : > { %20176 = vst [vmem:[#allocation16_spill] sm:$0xff] %v17436_v62  ;;  %14064 = vmatprep.mubr.msk.f32.mxu1 %vm682_vm0, %v17436_v62 }
0x134c   : > { %14065 = vmatmul.mubr.msk.f32.gmra.mrb[34].mxu1 %vm682_vm0, %v17440_v37  ;;  %v3218_v54 = vpop.permute.xlu1 %3217 }
0x134d   : > { %14075 = vmatprep.mubr.msk.f32.mxu1 %vm968_vm1, %v3212_v63 }
0x1351   : > { %15150 = vmatpush3.bf16.xpose.msk.msra.mxu1 %vm16818_vm2, %v15145_v47 }
0x1358   : > { %14076 = vmatmul.mubr.msk.f32.vlgmr.msra.gmra.mrb[36].mxu1 %vm968_vm1, %v3214_v36 }
0x1359   : > { %14078 = vmatprep.mubr.msk.f32.mxu1 %vm968_vm1, %v3216_v9 }
0x135c   : > { %14079 = vmatmul.mubr.msk.f32.gmra.mrb[38].mxu1 %vm968_vm1, %v3218_v54 }
0x141b   : > { %v17452_v10 = vpop.f32.mrb[32].mxu1 }
0x141c   : > { %v17454_v13 = vpop.f32.mrb[33].mxu1 }
0x141f   : > { %v17456_v2 = vpop.f32.mrb[34].mxu1 }
0x1420   : > { %v17458_v22 = vpop.f32.mrb[35].mxu1 }
0x142b   : > { %v14077_v12 = vpop.f32.mrb[36].mxu1 }
0x142c   : > { %v3329_v34 = vmul.f32 0.35355338, %v14077_v12  ;;  %v3309_v40 = vpop.f32.mrb[37].mxu1 }
0x142d   : > { %v3328_v44 = vmul.f32 0.35355338, %v3309_v40 }
0x142e   : > { %v3333_v59 = vadd.f32 %v17389_v18, %v3329_v34 }
0x142f   : > { %v14080_v5 = vpop.f32.mrb[38].mxu1  ;;  %v3332_v27 = vadd.f32 %v17393_v23, %v3328_v44 }
0x1430   : > { %v3319_v32 = vpop.f32.mrb[39].mxu1  ;;  %v3339_v46 = vsel %vm682_vm0, %v3333_v59, -inf  ;;  %v3331_v7 = vmul.f32 0.35355338, %v14080_v5 }
0x1431   : > { %v3330_v41 = vmul.f32 0.35355338, %v3319_v32  ;;  %3340 = vmax.xlane.f32.xlu1 %v3339_v46  ;;  %v3336_v42 = vsel %vm682_vm0, %v3332_v27, -inf }
0x1432   : > { %3337 = vmax.xlane.f32.xlu0 %v3336_v42  ;;  %v3335_v48 = vadd.f32 %v17399_v26, %v3331_v7 }
0x1433   : > { %v3334_v28 = vadd.f32 %v17403_v45, %v3330_v41 }
0x1434   : > { %v3345_v55 = vsel %vm682_vm0, %v3335_v48, -inf }
0x1435   : > { %v3342_v52 = vsel %vm682_vm0, %v3334_v28, -inf }
0x1436   : > { %3343 = vmax.xlane.f32.xlu0 %v3342_v52 }
0x143a   : > { %3346 = vmax.xlane.f32.xlu0 %v3345_v55 }
0x14be   : > { %v3341_v25 = vpop.xlane.xlu1 %3340 }
0x14bf   : > { %v3349_v58 = vsub.f32 %v3333_v59, %v3341_v25  ;;  %v3338_v47 = vpop.xlane.xlu0 %3337 }
0x14c0   : > { %v3348_v63 = vsub.f32 %v3332_v27, %v3338_v47 }
0x14c1   : > { %v3354_v36 = vmul.f32 1.442695, %v3349_v58 }
0x14c2   : > { %v3352_v9 = vmul.f32 1.442695, %v3348_v63 }
0x14c3   : > { %16224 = vpow2.f32 %v3354_v36  ;;  %v3344_v44 = vpop.xlane.xlu0 %3343 }
0x14c4   : > { %16226 = vpow2.f32 %v3352_v9  ;;  %v3350_v59 = vsub.f32 %v3334_v28, %v3344_v44 }
0x14c6   : > { %v3356_v5 = vmul.f32 1.442695, %v3350_v59 }
0x14c7   : > { %v3347_v27 = vpop.xlane.xlu0 %3346 }
0x14c8   : > { %v3351_v32 = vsub.f32 %v3335_v48, %v3347_v27  ;;  %16228 = vpow2.f32 %v3356_v5 }
0x14ca   : > { %v3358_v46 = vmul.f32 1.442695, %v3351_v32 }
0x14cc   : > { %16230 = vpow2.f32 %v3358_v46 }
0x14cd   : > { %v16225_v54 = vpop.eup %16224 }
0x14ce   : > { %v16227_v12 = vpop.eup %16226  ;;  %v3363_v34 = vsel %vm682_vm0, %v16225_v54, 0.0 }
0x14cf   : > { %3364 = vadd.xlane.f32.xlu1 %v3363_v34  ;;  %v3360_v40 = vsel %vm682_vm0, %v16227_v12, 0.0 }
0x14d0   : > { %3361 = vadd.xlane.f32.xlu0 %v3360_v40 }
0x14d2   : > { %v16229_v7 = vpop.eup %16228 }
0x14d3   : > { %v3366_v41 = vsel %vm682_vm0, %v16229_v7, 0.0 }
0x14d6   : > { %v16231_v42 = vpop.eup %16230 }
0x14d7   : > { %v3369_v52 = vsel %vm682_vm0, %v16231_v42, 0.0 }
0x14e0   : > { %15844 = vrot.lane.b32.xlu1 %v17362_v50, %s20173_s0 }
0x14e4   : > { %15849 = vrot.lane.b32.xlu1 %v17364_v4, %s20178_s2 }
0x14e6   : > { %15839 = vrot.lane.b32.xlu0 %v17357_v29, %s20173_s0 }
0x14e8   : > { %15854 = vrot.lane.b32.xlu1 %v17370_v14, %s20178_s2 }
0x1505   : > { %3367 = vadd.xlane.f32.xlu0 %v3366_v41 }
0x150c   : > { %3370 = vadd.xlane.f32.xlu1 %v3369_v52 }
0x151b   : > { %3493 = vrot.lane.b32.xlu0 %v17353_v39, %s20178_s2 }
0x151d   : > { %3495 = vrot.lane.b32.xlu1 %v17376_v16, %s20178_s2 }
0x151f   : > { %3497 = vrot.lane.b32.xlu0 %v17378_v21, %s20178_s2 }
0x1521   : > { %3499 = vrot.lane.b32.xlu1 %v17384_v38, %s20178_s2 }
0x155c   : > { %v3365_v28 = vpop.xlane.xlu1 %3364 }
0x155d   : > { %v3362_v48 = vpop.xlane.xlu0 %3361 }
0x155e   : > { %16232 = vrcp.f32 %v3362_v48 }
0x155f   : > { %16234 = vrcp.f32 %v3365_v28 }
0x1560   : > { %v15845_v55 = vpop.permute.xlu1 %15844 }
0x1561   : > { %v15840_v25 = vpop.permute.xlu0 %15839  ;;  %v15847_v58 = vunpack.i.h.bf16 %v15845_v55  ;;  %v15846_v47 = vunpack.i.l.bf16 %v15845_v55 }
0x1562   : > { %v15842_v63 = vunpack.i.h.bf16 %v15840_v25  ;;  %v15841_v36 = vunpack.i.l.bf16 %v15840_v25 }
0x1563   : > { %v15155_v59 = vpack.c.bf16 %v15847_v58, %v15846_v47 }
0x1564   : > { %v15850_v9 = vpop.permute.xlu1 %15849  ;;  %v15151_v34 = vpack.c.bf16 %v15842_v63, %v15841_v36 }
0x1565   : > { %v15852_v40 = vunpack.i.h.bf16 %v15850_v9  ;;  %v15851_v44 = vunpack.i.l.bf16 %v15850_v9 }
0x1566   : > { %15152 = vmatprep.subr.bf16.mxu0 %v15151_v34 }
0x1567   : > { %15154 = vmatpush3.bf16.msra.mxu0 %v15151_v34  ;;  %v15159_v46 = vpack.c.bf16 %v15852_v40, %v15851_v44 }
0x1568   : > { %v16233_v5 = vpop.eup %16232  ;;  %15156 = vmatprep.subr.bf16.mxu0 %v15155_v59  ;;  %v15855_v52 = vpop.permute.xlu1 %15854 }
0x1569   : > { %v16235_v27 = vpop.eup %16234  ;;  %v17488_v32 = vmul.f32 %v16233_v5, %v16227_v12  ;;  %v15857_v28 = vunpack.i.h.bf16 %v15855_v52  ;;  %v15856_v48 = vunpack.i.l.bf16 %v15855_v52 }
0x156a   : > { %v17492_v41 = vmul.f32 %v16235_v27, %v16225_v54 }
0x156b   : > { %15158 = vmatpush3.bf16.msra.mxu0 %v15155_v59  ;;  %14089 = vmatprep.mubr.msk.f32.mxu0 %vm682_vm0, %v17488_v32  ;;  %v15165_v55 = vpack.c.bf16 %v15857_v28, %v15856_v48 }
0x156c   : > { %15161 = vmatprep.subr.msk.bf16.mxu0 %vm16818_vm2, %v15159_v46 }
0x156e   : > { %14090 = vmatmul.mubr.msk.f32.vlgmr.msra.gmra.mrb[40].mxu0 %vm682_vm0, %v17492_v41 }
0x1574   : > { %15164 = vmatpush3.bf16.xpose.msk.msra.mxu0 %vm16818_vm2, %v15159_v46 }
0x1575   : > { %15167 = vmatprep.subr.msk.bf16.mxu0 %vm16818_vm2, %v15165_v55 }
0x157c   : > { %15170 = vmatpush3.bf16.xpose.msk.msra.mxu0 %vm16818_vm2, %v15165_v55 }
0x1592   : > { %v3368_v54 = vpop.xlane.xlu0 %3367 }
0x1593   : > { %16236 = vrcp.f32 %v3368_v54 }
0x1596   : > { %v3494_v63 = vpop.permute.xlu0 %3493 }
0x1599   : > { %v3371_v12 = vpop.xlane.xlu1 %3370 }
0x159a   : > { %16238 = vrcp.f32 %v3371_v12  ;;  %v3498_v34 = vpop.permute.xlu0 %3497 }
0x159d   : > { %v16237_v25 = vpop.eup %16236  ;;  %v3496_v9 = vpop.permute.xlu1 %3495 }
0x159e   : > { %v17504_v58 = vmul.f32 %v16237_v25, %v16229_v7 }
0x15a0   : > { %14092 = vmatprep.mubr.msk.f32.mxu0 %vm682_vm0, %v17504_v58 }
0x15a1   : > { %v3500_v7 = vpop.permute.xlu1 %3499 }
0x15a4   : > { %v16239_v47 = vpop.eup %16238 }
0x15a5   : > { %v17508_v36 = vmul.f32 %v16239_v47, %v16231_v42 }
0x15a7   : > { %14093 = vmatmul.mubr.msk.f32.gmra.mrb[42].mxu0 %vm682_vm0, %v17508_v36 }
0x15a8   : > { %14103 = vmatprep.mubr.msk.f32.mxu0 %vm968_vm1, %v3494_v63 }
0x15ab   : > { %14104 = vmatmul.mubr.msk.f32.vlgmr.msra.gmra.mrb[44].mxu0 %vm968_vm1, %v3496_v9 }
0x15ac   : > { %14106 = vmatprep.mubr.msk.f32.mxu0 %vm968_vm1, %v3498_v34 }
0x15af   : > { %14107 = vmatmul.mubr.msk.f32.gmra.mrb[46].mxu0 %vm968_vm1, %v3500_v7 }
0x1641   : > { %v17516_v40 = vpop.f32.mrb[40].mxu0 }
0x1642   : > { %v17518_v44 = vpop.f32.mrb[41].mxu0 }
0x167a   : > { %v17520_v42 = vpop.f32.mrb[42].mxu0 }
0x167b   : > { %v17522_v59 = vpop.f32.mrb[43].mxu0 }
0x167e   : > { %v14105_v5 = vpop.f32.mrb[44].mxu0 }
0x167f   : > { %v3611_v27 = vmul.f32 0.35355338, %v14105_v5  ;;  %v3591_v46 = vpop.f32.mrb[45].mxu0 }
0x1680   : > { %v3610_v52 = vmul.f32 0.35355338, %v3591_v46 }
0x1681   : > { %v3615_v28 = vadd.f32 %v17389_v18, %v3611_v27 }
0x1682   : > { %v3614_v48 = vadd.f32 %v17393_v23, %v3610_v52  ;;  %v14108_v55 = vpop.f32.mrb[46].mxu0 }
0x1683   : > { %v3601_v54 = vpop.f32.mrb[47].mxu0  ;;  %v3621_v12 = vsel %vm682_vm0, %v3615_v28, -inf  ;;  %v3613_v25 = vmul.f32 0.35355338, %v14108_v55 }
0x1684   : > { %v3612_v47 = vmul.f32 0.35355338, %v3601_v54  ;;  %3622 = vmax.xlane.f32.xlu1 %v3621_v12  ;;  %v3618_v63 = vsel %vm682_vm0, %v3614_v48, -inf }
0x1685   : > { %3619 = vmax.xlane.f32.xlu0 %v3618_v63  ;;  %v3617_v34 = vadd.f32 %v17399_v26, %v3613_v25 }
0x1686   : > { %v3616_v9 = vadd.f32 %v17403_v45, %v3612_v47 }
0x1687   : > { %v3627_v5 = vsel %vm682_vm0, %v3617_v34, -inf }
0x1688   : > { %v3624_v7 = vsel %vm682_vm0, %v3616_v9, -inf }
0x1689   : > { %3625 = vmax.xlane.f32.xlu0 %v3624_v7 }
0x168d   : > { %3628 = vmax.xlane.f32.xlu0 %v3627_v5 }
0x1711   : > { %v3623_v27 = vpop.xlane.xlu1 %3622 }
0x1712   : > { %v3631_v46 = vsub.f32 %v3615_v28, %v3623_v27  ;;  %v3620_v52 = vpop.xlane.xlu0 %3619 }
0x1713   : > { %v3630_v37 = vsub.f32 %v3614_v48, %v3620_v52 }
0x1714   : > { %v3636_v55 = vmul.f32 1.442695, %v3631_v46 }
0x1715   : > { %v3634_v54 = vmul.f32 1.442695, %v3630_v37 }
0x1716   : > { %16240 = vpow2.f32 %v3636_v55  ;;  %v3626_v37 = vpop.xlane.xlu0 %3625 }
0x1717   : > { %16242 = vpow2.f32 %v3634_v54  ;;  %v3632_v28 = vsub.f32 %v3616_v9, %v3626_v37 }
0x1719   : > { %v3638_v48 = vmul.f32 1.442695, %v3632_v28 }
0x171a   : > { %v3629_v7 = vpop.xlane.xlu0 %3628 }
0x171b   : > { %v3633_v5 = vsub.f32 %v3617_v34, %v3629_v7  ;;  %16244 = vpow2.f32 %v3638_v48 }
0x171d   : > { %v3640_v27 = vmul.f32 1.442695, %v3633_v5 }
0x171f   : > { %16246 = vpow2.f32 %v3640_v27 }
0x1720   : > { %v16241_v12 = vpop.eup %16240 }
0x1721   : > { %v16243_v63 = vpop.eup %16242  ;;  %v3645_v47 = vsel %vm682_vm0, %v16241_v12, 0.0 }
0x1722   : > { %3646 = vadd.xlane.f32.xlu1 %v3645_v47  ;;  %v3642_v25 = vsel %vm682_vm0, %v16243_v63, 0.0 }
0x1723   : > { %3643 = vadd.xlane.f32.xlu0 %v3642_v25 }
0x1725   : > { %v16245_v46 = vpop.eup %16244 }
0x1726   : > { %v3648_v52 = vsel %vm682_vm0, %v16245_v46, 0.0 }
0x1729   : > { %v16247_v55 = vpop.eup %16246 }
0x1733   : > { %15864 = vrot.lane.b32.xlu1 %v17362_v50, %s20178_s2 }
0x1737   : > { %15869 = vrot.lane.b32.xlu1 %v17364_v4, %s20179_s1  ;;  %v3651_v4 = vsel %vm682_vm0, %v16247_v55, 0.0 }
0x1739   : > { %15859 = vrot.lane.b32.xlu0 %v17357_v29, %s20178_s2 }
0x173b   : > { %15874 = vrot.lane.b32.xlu1 %v17370_v14, %s20179_s1 }
0x1758   : > { %3649 = vadd.xlane.f32.xlu0 %v3648_v52 }
0x175f   : > { %3652 = vadd.xlane.f32.xlu1 %v3651_v4 }
0x176e   : > { %3771 = vrot.lane.b32.xlu0 %v17353_v39, %s20179_s1 }
0x1770   : > { %3773 = vrot.lane.b32.xlu1 %v17376_v16, %s20179_s1 }
0x1772   : > { %3775 = vrot.lane.b32.xlu0 %v17378_v21, %s20179_s1 }
0x1774   : > { %3777 = vrot.lane.b32.xlu1 %v17384_v38, %s20179_s1 }
0x17af   : > { %v3647_v14 = vpop.xlane.xlu1 %3646 }
0x17b0   : > { %v3644_v9 = vpop.xlane.xlu0 %3643 }
0x17b1   : > { %16248 = vrcp.f32 %v3644_v9 }
0x17b2   : > { %16250 = vrcp.f32 %v3647_v14 }
0x17b3   : > { %v15865_v34 = vpop.permute.xlu1 %15864 }
0x17b4   : > { %v15860_v54 = vpop.permute.xlu0 %15859  ;;  %v15867_v47 = vunpack.i.h.bf16 %v15865_v34  ;;  %v15866_v25 = vunpack.i.l.bf16 %v15865_v34 }
0x17b5   : > { %v15862_v37 = vunpack.i.h.bf16 %v15860_v54  ;;  %v15861_v28 = vunpack.i.l.bf16 %v15860_v54 }
0x17b6   : > { %v15175_v5 = vpack.c.bf16 %v15867_v47, %v15866_v25 }
0x17b7   : > { %v15870_v39 = vpop.permute.xlu1 %15869  ;;  %v15171_v48 = vpack.c.bf16 %v15862_v37, %v15861_v28 }
0x17b8   : > { %v15872_v7 = vunpack.i.h.bf16 %v15870_v39  ;;  %v15871_v16 = vunpack.i.l.bf16 %v15870_v39 }
0x17b9   : > { %15172 = vmatprep.subr.bf16.mxu1 %v15171_v48 }
0x17ba   : > { %15174 = vmatpush3.bf16.msra.mxu1 %v15171_v48  ;;  %v15179_v52 = vpack.c.bf16 %v15872_v7, %v15871_v16 }
0x17bb   : > { %v16249_v21 = vpop.eup %16248  ;;  %15176 = vmatprep.subr.bf16.mxu1 %v15175_v5  ;;  %v15875_v14 = vpop.permute.xlu1 %15874 }
0x17bc   : > { %v16251_v38 = vpop.eup %16250  ;;  %v17552_v27 = vmul.f32 %v16249_v21, %v16243_v63  ;;  %v15877_v9 = vunpack.i.h.bf16 %v15875_v14  ;;  %v15876_v34 = vunpack.i.l.bf16 %v15875_v14 }
0x17bd   : > { %v17556_v4 = vmul.f32 %v16251_v38, %v16241_v12 }
0x17be   : > { %15178 = vmatpush3.bf16.msra.mxu1 %v15175_v5  ;;  %14117 = vmatprep.mubr.msk.f32.mxu1 %vm682_vm0, %v17552_v27  ;;  %v15185_v54 = vpack.c.bf16 %v15877_v9, %v15876_v34 }
0x17bf   : > { %15181 = vmatprep.subr.msk.bf16.mxu1 %vm16818_vm2, %v15179_v52 }
0x17c1   : > { %14118 = vmatmul.mubr.msk.f32.vlgmr.msra.gmra.mrb[40].mxu1 %vm682_vm0, %v17556_v4 }
0x17c7   : > { %15184 = vmatpush3.bf16.xpose.msk.msra.mxu1 %vm16818_vm2, %v15179_v52 }
0x17c8   : > { %15187 = vmatprep.subr.msk.bf16.mxu1 %vm16818_vm2, %v15185_v54 }
0x17cf   : > { %15190 = vmatpush3.bf16.xpose.msk.msra.mxu1 %vm16818_vm2, %v15185_v54 }
0x17e5   : > { %v3650_v12 = vpop.xlane.xlu0 %3649 }
0x17e6   : > { %16252 = vrcp.f32 %v3650_v12 }
0x17e9   : > { %v3772_v28 = vpop.permute.xlu0 %3771 }
0x17ec   : > { %v3653_v63 = vpop.xlane.xlu1 %3652 }
0x17ed   : > { %16254 = vrcp.f32 %v3653_v63  ;;  %v3776_v7 = vpop.permute.xlu0 %3775 }
0x17f0   : > { %v16253_v47 = vpop.eup %16252  ;;  %v3774_v48 = vpop.permute.xlu1 %3773 }
0x17f1   : > { %v17568_v25 = vmul.f32 %v16253_v47, %v16245_v46 }
0x17f3   : > { %14120 = vmatprep.mubr.msk.f32.mxu1 %vm682_vm0, %v17568_v25 }
0x17f4   : > { %v3778_v46 = vpop.permute.xlu1 %3777 }
0x17f7   : > { %v16255_v37 = vpop.eup %16254 }
0x17f8   : > { %v17572_v39 = vmul.f32 %v16255_v37, %v16247_v55 }
0x17fa   : > { %20180 = vst [vmem:[#allocation18_spill] sm:$0xff] %v17572_v39  ;;  %14121 = vmatmul.mubr.msk.f32.gmra.mrb[42].mxu1 %vm682_vm0, %v17572_v39 }
0x17fb   : > { %14131 = vmatprep.mubr.msk.f32.mxu1 %vm968_vm1, %v3772_v28 }
0x17fe   : > { %14132 = vmatmul.mubr.msk.f32.vlgmr.msra.gmra.mrb[44].mxu1 %vm968_vm1, %v3774_v48 }
0x17ff   : > { %14134 = vmatprep.mubr.msk.f32.mxu1 %vm968_vm1, %v3776_v7 }
0x1802   : > { %14135 = vmatmul.mubr.msk.f32.gmra.mrb[46].mxu1 %vm968_vm1, %v3778_v46 }
0x1894   : > { %v14119_v16 = vpop.f32.mrb[40].mxu1 }
0x1895   : > { %v3752_v5 = vpop.f32.mrb[41].mxu1 }
0x18cd   : > { %v14122_v21 = vpop.f32.mrb[42].mxu1 }
0x18ce   : > { %v3762_v38 = vpop.f32.mrb[43].mxu1 }
0x18d1   : > { %v14133_v55 = vpop.f32.mrb[44].mxu1 }
0x18d2   : > { %v3889_v52 = vmul.f32 0.35355338, %v14133_v55  ;;  %v3869_v14 = vpop.f32.mrb[45].mxu1 }
0x18d3   : > { %v3888_v9 = vmul.f32 0.35355338, %v3869_v14 }
0x18d4   : > { %v3893_v34 = vadd.f32 %v17389_v18, %v3889_v52 }
0x18d5   : > { %v3892_v54 = vadd.f32 %v17393_v23, %v3888_v9  ;;  %v14136_v12 = vpop.f32.mrb[46].mxu1 }
0x18d6   : > { %v3879_v63 = vpop.f32.mrb[47].mxu1  ;;  %v3899_v47 = vsel %vm682_vm0, %v3893_v34, -inf  ;;  %v3891_v37 = vmul.f32 0.35355338, %v14136_v12 }
0x18d7   : > { %v3890_v28 = vmul.f32 0.35355338, %v3879_v63  ;;  %3900 = vmax.xlane.f32.xlu1 %v3899_v47  ;;  %v3896_v48 = vsel %vm682_vm0, %v3892_v54, -inf }
0x18d8   : > { %3897 = vmax.xlane.f32.xlu0 %v3896_v48  ;;  %v3895_v46 = vadd.f32 %v17399_v26, %v3891_v37 }
0x18d9   : > { %v3894_v7 = vadd.f32 %v17403_v45, %v3890_v28 }
0x18da   : > { %v3905_v18 = vsel %vm682_vm0, %v3895_v46, -inf }
0x18db   : > { %v3902_v55 = vsel %vm682_vm0, %v3894_v7, -inf }
0x18dc   : > { %3903 = vmax.xlane.f32.xlu0 %v3902_v55 }
0x18e0   : > { %3906 = vmax.xlane.f32.xlu0 %v3905_v18 }
0x1964   : > { %v3901_v23 = vpop.xlane.xlu1 %3900 }
0x1965   : > { %v3909_v52 = vsub.f32 %v3893_v34, %v3901_v23  ;;  %v3898_v14 = vpop.xlane.xlu0 %3897 }
0x1966   : > { %v3908_v9 = vsub.f32 %v3892_v54, %v3898_v14 }
0x1967   : > { %v3914_v12 = vmul.f32 1.442695, %v3909_v52 }
0x1968   : > { %v3912_v63 = vmul.f32 1.442695, %v3908_v9 }
0x1969   : > { %16256 = vpow2.f32 %v3914_v12  ;;  %v3904_v47 = vpop.xlane.xlu0 %3903 }
0x196a   : > { %16258 = vpow2.f32 %v3912_v63  ;;  %v3910_v48 = vsub.f32 %v3894_v7, %v3904_v47 }
0x196c   : > { %v3916_v57 = vmul.f32 1.442695, %v3910_v48 }
0x196d   : > { %v3907_v45 = vpop.xlane.xlu0 %3906 }
0x196e   : > { %16260 = vpow2.f32 %v3916_v57  ;;  %v3911_v26 = vsub.f32 %v3895_v46, %v3907_v45 }
0x1970   : > { %v3918_v37 = vmul.f32 1.442695, %v3911_v26 }
0x1972   : > { %16262 = vpow2.f32 %v3918_v37  ;;  %v12669_v37 = vld [vmem:[%s20060_s8 + $0x20] sm:$0xff] }
0x1973   : > { %v16257_v28 = vpop.eup %16256 }
0x1974   : > { %v16259_v55 = vpop.eup %16258  ;;  %v3923_v18 = vsel %vm682_vm0, %v16257_v28, 0.0 }
0x1975   : > { %3924 = vadd.xlane.f32.xlu1 %v3923_v18  ;;  %v3920_v34 = vsel %vm682_vm0, %v16259_v55, 0.0 }
0x1976   : > { %3921 = vadd.xlane.f32.xlu0 %v3920_v34  ;;  %v12672_v34 = vld [vmem:[%s20060_s8 + $0x38] sm:$0xff] }
0x1978   : > { %v16261_v54 = vpop.eup %16260 }
0x1979   : > { %v3926_v23 = vsel %vm682_vm0, %v16261_v54, 0.0 }
0x197a   : > { %3927 = vadd.xlane.f32.xlu0 %v3926_v23 }
0x197c   : > { %v16263_v52 = vpop.eup %16262 }
0x197d   : > { %v3929_v7 = vsel %vm682_vm0, %v16263_v52, 0.0 }
0x197e   : > { %3930 = vadd.xlane.f32.xlu1 %v3929_v7 }
0x198f   : > { %15884 = vrot.lane.b32.xlu1 %v17362_v50, %s20179_s1 }
0x1990   : > { %15879 = vrot.lane.b32.xlu0 %v17357_v29, %s20179_s1 }
0x1993   : > { %4101 = vrot.lane.b32.xlu1 %v17518_v44, %s20181_s19 }
0x1994   : > { %4117 = vrot.lane.b32.xlu0 %v3752_v5, %s20182_s20 }
0x1997   : > { %4103 = vrot.lane.b32.xlu1 %v17516_v40, %s20181_s19 }
0x1998   : > { %4105 = vrot.lane.b32.xlu0 %v17522_v59, %s20181_s19 }
0x199b   : > { %4119 = vrot.lane.b32.xlu1 %v14119_v16, %s20182_s20 }
0x199c   : > { %4121 = vrot.lane.b32.xlu0 %v3762_v38, %s20182_s20 }
0x199f   : > { %4107 = vrot.lane.b32.xlu1 %v17520_v42, %s20181_s19 }
0x19a3   : > { %4123 = vrot.lane.b32.xlu1 %v14122_v21, %s20182_s20 }
0x1a02   : > { %v3925_v50 = vpop.xlane.xlu1 %3924 }
0x1a03   : > { %v3922_v29 = vpop.xlane.xlu0 %3921 }
0x1a04   : > { %16264 = vrcp.f32 %v3922_v29 }
0x1a05   : > { %16266 = vrcp.f32 %v3925_v50 }
0x1a07   : > { %v3928_v57 = vpop.xlane.xlu0 %3927 }
0x1a08   : > { %16268 = vrcp.f32 %v3928_v57 }
0x1a0b   : > { %v3931_v44 = vpop.xlane.xlu1 %3930  ;;  %v15880_v40 = vpop.permute.xlu0 %15879 }
0x1a0c   : > { %v15882_v5 = vunpack.i.h.bf16 %v15880_v40  ;;  %v15881_v46 = vunpack.i.l.bf16 %v15880_v40  ;;  %16270 = vrcp.f32 %v3931_v44 }
0x1a0e   : > { %v16265_v59 = vpop.eup %16264  ;;  %v15191_v16 = vpack.c.bf16 %v15882_v5, %v15881_v46 }
0x1a0f   : > { %v15885_v14 = vpop.permute.xlu1 %15884  ;;  %v17608_v38 = vmul.f32 %v16265_v59, %v16259_v55  ;;  %v16267_v12 = vpop.eup %16266  ;;  %v12671_v55 = vld [vmem:[%s20060_s8 + $0x30] sm:$0xff] }
0x1a10   : > { %v15887_v9 = vunpack.i.h.bf16 %v15885_v14  ;;  %v15886_v42 = vunpack.i.l.bf16 %v15885_v14  ;;  %15192 = vmatprep.subr.bf16.mxu0 %v15191_v16  ;;  %v17612_v47 = vmul.f32 %v16267_v12, %v16257_v28  ;;  %v12670_v28 = vld [vmem:[%s20060_s8 + $0x28] sm:$0xff]  ;;  %v4118_v40 = vpop.permute.xlu0 %4117 }
0x1a11   : > { %20183 = vst [vmem:[#allocation19_spill] sm:$0xff] %v17608_v38  ;;  %15194 = vmatpush3.bf16.msra.mxu0 %v15191_v16  ;;  %14145 = vmatprep.mubr.msk.f32.mxu0 %vm682_vm0, %v17608_v38  ;;  %v15199_v18 = vpack.c.bf16 %v12670_v28, %v12669_v37 }
0x1a12   : > { %v15195_v21 = vpack.c.bf16 %v15887_v9, %v15886_v42  ;;  %v16269_v63 = vpop.eup %16268  ;;  %20184 = vst [vmem:[#allocation20_spill] sm:$0xff] %v17612_v47 }
0x1a13   : > { %v17614_v45 = vmul.f32 %v16269_v63, %v16261_v54  ;;  %v15203_v54 = vpack.c.bf16 %v12672_v34, %v12671_v55  ;;  %v4102_v50 = vpop.permute.xlu1 %4101 }
0x1a14   : > { %15196 = vmatprep.subr.bf16.mxu0 %v15195_v21  ;;  %v4106_v46 = vpop.permute.xlu0 %4105  ;;  %v4145_v14 = vsel %vm968_vm1, %v17454_v13, %v4102_v50 }
0x1a15   : > { %15198 = vmatpush3.bf16.msra.mxu0 %v15195_v21  ;;  %20185 = vst [vmem:[#allocation21_spill] sm:$0xff] %v17614_v45  ;;  %v4149_v21 = vsel %vm2167_vm3, %v4145_v14, %v4118_v40  ;;  %v4147_v28 = vsel %vm968_vm1, %v17458_v22, %v4106_v46  ;;  %v12673_v22 = vld [vmem:[%s20063_s11 + $0x9] ss:$0 sm:$0xff] }
0x1a16   : > { %v16271_v48 = vpop.eup %16270  ;;  %15200 = vmatprep.subr.bf16.mxu0 %v15199_v18 }
0x1a17   : > { %v17620_v26 = vmul.f32 %v16271_v48, %v16263_v52  ;;  %v4104_v57 = vpop.permute.xlu1 %4103 }
0x1a18   : > { %14146 = vmatmul.mubr.msk.f32.vlgmr.msra.gmra.mrb[48].mxu0 %vm682_vm0, %v17612_v47  ;;  %v4122_v16 = vpop.permute.xlu0 %4121  ;;  %v4146_v42 = vsel %vm968_vm1, %v17452_v10, %v4104_v57 }
0x1a19   : > { %14148 = vmatprep.mubr.msk.f32.mxu0 %vm682_vm0, %v17614_v45  ;;  %20186 = vst [vmem:[#allocation22_spill] sm:$0xff] %v17620_v26  ;;  %15202 = vmatpush3.bf16.msra.mxu0 %v15199_v18  ;;  %v4151_v55 = vsel %vm2167_vm3, %v4147_v28, %v4122_v16 }
0x1a1a   : > { %15204 = vmatprep.subr.bf16.mxu0 %v15203_v54 }
0x1a1b   : > { %v4120_v44 = vpop.permute.xlu1 %4119 }
0x1a1c   : > { %14149 = vmatmul.mubr.msk.f32.gmra.mrb[50].mxu0 %vm682_vm0, %v17620_v26  ;;  %v4150_v63 = vsel %vm2167_vm3, %v4146_v42, %v4120_v44 }
0x1a1d   : > { %15206 = vmatpush3.bf16.msra.mxu0 %v15203_v54 }
0x1a1f   : > { %v4108_v5 = vpop.permute.xlu1 %4107 }
0x1a20   : > { %v4148_v10 = vsel %vm968_vm1, %v17456_v2, %v4108_v5 }
0x1a23   : > { %v4124_v59 = vpop.permute.xlu1 %4123 }
0x1a24   : > { %v4152_v34 = vsel %vm2167_vm3, %v4148_v10, %v4124_v59 }
0x1aeb   : > { %v14147_v23 = vpop.f32.mrb[48].mxu0 }
0x1aec   : > { %4135 = vrot.lane.b32.xlu1 %v14147_v23, %s20187_s28  ;;  %v4030_v52 = vpop.f32.mrb[49].mxu0 }
0x1aed   : > { %4133 = vrot.lane.b32.xlu0 %v4030_v52, %s20187_s28 }
0x1aef   : > { %v14150_v7 = vpop.f32.mrb[50].mxu0 }
0x1af0   : > { %4139 = vrot.lane.b32.xlu1 %v14150_v7, %s20187_s28  ;;  %v4040_v29 = vpop.f32.mrb[51].mxu0 }
0x1af1   : > { %4137 = vrot.lane.b32.xlu0 %v4040_v29, %s20187_s28 }
0x1b5e   : > { %v4136_v9 = vpop.permute.xlu1 %4135 }
0x1b5f   : > { %v4134_v12 = vpop.permute.xlu0 %4133  ;;  %v4154_v37 = vsel %vm2172_vm4, %v4150_v63, %v4136_v9 }
0x1b60   : > { %v4153_v48 = vsel %vm2172_vm4, %v4149_v21, %v4134_v12 }
0x1b61   : > { %14159 = vmatprep.mubr.msk.f32.mxu0 %vm682_vm0, %v4153_v48 }
0x1b62   : > { %14160 = vmatmul.mubr.msk.f32.vlgmr.msra.gmra.mrb[52].mxu0 %vm682_vm0, %v4154_v37  ;;  %v4140_v13 = vpop.permute.xlu1 %4139 }
0x1b63   : > { %v4138_v18 = vpop.permute.xlu0 %4137  ;;  %v4156_v23 = vsel %vm2172_vm4, %v4152_v34, %v4140_v13 }
0x1b64   : > { %v4155_v54 = vsel %vm2172_vm4, %v4151_v55, %v4138_v18 }
0x1b65   : > { %14162 = vmatprep.mubr.msk.f32.mxu0 %vm682_vm0, %v4155_v54 }
0x1b66   : > { %14163 = vmatmul.mubr.msk.f32.gmra.mrb[54].mxu0 %vm682_vm0, %v4156_v23 }
0x1c35   : > { %v14161_v52 = vpop.f32.mrb[52].mxu0 }
0x1c36   : > { %v4251_v7 = vadd.f32 %v14161_v52, %v12673_v22  ;;  %v4245_v29 = vpop.f32.mrb[53].mxu0 }
0x1c37   : > { %v4246_v50 = vadd.f32 %v12673_v22, %v4245_v29 }
0x1c38   : > { %v4265_v2 = vadd.f32 %v4251_v7, %v17315_v11 }
0x1c39   : > { %v4264_v57 = vadd.f32 %v4246_v50, %v17313_v6  ;;  %v14164_v44 = vpop.f32.mrb[54].mxu0  ;;  %v12684_v50 = vld [vmem:[%s20061_s9 + $0x20] sm:$0xff] }
0x1c3a   : > { %v4255_v40 = vpop.f32.mrb[55].mxu0  ;;  %v4273_v5 = vsel %vm682_vm0, %v4265_v2, 0.0  ;;  %v4261_v46 = vadd.f32 %v14164_v44, %v12673_v22  ;;  %v12686_v44 = vld [vmem:[%s20061_s9 + $0x30] sm:$0xff] }
0x1c3b   : > { %v4256_v59 = vadd.f32 %v12673_v22, %v4255_v40  ;;  %4274 = vadd.xlane.f32.xlu1 %v4273_v5  ;;  %v4270_v16 = vsel %vm682_vm0, %v4264_v57, 0.0  ;;  %v12687_v40 = vld [vmem:[%s20061_s9 + $0x38] sm:$0xff] }
0x1c3c   : > { %4271 = vadd.xlane.f32.xlu0 %v4270_v16  ;;  %v4267_v9 = vadd.f32 %v4261_v46, %v17329_v8  ;;  %v15211_v5 = vpack.c.bf16 %v12687_v40, %v12686_v44  ;;  %v12708_v46 = vld [vmem:[%s20057_s5 + $0x40] sm:$0xff] }
0x1c3d   : > { %v4266_v14 = vadd.f32 %v4256_v59, %v17327_v43  ;;  %v12709_v59 = vld [vmem:[%s20057_s5 + $0x48] sm:$0xff] }
0x1c3e   : > { %v4279_v11 = vsel %vm682_vm0, %v4267_v9, 0.0  ;;  %v15231_v16 = vpack.c.bf16 %v12709_v59, %v12708_v46  ;;  %v12679_v46 = vld [vmem:[%s20063_s11 + $0xb] ss:$0 sm:$0xff] }
0x1c3f   : > { %v4276_v42 = vsel %vm682_vm0, %v4266_v14, 0.0 }
0x1c40   : > { %4277 = vadd.xlane.f32.xlu0 %v4276_v42  ;;  %v12695_v42 = vld [vmem:[%s20062_s10 + $0x50] sm:$0xff] }
0x1c44   : > { %4280 = vadd.xlane.f32.xlu0 %v4279_v11 }
0x1cc8   : > { %v4275_v6 = vpop.xlane.xlu1 %4274 }
0x1cc9   : > { %v4283_v21 = vmul.f32 0.03125, %v4275_v6  ;;  %v4272_v12 = vpop.xlane.xlu0 %4271  ;;  %v12696_v6 = vld [vmem:[%s20062_s10 + $0x58] sm:$0xff] }
0x1cca   : > { %v4282_v63 = vmul.f32 0.03125, %v4272_v12  ;;  %v12697_v12 = vld [vmem:[%s20062_s10 + $0x60] sm:$0xff] }
0x1ccb   : > { %v17671_v48 = vsub.f32 %v4265_v2, %v4283_v21  ;;  %v12685_v2 = vld [vmem:[%s20061_s9 + $0x28] sm:$0xff]  ;;  %v15219_v21 = vpack.c.bf16 %v12696_v6, %v12695_v42  ;;  %v12711_v42 = vld [vmem:[%s20057_s5 + $0x58] sm:$0xff] }
0x1ccc   : > { %v17673_v37 = vsub.f32 %v4264_v57, %v4282_v63  ;;  %v15207_v57 = vpack.c.bf16 %v12685_v2, %v12684_v50  ;;  %v12698_v63 = vld [vmem:[%s20062_s10 + $0x68] sm:$0xff] }
0x1ccd   : > { %v4278_v28 = vpop.xlane.xlu0 %4277  ;;  %v4291_v43 = vmul.f32 %v17671_v48, %v17671_v48 }
0x1cce   : > { %v4284_v13 = vmul.f32 0.03125, %v4278_v28  ;;  %v4290_v8 = vmul.f32 %v17673_v37, %v17673_v37  ;;  %15208 = vmatprep.subr.bf16.mxu1 %v15207_v57  ;;  %v15223_v28 = vpack.c.bf16 %v12698_v63, %v12697_v12  ;;  %v12717_v63 = vld [vmem:[%s20058_s6 + $0x40] sm:$0xff] }
0x1ccf   : > { %v4297_v55 = vsel %vm682_vm0, %v4291_v43, 0.0  ;;  %15210 = vmatpush3.bf16.msra.mxu1 %v15207_v57  ;;  %v12678_v57 = vld [vmem:[%s20063_s11 + $0xa] ss:$0 sm:$0xff] }
0x1cd0   : > { %v17680_v10 = vsub.f32 %v4266_v14, %v4284_v13  ;;  %4298 = vadd.xlane.f32.xlu1 %v4297_v55  ;;  %v4294_v18 = vsel %vm682_vm0, %v4290_v8, 0.0  ;;  %15212 = vmatprep.subr.bf16.mxu1 %v15211_v5  ;;  %v12693_v14 = vld [vmem:[%s20062_s10 + $0x40] sm:$0xff] }
0x1cd1   : > { %4295 = vadd.xlane.f32.xlu0 %v4294_v18  ;;  %v4281_v34 = vpop.xlane.xlu0 %4280 }
0x1cd2   : > { %v4285_v54 = vmul.f32 0.03125, %v4281_v34  ;;  %v4292_v23 = vmul.f32 %v17680_v10, %v17680_v10 }
0x1cd3   : > { %15214 = vmatpush3.bf16.msra.mxu1 %v15211_v5 }
0x1cd4   : > { %v17685_v22 = vsub.f32 %v4267_v9, %v4285_v54  ;;  %v4300_v52 = vsel %vm682_vm0, %v4292_v23, 0.0  ;;  %15232 = vmatprep.subr.bf16.mxu1 %v15231_v16  ;;  %v12694_v9 = vld [vmem:[%s20062_s10 + $0x48] sm:$0xff] }
0x1cd5   : > { %4301 = vadd.xlane.f32.xlu0 %v4300_v52  ;;  %v15215_v11 = vpack.c.bf16 %v12694_v9, %v12693_v14  ;;  %v12710_v9 = vld [vmem:[%s20057_s5 + $0x50] sm:$0xff] }
0x1cd6   : > { %v4293_v7 = vmul.f32 %v17685_v22, %v17685_v22 }
0x1cd7   : > { %15216 = vmatprep.subr.bf16.mxu0 %v15215_v11 }
0x1cd8   : > { %v4303_v29 = vsel %vm682_vm0, %v4293_v7, 0.0  ;;  %15218 = vmatpush3.bf16.msra.mxu0 %v15215_v11 }
0x1cd9   : > { %4304 = vadd.xlane.f32.xlu1 %v4303_v29  ;;  %15220 = vmatprep.subr.bf16.mxu0 %v15219_v21 }
0x1cdc   : > { %15222 = vmatpush3.bf16.msra.mxu0 %v15219_v21  ;;  %v15235_v21 = vpack.c.bf16 %v12711_v42, %v12710_v9 }
0x1cdd   : > { %15224 = vmatprep.subr.bf16.mxu0 %v15223_v28 }
0x1ce0   : > { %15226 = vmatpush3.bf16.msra.mxu0 %v15223_v28  ;;  %v12718_v28 = vld [vmem:[%s20058_s6 + $0x48] sm:$0xff] }
0x1d5d   : > { %v4299_v43 = vpop.xlane.xlu1 %4298 }
0x1d5e   : > { %v4307_v13 = vmul.f32 0.03125, %v4299_v43  ;;  %v4296_v8 = vpop.xlane.xlu0 %4295 }
0x1d5f   : > { %v4306_v55 = vmul.f32 0.03125, %v4296_v8  ;;  %v15239_v8 = vpack.c.bf16 %v12718_v28, %v12717_v63 }
0x1d60   : > { %v4311_v18 = vadd.f32 1e-05, %v4307_v13 }
0x1d61   : > { %v4310_v34 = vadd.f32 1e-05, %v4306_v55 }
0x1d62   : > { %16272 = vrsqrt.f32 %v4311_v18  ;;  %v4302_v54 = vpop.xlane.xlu0 %4301 }
0x1d63   : > { %16274 = vrsqrt.f32 %v4310_v34  ;;  %v4308_v23 = vmul.f32 0.03125, %v4302_v54  ;;  %v12720_v34 = vld [vmem:[%s20058_s6 + $0x58] sm:$0xff]  ;;  %v17780_v54 = vld [vmem:[%s17763_s21 + $0x8] sm:$0xff] }
0x1d65   : > { %v4312_v52 = vadd.f32 1e-05, %v4308_v23  ;;  %v17783_v23 = vld [vmem:[%s17763_s21 + $0x10] sm:$0xff] }
0x1d66   : > { %v4305_v7 = vpop.xlane.xlu1 %4304 }
0x1d67   : > { %16276 = vrsqrt.f32 %v4312_v52  ;;  %v4309_v29 = vmul.f32 0.03125, %v4305_v7  ;;  %v17790_v7 = vld [vmem:[%s17763_s21 + $0x18] sm:$0xff] }
0x1d69   : > { %v4313_v50 = vadd.f32 1e-05, %v4309_v29  ;;  %v12699_v29 = vld [vmem:[%s20062_s10 + $0x70] sm:$0xff] }
0x1d6b   : > { %16278 = vrsqrt.f32 %v4313_v50  ;;  %v12700_v50 = vld [vmem:[%s20062_s10 + $0x78] sm:$0xff] }
0x1d6c   : > { %v16273_v2 = vpop.eup %16272 }
0x1d6d   : > { %v16275_v44 = vpop.eup %16274  ;;  %v4319_v40 = vmul.f32 %v16273_v2, %v17671_v48  ;;  %v15227_v2 = vpack.c.bf16 %v12700_v50, %v12699_v29 }
0x1d6e   : > { %v4318_v5 = vmul.f32 %v16275_v44, %v17673_v37 }
0x1d6f   : > { %v4327_v59 = vmul.f32 %v12678_v57, %v4319_v40  ;;  %15228 = vmatprep.subr.bf16.mxu0 %v15227_v2 }
0x1d70   : > { %v4326_v14 = vmul.f32 %v12678_v57, %v4318_v5  ;;  %15230 = vmatpush3.bf16.msra.mxu0 %v15227_v2 }
0x1d71   : > { %v16277_v11 = vpop.eup %16276  ;;  %v17744_v37 = vadd.f32 %v12679_v46, %v4327_v59 }
0x1d72   : > { %v17741_v6 = vadd.f32 %v12679_v46, %v4326_v14  ;;  %v4320_v48 = vmul.f32 %v16277_v11, %v17680_v10 }
0x1d74   : > { %14173 = vmatprep.mubr.msk.f32.mxu1 %vm682_vm0, %v17741_v6  ;;  %v4328_v12 = vmul.f32 %v12678_v57, %v4320_v48 }
0x1d75   : > { %v16279_v43 = vpop.eup %16278  ;;  %14174 = vmatmul.mubr.msk.f32.vlgmr.msra.gmra.mrb[48].mxu1 %vm682_vm0, %v17744_v37 }
0x1d76   : > { %v17756_v10 = vadd.f32 %v12679_v46, %v4328_v12  ;;  %15234 = vmatpush3.bf16.msra.mxu1 %v15231_v16  ;;  %v4321_v13 = vmul.f32 %v16279_v43, %v17685_v22  ;;  %v657_v16 = vld [vmem:[%s17763_s21] sm:$0xff]  ;;  %v12719_v22 = vld [vmem:[%s20058_s6 + $0x50] sm:$0xff] }
0x1d77   : > { %15236 = vmatprep.subr.bf16.mxu1 %v15235_v21  ;;  %v15243_v52 = vpack.c.bf16 %v12720_v34, %v12719_v22  ;;  %v12721_v22 = vld [vmem:[%s20063_s11 + $0xd] ss:$0 sm:$0xff] }
0x1d78   : > { %14176 = vmatprep.mubr.msk.f32.mxu1 %vm682_vm0, %v17756_v10  ;;  %v4329_v55 = vmul.f32 %v12678_v57, %v4321_v13  ;;  %v12688_v57 = vld [vmem:[%s20064_s12 + $0x1] ss:$0 sm:$0xff] }
0x1d7a   : > { %v17767_v18 = vadd.f32 %v12679_v46, %v4329_v55  ;;  %15238 = vmatpush3.bf16.msra.mxu1 %v15235_v21  ;;  %v12712_v21 = vld [vmem:[%s20063_s11 + $0xc] ss:$0 sm:$0xff] }
0x1d7b   : > { %15240 = vmatprep.subr.bf16.mxu1 %v15239_v8 }
0x1d7c   : > { %14177 = vmatmul.mubr.msk.f32.gmra.mrb[50].mxu1 %vm682_vm0, %v17767_v18 }
0x1d7d   : > { %14209 = vmatprep.mubr.msk.f32.mxu1 %vm682_vm0, %v657_v16 }
0x1d80   : > { %14210 = vmatmul.mubr.msk.f32.vlgmr.msra.gmra.mrb[52].mxu1 %vm682_vm0, %v17780_v54 }
0x1d81   : > { %15242 = vmatpush3.bf16.msra.mxu1 %v15239_v8  ;;  %14212 = vmatprep.mubr.msk.f32.mxu1 %vm682_vm0, %v17783_v23 }
0x1d82   : > { %15244 = vmatprep.subr.bf16.mxu1 %v15243_v52 }
0x1d84   : > { %14213 = vmatmul.mubr.msk.f32.gmra.mrb[54].mxu1 %vm682_vm0, %v17790_v7 }
0x1d85   : > { %15246 = vmatpush3.bf16.msra.mxu1 %v15243_v52  ;;  %14223 = vmatprep.mubr.msk.f32.mxu1 %vm682_vm0, %v657_v16 }
0x1d88   : > { %14224 = vmatmul.mubr.msk.f32.vlgmr.msra.gmra.mrb[56].mxu1 %vm682_vm0, %v17780_v54 }
0x1d89   : > { %14226 = vmatprep.mubr.msk.f32.mxu1 %vm682_vm0, %v17783_v23 }
0x1d8c   : > { %14227 = vmatmul.mubr.msk.f32.gmra.mrb[58].mxu1 %vm682_vm0, %v17790_v7 }
0x1e48   : > { %v14175_v44 = vpop.f32.mrb[48].mxu1 }
0x1e49   : > { %v4437_v40 = vadd.f32 %v14175_v44, %v12688_v57  ;;  %v4431_v5 = vpop.f32.mrb[49].mxu1 }
0x1e4a   : > { %v4432_v46 = vadd.f32 %v12688_v57, %v4431_v5 }
0x1e4b   : > { %v4451_v14 = vmax.f32 %v4437_v40, 0.0 }
0x1e4c   : > { %v4450_v59 = vmax.f32 %v4432_v46, 0.0 }
0x1e4e   : > { %14195 = vmatprep.mubr.msk.f32.mxu0 %vm2105_vm5, %v4450_v59 }
0x1e4f   : > { %v14178_v9 = vpop.f32.mrb[50].mxu1  ;;  %14196 = vmatmul.mubr.msk.f32.vlgmr.msra.gmra.mrb[56].mxu0 %vm2105_vm5, %v4451_v14 }
0x1e50   : > { %v4447_v42 = vadd.f32 %v14178_v9, %v12688_v57  ;;  %v4441_v11 = vpop.f32.mrb[51].mxu1 }
0x1e51   : > { %v4442_v48 = vadd.f32 %v12688_v57, %v4441_v11  ;;  %v12726_v11 = vld [vmem:[%s20059_s7 + $0x40] sm:$0xff] }
0x1e52   : > { %v4453_v28 = vmax.f32 %v4447_v42, 0.0 }
0x1e53   : > { %v4452_v12 = vmax.f32 %v4442_v48, 0.0  ;;  %v14211_v63 = vpop.f32.mrb[52].mxu1  ;;  %v12727_v48 = vld [vmem:[%s20059_s7 + $0x48] sm:$0xff] }
0x1e54   : > { %v4727_v43 = vpop.f32.mrb[53].mxu1  ;;  %v17837_v14 = vadd.f32 %v14211_v63, %v12712_v21  ;;  %v15247_v63 = vpack.c.bf16 %v12727_v48, %v12726_v11 }
0x1e55   : > { %v17815_v13 = vadd.f32 %v12712_v21, %v4727_v43  ;;  %14198 = vmatprep.mubr.msk.f32.mxu0 %vm2105_vm5, %v4452_v12  ;;  %v12728_v12 = vld [vmem:[%s20059_s7 + $0x50] sm:$0xff] }
0x1e56   : > { %14199 = vmatmul.mubr.msk.f32.gmra.mrb[58].mxu0 %vm2105_vm5, %v4453_v28  ;;  %15248 = vmatprep.subr.bf16.mxu0 %v15247_v63 }
0x1e57   : > { %v14214_v8 = vpop.f32.mrb[54].mxu1  ;;  %14251 = vmatprep.mubr.msk.f32.mxu1 %vm968_vm1, %v17815_v13  ;;  %14237 = vmatprep.mubr.msk.f32.mxu0 %vm682_vm0, %v657_v16 }
0x1e58   : > { %v4737_v55 = vpop.f32.mrb[55].mxu1  ;;  %v17845_v42 = vadd.f32 %v14214_v8, %v12712_v21  ;;  %15250 = vmatpush3.bf16.msra.mxu0 %v15247_v63 }
0x1e59   : > { %v17839_v9 = vadd.f32 %v12712_v21, %v4737_v55  ;;  %v12729_v21 = vld [vmem:[%s20059_s7 + $0x58] sm:$0xff] }
0x1e5a   : > { %v15251_v28 = vpack.c.bf16 %v12729_v21, %v12728_v12 }
0x1e5b   : > { %v14225_v34 = vpop.f32.mrb[56].mxu1 }
0x1e5c   : > { %v4828_v52 = vadd.f32 %v14225_v34, %v12721_v22  ;;  %v4822_v29 = vpop.f32.mrb[57].mxu1  ;;  %15252 = vmatprep.subr.bf16.mxu0 %v15251_v28  ;;  %v17885_v34 = vld [vmem:[%s17879_s15] sm:$0xff] }
0x1e5d   : > { %v4823_v50 = vadd.f32 %v12721_v22, %v4822_v29  ;;  %15254 = vmatpush3.bf16.msra.mxu0 %v15251_v28 }
0x1e5f   : > { %v15255_v2 = vpack.c.bf16 %v4828_v52, %v4823_v50  ;;  %v14228_v57 = vpop.f32.mrb[58].mxu1  ;;  %v17825_v44 = vpack.i.bf16 %v4828_v52, %v4823_v50 }
0x1e60   : > { %v4838_v40 = vadd.f32 %v14228_v57, %v12721_v22  ;;  %v4832_v5 = vpop.f32.mrb[59].mxu1  ;;  %14238 = vmatmul.mubr.msk.f32.vlgmr.msra.gmra.mrb[60].mxu0 %vm682_vm0, %v17780_v54  ;;  %v17882_v54 = vld [vmem:[%s17879_s15 + $0x8] sm:$0xff]  ;;  %v17890_v57 = vld [vmem:[%s17879_s15 + $0x18] sm:$0xff] }
0x1e61   : > { %15257 = vmatprep.subr.msk.bf16.mxu1 %vm16818_vm2, %v15255_v2  ;;  %v4833_v46 = vadd.f32 %v12721_v22, %v4832_v5  ;;  %14240 = vmatprep.mubr.msk.f32.mxu0 %vm682_vm0, %v17783_v23 }
0x1e62   : > { %15260 = vmatpush3.bf16.xpose.msk.msra.mxu1 %vm16818_vm2, %v15255_v2 }
0x1e63   : > { %v15261_v16 = vpack.c.bf16 %v4838_v40, %v4833_v46  ;;  %v17831_v59 = vpack.i.bf16 %v4838_v40, %v4833_v46  ;;  %v17893_v46 = vld [vmem:[%s17879_s15 + $0x10] sm:$0xff] }
0x1e64   : > { %14241 = vmatmul.mubr.msk.f32.gmra.mrb[62].mxu0 %vm682_vm0, %v17790_v7 }
0x1e65   : > { %15263 = vmatprep.subr.msk.bf16.mxu1 %vm16818_vm2, %v15261_v16 }
0x1e6a   : > { %15266 = vmatpush3.bf16.xpose.msk.msra.mxu1 %vm16818_vm2, %v15261_v16 }
0x1e71   : > { %14252 = vmatmul.mubr.msk.f32.vlgmr.msra.gmra.mrb[60].mxu1 %vm968_vm1, %v17837_v14 }
0x1e72   : > { %14254 = vmatprep.mubr.msk.f32.mxu1 %vm968_vm1, %v17839_v9 }
0x1e75   : > { %14255 = vmatmul.mubr.msk.f32.gmra.mrb[62].mxu1 %vm968_vm1, %v17845_v42 }
0x1f22   : > { %v17867_v43 = vpop.f32.mrb[56].mxu0 }
0x1f23   : > { %v17869_v8 = vpop.f32.mrb[57].mxu0 }
0x1f29   : > { %v17871_v55 = vpop.f32.mrb[58].mxu0 }
0x1f2a   : > { %v17873_v22 = vpop.f32.mrb[59].mxu0 }
0x1f44   : > { %v14253_v23 = vpop.f32.mrb[60].mxu1 }
0x1f45   : > { %v5046_v7 = vmul.f32 0.35355338, %v14253_v23  ;;  %v5026_v52 = vpop.f32.mrb[61].mxu1 }
0x1f46   : > { %v5045_v29 = vmul.f32 0.35355338, %v5026_v52 }
0x1f47   : > { %v5050_v50 = vadd.f32 %v5046_v7, %v17882_v54  ;;  %v14239_v7 = vpop.f32.mrb[60].mxu0 }
0x1f48   : > { %v5049_v2 = vadd.f32 %v5045_v29, %v17885_v34  ;;  %v14256_v40 = vpop.f32.mrb[62].mxu1  ;;  %v4917_v52 = vpop.f32.mrb[61].mxu0 }
0x1f49   : > { %v5048_v5 = vmul.f32 0.35355338, %v14256_v40  ;;  %v5036_v16 = vpop.f32.mrb[63].mxu1  ;;  %v5056_v11 = vsel %vm682_vm0, %v5050_v50, -inf  ;;  %v14242_v29 = vpop.f32.mrb[62].mxu0 }
0x1f4a   : > { %v5047_v48 = vmul.f32 0.35355338, %v5036_v16  ;;  %5057 = vmax.xlane.f32.xlu1 %v5056_v11  ;;  %v5053_v12 = vsel %vm682_vm0, %v5049_v2, -inf  ;;  %v4927_v40 = vpop.f32.mrb[63].mxu0 }
0x1f4b   : > { %v5052_v63 = vadd.f32 %v5048_v5, %v17890_v57  ;;  %5054 = vmax.xlane.f32.xlu0 %v5053_v12 }
0x1f4c   : > { %v5051_v21 = vadd.f32 %v5047_v48, %v17893_v46 }
0x1f4d   : > { %v5062_v28 = vsel %vm682_vm0, %v5052_v63, -inf }
0x1f4e   : > { %5063 = vmax.xlane.f32.xlu1 %v5062_v28  ;;  %v5059_v23 = vsel %vm682_vm0, %v5051_v21, -inf }
0x1f4f   : > { %5060 = vmax.xlane.f32.xlu0 %v5059_v23 }
0x1fd7   : > { %v5058_v62 = vpop.xlane.xlu1 %5057 }
0x1fd8   : > { %v5066_v16 = vsub.f32 %v5050_v50, %v5058_v62  ;;  %v5055_v11 = vpop.xlane.xlu0 %5054 }
0x1fd9   : > { %v5065_v56 = vsub.f32 %v5049_v2, %v5055_v11 }
0x1fda   : > { %v5071_v0 = vmul.f32 1.442695, %v5066_v16 }
0x1fdb   : > { %v5069_v60 = vmul.f32 1.442695, %v5065_v56  ;;  %v5064_v5 = vpop.xlane.xlu1 %5063 }
0x1fdc   : > { %16280 = vpow2.f32 %v5071_v0  ;;  %v5068_v12 = vsub.f32 %v5052_v63, %v5064_v5  ;;  %v5061_v48 = vpop.xlane.xlu0 %5060 }
0x1fdd   : > { %16282 = vpow2.f32 %v5069_v60  ;;  %v5067_v61 = vsub.f32 %v5051_v21, %v5061_v48 }
0x1fde   : > { %v5075_v28 = vmul.f32 1.442695, %v5068_v12 }
0x1fdf   : > { %v5073_v53 = vmul.f32 1.442695, %v5067_v61  ;;  %v12730_v61 = vld [vmem:[%s20063_s11 + $0xe] ss:$0 sm:$0xff] }
0x1fe0   : > { %16284 = vpow2.f32 %v5075_v28  ;;  %v4918_v2 = vadd.f32 %v12730_v61, %v4917_v52  ;;  %v4933_v63 = vadd.f32 %v14242_v29, %v12730_v61  ;;  %v4928_v21 = vadd.f32 %v12730_v61, %v4927_v40 }
0x1fe1   : > { %16286 = vpow2.f32 %v5073_v53  ;;  %v4923_v53 = vadd.f32 %v14239_v7, %v12730_v61 }
0x1fe2   : > { %v15271_v11 = vpack.c.bf16 %v4933_v63, %v4928_v21  ;;  %v17910_v5 = vpack.i.bf16 %v4933_v63, %v4928_v21 }
0x1fe3   : > { %v17908_v16 = vpack.i.bf16 %v4923_v53, %v4918_v2 }
0x1fe6   : > { %v16281_v23 = vpop.eup %16280 }
0x1fe7   : > { %v16283_v26 = vpop.eup %16282  ;;  %v5080_v45 = vsel %vm682_vm0, %v16281_v23, 0.0 }
0x1fe8   : > { %5081 = vadd.xlane.f32.xlu1 %v5080_v45  ;;  %v5077_v62 = vsel %vm682_vm0, %v16283_v26, 0.0  ;;  %v15267_v45 = vpack.c.bf16 %v4923_v53, %v4918_v2 }
0x1fe9   : > { %5078 = vadd.xlane.f32.xlu0 %v5077_v62 }
0x1fea   : > { %v16285_v50 = vpop.eup %16284  ;;  %15268 = vmatprep.subr.bf16.mxu0 %v15267_v45 }
0x1feb   : > { %v16287_v56 = vpop.eup %16286  ;;  %v5086_v0 = vsel %vm682_vm0, %v16285_v50, 0.0  ;;  %15270 = vmatpush3.bf16.msra.mxu0 %v15267_v45 }
0x1fec   : > { %5087 = vadd.xlane.f32.xlu1 %v5086_v0  ;;  %v5083_v60 = vsel %vm682_vm0, %v16287_v56, 0.0  ;;  %15272 = vmatprep.subr.bf16.mxu0 %v15271_v11 }
0x1fed   : > { %5084 = vadd.xlane.f32.xlu0 %v5083_v60 }
0x1fef   : > { %15274 = vmatpush3.bf16.msra.mxu0 %v15271_v11 }
0x1ffd   : > { %15894 = vrot.lane.b32.xlu1 %v17831_v59, %s20173_s0 }
0x2001   : > { %5194 = vrot.lane.b32.xlu1 %v17815_v13, %s20173_s0 }
0x2003   : > { %15889 = vrot.lane.b32.xlu0 %v17825_v44, %s20173_s0 }
0x2005   : > { %5196 = vrot.lane.b32.xlu1 %v17837_v14, %s20173_s0 }
0x2007   : > { %5198 = vrot.lane.b32.xlu0 %v17839_v9, %s20173_s0 }
0x2009   : > { %5200 = vrot.lane.b32.xlu1 %v17845_v42, %s20173_s0 }
0x2075   : > { %v5082_v7 = vpop.xlane.xlu1 %5081 }
0x2076   : > { %16288 = vrcp.f32 %v5082_v7  ;;  %v5079_v52 = vpop.xlane.xlu0 %5078 }
0x2077   : > { %16290 = vrcp.f32 %v5079_v52 }
0x2079   : > { %v5088_v29 = vpop.xlane.xlu1 %5087 }
0x207a   : > { %16292 = vrcp.f32 %v5088_v29  ;;  %v5085_v40 = vpop.xlane.xlu0 %5084 }
0x207b   : > { %16294 = vrcp.f32 %v5085_v40 }
0x207d   : > { %v15895_v12 = vpop.permute.xlu1 %15894 }
0x207e   : > { %v15890_v48 = vpop.permute.xlu0 %15889  ;;  %v15897_v61 = vunpack.i.h.bf16 %v15895_v12  ;;  %v15896_v53 = vunpack.i.l.bf16 %v15895_v12 }
0x207f   : > { %v15892_v28 = vunpack.i.h.bf16 %v15890_v48  ;;  %v15891_v62 = vunpack.i.l.bf16 %v15890_v48 }
0x2080   : > { %v16289_v0 = vpop.eup %16288  ;;  %v15281_v7 = vpack.c.bf16 %v15897_v61, %v15896_v53 }
0x2081   : > { %v16291_v60 = vpop.eup %16290  ;;  %v15275_v2 = vpack.c.bf16 %v15892_v28, %v15891_v62  ;;  %v17926_v21 = vmul.f32 %v16289_v0, %v16281_v23  ;;  %v5195_v23 = vpop.permute.xlu1 %5194 }
0x2082   : > { %v17924_v63 = vmul.f32 %v16291_v60, %v16283_v26 }
0x2083   : > { %20191 = vst [vmem:[#allocation24_spill] sm:$0xff] %v17926_v21  ;;  %15277 = vmatprep.subr.msk.bf16.mxu0 %vm16818_vm2, %v15275_v2 }
0x2084   : > { %20190 = vst [vmem:[#allocation23_spill] sm:$0xff] %v17924_v63  ;;  %v16293_v45 = vpop.eup %16292  ;;  %14265 = vmatprep.mubr.msk.f32.mxu0 %vm682_vm0, %v17924_v63 }
0x2085   : > { %v16295_v11 = vpop.eup %16294  ;;  %14266 = vmatmul.mubr.msk.f32.vlgmr.msra.gmra.mrb[64].mxu0 %vm682_vm0, %v17926_v21  ;;  %v17940_v26 = vmul.f32 %v16293_v45, %v16285_v50  ;;  %v5197_v29 = vpop.permute.xlu1 %5196 }
0x2086   : > { %15280 = vmatpush3.bf16.xpose.msk.msra.mxu0 %vm16818_vm2, %v15275_v2  ;;  %v17936_v52 = vmul.f32 %v16295_v11, %v16287_v56  ;;  %v5199_v56 = vpop.permute.xlu0 %5198 }
0x2087   : > { %15283 = vmatprep.subr.msk.bf16.mxu0 %vm16818_vm2, %v15281_v7  ;;  %20193 = vst [vmem:[#allocation26_spill] sm:$0xff] %v17940_v26 }
0x2088   : > { %20192 = vst [vmem:[#allocation25_spill] sm:$0xff] %v17936_v52  ;;  %14268 = vmatprep.mubr.msk.f32.mxu0 %vm682_vm0, %v17936_v52 }
0x2089   : > { %14269 = vmatmul.mubr.msk.f32.gmra.mrb[66].mxu0 %vm682_vm0, %v17940_v26  ;;  %v5201_v50 = vpop.permute.xlu1 %5200 }
0x208a   : > { %14279 = vmatprep.mubr.msk.f32.mxu0 %vm968_vm1, %v5195_v23 }
0x208e   : > { %15286 = vmatpush3.bf16.xpose.msk.msra.mxu0 %vm16818_vm2, %v15281_v7 }
0x2095   : > { %14280 = vmatmul.mubr.msk.f32.vlgmr.msra.gmra.mrb[68].mxu0 %vm968_vm1, %v5197_v29 }
0x2096   : > { %14282 = vmatprep.mubr.msk.f32.mxu0 %vm968_vm1, %v5199_v56 }
0x2099   : > { %14283 = vmatmul.mubr.msk.f32.gmra.mrb[70].mxu0 %vm968_vm1, %v5201_v50 }
0x2158   : > { %v17952_v40 = vpop.f32.mrb[64].mxu0 }
0x2159   : > { %v17954_v12 = vpop.f32.mrb[65].mxu0 }
0x215c   : > { %v17956_v48 = vpop.f32.mrb[66].mxu0 }
0x215d   : > { %v17958_v28 = vpop.f32.mrb[67].mxu0 }
0x2168   : > { %v14281_v62 = vpop.f32.mrb[68].mxu0 }
0x2169   : > { %v5312_v0 = vmul.f32 0.35355338, %v14281_v62  ;;  %v5292_v60 = vpop.f32.mrb[69].mxu0 }
0x216a   : > { %v5311_v61 = vmul.f32 0.35355338, %v5292_v60 }
0x216b   : > { %v5316_v53 = vadd.f32 %v5312_v0, %v17882_v54 }
0x216c   : > { %v5315_v2 = vadd.f32 %v5311_v61, %v17885_v34  ;;  %v14284_v45 = vpop.f32.mrb[70].mxu0 }
0x216d   : > { %v5302_v11 = vpop.f32.mrb[71].mxu0  ;;  %v5322_v7 = vsel %vm682_vm0, %v5316_v53, -inf  ;;  %v5314_v23 = vmul.f32 0.35355338, %v14284_v45 }
0x216e   : > { %v5313_v29 = vmul.f32 0.35355338, %v5302_v11  ;;  %5323 = vmax.xlane.f32.xlu1 %v5322_v7  ;;  %v5319_v56 = vsel %vm682_vm0, %v5315_v2, -inf }
0x216f   : > { %5320 = vmax.xlane.f32.xlu0 %v5319_v56  ;;  %v5318_v62 = vadd.f32 %v5314_v23, %v17890_v57 }
0x2170   : > { %v5317_v50 = vadd.f32 %v5313_v29, %v17893_v46 }
0x2171   : > { %v5328_v0 = vsel %vm682_vm0, %v5318_v62, -inf }
0x2172   : > { %v5325_v60 = vsel %vm682_vm0, %v5317_v50, -inf }
0x2173   : > { %5326 = vmax.xlane.f32.xlu0 %v5325_v60 }
0x2177   : > { %5329 = vmax.xlane.f32.xlu0 %v5328_v0 }
0x21fb   : > { %v5324_v61 = vpop.xlane.xlu1 %5323 }
0x21fc   : > { %v5332_v26 = vsub.f32 %v5316_v53, %v5324_v61  ;;  %v5321_v21 = vpop.xlane.xlu0 %5320 }
0x21fd   : > { %v5331_v52 = vsub.f32 %v5315_v2, %v5321_v21 }
0x21fe   : > { %v5337_v45 = vmul.f32 1.442695, %v5332_v26 }
0x21ff   : > { %v5335_v11 = vmul.f32 1.442695, %v5331_v52 }
0x2200   : > { %16296 = vpow2.f32 %v5337_v45  ;;  %v5327_v21 = vpop.xlane.xlu0 %5326 }
0x2201   : > { %16298 = vpow2.f32 %v5335_v11  ;;  %v5333_v52 = vsub.f32 %v5317_v50, %v5327_v21 }
0x2203   : > { %v5339_v26 = vmul.f32 1.442695, %v5333_v52 }
0x2204   : > { %v5330_v53 = vpop.xlane.xlu0 %5329 }
0x2205   : > { %v5334_v2 = vsub.f32 %v5318_v62, %v5330_v53  ;;  %16300 = vpow2.f32 %v5339_v26 }
0x2207   : > { %v5341_v60 = vmul.f32 1.442695, %v5334_v2 }
0x2209   : > { %16302 = vpow2.f32 %v5341_v60 }
0x220a   : > { %v16297_v7 = vpop.eup %16296 }
0x220b   : > { %v16299_v56 = vpop.eup %16298  ;;  %v5346_v29 = vsel %vm682_vm0, %v16297_v7, 0.0 }
0x220c   : > { %5347 = vadd.xlane.f32.xlu1 %v5346_v29  ;;  %v5343_v23 = vsel %vm682_vm0, %v16299_v56, 0.0 }
0x220d   : > { %5344 = vadd.xlane.f32.xlu0 %v5343_v23 }
0x220f   : > { %v16301_v0 = vpop.eup %16300 }
0x2210   : > { %v5349_v61 = vsel %vm682_vm0, %v16301_v0, 0.0 }
0x2213   : > { %v16303_v45 = vpop.eup %16302 }
0x2214   : > { %v5352_v11 = vsel %vm682_vm0, %v16303_v45, 0.0 }
0x221d   : > { %15904 = vrot.lane.b32.xlu1 %v17910_v5, %s20173_s0 }
0x2221   : > { %15909 = vrot.lane.b32.xlu1 %v17825_v44, %s20178_s2 }
0x2223   : > { %15899 = vrot.lane.b32.xlu0 %v17908_v16, %s20173_s0 }
0x2225   : > { %15914 = vrot.lane.b32.xlu1 %v17831_v59, %s20178_s2 }
0x2242   : > { %5350 = vadd.xlane.f32.xlu0 %v5349_v61 }
0x2249   : > { %5353 = vadd.xlane.f32.xlu1 %v5352_v11 }
0x2258   : > { %5476 = vrot.lane.b32.xlu0 %v17815_v13, %s20178_s2 }
0x225a   : > { %5478 = vrot.lane.b32.xlu1 %v17837_v14, %s20178_s2 }
0x225c   : > { %5480 = vrot.lane.b32.xlu0 %v17839_v9, %s20178_s2 }
0x225e   : > { %5482 = vrot.lane.b32.xlu1 %v17845_v42, %s20178_s2 }
0x2299   : > { %v5348_v50 = vpop.xlane.xlu1 %5347 }
0x229a   : > { %v5345_v62 = vpop.xlane.xlu0 %5344 }
0x229b   : > { %16304 = vrcp.f32 %v5345_v62 }
0x229c   : > { %16306 = vrcp.f32 %v5348_v50 }
0x229d   : > { %v15905_v29 = vpop.permute.xlu1 %15904 }
0x229e   : > { %v15900_v23 = vpop.permute.xlu0 %15899  ;;  %v15907_v21 = vunpack.i.h.bf16 %v15905_v29  ;;  %v15906_v52 = vunpack.i.l.bf16 %v15905_v29 }
0x229f   : > { %v15902_v26 = vunpack.i.h.bf16 %v15900_v23  ;;  %v15901_v53 = vunpack.i.l.bf16 %v15900_v23 }
0x22a0   : > { %v15291_v63 = vpack.c.bf16 %v15907_v21, %v15906_v52 }
0x22a1   : > { %v15910_v2 = vpop.permute.xlu1 %15909  ;;  %v15287_v60 = vpack.c.bf16 %v15902_v26, %v15901_v53 }
0x22a2   : > { %v15912_v61 = vunpack.i.h.bf16 %v15910_v2  ;;  %v15911_v11 = vunpack.i.l.bf16 %v15910_v2 }
0x22a3   : > { %15288 = vmatprep.subr.bf16.mxu1 %v15287_v60 }
0x22a4   : > { %15290 = vmatpush3.bf16.msra.mxu1 %v15287_v60  ;;  %v15295_v62 = vpack.c.bf16 %v15912_v61, %v15911_v11 }
0x22a5   : > { %v16305_v47 = vpop.eup %16304  ;;  %15292 = vmatprep.subr.bf16.mxu1 %v15291_v63  ;;  %v15915_v29 = vpop.permute.xlu1 %15914 }
0x22a6   : > { %v16307_v38 = vpop.eup %16306  ;;  %v17988_v39 = vmul.f32 %v16305_v47, %v16299_v56  ;;  %v15917_v23 = vunpack.i.h.bf16 %v15915_v29  ;;  %v15916_v21 = vunpack.i.l.bf16 %v15915_v29 }
0x22a7   : > { %v17992_v50 = vmul.f32 %v16307_v38, %v16297_v7 }
0x22a8   : > { %20194 = vst [vmem:[#allocation27_spill] sm:$0xff] %v17988_v39  ;;  %15294 = vmatpush3.bf16.msra.mxu1 %v15291_v63  ;;  %14293 = vmatprep.mubr.msk.f32.mxu1 %vm682_vm0, %v17988_v39  ;;  %v15301_v52 = vpack.c.bf16 %v15917_v23, %v15916_v21 }
0x22a9   : > { %20195 = vst [vmem:[#allocation28_spill] sm:$0xff] %v17992_v50  ;;  %15297 = vmatprep.subr.msk.bf16.mxu1 %vm16818_vm2, %v15295_v62 }
0x22ab   : > { %14294 = vmatmul.mubr.msk.f32.vlgmr.msra.gmra.mrb[64].mxu1 %vm682_vm0, %v17992_v50 }
0x22b1   : > { %15300 = vmatpush3.bf16.xpose.msk.msra.mxu1 %vm16818_vm2, %v15295_v62 }
0x22b2   : > { %15303 = vmatprep.subr.msk.bf16.mxu1 %vm16818_vm2, %v15301_v52 }
0x22b9   : > { %15306 = vmatpush3.bf16.xpose.msk.msra.mxu1 %vm16818_vm2, %v15301_v52 }
0x22cf   : > { %v5351_v38 = vpop.xlane.xlu0 %5350 }
0x22d0   : > { %16308 = vrcp.f32 %v5351_v38 }
0x22d3   : > { %v5477_v26 = vpop.permute.xlu0 %5476 }
0x22d6   : > { %v5354_v47 = vpop.xlane.xlu1 %5353 }
0x22d7   : > { %16310 = vrcp.f32 %v5354_v47  ;;  %v5481_v60 = vpop.permute.xlu0 %5480 }
0x22da   : > { %v16309_v63 = vpop.eup %16308  ;;  %v5479_v2 = vpop.permute.xlu1 %5478 }
0x22db   : > { %v18004_v7 = vmul.f32 %v16309_v63, %v16301_v0 }
0x22dd   : > { %20196 = vst [vmem:[#allocation29_spill] sm:$0xff] %v18004_v7  ;;  %14296 = vmatprep.mubr.msk.f32.mxu1 %vm682_vm0, %v18004_v7 }
0x22de   : > { %v5483_v0 = vpop.permute.xlu1 %5482 }
0x22e1   : > { %v16311_v56 = vpop.eup %16310 }
0x22e2   : > { %v18008_v53 = vmul.f32 %v16311_v56, %v16303_v45 }
0x22e4   : > { %20197 = vst [vmem:[#allocation30_spill] sm:$0xff] %v18008_v53  ;;  %14297 = vmatmul.mubr.msk.f32.gmra.mrb[66].mxu1 %vm682_vm0, %v18008_v53 }
0x22e5   : > { %14307 = vmatprep.mubr.msk.f32.mxu1 %vm968_vm1, %v5477_v26 }
0x22e8   : > { %14308 = vmatmul.mubr.msk.f32.vlgmr.msra.gmra.mrb[68].mxu1 %vm968_vm1, %v5479_v2 }
0x22e9   : > { %14310 = vmatprep.mubr.msk.f32.mxu1 %vm968_vm1, %v5481_v60 }
0x22ec   : > { %14311 = vmatmul.mubr.msk.f32.gmra.mrb[70].mxu1 %vm968_vm1, %v5483_v0 }
0x237e   : > { %v18016_v61 = vpop.f32.mrb[64].mxu1 }
0x237f   : > { %v18018_v11 = vpop.f32.mrb[65].mxu1 }
0x23b7   : > { %v18020_v45 = vpop.f32.mrb[66].mxu1 }
0x23b8   : > { %v18022_v62 = vpop.f32.mrb[67].mxu1 }
0x23bb   : > { %v14309_v29 = vpop.f32.mrb[68].mxu1 }
0x23bc   : > { %v5594_v23 = vmul.f32 0.35355338, %v14309_v29  ;;  %v5574_v21 = vpop.f32.mrb[69].mxu1 }
0x23bd   : > { %v5593_v52 = vmul.f32 0.35355338, %v5574_v21 }
0x23be   : > { %v5598_v38 = vadd.f32 %v5594_v23, %v17882_v54 }
0x23bf   : > { %v5597_v47 = vadd.f32 %v5593_v52, %v17885_v34  ;;  %v14312_v63 = vpop.f32.mrb[70].mxu1 }
0x23c0   : > { %v5584_v56 = vpop.f32.mrb[71].mxu1  ;;  %v5604_v26 = vsel %vm682_vm0, %v5598_v38, -inf  ;;  %v5596_v2 = vmul.f32 0.35355338, %v14312_v63 }
0x23c1   : > { %v5595_v60 = vmul.f32 0.35355338, %v5584_v56  ;;  %5605 = vmax.xlane.f32.xlu1 %v5604_v26  ;;  %v5601_v0 = vsel %vm682_vm0, %v5597_v47, -inf }
0x23c2   : > { %5602 = vmax.xlane.f32.xlu0 %v5601_v0  ;;  %v5600_v29 = vadd.f32 %v5596_v2, %v17890_v57 }
0x23c3   : > { %v5599_v53 = vadd.f32 %v5595_v60, %v17893_v46 }
0x23c4   : > { %v5610_v23 = vsel %vm682_vm0, %v5600_v29, -inf }
0x23c5   : > { %v5607_v21 = vsel %vm682_vm0, %v5599_v53, -inf }
0x23c6   : > { %5608 = vmax.xlane.f32.xlu0 %v5607_v21 }
0x23ca   : > { %5611 = vmax.xlane.f32.xlu0 %v5610_v23 }
0x244e   : > { %v5606_v52 = vpop.xlane.xlu1 %5605 }
0x244f   : > { %v5614_v7 = vsub.f32 %v5598_v38, %v5606_v52  ;;  %v5603_v50 = vpop.xlane.xlu0 %5602 }
0x2450   : > { %v5613_v39 = vsub.f32 %v5597_v47, %v5603_v50 }
0x2451   : > { %v5619_v63 = vmul.f32 1.442695, %v5614_v7 }
0x2452   : > { %v5617_v56 = vmul.f32 1.442695, %v5613_v39 }
0x2453   : > { %16312 = vpow2.f32 %v5619_v63  ;;  %v5609_v39 = vpop.xlane.xlu0 %5608 }
0x2454   : > { %16314 = vpow2.f32 %v5617_v56  ;;  %v5615_v50 = vsub.f32 %v5599_v53, %v5609_v39 }
0x2456   : > { %v5621_v7 = vmul.f32 1.442695, %v5615_v50 }
0x2457   : > { %v5612_v38 = vpop.xlane.xlu0 %5611 }
0x2458   : > { %v5616_v47 = vsub.f32 %v5600_v29, %v5612_v38  ;;  %16316 = vpow2.f32 %v5621_v7 }
0x245a   : > { %v5623_v21 = vmul.f32 1.442695, %v5616_v47 }
0x245c   : > { %16318 = vpow2.f32 %v5623_v21 }
0x245d   : > { %v16313_v26 = vpop.eup %16312 }
0x245e   : > { %v16315_v0 = vpop.eup %16314  ;;  %v5628_v60 = vsel %vm682_vm0, %v16313_v26, 0.0 }
0x245f   : > { %5629 = vadd.xlane.f32.xlu1 %v5628_v60  ;;  %v5625_v2 = vsel %vm682_vm0, %v16315_v0, 0.0 }
0x2460   : > { %5626 = vadd.xlane.f32.xlu0 %v5625_v2 }
0x2462   : > { %v16317_v23 = vpop.eup %16316 }
0x2463   : > { %v5631_v52 = vsel %vm682_vm0, %v16317_v23, 0.0 }
0x2466   : > { %v16319_v63 = vpop.eup %16318 }
0x2470   : > { %15924 = vrot.lane.b32.xlu1 %v17910_v5, %s20178_s2 }
0x2474   : > { %15929 = vrot.lane.b32.xlu1 %v17825_v44, %s20179_s1  ;;  %v5634_v44 = vsel %vm682_vm0, %v16319_v63, 0.0 }
0x2476   : > { %15919 = vrot.lane.b32.xlu0 %v17908_v16, %s20178_s2 }
0x2478   : > { %15934 = vrot.lane.b32.xlu1 %v17831_v59, %s20179_s1 }
0x2495   : > { %5632 = vadd.xlane.f32.xlu0 %v5631_v52 }
0x249c   : > { %5635 = vadd.xlane.f32.xlu1 %v5634_v44 }
0x24ab   : > { %5754 = vrot.lane.b32.xlu0 %v17815_v13, %s20179_s1 }
0x24ad   : > { %5756 = vrot.lane.b32.xlu1 %v17837_v14, %s20179_s1 }
0x24af   : > { %5758 = vrot.lane.b32.xlu0 %v17839_v9, %s20179_s1 }
0x24b1   : > { %5760 = vrot.lane.b32.xlu1 %v17845_v42, %s20179_s1 }
0x24ec   : > { %v5630_v59 = vpop.xlane.xlu1 %5629 }
0x24ed   : > { %v5627_v53 = vpop.xlane.xlu0 %5626 }
0x24ee   : > { %16320 = vrcp.f32 %v5627_v53 }
0x24ef   : > { %16322 = vrcp.f32 %v5630_v59 }
0x24f0   : > { %v15925_v29 = vpop.permute.xlu1 %15924 }
0x24f1   : > { %v15920_v56 = vpop.permute.xlu0 %15919  ;;  %v15927_v60 = vunpack.i.h.bf16 %v15925_v29  ;;  %v15926_v2 = vunpack.i.l.bf16 %v15925_v29 }
0x24f2   : > { %v15922_v39 = vunpack.i.h.bf16 %v15920_v56  ;;  %v15921_v50 = vunpack.i.l.bf16 %v15920_v56 }
0x24f3   : > { %v15311_v47 = vpack.c.bf16 %v15927_v60, %v15926_v2 }
0x24f4   : > { %v15930_v13 = vpop.permute.xlu1 %15929  ;;  %v15307_v7 = vpack.c.bf16 %v15922_v39, %v15921_v50 }
0x24f5   : > { %v15932_v38 = vunpack.i.h.bf16 %v15930_v13  ;;  %v15931_v14 = vunpack.i.l.bf16 %v15930_v13 }
0x24f6   : > { %15308 = vmatprep.subr.bf16.mxu0 %v15307_v7 }
0x24f7   : > { %15310 = vmatpush3.bf16.msra.mxu0 %v15307_v7  ;;  %v15315_v52 = vpack.c.bf16 %v15932_v38, %v15931_v14 }
0x24f8   : > { %v16321_v9 = vpop.eup %16320  ;;  %15312 = vmatprep.subr.bf16.mxu0 %v15311_v47  ;;  %v15935_v59 = vpop.permute.xlu1 %15934 }
0x24f9   : > { %v16323_v42 = vpop.eup %16322  ;;  %v18052_v21 = vmul.f32 %v16321_v9, %v16315_v0  ;;  %v15937_v53 = vunpack.i.h.bf16 %v15935_v59  ;;  %v15936_v29 = vunpack.i.l.bf16 %v15935_v59 }
0x24fa   : > { %v18056_v44 = vmul.f32 %v16323_v42, %v16313_v26 }
0x24fb   : > { %20198 = vst [vmem:[#allocation31_spill] sm:$0xff] %v18052_v21  ;;  %15314 = vmatpush3.bf16.msra.mxu0 %v15311_v47  ;;  %14321 = vmatprep.mubr.msk.f32.mxu0 %vm682_vm0, %v18052_v21  ;;  %v15321_v56 = vpack.c.bf16 %v15937_v53, %v15936_v29 }
0x24fc   : > { %20199 = vst [vmem:[#allocation32_spill] sm:$0xff] %v18056_v44  ;;  %15317 = vmatprep.subr.msk.bf16.mxu0 %vm16818_vm2, %v15315_v52 }
0x24fe   : > { %14322 = vmatmul.mubr.msk.f32.vlgmr.msra.gmra.mrb[72].mxu0 %vm682_vm0, %v18056_v44 }
0x2504   : > { %15320 = vmatpush3.bf16.xpose.msk.msra.mxu0 %vm16818_vm2, %v15315_v52 }
0x2505   : > { %15323 = vmatprep.subr.msk.bf16.mxu0 %vm16818_vm2, %v15321_v56 }
0x250c   : > { %15326 = vmatpush3.bf16.xpose.msk.msra.mxu0 %vm16818_vm2, %v15321_v56 }
0x2522   : > { %v5633_v26 = vpop.xlane.xlu0 %5632 }
0x2523   : > { %16324 = vrcp.f32 %v5633_v26 }
0x2526   : > { %v5755_v50 = vpop.permute.xlu0 %5754 }
0x2529   : > { %v5636_v0 = vpop.xlane.xlu1 %5635 }
0x252a   : > { %16326 = vrcp.f32 %v5636_v0  ;;  %v5759_v38 = vpop.permute.xlu0 %5758 }
0x252d   : > { %v16325_v60 = vpop.eup %16324  ;;  %v5757_v7 = vpop.permute.xlu1 %5756 }
0x252e   : > { %v18068_v2 = vmul.f32 %v16325_v60, %v16317_v23 }
0x2530   : > { %20200 = vst [vmem:[#allocation33_spill] sm:$0xff] %v18068_v2  ;;  %14324 = vmatprep.mubr.msk.f32.mxu0 %vm682_vm0, %v18068_v2 }
0x2531   : > { %v5761_v23 = vpop.permute.xlu1 %5760 }
0x2534   : > { %v16327_v39 = vpop.eup %16326 }
0x2535   : > { %v18072_v13 = vmul.f32 %v16327_v39, %v16319_v63 }
0x2537   : > { %20201 = vst [vmem:[#allocation34_spill] sm:$0xff] %v18072_v13  ;;  %14325 = vmatmul.mubr.msk.f32.gmra.mrb[74].mxu0 %vm682_vm0, %v18072_v13 }
0x2538   : > { %14335 = vmatprep.mubr.msk.f32.mxu0 %vm968_vm1, %v5755_v50 }
0x253b   : > { %14336 = vmatmul.mubr.msk.f32.vlgmr.msra.gmra.mrb[76].mxu0 %vm968_vm1, %v5757_v7 }
0x253c   : > { %14338 = vmatprep.mubr.msk.f32.mxu0 %vm968_vm1, %v5759_v38 }
0x253f   : > { %14339 = vmatmul.mubr.msk.f32.gmra.mrb[78].mxu0 %vm968_vm1, %v5761_v23 }
0x25d1   : > { %v14323_v14 = vpop.f32.mrb[72].mxu0 }
0x25d2   : > { %v5735_v47 = vpop.f32.mrb[73].mxu0 }
0x260a   : > { %v18080_v9 = vpop.f32.mrb[74].mxu0 }
0x260b   : > { %v18082_v63 = vpop.f32.mrb[75].mxu0 }
0x260e   : > { %v14337_v42 = vpop.f32.mrb[76].mxu0 }
0x260f   : > { %v5872_v52 = vmul.f32 0.35355338, %v14337_v42  ;;  %v5852_v59 = vpop.f32.mrb[77].mxu0 }
0x2610   : > { %v5871_v53 = vmul.f32 0.35355338, %v5852_v59 }
0x2611   : > { %v5876_v29 = vadd.f32 %v5872_v52, %v17882_v54 }
0x2612   : > { %v5875_v56 = vadd.f32 %v5871_v53, %v17885_v34  ;;  %v14340_v26 = vpop.f32.mrb[78].mxu0 }
0x2613   : > { %v5862_v0 = vpop.f32.mrb[79].mxu0  ;;  %v5882_v60 = vsel %vm682_vm0, %v5876_v29, -inf  ;;  %v5874_v39 = vmul.f32 0.35355338, %v14340_v26 }
0x2614   : > { %v5873_v50 = vmul.f32 0.35355338, %v5862_v0  ;;  %5883 = vmax.xlane.f32.xlu1 %v5882_v60  ;;  %v5879_v7 = vsel %vm682_vm0, %v5875_v56, -inf }
0x2615   : > { %5880 = vmax.xlane.f32.xlu0 %v5879_v7  ;;  %v5878_v23 = vadd.f32 %v5874_v39, %v17890_v57 }
0x2616   : > { %v5877_v38 = vadd.f32 %v5873_v50, %v17893_v46 }
0x2617   : > { %v5888_v54 = vsel %vm682_vm0, %v5878_v23, -inf }
0x2618   : > { %v5885_v42 = vsel %vm682_vm0, %v5877_v38, -inf }
0x2619   : > { %5886 = vmax.xlane.f32.xlu0 %v5885_v42 }
0x261d   : > { %5889 = vmax.xlane.f32.xlu0 %v5888_v54 }
0x26a1   : > { %v5884_v34 = vpop.xlane.xlu1 %5883 }
0x26a2   : > { %v5892_v52 = vsub.f32 %v5876_v29, %v5884_v34  ;;  %v5881_v59 = vpop.xlane.xlu0 %5880 }
0x26a3   : > { %v5891_v53 = vsub.f32 %v5875_v56, %v5881_v59 }
0x26a4   : > { %v5897_v26 = vmul.f32 1.442695, %v5892_v52 }
0x26a5   : > { %v5895_v0 = vmul.f32 1.442695, %v5891_v53 }
0x26a6   : > { %16328 = vpow2.f32 %v5897_v26  ;;  %v5887_v60 = vpop.xlane.xlu0 %5886 }
0x26a7   : > { %16330 = vpow2.f32 %v5895_v0  ;;  %v5893_v7 = vsub.f32 %v5877_v38, %v5887_v60 }
0x26a9   : > { %v5899_v13 = vmul.f32 1.442695, %v5893_v7 }
0x26aa   : > { %v5890_v46 = vpop.xlane.xlu0 %5889 }
0x26ab   : > { %16332 = vpow2.f32 %v5899_v13  ;;  %v5894_v57 = vsub.f32 %v5878_v23, %v5890_v46 }
0x26ad   : > { %v5901_v39 = vmul.f32 1.442695, %v5894_v57 }
0x26af   : > { %16334 = vpow2.f32 %v5901_v39 }
0x26b0   : > { %v16329_v50 = vpop.eup %16328 }
0x26b1   : > { %v16331_v42 = vpop.eup %16330  ;;  %v5906_v54 = vsel %vm682_vm0, %v16329_v50, 0.0 }
0x26b2   : > { %5907 = vadd.xlane.f32.xlu1 %v5906_v54  ;;  %v5903_v29 = vsel %vm682_vm0, %v16331_v42, 0.0 }
0x26b3   : > { %5904 = vadd.xlane.f32.xlu0 %v5903_v29 }
0x26b5   : > { %v16333_v56 = vpop.eup %16332 }
0x26b6   : > { %v5909_v34 = vsel %vm682_vm0, %v16333_v56, 0.0 }
0x26b7   : > { %5910 = vadd.xlane.f32.xlu0 %v5909_v34  ;;  %v12783_v34 = vld [vmem:[%s20060_s8 + $0x40] sm:$0xff] }
0x26b9   : > { %v16335_v52 = vpop.eup %16334 }
0x26ba   : > { %v5912_v38 = vsel %vm682_vm0, %v16335_v52, 0.0 }
0x26bb   : > { %5913 = vadd.xlane.f32.xlu1 %v5912_v38 }
0x26cc   : > { %15944 = vrot.lane.b32.xlu1 %v17910_v5, %s20179_s1 }
0x26cd   : > { %15939 = vrot.lane.b32.xlu0 %v17908_v16, %s20179_s1 }
0x26d0   : > { %6084 = vrot.lane.b32.xlu1 %v18018_v11, %s20181_s19 }
0x26d1   : > { %6100 = vrot.lane.b32.xlu0 %v5735_v47, %s20182_s20 }
0x26d4   : > { %6086 = vrot.lane.b32.xlu1 %v18016_v61, %s20181_s19 }
0x26d8   : > { %6102 = vrot.lane.b32.xlu1 %v14323_v14, %s20182_s20 }
0x273f   : > { %v5908_v23 = vpop.xlane.xlu1 %5907 }
0x2740   : > { %v5905_v13 = vpop.xlane.xlu0 %5904 }
0x2741   : > { %16336 = vrcp.f32 %v5905_v13 }
0x2742   : > { %16338 = vrcp.f32 %v5908_v23 }
0x2744   : > { %v5911_v59 = vpop.xlane.xlu0 %5910 }
0x2745   : > { %16340 = vrcp.f32 %v5911_v59 }
0x2748   : > { %v5914_v5 = vpop.xlane.xlu1 %5913  ;;  %v15940_v53 = vpop.permute.xlu0 %15939 }
0x2749   : > { %v15942_v26 = vunpack.i.h.bf16 %v15940_v53  ;;  %v15941_v16 = vunpack.i.l.bf16 %v15940_v53  ;;  %16342 = vrcp.f32 %v5914_v5 }
0x274b   : > { %v16337_v0 = vpop.eup %16336  ;;  %v15327_v11 = vpack.c.bf16 %v15942_v26, %v15941_v16  ;;  %v12701_v26 = vld [vmem:[%s20063_s11 + $0x27] ss:$0 sm:$0xff] }
0x274c   : > { %v15945_v60 = vpop.permute.xlu1 %15944  ;;  %v18106_v47 = vmul.f32 %v16337_v0, %v16331_v42  ;;  %v16339_v46 = vpop.eup %16338  ;;  %v4552_v16 = vadd.f32 %v17867_v43, %v12701_v26 }
0x274d   : > { %v15947_v7 = vunpack.i.h.bf16 %v15945_v60  ;;  %v15946_v61 = vunpack.i.l.bf16 %v15945_v60  ;;  %15328 = vmatprep.subr.bf16.mxu1 %v15327_v11  ;;  %v18110_v39 = vmul.f32 %v16339_v46, %v16329_v50  ;;  %v12784_v50 = vld [vmem:[%s20060_s8 + $0x48] sm:$0xff] }
0x274e   : > { %20202 = vst [vmem:[#allocation35_spill] sm:$0xff] %v18106_v47  ;;  %15330 = vmatpush3.bf16.msra.mxu1 %v15327_v11  ;;  %14349 = vmatprep.mubr.msk.f32.mxu1 %vm682_vm0, %v18106_v47  ;;  %v15335_v38 = vpack.c.bf16 %v12784_v50, %v12783_v34  ;;  %v4566_v0 = vadd.f32 %v4552_v16, %v17744_v37  ;;  %v12787_v16 = vld [vmem:[%s20063_s11 + $0xf] ss:$0 sm:$0xff] }
0x274f   : > { %v15331_v14 = vpack.c.bf16 %v15947_v7, %v15946_v61  ;;  %v16341_v57 = vpop.eup %16340  ;;  %20203 = vst [vmem:[#allocation36_spill] sm:$0xff] %v18110_v39  ;;  %v6101_v7 = vpop.permute.xlu0 %6100 }
0x2750   : > { %v18112_v29 = vmul.f32 %v16341_v57, %v16333_v56  ;;  %v12785_v56 = vld [vmem:[%s20060_s8 + $0x50] sm:$0xff]  ;;  %v4574_v43 = vsel %vm682_vm0, %v4566_v0, 0.0 }
0x2751   : > { %15332 = vmatprep.subr.bf16.mxu1 %v15331_v14 }
0x2752   : > { %15334 = vmatpush3.bf16.msra.mxu1 %v15331_v14  ;;  %20204 = vst [vmem:[#allocation37_spill] sm:$0xff] %v18112_v29 }
0x2753   : > { %v16343_v54 = vpop.eup %16342  ;;  %15336 = vmatprep.subr.bf16.mxu1 %v15335_v38 }
0x2754   : > { %v18118_v42 = vmul.f32 %v16343_v54, %v16335_v52  ;;  %v12786_v52 = vld [vmem:[%s20060_s8 + $0x58] sm:$0xff] }
0x2755   : > { %14350 = vmatmul.mubr.msk.f32.vlgmr.msra.gmra.mrb[72].mxu1 %vm682_vm0, %v18110_v39  ;;  %v15339_v13 = vpack.c.bf16 %v12786_v52, %v12785_v56 }
0x2756   : > { %14352 = vmatprep.mubr.msk.f32.mxu1 %vm682_vm0, %v18112_v29  ;;  %20205 = vst [vmem:[#allocation38_spill] sm:$0xff] %v18118_v42  ;;  %15338 = vmatpush3.bf16.msra.mxu1 %v15335_v38 }
0x2757   : > { %15340 = vmatprep.subr.bf16.mxu1 %v15339_v13 }
0x2759   : > { %14353 = vmatmul.mubr.msk.f32.gmra.mrb[74].mxu1 %vm682_vm0, %v18118_v42 }
0x275a   : > { %15342 = vmatpush3.bf16.msra.mxu1 %v15339_v13 }
0x2828   : > { %v14351_v23 = vpop.f32.mrb[72].mxu1 }
0x2829   : > { %6118 = vrot.lane.b32.xlu1 %v14351_v23, %s20187_s28  ;;  %v6013_v59 = vpop.f32.mrb[73].mxu1 }
0x282a   : > { %6116 = vrot.lane.b32.xlu0 %v6013_v59, %s20187_s28 }
0x282c   : > { %v14354_v5 = vpop.f32.mrb[74].mxu1 }
0x282d   : > { %6090 = vrot.lane.b32.xlu1 %v18020_v45, %s20181_s19  ;;  %v6023_v53 = vpop.f32.mrb[75].mxu1  ;;  %v4547_v45 = vadd.f32 %v12701_v26, %v17869_v8 }
0x282e   : > { %6088 = vrot.lane.b32.xlu0 %v18022_v62, %s20181_s19 }
0x282f   : > { %v18152_v62 = vadd.f32 %v4547_v45, %v17741_v6 }
0x2831   : > { %6106 = vrot.lane.b32.xlu1 %v18080_v9, %s20182_s20  ;;  %v4557_v9 = vadd.f32 %v12701_v26, %v17873_v22  ;;  %v4571_v60 = vsel %vm682_vm0, %v18152_v62, 0.0 }
0x2832   : > { %6104 = vrot.lane.b32.xlu0 %v18082_v63, %s20182_s20  ;;  %v4562_v63 = vadd.f32 %v17871_v55, %v12701_v26 }
0x2833   : > { %v18158_v11 = vadd.f32 %v4557_v9, %v17756_v10  ;;  %v6085_v10 = vpop.permute.xlu1 %6084 }
0x2834   : > { %v18163_v8 = vadd.f32 %v4562_v63, %v17767_v18  ;;  %v6128_v61 = vsel %vm968_vm1, %v17954_v12, %v6085_v10  ;;  %v16601_v10 = vld [vmem:[%s17763_s21] sm:$0xff] }
0x2835   : > { %6122 = vrot.lane.b32.xlu1 %v14354_v5, %s20187_s28  ;;  %v4577_v6 = vsel %vm682_vm0, %v18158_v11, 0.0  ;;  %v6132_v46 = vsel %vm2167_vm3, %v6128_v61, %v6101_v7 }
0x2836   : > { %6120 = vrot.lane.b32.xlu0 %v6023_v53, %s20187_s28  ;;  %v4580_v37 = vsel %vm682_vm0, %v18163_v8, 0.0 }
0x2837   : > { %v6087_v55 = vpop.permute.xlu1 %6086 }
0x2838   : > { %v6129_v14 = vsel %vm968_vm1, %v17952_v40, %v6087_v55 }
0x283b   : > { %v6103_v22 = vpop.permute.xlu1 %6102 }
0x283c   : > { %v6133_v54 = vsel %vm2167_vm3, %v6129_v14, %v6103_v22 }
0x2855   : > { %4572 = vadd.xlane.f32.xlu0 %v4571_v60 }
0x2859   : > { %4575 = vadd.xlane.f32.xlu1 %v4574_v43  ;;  %4578 = vadd.xlane.f32.xlu0 %v4577_v6  ;;  %v16600_v43 = vld [vmem:[%s17763_s21 + $0x8] sm:$0xff] }
0x285d   : > { %4581 = vadd.xlane.f32.xlu0 %v4580_v37 }
0x289b   : > { %v6119_v18 = vpop.permute.xlu1 %6118 }
0x289c   : > { %v6117_v57 = vpop.permute.xlu0 %6116  ;;  %v6137_v50 = vsel %vm2172_vm4, %v6133_v54, %v6119_v18 }
0x289d   : > { %v6136_v34 = vsel %vm2172_vm4, %v6132_v46, %v6117_v57 }
0x289e   : > { %14363 = vmatprep.mubr.msk.f32.mxu1 %vm682_vm0, %v6136_v34 }
0x289f   : > { %v6091_v56 = vpop.permute.xlu1 %6090  ;;  %14364 = vmatmul.mubr.msk.f32.vlgmr.msra.gmra.mrb[76].mxu1 %vm682_vm0, %v6137_v50 }
0x28a0   : > { %v6089_v38 = vpop.permute.xlu0 %6088  ;;  %v6131_v23 = vsel %vm968_vm1, %v17956_v48, %v6091_v56 }
0x28a1   : > { %v6130_v40 = vsel %vm968_vm1, %v17958_v28, %v6089_v38 }
0x28a3   : > { %v6107_v12 = vpop.permute.xlu1 %6106 }
0x28a4   : > { %v6105_v52 = vpop.permute.xlu0 %6104  ;;  %v6135_v53 = vsel %vm2167_vm3, %v6131_v23, %v6107_v12  ;;  %v16603_v23 = vld [vmem:[%s17763_s21 + $0x10] sm:$0xff] }
0x28a5   : > { %v6134_v59 = vsel %vm2167_vm3, %v6130_v40, %v6105_v52  ;;  %v16602_v40 = vld [vmem:[%s17763_s21 + $0x18] sm:$0xff]  ;;  %s16644_s21 = smov 96  }
0x28a7   : > { %v6123_v13 = vpop.permute.xlu1 %6122 }
0x28a8   : > { %v6121_v5 = vpop.permute.xlu0 %6120  ;;  %v6139_v45 = vsel %vm2172_vm4, %v6135_v53, %v6123_v13 }
0x28a9   : > { %v6138_v26 = vsel %vm2172_vm4, %v6134_v59, %v6121_v5 }
0x28aa   : > { %14366 = vmatprep.mubr.msk.f32.mxu1 %vm682_vm0, %v6138_v26 }
0x28ab   : > { %14367 = vmatmul.mubr.msk.f32.gmra.mrb[78].mxu1 %vm682_vm0, %v6139_v45 }
0x28e2   : > { %v4573_v28 = vpop.xlane.xlu0 %4572 }
0x28e3   : > { %v4583_v14 = vmul.f32 0.03125, %v4573_v28 }
0x28e5   : > { %v18200_v38 = vsub.f32 %v18152_v62, %v4583_v14 }
0x28e6   : > { %v4579_v37 = vpop.xlane.xlu0 %4578  ;;  %v4576_v7 = vpop.xlane.xlu1 %4575 }
0x28e7   : > { %v4584_v18 = vmul.f32 0.03125, %v4576_v7  ;;  %v4585_v12 = vmul.f32 0.03125, %v4579_v37  ;;  %v4591_v45 = vmul.f32 %v18200_v38, %v18200_v38  ;;  %v12805_v37 = vld [vmem:[%s20058_s6 + $0x70] sm:$0xff] }
0x28e9   : > { %v18197_v54 = vsub.f32 %v4566_v0, %v4584_v18  ;;  %v18211_v26 = vsub.f32 %v18158_v11, %v4585_v12 }
0x28ea   : > { %v4582_v46 = vpop.xlane.xlu0 %4581 }
0x28eb   : > { %v4586_v34 = vmul.f32 0.03125, %v4582_v46  ;;  %v4592_v0 = vmul.f32 %v18197_v54, %v18197_v54 }
0x28ed   : > { %v18205_v5 = vsub.f32 %v18163_v8, %v4586_v34  ;;  %v4598_v28 = vsel %vm682_vm0, %v4592_v0, 0.0 }
0x28ef   : > { %v4594_v8 = vmul.f32 %v18205_v5, %v18205_v5 }
0x28f1   : > { %v4604_v11 = vsel %vm682_vm0, %v4594_v8, 0.0 }
0x2972   : > { %v14365_v48 = vpop.f32.mrb[76].mxu1 }
0x2973   : > { %v6234_v9 = vadd.f32 %v14365_v48, %v12787_v16  ;;  %v6228_v63 = vpop.f32.mrb[77].mxu1  ;;  %v4593_v48 = vmul.f32 %v18211_v26, %v18211_v26 }
0x2974   : > { %v6229_v60 = vadd.f32 %v12787_v16, %v6228_v63  ;;  %v12803_v63 = vld [vmem:[%s20058_s6 + $0x60] sm:$0xff] }
0x2975   : > { %v6248_v6 = vadd.f32 %v16600_v43, %v6234_v9  ;;  %v4601_v9 = vsel %vm682_vm0, %v4593_v48, 0.0 }
0x2976   : > { %v6247_v55 = vadd.f32 %v16601_v10, %v6229_v60  ;;  %v12804_v60 = vld [vmem:[%s20058_s6 + $0x68] sm:$0xff]  ;;  %v12806_v10 = vld [vmem:[%s20058_s6 + $0x78] sm:$0xff] }
0x2977   : > { %v6256_v22 = vsel %vm682_vm0, %v6248_v6, 0.0  ;;  %v15351_v43 = vpack.c.bf16 %v12804_v60, %v12803_v63 }
0x2978   : > { %6257 = vadd.xlane.f32.xlu1 %v6256_v22  ;;  %v6253_v61 = vsel %vm682_vm0, %v6247_v55, 0.0  ;;  %v15355_v22 = vpack.c.bf16 %v12806_v10, %v12805_v37 }
0x2979   : > { %6254 = vadd.xlane.f32.xlu0 %v6253_v61  ;;  %15352 = vmatprep.subr.bf16.mxu1 %v15351_v43 }
0x297a   : > { %15354 = vmatpush3.bf16.msra.mxu1 %v15351_v43 }
0x297b   : > { %15356 = vmatprep.subr.bf16.mxu1 %v15355_v22 }
0x297e   : > { %v14368_v57 = vpop.f32.mrb[78].mxu1  ;;  %15358 = vmatpush3.bf16.msra.mxu1 %v15355_v22 }
0x297f   : > { %v6244_v50 = vadd.f32 %v14368_v57, %v12787_v16  ;;  %v6238_v56 = vpop.f32.mrb[79].mxu1 }
0x2980   : > { %v6239_v52 = vadd.f32 %v12787_v16, %v6238_v56  ;;  %v4595_v16 = vsel %vm682_vm0, %v4591_v45, 0.0 }
0x2981   : > { %v6250_v13 = vadd.f32 %v16602_v40, %v6244_v50 }
0x2982   : > { %v6249_v59 = vadd.f32 %v16603_v23, %v6239_v52 }
0x2983   : > { %v6262_v53 = vsel %vm682_vm0, %v6250_v13, 0.0 }
0x2984   : > { %6263 = vadd.xlane.f32.xlu1 %v6262_v53  ;;  %v6259_v62 = vsel %vm682_vm0, %v6249_v59, 0.0 }
0x2985   : > { %6260 = vadd.xlane.f32.xlu0 %v6259_v62 }
0x2988   : > { %4599 = vadd.xlane.f32.xlu1 %v4598_v28 }
0x2989   : > { %4596 = vadd.xlane.f32.xlu0 %v4595_v16 }
0x298c   : > { %4605 = vadd.xlane.f32.xlu1 %v4604_v11 }
0x298d   : > { %4602 = vadd.xlane.f32.xlu0 %v4601_v9 }
0x2a05   : > { %v6258_v7 = vpop.xlane.xlu1 %6257 }
0x2a06   : > { %v6266_v61 = vmul.f32 0.03125, %v6258_v7  ;;  %v6255_v18 = vpop.xlane.xlu0 %6254  ;;  %v12706_v7 = vld [vmem:[%s20063_s11 + $0x28] ss:$0 sm:$0xff] }
0x2a07   : > { %v6265_v14 = vmul.f32 0.03125, %v6255_v18 }
0x2a08   : > { %v18236_v46 = vsub.f32 %v6248_v6, %v6266_v61 }
0x2a09   : > { %v18238_v57 = vsub.f32 %v6247_v55, %v6265_v14 }
0x2a0a   : > { %v6274_v34 = vmul.f32 %v18236_v46, %v18236_v46 }
0x2a0b   : > { %v6273_v50 = vmul.f32 %v18238_v57, %v18238_v57 }
0x2a0c   : > { %v6280_v56 = vsel %vm682_vm0, %v6274_v34, 0.0  ;;  %v12707_v34 = vld [vmem:[%s20063_s11 + $0x29] ss:$0 sm:$0xff] }
0x2a0d   : > { %6281 = vadd.xlane.f32.xlu1 %v6280_v56  ;;  %v6277_v12 = vsel %vm682_vm0, %v6273_v50, 0.0  ;;  %v12794_v56 = vld [vmem:[%s20057_s5 + $0x60] sm:$0xff] }
0x2a0e   : > { %6278 = vadd.xlane.f32.xlu0 %v6277_v12  ;;  %v12795_v12 = vld [vmem:[%s20057_s5 + $0x68] sm:$0xff] }
0x2a11   : > { %v6264_v52 = vpop.xlane.xlu1 %6263 }
0x2a12   : > { %v6268_v40 = vmul.f32 0.03125, %v6264_v52  ;;  %v6261_v23 = vpop.xlane.xlu0 %6260 }
0x2a13   : > { %v6267_v53 = vmul.f32 0.03125, %v6261_v23  ;;  %v15343_v23 = vpack.c.bf16 %v12795_v12, %v12794_v56 }
0x2a14   : > { %v18246_v6 = vsub.f32 %v6250_v13, %v6268_v40 }
0x2a15   : > { %v18248_v55 = vsub.f32 %v6249_v59, %v6267_v53  ;;  %v4600_v0 = vpop.xlane.xlu1 %4599  ;;  %15344 = vmatprep.subr.bf16.mxu0 %v15343_v23 }
0x2a16   : > { %v4608_v62 = vmul.f32 0.03125, %v4600_v0  ;;  %v4597_v45 = vpop.xlane.xlu0 %4596  ;;  %v6276_v28 = vmul.f32 %v18246_v6, %v18246_v6  ;;  %15346 = vmatpush3.bf16.msra.mxu0 %v15343_v23  ;;  %v12793_v23 = vld [vmem:[%s20063_s11 + $0x11] ss:$0 sm:$0xff] }
0x2a17   : > { %v4607_v8 = vmul.f32 0.03125, %v4597_v45  ;;  %v6275_v16 = vmul.f32 %v18248_v55, %v18248_v55 }
0x2a18   : > { %v4612_v48 = vadd.f32 1e-05, %v4608_v62  ;;  %v6286_v11 = vsel %vm682_vm0, %v6276_v28, 0.0  ;;  %v12796_v28 = vld [vmem:[%s20057_s5 + $0x70] sm:$0xff] }
0x2a19   : > { %v4611_v9 = vadd.f32 1e-05, %v4607_v8  ;;  %6287 = vadd.xlane.f32.xlu1 %v6286_v11  ;;  %v4606_v63 = vpop.xlane.xlu1 %4605  ;;  %v6283_v13 = vsel %vm682_vm0, %v6275_v16, 0.0  ;;  %v12797_v8 = vld [vmem:[%s20057_s5 + $0x78] sm:$0xff]  ;;  %v12812_v11 = vld [vmem:[%s20059_s7 + $0x60] sm:$0xff] }
0x2a1a   : > { %16344 = vrsqrt.f32 %v4612_v48  ;;  %v4610_v59 = vmul.f32 0.03125, %v4606_v63  ;;  %6284 = vadd.xlane.f32.xlu0 %v6283_v13  ;;  %v4603_v60 = vpop.xlane.xlu0 %4602  ;;  %v15347_v16 = vpack.c.bf16 %v12797_v8, %v12796_v28 }
0x2a1b   : > { %16346 = vrsqrt.f32 %v4611_v9  ;;  %v4609_v43 = vmul.f32 0.03125, %v4603_v60  ;;  %v12813_v9 = vld [vmem:[%s20059_s7 + $0x68] sm:$0xff] }
0x2a1c   : > { %v4614_v37 = vadd.f32 1e-05, %v4610_v59  ;;  %15348 = vmatprep.subr.bf16.mxu0 %v15347_v16  ;;  %v15359_v63 = vpack.c.bf16 %v12813_v9, %v12812_v11 }
0x2a1d   : > { %v4613_v10 = vadd.f32 1e-05, %v4609_v43  ;;  %15350 = vmatpush3.bf16.msra.mxu0 %v15347_v16 }
0x2a1e   : > { %16348 = vrsqrt.f32 %v4614_v37  ;;  %15360 = vmatprep.subr.bf16.mxu0 %v15359_v63 }
0x2a1f   : > { %16350 = vrsqrt.f32 %v4613_v10 }
0x2a24   : > { %v16345_v22 = vpop.eup %16344 }
0x2a25   : > { %v16347_v61 = vpop.eup %16346  ;;  %v4620_v18 = vmul.f32 %v16345_v22, %v18197_v54 }
0x2a26   : > { %v4619_v14 = vmul.f32 %v16347_v61, %v18200_v38 }
0x2a27   : > { %v4628_v50 = vmul.f32 %v12706_v7, %v4620_v18 }
0x2a28   : > { %v16349_v52 = vpop.eup %16348  ;;  %v4627_v40 = vmul.f32 %v12706_v7, %v4619_v14 }
0x2a29   : > { %v16351_v53 = vpop.eup %16350  ;;  %v4622_v54 = vmul.f32 %v16349_v52, %v18205_v5  ;;  %v18274_v62 = vadd.f32 %v12707_v34, %v4628_v50  ;;  %v12792_v50 = vld [vmem:[%s20063_s11 + $0x10] ss:$0 sm:$0xff] }
0x2a2a   : > { %v18271_v38 = vadd.f32 %v12707_v34, %v4627_v40  ;;  %v4621_v0 = vmul.f32 %v16351_v53, %v18211_v26 }
0x2a2b   : > { %v4630_v45 = vmul.f32 %v12706_v7, %v4622_v54 }
0x2a2c   : > { %14391 = vmatprep.mubr.msk.f32.mxu1 %vm682_vm0, %v18271_v38  ;;  %v4629_v5 = vmul.f32 %v12706_v7, %v4621_v0  ;;  %v12814_v0 = vld [vmem:[%s20059_s7 + $0x70] sm:$0xff] }
0x2a2d   : > { %14392 = vmatmul.mubr.msk.f32.vlgmr.msra.gmra.mrb[80].mxu1 %vm682_vm0, %v18274_v62  ;;  %v18288_v48 = vadd.f32 %v12707_v34, %v4630_v45  ;;  %v12815_v45 = vld [vmem:[%s20059_s7 + $0x78] sm:$0xff] }
0x2a2e   : > { %v18286_v26 = vadd.f32 %v12707_v34, %v4629_v5 }
0x2a30   : > { %14394 = vmatprep.mubr.msk.f32.mxu1 %vm682_vm0, %v18286_v26 }
0x2a31   : > { %14395 = vmatmul.mubr.msk.f32.gmra.mrb[82].mxu1 %vm682_vm0, %v18288_v48 }
0x2a9a   : > { %v6282_v13 = vpop.xlane.xlu1 %6281 }
0x2a9b   : > { %v6290_v59 = vmul.f32 0.03125, %v6282_v13  ;;  %v6279_v60 = vpop.xlane.xlu0 %6278 }
0x2a9c   : > { %v6289_v43 = vmul.f32 0.03125, %v6279_v60 }
0x2a9d   : > { %v6294_v37 = vadd.f32 1e-05, %v6290_v59 }
0x2a9e   : > { %v6293_v10 = vadd.f32 1e-05, %v6289_v43 }
0x2a9f   : > { %16352 = vrsqrt.f32 %v6294_v37 }
0x2aa0   : > { %16354 = vrsqrt.f32 %v6293_v10 }
0x2aa6   : > { %v6288_v22 = vpop.xlane.xlu1 %6287 }
0x2aa7   : > { %v6292_v7 = vmul.f32 0.03125, %v6288_v22  ;;  %v6285_v61 = vpop.xlane.xlu0 %6284 }
0x2aa8   : > { %v6291_v18 = vmul.f32 0.03125, %v6285_v61 }
0x2aa9   : > { %v16353_v14 = vpop.eup %16352  ;;  %v6296_v34 = vadd.f32 1e-05, %v6292_v7 }
0x2aaa   : > { %v16355_v56 = vpop.eup %16354  ;;  %v6302_v12 = vmul.f32 %v16353_v14, %v18236_v46  ;;  %v6295_v52 = vadd.f32 1e-05, %v6291_v18 }
0x2aab   : > { %16356 = vrsqrt.f32 %v6296_v34  ;;  %v6301_v40 = vmul.f32 %v16355_v56, %v18238_v57  ;;  %v15363_v57 = vpack.c.bf16 %v12815_v45, %v12814_v0  ;;  %v12798_v56 = vld [vmem:[%s20063_s11 + $0x12] ss:$0 sm:$0xff]  ;;  %v12816_v45 = vld [vmem:[%s20063_s11 + $0x14] ss:$0 sm:$0xff] }
0x2aac   : > { %16358 = vrsqrt.f32 %v6295_v52  ;;  %v6310_v53 = vmul.f32 %v12792_v50, %v6302_v12 }
0x2aad   : > { %v6309_v54 = vmul.f32 %v12792_v50, %v6301_v40 }
0x2aae   : > { %v18316_v28 = vadd.f32 %v12793_v23, %v6310_v53 }
0x2aaf   : > { %v18314_v46 = vadd.f32 %v12793_v23, %v6309_v54 }
0x2ab1   : > { %14377 = vmatprep.mubr.msk.f32.mxu0 %vm682_vm0, %v18314_v46 }
0x2ab2   : > { %14378 = vmatmul.mubr.msk.f32.vlgmr.msra.gmra.mrb[80].mxu0 %vm682_vm0, %v18316_v28 }
0x2ab3   : > { %15362 = vmatpush3.bf16.msra.mxu0 %v15359_v63 }
0x2ab4   : > { %15364 = vmatprep.subr.bf16.mxu0 %v15363_v57 }
0x2ab5   : > { %v16357_v8 = vpop.eup %16356 }
0x2ab6   : > { %v16359_v5 = vpop.eup %16358  ;;  %v6304_v16 = vmul.f32 %v16357_v8, %v18246_v6  ;;  %v12807_v6 = vld [vmem:[%s20063_s11 + $0x13] ss:$0 sm:$0xff] }
0x2ab7   : > { %v6303_v11 = vmul.f32 %v16359_v5, %v18248_v55  ;;  %15366 = vmatpush3.bf16.msra.mxu0 %v15363_v57 }
0x2ab8   : > { %v6312_v9 = vmul.f32 %v12792_v50, %v6304_v16 }
0x2ab9   : > { %v6311_v13 = vmul.f32 %v12792_v50, %v6303_v11 }
0x2aba   : > { %v18326_v60 = vadd.f32 %v12793_v23, %v6312_v9 }
0x2abb   : > { %v18324_v59 = vadd.f32 %v12793_v23, %v6311_v13 }
0x2abd   : > { %14380 = vmatprep.mubr.msk.f32.mxu0 %vm682_vm0, %v18324_v59 }
0x2abe   : > { %14381 = vmatmul.mubr.msk.f32.gmra.mrb[82].mxu0 %vm682_vm0, %v18326_v60 }
0x2abf   : > { %14405 = vmatprep.mubr.msk.f32.mxu0 %vm682_vm0, %v18271_v38 }
0x2ac2   : > { %14406 = vmatmul.mubr.msk.f32.vlgmr.msra.gmra.mrb[84].mxu0 %vm682_vm0, %v18274_v62 }
0x2ac3   : > { %14408 = vmatprep.mubr.msk.f32.mxu0 %vm682_vm0, %v18286_v26 }
0x2ac6   : > { %14409 = vmatmul.mubr.msk.f32.gmra.mrb[86].mxu0 %vm682_vm0, %v18288_v48 }
0x2b00   : > { %v14393_v55 = vpop.f32.mrb[80].mxu1 }
0x2b01   : > { %v6526_v63 = vadd.f32 %v14393_v55, %v12807_v6  ;;  %v6520_v43 = vpop.f32.mrb[81].mxu1 }
0x2b02   : > { %v6521_v37 = vadd.f32 %v12807_v6, %v6520_v43 }
0x2b04   : > { %v14396_v10 = vpop.f32.mrb[82].mxu1  ;;  %v15367_v22 = vpack.c.bf16 %v6526_v63, %v6521_v37  ;;  %v18343_v7 = vpack.i.bf16 %v6526_v63, %v6521_v37 }
0x2b05   : > { %v6536_v61 = vadd.f32 %v14396_v10, %v12807_v6  ;;  %v6530_v18 = vpop.f32.mrb[83].mxu1 }
0x2b06   : > { %v6531_v14 = vadd.f32 %v12807_v6, %v6530_v18  ;;  %15369 = vmatprep.subr.msk.bf16.mxu1 %vm16818_vm2, %v15367_v22 }
0x2b07   : > { %15372 = vmatpush3.bf16.xpose.msk.msra.mxu1 %vm16818_vm2, %v15367_v22  ;;  %v18388_v22 = vld [vmem:[%s18385_s26 + $0x8] sm:$0xff] }
0x2b08   : > { %v15373_v34 = vpack.c.bf16 %v6536_v61, %v6531_v14  ;;  %v18349_v50 = vpack.i.bf16 %v6536_v61, %v6531_v14  ;;  %v18391_v14 = vld [vmem:[%s18385_s26] sm:$0xff] }
0x2b0a   : > { %15375 = vmatprep.subr.msk.bf16.mxu1 %vm16818_vm2, %v15373_v34 }
0x2b0f   : > { %15378 = vmatpush3.bf16.xpose.msk.msra.mxu1 %vm16818_vm2, %v15373_v34 }
0x2b85   : > { %v14379_v12 = vpop.f32.mrb[80].mxu0 }
0x2b86   : > { %v6413_v52 = vpop.f32.mrb[81].mxu0  ;;  %v18360_v23 = vadd.f32 %v14379_v12, %v12798_v56 }
0x2b87   : > { %v18358_v40 = vadd.f32 %v12798_v56, %v6413_v52 }
0x2b89   : > { %14419 = vmatprep.mubr.msk.f32.mxu1 %vm968_vm1, %v18358_v40 }
0x2b8a   : > { %14420 = vmatmul.mubr.msk.f32.vlgmr.msra.gmra.mrb[84].mxu1 %vm968_vm1, %v18360_v23 }
0x2b91   : > { %v14382_v53 = vpop.f32.mrb[82].mxu0 }
0x2b92   : > { %v6423_v54 = vpop.f32.mrb[83].mxu0  ;;  %v18371_v57 = vadd.f32 %v14382_v53, %v12798_v56 }
0x2b93   : > { %v18366_v0 = vadd.f32 %v12798_v56, %v6423_v54 }
0x2b95   : > { %v14407_v8 = vpop.f32.mrb[84].mxu0  ;;  %14422 = vmatprep.mubr.msk.f32.mxu1 %vm968_vm1, %v18366_v0 }
0x2b96   : > { %v6621_v5 = vadd.f32 %v14407_v8, %v12816_v45  ;;  %v6615_v16 = vpop.f32.mrb[85].mxu0  ;;  %14423 = vmatmul.mubr.msk.f32.gmra.mrb[86].mxu1 %vm968_vm1, %v18371_v57 }
0x2b97   : > { %v6616_v11 = vadd.f32 %v12816_v45, %v6615_v16  ;;  %v18401_v16 = vld [vmem:[%s18385_s26 + $0x10] sm:$0xff] }
0x2b99   : > { %v14410_v9 = vpop.f32.mrb[86].mxu0  ;;  %v15379_v13 = vpack.c.bf16 %v6621_v5, %v6616_v11  ;;  %v18377_v6 = vpack.i.bf16 %v6621_v5, %v6616_v11 }
0x2b9a   : > { %v6631_v55 = vadd.f32 %v14410_v9, %v12816_v45  ;;  %v6625_v63 = vpop.f32.mrb[87].mxu0 }
0x2b9b   : > { %v6626_v43 = vadd.f32 %v12816_v45, %v6625_v63  ;;  %15380 = vmatprep.subr.bf16.mxu0 %v15379_v13  ;;  %v18398_v45 = vld [vmem:[%s18385_s26 + $0x18] sm:$0xff] }
0x2b9c   : > { %15382 = vmatpush3.bf16.msra.mxu0 %v15379_v13 }
0x2b9d   : > { %v15383_v37 = vpack.c.bf16 %v6631_v55, %v6626_v43  ;;  %v18379_v10 = vpack.i.bf16 %v6631_v55, %v6626_v43 }
0x2b9f   : > { %15384 = vmatprep.subr.bf16.mxu0 %v15383_v37 }
0x2ba0   : > { %15386 = vmatpush3.bf16.msra.mxu0 %v15383_v37 }
0x2c5d   : > { %v14421_v61 = vpop.f32.mrb[84].mxu1 }
0x2c5e   : > { %v6744_v18 = vmul.f32 0.35355338, %v14421_v61  ;;  %v6724_v34 = vpop.f32.mrb[85].mxu1 }
0x2c5f   : > { %v6743_v56 = vmul.f32 0.35355338, %v6724_v34 }
0x2c60   : > { %v6748_v12 = vadd.f32 %v6744_v18, %v18388_v22 }
0x2c61   : > { %v6747_v52 = vadd.f32 %v6743_v56, %v18391_v14 }
0x2c62   : > { %v6754_v53 = vsel %vm682_vm0, %v6748_v12, -inf }
0x2c63   : > { %6755 = vmax.xlane.f32.xlu1 %v6754_v53  ;;  %v6751_v54 = vsel %vm682_vm0, %v6747_v52, -inf }
0x2c64   : > { %6752 = vmax.xlane.f32.xlu0 %v6751_v54 }
0x2c69   : > { %v14424_v8 = vpop.f32.mrb[86].mxu1 }
0x2c6a   : > { %v6746_v5 = vmul.f32 0.35355338, %v14424_v8  ;;  %v6734_v11 = vpop.f32.mrb[87].mxu1 }
0x2c6b   : > { %v6745_v9 = vmul.f32 0.35355338, %v6734_v11 }
0x2c6c   : > { %v6750_v13 = vadd.f32 %v6746_v5, %v18398_v45 }
0x2c6d   : > { %v6749_v55 = vadd.f32 %v6745_v9, %v18401_v16 }
0x2c6e   : > { %v6760_v63 = vsel %vm682_vm0, %v6750_v13, -inf }
0x2c6f   : > { %6761 = vmax.xlane.f32.xlu1 %v6760_v63  ;;  %v6757_v43 = vsel %vm682_vm0, %v6749_v55, -inf }
0x2c70   : > { %6758 = vmax.xlane.f32.xlu0 %v6757_v43 }
0x2cf0   : > { %v6756_v37 = vpop.xlane.xlu1 %6755 }
0x2cf1   : > { %v6764_v61 = vsub.f32 %v6748_v12, %v6756_v37  ;;  %v6753_v18 = vpop.xlane.xlu0 %6752 }
0x2cf2   : > { %v6763_v34 = vsub.f32 %v6747_v52, %v6753_v18 }
0x2cf3   : > { %v6769_v56 = vmul.f32 1.442695, %v6764_v61 }
0x2cf4   : > { %v6767_v53 = vmul.f32 1.442695, %v6763_v34 }
0x2cf5   : > { %16360 = vpow2.f32 %v6769_v56 }
0x2cf6   : > { %16362 = vpow2.f32 %v6767_v53 }
0x2cfc   : > { %v6762_v54 = vpop.xlane.xlu1 %6761 }
0x2cfd   : > { %v6766_v8 = vsub.f32 %v6750_v13, %v6762_v54  ;;  %v6759_v11 = vpop.xlane.xlu0 %6758 }
0x2cfe   : > { %v6765_v5 = vsub.f32 %v6749_v55, %v6759_v11 }
0x2cff   : > { %v16361_v42 = vpop.eup %16360  ;;  %v6773_v9 = vmul.f32 1.442695, %v6766_v8 }
0x2d00   : > { %v16363_v29 = vpop.eup %16362  ;;  %v6771_v39 = vmul.f32 1.442695, %v6765_v5  ;;  %v6778_v63 = vsel %vm682_vm0, %v16361_v42, 0.0 }
0x2d01   : > { %16364 = vpow2.f32 %v6773_v9  ;;  %6779 = vadd.xlane.f32.xlu1 %v6778_v63  ;;  %v6775_v12 = vsel %vm682_vm0, %v16363_v29, 0.0 }
0x2d02   : > { %16366 = vpow2.f32 %v6771_v39  ;;  %6776 = vadd.xlane.f32.xlu0 %v6775_v12 }
0x2d0b   : > { %v16365_v52 = vpop.eup %16364 }
0x2d0c   : > { %v16367_v43 = vpop.eup %16366  ;;  %v6784_v37 = vsel %vm682_vm0, %v16365_v52, 0.0 }
0x2d0d   : > { %6785 = vadd.xlane.f32.xlu1 %v6784_v37  ;;  %v6781_v13 = vsel %vm682_vm0, %v16367_v43, 0.0 }
0x2d0e   : > { %6782 = vadd.xlane.f32.xlu0 %v6781_v13 }
0x2d1e   : > { %15954 = vrot.lane.b32.xlu1 %v18349_v50, %s20173_s0 }
0x2d22   : > { %6892 = vrot.lane.b32.xlu1 %v18358_v40, %s20173_s0 }
0x2d24   : > { %15949 = vrot.lane.b32.xlu0 %v18343_v7, %s20173_s0 }
0x2d26   : > { %6894 = vrot.lane.b32.xlu1 %v18360_v23, %s20173_s0 }
0x2d28   : > { %6896 = vrot.lane.b32.xlu0 %v18366_v0, %s20173_s0 }
0x2d2a   : > { %6898 = vrot.lane.b32.xlu1 %v18371_v57, %s20173_s0 }
0x2d8e   : > { %v6780_v39 = vpop.xlane.xlu1 %6779 }
0x2d8f   : > { %16368 = vrcp.f32 %v6780_v39  ;;  %v6777_v55 = vpop.xlane.xlu0 %6776 }
0x2d90   : > { %16370 = vrcp.f32 %v6777_v55 }
0x2d99   : > { %v16369_v61 = vpop.eup %16368 }
0x2d9a   : > { %v16371_v18 = vpop.eup %16370  ;;  %v6786_v34 = vpop.xlane.xlu1 %6785  ;;  %v18425_v54 = vmul.f32 %v16369_v61, %v16361_v42 }
0x2d9b   : > { %16372 = vrcp.f32 %v6786_v34  ;;  %v6783_v56 = vpop.xlane.xlu0 %6782  ;;  %v18423_v53 = vmul.f32 %v16371_v18, %v16363_v29 }
0x2d9c   : > { %20207 = vst [vmem:[#allocation40_spill] sm:$0xff] %v18425_v54  ;;  %16374 = vrcp.f32 %v6783_v56 }
0x2d9d   : > { %20206 = vst [vmem:[#allocation39_spill] sm:$0xff] %v18423_v53  ;;  %14433 = vmatprep.mubr.msk.f32.mxu0 %vm682_vm0, %v18423_v53 }
0x2d9e   : > { %v15955_v8 = vpop.permute.xlu1 %15954  ;;  %14434 = vmatmul.mubr.msk.f32.vlgmr.msra.gmra.mrb[88].mxu0 %vm682_vm0, %v18425_v54 }
0x2d9f   : > { %v15950_v11 = vpop.permute.xlu0 %15949  ;;  %v15957_v5 = vunpack.i.h.bf16 %v15955_v8  ;;  %v15956_v9 = vunpack.i.l.bf16 %v15955_v8 }
0x2da0   : > { %v15952_v63 = vunpack.i.h.bf16 %v15950_v11  ;;  %v15951_v12 = vunpack.i.l.bf16 %v15950_v11 }
0x2da1   : > { %v15393_v13 = vpack.c.bf16 %v15957_v5, %v15956_v9 }
0x2da2   : > { %v15387_v37 = vpack.c.bf16 %v15952_v63, %v15951_v12  ;;  %v6893_v61 = vpop.permute.xlu1 %6892 }
0x2da3   : > { %v6897_v34 = vpop.permute.xlu0 %6896 }
0x2da4   : > { %15389 = vmatprep.subr.msk.bf16.mxu0 %vm16818_vm2, %v15387_v37 }
0x2da5   : > { %v16373_v29 = vpop.eup %16372  ;;  %15392 = vmatpush3.bf16.xpose.msk.msra.mxu0 %vm16818_vm2, %v15387_v37 }
0x2da6   : > { %v16375_v42 = vpop.eup %16374  ;;  %15395 = vmatprep.subr.msk.bf16.mxu0 %vm16818_vm2, %v15393_v13  ;;  %v18439_v55 = vmul.f32 %v16373_v29, %v16365_v52  ;;  %v6895_v18 = vpop.permute.xlu1 %6894 }
0x2da7   : > { %v18437_v39 = vmul.f32 %v16375_v42, %v16367_v43 }
0x2da8   : > { %20209 = vst [vmem:[#allocation42_spill] sm:$0xff] %v18439_v55 }
0x2da9   : > { %20208 = vst [vmem:[#allocation41_spill] sm:$0xff] %v18437_v39  ;;  %14436 = vmatprep.mubr.msk.f32.mxu0 %vm682_vm0, %v18437_v39 }
0x2daa   : > { %14437 = vmatmul.mubr.msk.f32.gmra.mrb[90].mxu0 %vm682_vm0, %v18439_v55  ;;  %v6899_v52 = vpop.permute.xlu1 %6898 }
0x2dab   : > { %14447 = vmatprep.mubr.msk.f32.mxu0 %vm968_vm1, %v6893_v61 }
0x2dad   : > { %15398 = vmatpush3.bf16.xpose.msk.msra.mxu0 %vm16818_vm2, %v15393_v13 }
0x2db4   : > { %14448 = vmatmul.mubr.msk.f32.vlgmr.msra.gmra.mrb[92].mxu0 %vm968_vm1, %v6895_v18 }
0x2db5   : > { %14450 = vmatprep.mubr.msk.f32.mxu0 %vm968_vm1, %v6897_v34 }
0x2db8   : > { %14451 = vmatmul.mubr.msk.f32.gmra.mrb[94].mxu0 %vm968_vm1, %v6899_v52 }
0x2e71   : > { %v18451_v43 = vpop.f32.mrb[88].mxu0 }
0x2e72   : > { %v18453_v56 = vpop.f32.mrb[89].mxu0 }
0x2e7d   : > { %v18455_v8 = vpop.f32.mrb[90].mxu0 }
0x2e7e   : > { %v18457_v11 = vpop.f32.mrb[91].mxu0 }
0x2e87   : > { %v14449_v5 = vpop.f32.mrb[92].mxu0 }
0x2e88   : > { %v7010_v9 = vmul.f32 0.35355338, %v14449_v5  ;;  %v6990_v63 = vpop.f32.mrb[93].mxu0 }
0x2e89   : > { %v7009_v12 = vmul.f32 0.35355338, %v6990_v63 }
0x2e8a   : > { %v7014_v37 = vadd.f32 %v7010_v9, %v18388_v22 }
0x2e8b   : > { %v7013_v13 = vadd.f32 %v7009_v12, %v18391_v14  ;;  %v14452_v29 = vpop.f32.mrb[94].mxu0 }
0x2e8c   : > { %v7000_v42 = vpop.f32.mrb[95].mxu0  ;;  %v7020_v61 = vsel %vm682_vm0, %v7014_v37, -inf  ;;  %v7012_v18 = vmul.f32 0.35355338, %v14452_v29 }
0x2e8d   : > { %v7011_v34 = vmul.f32 0.35355338, %v7000_v42  ;;  %7021 = vmax.xlane.f32.xlu1 %v7020_v61  ;;  %v7017_v52 = vsel %vm682_vm0, %v7013_v13, -inf }
0x2e8e   : > { %7018 = vmax.xlane.f32.xlu0 %v7017_v52  ;;  %v7016_v5 = vadd.f32 %v7012_v18, %v18398_v45 }
0x2e8f   : > { %v7015_v55 = vadd.f32 %v7011_v34, %v18401_v16 }
0x2e90   : > { %v7026_v9 = vsel %vm682_vm0, %v7016_v5, -inf }
0x2e91   : > { %v7023_v63 = vsel %vm682_vm0, %v7015_v55, -inf }
0x2e92   : > { %7024 = vmax.xlane.f32.xlu0 %v7023_v63 }
0x2e96   : > { %7027 = vmax.xlane.f32.xlu0 %v7026_v9 }
0x2f1a   : > { %v7022_v12 = vpop.xlane.xlu1 %7021 }
0x2f1b   : > { %v7030_v54 = vsub.f32 %v7014_v37, %v7022_v12  ;;  %v7019_v39 = vpop.xlane.xlu0 %7018 }
0x2f1c   : > { %v7029_v53 = vsub.f32 %v7013_v13, %v7019_v39 }
0x2f1d   : > { %v7035_v29 = vmul.f32 1.442695, %v7030_v54 }
0x2f1e   : > { %v7033_v42 = vmul.f32 1.442695, %v7029_v53 }
0x2f1f   : > { %16376 = vpow2.f32 %v7035_v29  ;;  %v7025_v53 = vpop.xlane.xlu0 %7024 }
0x2f20   : > { %16378 = vpow2.f32 %v7033_v42  ;;  %v7031_v54 = vsub.f32 %v7015_v55, %v7025_v53 }
0x2f22   : > { %v7037_v39 = vmul.f32 1.442695, %v7031_v54 }
0x2f23   : > { %v7028_v37 = vpop.xlane.xlu0 %7027 }
0x2f24   : > { %v7032_v13 = vsub.f32 %v7016_v5, %v7028_v37  ;;  %16380 = vpow2.f32 %v7037_v39 }
0x2f26   : > { %v7039_v63 = vmul.f32 1.442695, %v7032_v13 }
0x2f28   : > { %16382 = vpow2.f32 %v7039_v63 }
0x2f29   : > { %v16377_v61 = vpop.eup %16376 }
0x2f2a   : > { %v16379_v52 = vpop.eup %16378  ;;  %v7044_v34 = vsel %vm682_vm0, %v16377_v61, 0.0 }
0x2f2b   : > { %7045 = vadd.xlane.f32.xlu1 %v7044_v34  ;;  %v7041_v18 = vsel %vm682_vm0, %v16379_v52, 0.0 }
0x2f2c   : > { %7042 = vadd.xlane.f32.xlu0 %v7041_v18 }
0x2f2e   : > { %v16381_v9 = vpop.eup %16380 }
0x2f2f   : > { %v7047_v12 = vsel %vm682_vm0, %v16381_v9, 0.0 }
0x2f32   : > { %v16383_v29 = vpop.eup %16382 }
0x2f33   : > { %v7050_v42 = vsel %vm682_vm0, %v16383_v29, 0.0 }
0x2f3c   : > { %15964 = vrot.lane.b32.xlu1 %v18379_v10, %s20173_s0 }
0x2f40   : > { %15969 = vrot.lane.b32.xlu1 %v18343_v7, %s20178_s2 }
0x2f42   : > { %15959 = vrot.lane.b32.xlu0 %v18377_v6, %s20173_s0 }
0x2f44   : > { %15974 = vrot.lane.b32.xlu1 %v18349_v50, %s20178_s2 }
0x2f61   : > { %7048 = vadd.xlane.f32.xlu0 %v7047_v12 }
0x2f68   : > { %7051 = vadd.xlane.f32.xlu1 %v7050_v42 }
0x2f77   : > { %7174 = vrot.lane.b32.xlu0 %v18358_v40, %s20178_s2 }
0x2f79   : > { %7176 = vrot.lane.b32.xlu1 %v18360_v23, %s20178_s2 }
0x2f7b   : > { %7178 = vrot.lane.b32.xlu0 %v18366_v0, %s20178_s2 }
0x2f7d   : > { %7180 = vrot.lane.b32.xlu1 %v18371_v57, %s20178_s2 }
0x2fb8   : > { %v7046_v55 = vpop.xlane.xlu1 %7045 }
0x2fb9   : > { %v7043_v5 = vpop.xlane.xlu0 %7042 }
0x2fba   : > { %16384 = vrcp.f32 %v7043_v5 }
0x2fbb   : > { %16386 = vrcp.f32 %v7046_v55 }
0x2fbc   : > { %v15965_v34 = vpop.permute.xlu1 %15964 }
0x2fbd   : > { %v15960_v18 = vpop.permute.xlu0 %15959  ;;  %v15967_v53 = vunpack.i.h.bf16 %v15965_v34  ;;  %v15966_v54 = vunpack.i.l.bf16 %v15965_v34 }
0x2fbe   : > { %v15962_v39 = vunpack.i.h.bf16 %v15960_v18  ;;  %v15961_v37 = vunpack.i.l.bf16 %v15960_v18 }
0x2fbf   : > { %v15403_v47 = vpack.c.bf16 %v15967_v53, %v15966_v54 }
0x2fc0   : > { %v15970_v13 = vpop.permute.xlu1 %15969  ;;  %v15399_v63 = vpack.c.bf16 %v15962_v39, %v15961_v37 }
0x2fc1   : > { %v15972_v12 = vunpack.i.h.bf16 %v15970_v13  ;;  %v15971_v42 = vunpack.i.l.bf16 %v15970_v13 }
0x2fc2   : > { %15400 = vmatprep.subr.bf16.mxu1 %v15399_v63 }
0x2fc3   : > { %15402 = vmatpush3.bf16.msra.mxu1 %v15399_v63  ;;  %v15407_v5 = vpack.c.bf16 %v15972_v12, %v15971_v42 }
0x2fc4   : > { %v16385_v2 = vpop.eup %16384  ;;  %15404 = vmatprep.subr.bf16.mxu1 %v15403_v47  ;;  %v15975_v34 = vpop.permute.xlu1 %15974 }
0x2fc5   : > { %v16387_v44 = vpop.eup %16386  ;;  %v18487_v21 = vmul.f32 %v16385_v2, %v16379_v52  ;;  %v15977_v18 = vunpack.i.h.bf16 %v15975_v34  ;;  %v15976_v53 = vunpack.i.l.bf16 %v15975_v34 }
0x2fc6   : > { %v18491_v55 = vmul.f32 %v16387_v44, %v16377_v61 }
0x2fc7   : > { %20210 = vst [vmem:[#allocation43_spill] sm:$0xff] %v18487_v21  ;;  %15406 = vmatpush3.bf16.msra.mxu1 %v15403_v47  ;;  %14461 = vmatprep.mubr.msk.f32.mxu1 %vm682_vm0, %v18487_v21  ;;  %v15413_v54 = vpack.c.bf16 %v15977_v18, %v15976_v53 }
0x2fc8   : > { %20211 = vst [vmem:[#allocation44_spill] sm:$0xff] %v18491_v55  ;;  %15409 = vmatprep.subr.msk.bf16.mxu1 %vm16818_vm2, %v15407_v5 }
0x2fca   : > { %14462 = vmatmul.mubr.msk.f32.vlgmr.msra.gmra.mrb[88].mxu1 %vm682_vm0, %v18491_v55 }
0x2fd0   : > { %15412 = vmatpush3.bf16.xpose.msk.msra.mxu1 %vm16818_vm2, %v15407_v5 }
0x2fd1   : > { %15415 = vmatprep.subr.msk.bf16.mxu1 %vm16818_vm2, %v15413_v54 }
0x2fd8   : > { %15418 = vmatpush3.bf16.xpose.msk.msra.mxu1 %vm16818_vm2, %v15413_v54 }
0x2fee   : > { %v7049_v44 = vpop.xlane.xlu0 %7048 }
0x2fef   : > { %16388 = vrcp.f32 %v7049_v44 }
0x2ff2   : > { %v7175_v39 = vpop.permute.xlu0 %7174 }
0x2ff5   : > { %v7052_v2 = vpop.xlane.xlu1 %7051 }
0x2ff6   : > { %16390 = vrcp.f32 %v7052_v2  ;;  %v7179_v63 = vpop.permute.xlu0 %7178 }
0x2ff9   : > { %v16389_v47 = vpop.eup %16388  ;;  %v7177_v13 = vpop.permute.xlu1 %7176 }
0x2ffa   : > { %v18503_v61 = vmul.f32 %v16389_v47, %v16381_v9 }
0x2ffc   : > { %20212 = vst [vmem:[#allocation45_spill] sm:$0xff] %v18503_v61  ;;  %14464 = vmatprep.mubr.msk.f32.mxu1 %vm682_vm0, %v18503_v61 }
0x2ffd   : > { %v7181_v9 = vpop.permute.xlu1 %7180 }
0x3000   : > { %v16391_v52 = vpop.eup %16390 }
0x3001   : > { %v18507_v37 = vmul.f32 %v16391_v52, %v16383_v29 }
0x3003   : > { %20213 = vst [vmem:[#allocation46_spill] sm:$0xff] %v18507_v37  ;;  %14465 = vmatmul.mubr.msk.f32.gmra.mrb[90].mxu1 %vm682_vm0, %v18507_v37 }
0x3004   : > { %14475 = vmatprep.mubr.msk.f32.mxu1 %vm968_vm1, %v7175_v39 }
0x3007   : > { %14476 = vmatmul.mubr.msk.f32.vlgmr.msra.gmra.mrb[92].mxu1 %vm968_vm1, %v7177_v13 }
0x3008   : > { %14478 = vmatprep.mubr.msk.f32.mxu1 %vm968_vm1, %v7179_v63 }
0x300b   : > { %14479 = vmatmul.mubr.msk.f32.gmra.mrb[94].mxu1 %vm968_vm1, %v7181_v9 }
0x309d   : > { %v18515_v12 = vpop.f32.mrb[88].mxu1 }
0x309e   : > { %v18517_v42 = vpop.f32.mrb[89].mxu1 }
0x30d6   : > { %v18519_v29 = vpop.f32.mrb[90].mxu1 }
0x30d7   : > { %v18521_v5 = vpop.f32.mrb[91].mxu1 }
0x30da   : > { %v14477_v34 = vpop.f32.mrb[92].mxu1 }
0x30db   : > { %v7292_v18 = vmul.f32 0.35355338, %v14477_v34  ;;  %v7272_v53 = vpop.f32.mrb[93].mxu1 }
0x30dc   : > { %v7291_v54 = vmul.f32 0.35355338, %v7272_v53 }
0x30dd   : > { %v7296_v44 = vadd.f32 %v7292_v18, %v18388_v22 }
0x30de   : > { %v7295_v2 = vadd.f32 %v7291_v54, %v18391_v14  ;;  %v14480_v47 = vpop.f32.mrb[94].mxu1 }
0x30df   : > { %v7282_v52 = vpop.f32.mrb[95].mxu1  ;;  %v7302_v39 = vsel %vm682_vm0, %v7296_v44, -inf  ;;  %v7294_v13 = vmul.f32 0.35355338, %v14480_v47 }
0x30e0   : > { %v7293_v63 = vmul.f32 0.35355338, %v7282_v52  ;;  %7303 = vmax.xlane.f32.xlu1 %v7302_v39  ;;  %v7299_v9 = vsel %vm682_vm0, %v7295_v2, -inf }
0x30e1   : > { %7300 = vmax.xlane.f32.xlu0 %v7299_v9  ;;  %v7298_v34 = vadd.f32 %v7294_v13, %v18398_v45 }
0x30e2   : > { %v7297_v37 = vadd.f32 %v7293_v63, %v18401_v16 }
0x30e3   : > { %v7308_v18 = vsel %vm682_vm0, %v7298_v34, -inf }
0x30e4   : > { %v7305_v53 = vsel %vm682_vm0, %v7297_v37, -inf }
0x30e5   : > { %7306 = vmax.xlane.f32.xlu0 %v7305_v53 }
0x30e9   : > { %7309 = vmax.xlane.f32.xlu0 %v7308_v18 }
0x316d   : > { %v7304_v54 = vpop.xlane.xlu1 %7303 }
0x316e   : > { %v7312_v61 = vsub.f32 %v7296_v44, %v7304_v54  ;;  %v7301_v55 = vpop.xlane.xlu0 %7300 }
0x316f   : > { %v7311_v21 = vsub.f32 %v7295_v2, %v7301_v55 }
0x3170   : > { %v7317_v47 = vmul.f32 1.442695, %v7312_v61 }
0x3171   : > { %v7315_v52 = vmul.f32 1.442695, %v7311_v21 }
0x3172   : > { %16392 = vpow2.f32 %v7317_v47  ;;  %v7307_v21 = vpop.xlane.xlu0 %7306 }
0x3173   : > { %16394 = vpow2.f32 %v7315_v52  ;;  %v7313_v55 = vsub.f32 %v7297_v37, %v7307_v21 }
0x3175   : > { %v7319_v61 = vmul.f32 1.442695, %v7313_v55 }
0x3176   : > { %v7310_v44 = vpop.xlane.xlu0 %7309 }
0x3177   : > { %v7314_v2 = vsub.f32 %v7298_v34, %v7310_v44  ;;  %16396 = vpow2.f32 %v7319_v61 }
0x3179   : > { %v7321_v53 = vmul.f32 1.442695, %v7314_v2 }
0x317b   : > { %16398 = vpow2.f32 %v7321_v53 }
0x317c   : > { %v16393_v39 = vpop.eup %16392 }
0x317d   : > { %v16395_v9 = vpop.eup %16394  ;;  %v7326_v63 = vsel %vm682_vm0, %v16393_v39, 0.0 }
0x317e   : > { %7327 = vadd.xlane.f32.xlu1 %v7326_v63  ;;  %v7323_v13 = vsel %vm682_vm0, %v16395_v9, 0.0 }
0x317f   : > { %7324 = vadd.xlane.f32.xlu0 %v7323_v13 }
0x3181   : > { %v16397_v18 = vpop.eup %16396 }
0x3182   : > { %v7329_v54 = vsel %vm682_vm0, %v16397_v18, 0.0 }
0x3185   : > { %v16399_v47 = vpop.eup %16398 }
0x318f   : > { %15984 = vrot.lane.b32.xlu1 %v18379_v10, %s20178_s2 }
0x3193   : > { %15989 = vrot.lane.b32.xlu1 %v18343_v7, %s20179_s1  ;;  %v7332_v7 = vsel %vm682_vm0, %v16399_v47, 0.0 }
0x3195   : > { %15979 = vrot.lane.b32.xlu0 %v18377_v6, %s20178_s2 }
0x3197   : > { %15994 = vrot.lane.b32.xlu1 %v18349_v50, %s20179_s1 }
0x31b4   : > { %7330 = vadd.xlane.f32.xlu0 %v7329_v54 }
0x31bb   : > { %7333 = vadd.xlane.f32.xlu1 %v7332_v7 }
0x31ca   : > { %7452 = vrot.lane.b32.xlu0 %v18358_v40, %s20179_s1 }
0x31cc   : > { %7454 = vrot.lane.b32.xlu1 %v18360_v23, %s20179_s1 }
0x31ce   : > { %7456 = vrot.lane.b32.xlu0 %v18366_v0, %s20179_s1 }
0x31d0   : > { %7458 = vrot.lane.b32.xlu1 %v18371_v57, %s20179_s1 }
0x320b   : > { %v7328_v50 = vpop.xlane.xlu1 %7327 }
0x320c   : > { %v7325_v37 = vpop.xlane.xlu0 %7324 }
0x320d   : > { %16400 = vrcp.f32 %v7325_v37 }
0x320e   : > { %16402 = vrcp.f32 %v7328_v50 }
0x320f   : > { %v15985_v34 = vpop.permute.xlu1 %15984 }
0x3210   : > { %v15980_v52 = vpop.permute.xlu0 %15979  ;;  %v15987_v63 = vunpack.i.h.bf16 %v15985_v34  ;;  %v15986_v13 = vunpack.i.l.bf16 %v15985_v34 }
0x3211   : > { %v15982_v21 = vunpack.i.h.bf16 %v15980_v52  ;;  %v15981_v55 = vunpack.i.l.bf16 %v15980_v52 }
0x3212   : > { %v15423_v2 = vpack.c.bf16 %v15987_v63, %v15986_v13 }
0x3213   : > { %v15990_v40 = vpop.permute.xlu1 %15989  ;;  %v15419_v61 = vpack.c.bf16 %v15982_v21, %v15981_v55 }
0x3214   : > { %v15992_v44 = vunpack.i.h.bf16 %v15990_v40  ;;  %v15991_v23 = vunpack.i.l.bf16 %v15990_v40 }
0x3215   : > { %15420 = vmatprep.subr.bf16.mxu0 %v15419_v61 }
0x3216   : > { %15422 = vmatpush3.bf16.msra.mxu0 %v15419_v61  ;;  %v15427_v54 = vpack.c.bf16 %v15992_v44, %v15991_v23 }
0x3217   : > { %v16401_v0 = vpop.eup %16400  ;;  %15424 = vmatprep.subr.bf16.mxu0 %v15423_v2  ;;  %v15995_v50 = vpop.permute.xlu1 %15994 }
0x3218   : > { %v16403_v57 = vpop.eup %16402  ;;  %v18551_v53 = vmul.f32 %v16401_v0, %v16395_v9  ;;  %v15997_v37 = vunpack.i.h.bf16 %v15995_v50  ;;  %v15996_v34 = vunpack.i.l.bf16 %v15995_v50 }
0x3219   : > { %v18555_v7 = vmul.f32 %v16403_v57, %v16393_v39 }
0x321a   : > { %20214 = vst [vmem:[#allocation47_spill] sm:$0xff] %v18551_v53  ;;  %15426 = vmatpush3.bf16.msra.mxu0 %v15423_v2  ;;  %14489 = vmatprep.mubr.msk.f32.mxu0 %vm682_vm0, %v18551_v53  ;;  %v15433_v52 = vpack.c.bf16 %v15997_v37, %v15996_v34 }
0x321b   : > { %20215 = vst [vmem:[#allocation48_spill] sm:$0xff] %v18555_v7  ;;  %15429 = vmatprep.subr.msk.bf16.mxu0 %vm16818_vm2, %v15427_v54 }
0x321d   : > { %14490 = vmatmul.mubr.msk.f32.vlgmr.msra.gmra.mrb[96].mxu0 %vm682_vm0, %v18555_v7 }
0x3223   : > { %15432 = vmatpush3.bf16.xpose.msk.msra.mxu0 %vm16818_vm2, %v15427_v54 }
0x3224   : > { %15435 = vmatprep.subr.msk.bf16.mxu0 %vm16818_vm2, %v15433_v52 }
0x322b   : > { %15438 = vmatpush3.bf16.xpose.msk.msra.mxu0 %vm16818_vm2, %v15433_v52 }
0x3241   : > { %v7331_v39 = vpop.xlane.xlu0 %7330 }
0x3242   : > { %16404 = vrcp.f32 %v7331_v39 }
0x3245   : > { %v7453_v55 = vpop.permute.xlu0 %7452 }
0x3248   : > { %v7334_v9 = vpop.xlane.xlu1 %7333 }
0x3249   : > { %16406 = vrcp.f32 %v7334_v9  ;;  %v7457_v44 = vpop.permute.xlu0 %7456 }
0x324c   : > { %v16405_v63 = vpop.eup %16404  ;;  %v7455_v61 = vpop.permute.xlu1 %7454 }
0x324d   : > { %v18567_v13 = vmul.f32 %v16405_v63, %v16397_v18 }
0x324f   : > { %20216 = vst [vmem:[#allocation49_spill] sm:$0xff] %v18567_v13  ;;  %14492 = vmatprep.mubr.msk.f32.mxu0 %vm682_vm0, %v18567_v13 }
0x3250   : > { %v7459_v18 = vpop.permute.xlu1 %7458 }
0x3253   : > { %v16407_v21 = vpop.eup %16406 }
0x3254   : > { %v18571_v40 = vmul.f32 %v16407_v21, %v16399_v47 }
0x3256   : > { %20217 = vst [vmem:[#allocation50_spill] sm:$0xff] %v18571_v40  ;;  %14493 = vmatmul.mubr.msk.f32.gmra.mrb[98].mxu0 %vm682_vm0, %v18571_v40 }
0x3257   : > { %14503 = vmatprep.mubr.msk.f32.mxu0 %vm968_vm1, %v7453_v55 }
0x325a   : > { %14504 = vmatmul.mubr.msk.f32.vlgmr.msra.gmra.mrb[100].mxu0 %vm968_vm1, %v7455_v61 }
0x325b   : > { %14506 = vmatprep.mubr.msk.f32.mxu0 %vm968_vm1, %v7457_v44 }
0x325e   : > { %14507 = vmatmul.mubr.msk.f32.gmra.mrb[102].mxu0 %vm968_vm1, %v7459_v18 }
0x32f0   : > { %v14491_v23 = vpop.f32.mrb[96].mxu0 }
0x32f1   : > { %v7433_v2 = vpop.f32.mrb[97].mxu0 }
0x3329   : > { %v14494_v0 = vpop.f32.mrb[98].mxu0 }
0x332a   : > { %v7443_v57 = vpop.f32.mrb[99].mxu0 }
0x332d   : > { %v14505_v47 = vpop.f32.mrb[100].mxu0 }
0x332e   : > { %v7570_v54 = vmul.f32 0.35355338, %v14505_v47  ;;  %v7550_v50 = vpop.f32.mrb[101].mxu0 }
0x332f   : > { %v7569_v37 = vmul.f32 0.35355338, %v7550_v50 }
0x3330   : > { %v7574_v34 = vadd.f32 %v7570_v54, %v18388_v22 }
0x3331   : > { %v7573_v52 = vadd.f32 %v7569_v37, %v18391_v14  ;;  %v14508_v39 = vpop.f32.mrb[102].mxu0 }
0x3332   : > { %v7560_v9 = vpop.f32.mrb[103].mxu0  ;;  %v7580_v63 = vsel %vm682_vm0, %v7574_v34, -inf  ;;  %v7572_v21 = vmul.f32 0.35355338, %v14508_v39 }
0x3333   : > { %v7571_v55 = vmul.f32 0.35355338, %v7560_v9  ;;  %7581 = vmax.xlane.f32.xlu1 %v7580_v63  ;;  %v7577_v61 = vsel %vm682_vm0, %v7573_v52, -inf }
0x3334   : > { %7578 = vmax.xlane.f32.xlu0 %v7577_v61  ;;  %v7576_v18 = vadd.f32 %v7572_v21, %v18398_v45 }
0x3335   : > { %v7575_v44 = vadd.f32 %v7571_v55, %v18401_v16 }
0x3336   : > { %v7586_v22 = vsel %vm682_vm0, %v7576_v18, -inf }
0x3337   : > { %v7583_v47 = vsel %vm682_vm0, %v7575_v44, -inf }
0x3338   : > { %7584 = vmax.xlane.f32.xlu0 %v7583_v47 }
0x333c   : > { %7587 = vmax.xlane.f32.xlu0 %v7586_v22 }
0x33c0   : > { %v7582_v14 = vpop.xlane.xlu1 %7581 }
0x33c1   : > { %v7590_v54 = vsub.f32 %v7574_v34, %v7582_v14  ;;  %v7579_v50 = vpop.xlane.xlu0 %7578 }
0x33c2   : > { %v7589_v37 = vsub.f32 %v7573_v52, %v7579_v50 }
0x33c3   : > { %v7595_v39 = vmul.f32 1.442695, %v7590_v54 }
0x33c4   : > { %v7593_v9 = vmul.f32 1.442695, %v7589_v37 }
0x33c5   : > { %16408 = vpow2.f32 %v7595_v39  ;;  %v7585_v63 = vpop.xlane.xlu0 %7584 }
0x33c6   : > { %16410 = vpow2.f32 %v7593_v9  ;;  %v7591_v61 = vsub.f32 %v7575_v44, %v7585_v63 }
0x33c8   : > { %v7597_v40 = vmul.f32 1.442695, %v7591_v61 }
0x33c9   : > { %v7588_v16 = vpop.xlane.xlu0 %7587 }
0x33ca   : > { %16412 = vpow2.f32 %v7597_v40  ;;  %v7592_v45 = vsub.f32 %v7576_v18, %v7588_v16 }
0x33cc   : > { %v7599_v21 = vmul.f32 1.442695, %v7592_v45 }
0x33ce   : > { %16414 = vpow2.f32 %v7599_v21  ;;  %v12869_v21 = vld [vmem:[%s20060_s8 + $0x60] sm:$0xff] }
0x33cf   : > { %v16409_v55 = vpop.eup %16408 }
0x33d0   : > { %v16411_v47 = vpop.eup %16410  ;;  %v7604_v22 = vsel %vm682_vm0, %v16409_v55, 0.0 }
0x33d1   : > { %7605 = vadd.xlane.f32.xlu1 %v7604_v22  ;;  %v7601_v34 = vsel %vm682_vm0, %v16411_v47, 0.0 }
0x33d2   : > { %7602 = vadd.xlane.f32.xlu0 %v7601_v34  ;;  %v12872_v34 = vld [vmem:[%s20060_s8 + $0x78] sm:$0xff] }
0x33d4   : > { %v16413_v52 = vpop.eup %16412 }
0x33d5   : > { %v7607_v14 = vsel %vm682_vm0, %v16413_v52, 0.0 }
0x33d6   : > { %7608 = vadd.xlane.f32.xlu0 %v7607_v14 }
0x33d8   : > { %v16415_v54 = vpop.eup %16414 }
0x33d9   : > { %v7610_v44 = vsel %vm682_vm0, %v16415_v54, 0.0 }
0x33da   : > { %7611 = vadd.xlane.f32.xlu1 %v7610_v44 }
0x33eb   : > { %16004 = vrot.lane.b32.xlu1 %v18379_v10, %s20179_s1 }
0x33ec   : > { %15999 = vrot.lane.b32.xlu0 %v18377_v6, %s20179_s1 }
0x33ef   : > { %7782 = vrot.lane.b32.xlu1 %v18517_v42, %s20181_s19 }
0x33f0   : > { %7798 = vrot.lane.b32.xlu0 %v7433_v2, %s20182_s20 }
0x33f3   : > { %7784 = vrot.lane.b32.xlu1 %v18515_v12, %s20181_s19 }
0x33f4   : > { %7786 = vrot.lane.b32.xlu0 %v18521_v5, %s20181_s19 }
0x33f7   : > { %7800 = vrot.lane.b32.xlu1 %v14491_v23, %s20182_s20 }
0x33f8   : > { %7802 = vrot.lane.b32.xlu0 %v7443_v57, %s20182_s20 }
0x33fb   : > { %7788 = vrot.lane.b32.xlu1 %v18519_v29, %s20181_s19 }
0x33ff   : > { %7804 = vrot.lane.b32.xlu1 %v14494_v0, %s20182_s20 }
0x345e   : > { %v7606_v10 = vpop.xlane.xlu1 %7605 }
0x345f   : > { %v7603_v6 = vpop.xlane.xlu0 %7602 }
0x3460   : > { %16416 = vrcp.f32 %v7603_v6 }
0x3461   : > { %16418 = vrcp.f32 %v7606_v10 }
0x3463   : > { %v7609_v42 = vpop.xlane.xlu0 %7608 }
0x3464   : > { %16420 = vrcp.f32 %v7609_v42 }
0x3467   : > { %v7612_v40 = vpop.xlane.xlu1 %7611  ;;  %v16000_v12 = vpop.permute.xlu0 %15999 }
0x3468   : > { %v16002_v2 = vunpack.i.h.bf16 %v16000_v12  ;;  %v16001_v18 = vunpack.i.l.bf16 %v16000_v12  ;;  %16422 = vrcp.f32 %v7612_v40 }
0x346a   : > { %v16417_v5 = vpop.eup %16416  ;;  %v15439_v23 = vpack.c.bf16 %v16002_v2, %v16001_v18 }
0x346b   : > { %v16005_v50 = vpop.permute.xlu1 %16004  ;;  %v18607_v57 = vmul.f32 %v16417_v5, %v16411_v47  ;;  %v16419_v39 = vpop.eup %16418  ;;  %v12871_v47 = vld [vmem:[%s20060_s8 + $0x70] sm:$0xff] }
0x346c   : > { %v16007_v37 = vunpack.i.h.bf16 %v16005_v50  ;;  %v16006_v29 = vunpack.i.l.bf16 %v16005_v50  ;;  %15440 = vmatprep.subr.bf16.mxu1 %v15439_v23  ;;  %v18611_v63 = vmul.f32 %v16419_v39, %v16409_v55  ;;  %v12870_v55 = vld [vmem:[%s20060_s8 + $0x68] sm:$0xff]  ;;  %v7799_v12 = vpop.permute.xlu0 %7798 }
0x346d   : > { %20218 = vst [vmem:[#allocation51_spill] sm:$0xff] %v18607_v57  ;;  %15442 = vmatpush3.bf16.msra.mxu1 %v15439_v23  ;;  %14517 = vmatprep.mubr.msk.f32.mxu1 %vm682_vm0, %v18607_v57  ;;  %v15447_v22 = vpack.c.bf16 %v12870_v55, %v12869_v21 }
0x346e   : > { %v15443_v0 = vpack.c.bf16 %v16007_v37, %v16006_v29  ;;  %v16421_v9 = vpop.eup %16420  ;;  %20219 = vst [vmem:[#allocation52_spill] sm:$0xff] %v18611_v63 }
0x346f   : > { %v18613_v16 = vmul.f32 %v16421_v9, %v16413_v52  ;;  %v15451_v52 = vpack.c.bf16 %v12872_v34, %v12871_v47  ;;  %v7783_v10 = vpop.permute.xlu1 %7782 }
0x3470   : > { %15444 = vmatprep.subr.bf16.mxu1 %v15443_v0  ;;  %v7787_v18 = vpop.permute.xlu0 %7786  ;;  %v7826_v50 = vsel %vm968_vm1, %v18453_v56, %v7783_v10 }
0x3471   : > { %15446 = vmatpush3.bf16.msra.mxu1 %v15443_v0  ;;  %20220 = vst [vmem:[#allocation53_spill] sm:$0xff] %v18613_v16  ;;  %v7830_v0 = vsel %vm2167_vm3, %v7826_v50, %v7799_v12  ;;  %v7828_v55 = vsel %vm968_vm1, %v18457_v11, %v7787_v18  ;;  %v12873_v11 = vld [vmem:[%s20063_s11 + $0x15] ss:$0 sm:$0xff] }
0x3472   : > { %v16423_v61 = vpop.eup %16422  ;;  %15448 = vmatprep.subr.bf16.mxu1 %v15447_v22 }
0x3473   : > { %v18619_v45 = vmul.f32 %v16423_v61, %v16415_v54  ;;  %v7785_v42 = vpop.permute.xlu1 %7784 }
0x3474   : > { %14518 = vmatmul.mubr.msk.f32.vlgmr.msra.gmra.mrb[96].mxu1 %vm682_vm0, %v18611_v63  ;;  %v7803_v23 = vpop.permute.xlu0 %7802  ;;  %v7827_v29 = vsel %vm968_vm1, %v18451_v43, %v7785_v42 }
0x3475   : > { %14520 = vmatprep.mubr.msk.f32.mxu1 %vm682_vm0, %v18613_v16  ;;  %20221 = vst [vmem:[#allocation54_spill] sm:$0xff] %v18619_v45  ;;  %15450 = vmatpush3.bf16.msra.mxu1 %v15447_v22  ;;  %v7832_v47 = vsel %vm2167_vm3, %v7828_v55, %v7803_v23 }
0x3476   : > { %15452 = vmatprep.subr.bf16.mxu1 %v15451_v52 }
0x3477   : > { %v7801_v40 = vpop.permute.xlu1 %7800 }
0x3478   : > { %14521 = vmatmul.mubr.msk.f32.gmra.mrb[98].mxu1 %vm682_vm0, %v18619_v45  ;;  %v7831_v9 = vsel %vm2167_vm3, %v7827_v29, %v7801_v40 }
0x3479   : > { %15454 = vmatpush3.bf16.msra.mxu1 %v15451_v52 }
0x347b   : > { %v7789_v2 = vpop.permute.xlu1 %7788 }
0x347c   : > { %v7829_v43 = vsel %vm968_vm1, %v18455_v8, %v7789_v2 }
0x347f   : > { %v7805_v5 = vpop.permute.xlu1 %7804 }
0x3480   : > { %v7833_v34 = vsel %vm2167_vm3, %v7829_v43, %v7805_v5 }
0x3547   : > { %v14519_v14 = vpop.f32.mrb[96].mxu1 }
0x3548   : > { %7816 = vrot.lane.b32.xlu1 %v14519_v14, %s20187_s28  ;;  %v7711_v54 = vpop.f32.mrb[97].mxu1 }
0x3549   : > { %7814 = vrot.lane.b32.xlu0 %v7711_v54, %s20187_s28 }
0x354b   : > { %v14522_v44 = vpop.f32.mrb[98].mxu1 }
0x354c   : > { %7820 = vrot.lane.b32.xlu1 %v14522_v44, %s20187_s28  ;;  %v7721_v6 = vpop.f32.mrb[99].mxu1 }
0x354d   : > { %7818 = vrot.lane.b32.xlu0 %v7721_v6, %s20187_s28 }
0x35ba   : > { %v7817_v37 = vpop.permute.xlu1 %7816 }
0x35bb   : > { %v7815_v39 = vpop.permute.xlu0 %7814  ;;  %v7835_v21 = vsel %vm2172_vm4, %v7831_v9, %v7817_v37 }
0x35bc   : > { %v7834_v61 = vsel %vm2172_vm4, %v7830_v0, %v7815_v39 }
0x35bd   : > { %14531 = vmatprep.mubr.msk.f32.mxu1 %vm682_vm0, %v7834_v61 }
0x35be   : > { %14532 = vmatmul.mubr.msk.f32.vlgmr.msra.gmra.mrb[100].mxu1 %vm682_vm0, %v7835_v21  ;;  %v7821_v56 = vpop.permute.xlu1 %7820 }
0x35bf   : > { %v7819_v22 = vpop.permute.xlu0 %7818  ;;  %v7837_v14 = vsel %vm2172_vm4, %v7833_v34, %v7821_v56 }
0x35c0   : > { %v7836_v52 = vsel %vm2172_vm4, %v7832_v47, %v7819_v22 }
0x35c1   : > { %14534 = vmatprep.mubr.msk.f32.mxu1 %vm682_vm0, %v7836_v52 }
0x35c2   : > { %14535 = vmatmul.mubr.msk.f32.gmra.mrb[102].mxu1 %vm682_vm0, %v7837_v14 }
0x3691   : > { %v14533_v54 = vpop.f32.mrb[100].mxu1 }
0x3692   : > { %v7932_v44 = vadd.f32 %v14533_v54, %v12873_v11  ;;  %v7926_v6 = vpop.f32.mrb[101].mxu1 }
0x3693   : > { %v7927_v10 = vadd.f32 %v12873_v11, %v7926_v6 }
0x3694   : > { %v7946_v8 = vadd.f32 %v7932_v44, %v18316_v28 }
0x3695   : > { %v7945_v42 = vadd.f32 %v7927_v10, %v18314_v46  ;;  %v14536_v40 = vpop.f32.mrb[102].mxu1  ;;  %v12880_v10 = vld [vmem:[%s20061_s9 + $0x40] sm:$0xff] }
0x3696   : > { %v7936_v12 = vpop.f32.mrb[103].mxu1  ;;  %v7954_v2 = vsel %vm682_vm0, %v7946_v8, 0.0  ;;  %v7942_v18 = vadd.f32 %v14536_v40, %v12873_v11  ;;  %v12882_v40 = vld [vmem:[%s20061_s9 + $0x50] sm:$0xff] }
0x3697   : > { %v7937_v5 = vadd.f32 %v12873_v11, %v7936_v12  ;;  %7955 = vadd.xlane.f32.xlu1 %v7954_v2  ;;  %v7951_v23 = vsel %vm682_vm0, %v7945_v42, 0.0  ;;  %v12883_v12 = vld [vmem:[%s20061_s9 + $0x58] sm:$0xff] }
0x3698   : > { %7952 = vadd.xlane.f32.xlu0 %v7951_v23  ;;  %v7948_v37 = vadd.f32 %v7942_v18, %v18326_v60  ;;  %v15459_v2 = vpack.c.bf16 %v12883_v12, %v12882_v40  ;;  %v12889_v18 = vld [vmem:[%s20062_s10 + $0x80] sm:$0xff]  ;;  %v12891_v23 = vld [vmem:[%s20062_s10 + $0x90] sm:$0xff] }
0x3699   : > { %v7947_v50 = vadd.f32 %v7937_v5, %v18324_v59  ;;  %v12890_v5 = vld [vmem:[%s20062_s10 + $0x88] sm:$0xff]  ;;  %v12879_v40 = vld [vmem:[%s20063_s11 + $0x17] ss:$0 sm:$0xff] }
0x369a   : > { %v7960_v28 = vsel %vm682_vm0, %v7948_v37, 0.0 }
0x369b   : > { %v7957_v29 = vsel %vm682_vm0, %v7947_v50, 0.0 }
0x369c   : > { %7958 = vadd.xlane.f32.xlu0 %v7957_v29 }
0x36a0   : > { %7961 = vadd.xlane.f32.xlu0 %v7960_v28  ;;  %v12893_v28 = vld [vmem:[%s20062_s10 + $0xa0] sm:$0xff] }
0x3724   : > { %v7956_v46 = vpop.xlane.xlu1 %7955 }
0x3725   : > { %v7964_v0 = vmul.f32 0.03125, %v7956_v46  ;;  %v7953_v39 = vpop.xlane.xlu0 %7952  ;;  %v12894_v46 = vld [vmem:[%s20062_s10 + $0xa8] sm:$0xff] }
0x3726   : > { %v7963_v9 = vmul.f32 0.03125, %v7953_v39 }
0x3727   : > { %v18670_v61 = vsub.f32 %v7946_v8, %v7964_v0  ;;  %v12881_v8 = vld [vmem:[%s20061_s9 + $0x48] sm:$0xff]  ;;  %v15471_v0 = vpack.c.bf16 %v12894_v46, %v12893_v28 }
0x3728   : > { %v18672_v21 = vsub.f32 %v7945_v42, %v7963_v9  ;;  %v15455_v42 = vpack.c.bf16 %v12881_v8, %v12880_v10 }
0x3729   : > { %v7959_v55 = vpop.xlane.xlu0 %7958  ;;  %v7972_v59 = vmul.f32 %v18670_v61, %v18670_v61 }
0x372a   : > { %v7965_v56 = vmul.f32 0.03125, %v7959_v55  ;;  %v7971_v60 = vmul.f32 %v18672_v21, %v18672_v21  ;;  %15456 = vmatprep.subr.bf16.mxu0 %v15455_v42 }
0x372b   : > { %v7978_v47 = vsel %vm682_vm0, %v7972_v59, 0.0  ;;  %15458 = vmatpush3.bf16.msra.mxu0 %v15455_v42 }
0x372c   : > { %v18679_v43 = vsub.f32 %v7947_v50, %v7965_v56  ;;  %7979 = vadd.xlane.f32.xlu1 %v7978_v47  ;;  %v7975_v22 = vsel %vm682_vm0, %v7971_v60, 0.0  ;;  %15460 = vmatprep.subr.bf16.mxu0 %v15459_v2  ;;  %v15463_v50 = vpack.c.bf16 %v12890_v5, %v12889_v18 }
0x372d   : > { %7976 = vadd.xlane.f32.xlu0 %v7975_v22  ;;  %v7962_v34 = vpop.xlane.xlu0 %7961 }
0x372e   : > { %v7966_v52 = vmul.f32 0.03125, %v7962_v34  ;;  %v7973_v14 = vmul.f32 %v18679_v43, %v18679_v43  ;;  %15464 = vmatprep.subr.bf16.mxu1 %v15463_v50 }
0x372f   : > { %15462 = vmatpush3.bf16.msra.mxu0 %v15459_v2  ;;  %15466 = vmatpush3.bf16.msra.mxu1 %v15463_v50 }
0x3730   : > { %v18684_v11 = vsub.f32 %v7948_v37, %v7966_v52  ;;  %v7981_v54 = vsel %vm682_vm0, %v7973_v14, 0.0  ;;  %v12892_v37 = vld [vmem:[%s20062_s10 + $0x98] sm:$0xff] }
0x3731   : > { %7982 = vadd.xlane.f32.xlu0 %v7981_v54  ;;  %v15467_v29 = vpack.c.bf16 %v12892_v37, %v12891_v23 }
0x3732   : > { %v7974_v44 = vmul.f32 %v18684_v11, %v18684_v11 }
0x3733   : > { %15468 = vmatprep.subr.bf16.mxu1 %v15467_v29 }
0x3734   : > { %v7984_v6 = vsel %vm682_vm0, %v7974_v44, 0.0  ;;  %15470 = vmatpush3.bf16.msra.mxu1 %v15467_v29 }
0x3735   : > { %7985 = vadd.xlane.f32.xlu1 %v7984_v6  ;;  %15472 = vmatprep.subr.bf16.mxu1 %v15471_v0  ;;  %v12878_v6 = vld [vmem:[%s20063_s11 + $0x16] ss:$0 sm:$0xff] }
0x3738   : > { %15474 = vmatpush3.bf16.msra.mxu1 %v15471_v0  ;;  %v12896_v0 = vld [vmem:[%s20062_s10 + $0xb8] sm:$0xff] }
0x37b9   : > { %v7980_v39 = vpop.xlane.xlu1 %7979 }
0x37ba   : > { %v7988_v9 = vmul.f32 0.03125, %v7980_v39  ;;  %v7977_v55 = vpop.xlane.xlu0 %7976 }
0x37bb   : > { %v7987_v59 = vmul.f32 0.03125, %v7977_v55 }
0x37bc   : > { %v7992_v56 = vadd.f32 1e-05, %v7988_v9 }
0x37bd   : > { %v7991_v60 = vadd.f32 1e-05, %v7987_v59 }
0x37be   : > { %16424 = vrsqrt.f32 %v7992_v56  ;;  %v7983_v47 = vpop.xlane.xlu0 %7982 }
0x37bf   : > { %16426 = vrsqrt.f32 %v7991_v60  ;;  %v7989_v22 = vmul.f32 0.03125, %v7983_v47 }
0x37c1   : > { %v7993_v34 = vadd.f32 1e-05, %v7989_v22 }
0x37c2   : > { %v7986_v52 = vpop.xlane.xlu1 %7985 }
0x37c3   : > { %16428 = vrsqrt.f32 %v7993_v34  ;;  %v7990_v14 = vmul.f32 0.03125, %v7986_v52 }
0x37c5   : > { %v7994_v54 = vadd.f32 1e-05, %v7990_v14 }
0x37c7   : > { %16430 = vrsqrt.f32 %v7994_v54 }
0x37c8   : > { %v16425_v44 = vpop.eup %16424 }
0x37c9   : > { %v16427_v10 = vpop.eup %16426  ;;  %v8000_v8 = vmul.f32 %v16425_v44, %v18670_v61 }
0x37ca   : > { %v7999_v42 = vmul.f32 %v16427_v10, %v18672_v21 }
0x37cb   : > { %v8008_v12 = vmul.f32 %v12878_v6, %v8000_v8 }
0x37cc   : > { %v8007_v2 = vmul.f32 %v12878_v6, %v7999_v42 }
0x37cd   : > { %v16429_v18 = vpop.eup %16428  ;;  %v8016_v50 = vadd.f32 %v12879_v40, %v8008_v12 }
0x37ce   : > { %v8015_v5 = vadd.f32 %v12879_v40, %v8007_v2  ;;  %v8001_v23 = vmul.f32 %v16429_v18, %v18679_v43  ;;  %v12895_v43 = vld [vmem:[%s20062_s10 + $0xb0] sm:$0xff] }
0x37cf   : > { %v15475_v39 = vpack.c.bf16 %v12896_v0, %v12895_v43 }
0x37d0   : > { %14545 = vmatprep.mubr.msk.f32.mxu0 %vm682_vm0, %v8015_v5  ;;  %v8009_v37 = vmul.f32 %v12878_v6, %v8001_v23 }
0x37d1   : > { %v16431_v29 = vpop.eup %16430  ;;  %14546 = vmatmul.mubr.msk.f32.vlgmr.msra.gmra.mrb[104].mxu0 %vm682_vm0, %v8016_v50  ;;  %15476 = vmatprep.subr.bf16.mxu1 %v15475_v39 }
0x37d2   : > { %v8017_v61 = vadd.f32 %v12879_v40, %v8009_v37  ;;  %v8002_v21 = vmul.f32 %v16431_v29, %v18684_v11  ;;  %15478 = vmatpush3.bf16.msra.mxu1 %v15475_v39  ;;  %v12884_v11 = vld [vmem:[%s20064_s12 + $0x2] ss:$0 sm:$0xff] }
0x37d4   : > { %14548 = vmatprep.mubr.msk.f32.mxu0 %vm682_vm0, %v8017_v61  ;;  %v8010_v28 = vmul.f32 %v12878_v6, %v8002_v21  ;;  %v12897_v6 = vld [vmem:[%s20063_s11 + $0x2a] ss:$0 sm:$0xff] }
0x37d6   : > { %v8018_v46 = vadd.f32 %v12879_v40, %v8010_v28 }
0x37d8   : > { %14549 = vmatmul.mubr.msk.f32.gmra.mrb[106].mxu0 %vm682_vm0, %v8018_v46 }
0x38a4   : > { %v14547_v9 = vpop.f32.mrb[104].mxu0 }
0x38a5   : > { %v8117_v55 = vadd.f32 %v14547_v9, %v12884_v11  ;;  %v8111_v59 = vpop.f32.mrb[105].mxu0 }
0x38a6   : > { %v8112_v56 = vadd.f32 %v12884_v11, %v8111_v59 }
0x38a7   : > { %v8131_v47 = vmax.f32 %v8117_v55, 0.0 }
0x38a8   : > { %v8130_v60 = vmax.f32 %v8112_v56, 0.0 }
0x38aa   : > { %14567 = vmatprep.mubr.msk.f32.mxu1 %vm2105_vm5, %v8130_v60 }
0x38ab   : > { %v14550_v22 = vpop.f32.mrb[106].mxu0  ;;  %14568 = vmatmul.mubr.msk.f32.vlgmr.msra.gmra.mrb[104].mxu1 %vm2105_vm5, %v8131_v47 }
0x38ac   : > { %v8127_v34 = vadd.f32 %v14550_v22, %v12884_v11  ;;  %v8121_v52 = vpop.f32.mrb[107].mxu0 }
0x38ad   : > { %v8122_v14 = vadd.f32 %v12884_v11, %v8121_v52 }
0x38ae   : > { %v8133_v44 = vmax.f32 %v8127_v34, 0.0 }
0x38af   : > { %v8132_v54 = vmax.f32 %v8122_v14, 0.0 }
0x38b1   : > { %14570 = vmatprep.mubr.msk.f32.mxu1 %vm2105_vm5, %v8132_v54 }
0x38b2   : > { %14571 = vmatmul.mubr.msk.f32.gmra.mrb[106].mxu1 %vm2105_vm5, %v8133_v44 }
0x397e   : > { %v14569_v10 = vpop.f32.mrb[104].mxu1 }
0x397f   : > { %v8232_v8 = vadd.f32 %v14569_v10, %v12897_v6  ;;  %v8226_v42 = vpop.f32.mrb[105].mxu1 }
0x3980   : > { %v8227_v40 = vadd.f32 %v12897_v6, %v8226_v42 }
0x3981   : > { %v8246_v12 = vadd.f32 %v8232_v8, %v8016_v50 }
0x3982   : > { %v8245_v2 = vadd.f32 %v8227_v40, %v8015_v5  ;;  %v12904_v40 = vld [vmem:[%s20057_s5 + $0x80] sm:$0xff] }
0x3983   : > { %v8254_v18 = vsel %vm682_vm0, %v8246_v12, 0.0 }
0x3984   : > { %8255 = vadd.xlane.f32.xlu1 %v8254_v18  ;;  %v8251_v23 = vsel %vm682_vm0, %v8245_v2, 0.0 }
0x3985   : > { %8252 = vadd.xlane.f32.xlu0 %v8251_v23  ;;  %v14572_v37 = vpop.f32.mrb[106].mxu1  ;;  %v12923_v23 = vld [vmem:[%s20059_s7 + $0x88] sm:$0xff] }
0x3986   : > { %v8242_v29 = vadd.f32 %v14572_v37, %v12897_v6  ;;  %v8236_v21 = vpop.f32.mrb[107].mxu1 }
0x3987   : > { %v8237_v28 = vadd.f32 %v12897_v6, %v8236_v21  ;;  %v12907_v21 = vld [vmem:[%s20057_s5 + $0x98] sm:$0xff] }
0x3988   : > { %v8248_v43 = vadd.f32 %v8242_v29, %v8018_v46  ;;  %v12906_v29 = vld [vmem:[%s20057_s5 + $0x90] sm:$0xff] }
0x3989   : > { %v8247_v0 = vadd.f32 %v8237_v28, %v8017_v61  ;;  %v12924_v28 = vld [vmem:[%s20059_s7 + $0x90] sm:$0xff] }
0x398a   : > { %v8260_v39 = vsel %vm682_vm0, %v8248_v43, 0.0 }
0x398b   : > { %8261 = vadd.xlane.f32.xlu1 %v8260_v39  ;;  %v8257_v11 = vsel %vm682_vm0, %v8247_v0, 0.0 }
0x398c   : > { %8258 = vadd.xlane.f32.xlu0 %v8257_v11  ;;  %v12913_v11 = vld [vmem:[%s20058_s6 + $0x80] sm:$0xff] }
0x3a11   : > { %v8256_v50 = vpop.xlane.xlu1 %8255 }
0x3a12   : > { %v8264_v5 = vmul.f32 0.03125, %v8256_v50  ;;  %v8253_v9 = vpop.xlane.xlu0 %8252  ;;  %v12914_v50 = vld [vmem:[%s20058_s6 + $0x88] sm:$0xff] }
0x3a13   : > { %v8263_v55 = vmul.f32 0.03125, %v8253_v9 }
0x3a14   : > { %v18754_v59 = vsub.f32 %v8246_v12, %v8264_v5  ;;  %v12905_v12 = vld [vmem:[%s20057_s5 + $0x88] sm:$0xff]  ;;  %v15487_v5 = vpack.c.bf16 %v12914_v50, %v12913_v11 }
0x3a15   : > { %v18756_v56 = vsub.f32 %v8245_v2, %v8263_v55  ;;  %v12922_v2 = vld [vmem:[%s20059_s7 + $0x80] sm:$0xff]  ;;  %v15479_v18 = vpack.c.bf16 %v12905_v12, %v12904_v40 }
0x3a16   : > { %v8272_v60 = vmul.f32 %v18754_v59, %v18754_v59  ;;  %v15495_v37 = vpack.c.bf16 %v12923_v23, %v12922_v2 }
0x3a17   : > { %v8271_v61 = vmul.f32 %v18756_v56, %v18756_v56  ;;  %15480 = vmatprep.subr.bf16.mxu0 %v15479_v18 }
0x3a18   : > { %v8262_v46 = vpop.xlane.xlu1 %8261  ;;  %v8278_v47 = vsel %vm682_vm0, %v8272_v60, 0.0  ;;  %15496 = vmatprep.subr.bf16.mxu1 %v15495_v37  ;;  %15482 = vmatpush3.bf16.msra.mxu0 %v15479_v18  ;;  %v12903_v18 = vld [vmem:[%s20063_s11 + $0x2c] ss:$0 sm:$0xff] }
0x3a19   : > { %v8266_v22 = vmul.f32 0.03125, %v8262_v46  ;;  %8279 = vadd.xlane.f32.xlu1 %v8278_v47  ;;  %v8259_v34 = vpop.xlane.xlu0 %8258  ;;  %v8275_v52 = vsel %vm682_vm0, %v8271_v61, 0.0  ;;  %15498 = vmatpush3.bf16.msra.mxu1 %v15495_v37 }
0x3a1a   : > { %v8265_v14 = vmul.f32 0.03125, %v8259_v34  ;;  %8276 = vadd.xlane.f32.xlu0 %v8275_v52 }
0x3a1b   : > { %v18764_v54 = vsub.f32 %v8248_v43, %v8266_v22  ;;  %v15483_v43 = vpack.c.bf16 %v12907_v21, %v12906_v29  ;;  %v12915_v29 = vld [vmem:[%s20058_s6 + $0x90] sm:$0xff]  ;;  %v12916_v21 = vld [vmem:[%s20058_s6 + $0x98] sm:$0xff] }
0x3a1c   : > { %v18766_v44 = vsub.f32 %v8247_v0, %v8265_v14  ;;  %v12925_v0 = vld [vmem:[%s20059_s7 + $0x98] sm:$0xff] }
0x3a1d   : > { %v8274_v6 = vmul.f32 %v18764_v54, %v18764_v54  ;;  %v15499_v39 = vpack.c.bf16 %v12925_v0, %v12924_v28  ;;  %15484 = vmatprep.subr.bf16.mxu0 %v15483_v43 }
0x3a1e   : > { %v8273_v10 = vmul.f32 %v18766_v44, %v18766_v44  ;;  %15486 = vmatpush3.bf16.msra.mxu0 %v15483_v43 }
0x3a1f   : > { %v8284_v8 = vsel %vm682_vm0, %v8274_v6, 0.0  ;;  %15500 = vmatprep.subr.bf16.mxu1 %v15499_v39  ;;  %15488 = vmatprep.subr.bf16.mxu0 %v15487_v5 }
0x3a20   : > { %8285 = vadd.xlane.f32.xlu1 %v8284_v8  ;;  %v8281_v42 = vsel %vm682_vm0, %v8273_v10, 0.0  ;;  %15502 = vmatpush3.bf16.msra.mxu1 %v15499_v39 }
0x3a21   : > { %8282 = vadd.xlane.f32.xlu0 %v8281_v42  ;;  %v12902_v42 = vld [vmem:[%s20063_s11 + $0x2b] ss:$0 sm:$0xff] }
0x3aa6   : > { %v8280_v9 = vpop.xlane.xlu1 %8279 }
0x3aa7   : > { %v8288_v55 = vmul.f32 0.03125, %v8280_v9  ;;  %v8277_v60 = vpop.xlane.xlu0 %8276 }
0x3aa8   : > { %v8287_v61 = vmul.f32 0.03125, %v8277_v60 }
0x3aa9   : > { %v8292_v46 = vadd.f32 1e-05, %v8288_v55 }
0x3aaa   : > { %v8291_v47 = vadd.f32 1e-05, %v8287_v61 }
0x3aab   : > { %16432 = vrsqrt.f32 %v8292_v46 }
0x3aac   : > { %16434 = vrsqrt.f32 %v8291_v47 }
0x3aad   : > { %v8286_v22 = vpop.xlane.xlu1 %8285 }
0x3aae   : > { %v8290_v34 = vmul.f32 0.03125, %v8286_v22  ;;  %v8283_v52 = vpop.xlane.xlu0 %8282 }
0x3aaf   : > { %v8289_v14 = vmul.f32 0.03125, %v8283_v52 }
0x3ab0   : > { %v8294_v6 = vadd.f32 1e-05, %v8290_v34 }
0x3ab1   : > { %v8293_v10 = vadd.f32 1e-05, %v8289_v14 }
0x3ab2   : > { %16436 = vrsqrt.f32 %v8294_v6 }
0x3ab3   : > { %16438 = vrsqrt.f32 %v8293_v10 }
0x3ab5   : > { %v16433_v8 = vpop.eup %16432 }
0x3ab6   : > { %v16435_v40 = vpop.eup %16434  ;;  %v8300_v12 = vmul.f32 %v16433_v8, %v18754_v59 }
0x3ab7   : > { %v8299_v2 = vmul.f32 %v16435_v40, %v18756_v56  ;;  %v15491_v56 = vpack.c.bf16 %v12916_v21, %v12915_v29 }
0x3ab8   : > { %v8308_v23 = vmul.f32 %v12902_v42, %v8300_v12 }
0x3ab9   : > { %v8307_v37 = vmul.f32 %v12902_v42, %v8299_v2 }
0x3aba   : > { %v18820_v59 = vadd.f32 %v12903_v18, %v8308_v23 }
0x3abb   : > { %v18818_v28 = vadd.f32 %v12903_v18, %v8307_v37 }
0x3abc   : > { %v16437_v43 = vpop.eup %16436 }
0x3abd   : > { %v16439_v0 = vpop.eup %16438  ;;  %14581 = vmatprep.mubr.msk.f32.mxu0 %vm682_vm0, %v18818_v28  ;;  %14609 = vmatprep.mubr.msk.f32.mxu1 %vm682_vm0, %v18818_v28  ;;  %v8302_v39 = vmul.f32 %v16437_v43, %v18764_v54  ;;  %v12926_v54 = vld [vmem:[%s20063_s11 + $0x1a] ss:$0 sm:$0xff] }
0x3abe   : > { %14582 = vmatmul.mubr.msk.f32.vlgmr.msra.gmra.mrb[108].mxu0 %vm682_vm0, %v18820_v59  ;;  %14610 = vmatmul.mubr.msk.f32.vlgmr.msra.gmra.mrb[108].mxu1 %vm682_vm0, %v18820_v59  ;;  %v8301_v11 = vmul.f32 %v16439_v0, %v18766_v44  ;;  %v12908_v44 = vld [vmem:[%s20063_s11 + $0x18] ss:$0 sm:$0xff] }
0x3abf   : > { %15490 = vmatpush3.bf16.msra.mxu0 %v15487_v5  ;;  %v8310_v50 = vmul.f32 %v12902_v42, %v8302_v39 }
0x3ac0   : > { %v8309_v9 = vmul.f32 %v12902_v42, %v8301_v11  ;;  %15492 = vmatprep.subr.bf16.mxu0 %v15491_v56 }
0x3ac1   : > { %v18834_v60 = vadd.f32 %v12903_v18, %v8310_v50 }
0x3ac2   : > { %v18832_v55 = vadd.f32 %v12903_v18, %v8309_v9  ;;  %v12917_v18 = vld [vmem:[%s20063_s11 + $0x19] ss:$0 sm:$0xff] }
0x3ac3   : > { %15494 = vmatpush3.bf16.msra.mxu0 %v15491_v56 }
0x3ac4   : > { %14584 = vmatprep.mubr.msk.f32.mxu0 %vm682_vm0, %v18832_v55  ;;  %14612 = vmatprep.mubr.msk.f32.mxu1 %vm682_vm0, %v18832_v55 }
0x3ac5   : > { %14585 = vmatmul.mubr.msk.f32.gmra.mrb[110].mxu0 %vm682_vm0, %v18834_v60  ;;  %14613 = vmatmul.mubr.msk.f32.gmra.mrb[110].mxu1 %vm682_vm0, %v18834_v60 }
0x3ac6   : > { %14595 = vmatprep.mubr.msk.f32.mxu0 %vm682_vm0, %v18818_v28 }
0x3ac9   : > { %14596 = vmatmul.mubr.msk.f32.vlgmr.msra.gmra.mrb[112].mxu0 %vm682_vm0, %v18820_v59 }
0x3aca   : > { %14598 = vmatprep.mubr.msk.f32.mxu0 %vm682_vm0, %v18832_v55 }
0x3acd   : > { %14599 = vmatmul.mubr.msk.f32.gmra.mrb[114].mxu0 %vm682_vm0, %v18834_v60 }
0x3b91   : > { %v14583_v5 = vpop.f32.mrb[108].mxu0  ;;  %v14611_v61 = vpop.f32.mrb[108].mxu1 }
0x3b92   : > { %v8603_v46 = vadd.f32 %v14611_v61, %v12926_v54  ;;  %v8407_v47 = vpop.f32.mrb[109].mxu0  ;;  %v8597_v22 = vpop.f32.mrb[109].mxu1 }
0x3b93   : > { %v18858_v34 = vadd.f32 %v12908_v44, %v8407_v47  ;;  %v8598_v52 = vadd.f32 %v12926_v54, %v8597_v22  ;;  %v18881_v47 = vadd.f32 %v14583_v5, %v12908_v44 }
0x3b95   : > { %14623 = vmatprep.mubr.msk.f32.mxu0 %vm968_vm1, %v18858_v34  ;;  %v15515_v14 = vpack.c.bf16 %v8603_v46, %v8598_v52  ;;  %v18862_v6 = vpack.i.bf16 %v8603_v46, %v8598_v52 }
0x3b97   : > { %15516 = vmatprep.subr.bf16.mxu1 %v15515_v14 }
0x3b98   : > { %v14586_v10 = vpop.f32.mrb[110].mxu0  ;;  %v14614_v8 = vpop.f32.mrb[110].mxu1  ;;  %15518 = vmatpush3.bf16.msra.mxu1 %v15515_v14 }
0x3b99   : > { %v8613_v42 = vadd.f32 %v14614_v8, %v12926_v54  ;;  %v8417_v40 = vpop.f32.mrb[111].mxu0  ;;  %v8607_v12 = vpop.f32.mrb[111].mxu1  ;;  %v18889_v52 = vadd.f32 %v14586_v10, %v12908_v44 }
0x3b9a   : > { %v8608_v2 = vadd.f32 %v12926_v54, %v8607_v12  ;;  %v18883_v22 = vadd.f32 %v12908_v44, %v8417_v40  ;;  %v18894_v12 = vld [vmem:[%s17879_s15 + $0x8] sm:$0xff] }
0x3b9c   : > { %v14597_v23 = vpop.f32.mrb[112].mxu0  ;;  %v15519_v37 = vpack.c.bf16 %v8613_v42, %v8608_v2  ;;  %v18867_v29 = vpack.i.bf16 %v8613_v42, %v8608_v2  ;;  %v18898_v2 = vld [vmem:[%s17879_s15] sm:$0xff] }
0x3b9d   : > { %v8508_v21 = vadd.f32 %v14597_v23, %v12917_v18  ;;  %v8502_v43 = vpop.f32.mrb[113].mxu0 }
0x3b9e   : > { %v8503_v56 = vadd.f32 %v12917_v18, %v8502_v43  ;;  %15520 = vmatprep.subr.bf16.mxu1 %v15519_v37 }
0x3b9f   : > { %15522 = vmatpush3.bf16.msra.mxu1 %v15519_v37 }
0x3ba0   : > { %v14600_v0 = vpop.f32.mrb[114].mxu0  ;;  %v15503_v39 = vpack.c.bf16 %v8508_v21, %v8503_v56  ;;  %v18869_v11 = vpack.i.bf16 %v8508_v21, %v8503_v56  ;;  %v18904_v56 = vld [vmem:[%s17879_s15 + $0x18] sm:$0xff] }
0x3ba1   : > { %v8518_v50 = vadd.f32 %v14600_v0, %v12917_v18  ;;  %v8512_v9 = vpop.f32.mrb[115].mxu0 }
0x3ba2   : > { %v8513_v54 = vadd.f32 %v12917_v18, %v8512_v9  ;;  %15505 = vmatprep.subr.msk.bf16.mxu0 %vm16818_vm2, %v15503_v39 }
0x3ba3   : > { %15508 = vmatpush3.bf16.xpose.msk.msra.mxu0 %vm16818_vm2, %v15503_v39  ;;  %v18908_v39 = vld [vmem:[%s17879_s15 + $0x10] sm:$0xff]  ;;  %s16642_s15 = smov 32  }
0x3ba4   : > { %v15509_v61 = vpack.c.bf16 %v8518_v50, %v8513_v54  ;;  %v18875_v46 = vpack.i.bf16 %v8518_v50, %v8513_v54 }
0x3ba6   : > { %15511 = vmatprep.subr.msk.bf16.mxu0 %vm16818_vm2, %v15509_v61 }
0x3bab   : > { %15514 = vmatpush3.bf16.xpose.msk.msra.mxu0 %vm16818_vm2, %v15509_v61 }
0x3bb2   : > { %14624 = vmatmul.mubr.msk.f32.vlgmr.msra.gmra.mrb[116].mxu0 %vm968_vm1, %v18881_v47 }
0x3bb3   : > { %14626 = vmatprep.mubr.msk.f32.mxu0 %vm968_vm1, %v18883_v22 }
0x3bb6   : > { %14627 = vmatmul.mubr.msk.f32.gmra.mrb[118].mxu0 %vm968_vm1, %v18889_v52 }
0x3c85   : > { %v14625_v14 = vpop.f32.mrb[116].mxu0 }
0x3c86   : > { %v8726_v8 = vmul.f32 0.35355338, %v14625_v14  ;;  %v8706_v42 = vpop.f32.mrb[117].mxu0 }
0x3c87   : > { %v8725_v5 = vmul.f32 0.35355338, %v8706_v42 }
0x3c88   : > { %v8730_v40 = vadd.f32 %v18894_v12, %v8726_v8 }
0x3c89   : > { %v8729_v18 = vadd.f32 %v18898_v2, %v8725_v5  ;;  %v14628_v23 = vpop.f32.mrb[118].mxu0 }
0x3c8a   : > { %v8728_v44 = vmul.f32 0.35355338, %v14628_v23  ;;  %v8716_v10 = vpop.f32.mrb[119].mxu0  ;;  %v8736_v37 = vsel %vm682_vm0, %v8730_v40, -inf }
0x3c8b   : > { %v8727_v21 = vmul.f32 0.35355338, %v8716_v10  ;;  %8737 = vmax.xlane.f32.xlu1 %v8736_v37  ;;  %v8733_v43 = vsel %vm682_vm0, %v8729_v18, -inf }
0x3c8c   : > { %v8732_v0 = vadd.f32 %v18904_v56, %v8728_v44  ;;  %8734 = vmax.xlane.f32.xlu0 %v8733_v43 }
0x3c8d   : > { %v8731_v50 = vadd.f32 %v18908_v39, %v8727_v21 }
0x3c8e   : > { %v8742_v9 = vsel %vm682_vm0, %v8732_v0, -inf }
0x3c8f   : > { %8743 = vmax.xlane.f32.xlu1 %v8742_v9  ;;  %v8739_v54 = vsel %vm682_vm0, %v8731_v50, -inf }
0x3c90   : > { %8740 = vmax.xlane.f32.xlu0 %v8739_v54 }
0x3d18   : > { %v8738_v61 = vpop.xlane.xlu1 %8737 }
0x3d19   : > { %v8746_v14 = vsub.f32 %v8730_v40, %v8738_v61  ;;  %v8735_v8 = vpop.xlane.xlu0 %8734 }
0x3d1a   : > { %v8745_v42 = vsub.f32 %v8729_v18, %v8735_v8 }
0x3d1b   : > { %v8751_v5 = vmul.f32 1.442695, %v8746_v14 }
0x3d1c   : > { %v8749_v23 = vmul.f32 1.442695, %v8745_v42  ;;  %v8744_v10 = vpop.xlane.xlu1 %8743 }
0x3d1d   : > { %16440 = vpow2.f32 %v8751_v5  ;;  %v8748_v44 = vsub.f32 %v8732_v0, %v8744_v10  ;;  %v8741_v37 = vpop.xlane.xlu0 %8740 }
0x3d1e   : > { %16442 = vpow2.f32 %v8749_v23  ;;  %v8747_v43 = vsub.f32 %v8731_v50, %v8741_v37 }
0x3d1f   : > { %v8755_v45 = vmul.f32 1.442695, %v8748_v44 }
0x3d20   : > { %v8753_v21 = vmul.f32 1.442695, %v8747_v43 }
0x3d21   : > { %16444 = vpow2.f32 %v8755_v45 }
0x3d22   : > { %16446 = vpow2.f32 %v8753_v21 }
0x3d27   : > { %v16441_v9 = vpop.eup %16440 }
0x3d28   : > { %v16443_v16 = vpop.eup %16442  ;;  %v8760_v54 = vsel %vm682_vm0, %v16441_v9, 0.0 }
0x3d29   : > { %8761 = vadd.xlane.f32.xlu1 %v8760_v54  ;;  %v8757_v40 = vsel %vm682_vm0, %v16443_v16, 0.0 }
0x3d2a   : > { %8758 = vadd.xlane.f32.xlu0 %v8757_v40 }
0x3d2b   : > { %v16445_v18 = vpop.eup %16444 }
0x3d2c   : > { %v16447_v61 = vpop.eup %16446  ;;  %v8766_v14 = vsel %vm682_vm0, %v16445_v18, 0.0 }
0x3d2d   : > { %8767 = vadd.xlane.f32.xlu1 %v8766_v14  ;;  %v8763_v0 = vsel %vm682_vm0, %v16447_v61, 0.0 }
0x3d2e   : > { %8764 = vadd.xlane.f32.xlu0 %v8763_v0 }
0x3d3e   : > { %16014 = vrot.lane.b32.xlu1 %v18875_v46, %s20173_s0 }
0x3d42   : > { %8874 = vrot.lane.b32.xlu1 %v18858_v34, %s20173_s0 }
0x3d44   : > { %16009 = vrot.lane.b32.xlu0 %v18869_v11, %s20173_s0 }
0x3d46   : > { %8876 = vrot.lane.b32.xlu1 %v18881_v47, %s20173_s0 }
0x3d48   : > { %8878 = vrot.lane.b32.xlu0 %v18883_v22, %s20173_s0 }
0x3d4a   : > { %8880 = vrot.lane.b32.xlu1 %v18889_v52, %s20173_s0 }
0x3db6   : > { %v8762_v45 = vpop.xlane.xlu1 %8761 }
0x3db7   : > { %16448 = vrcp.f32 %v8762_v45  ;;  %v8759_v50 = vpop.xlane.xlu0 %8758 }
0x3db8   : > { %16450 = vrcp.f32 %v8759_v50 }
0x3dba   : > { %v8768_v8 = vpop.xlane.xlu1 %8767 }
0x3dbb   : > { %16452 = vrcp.f32 %v8768_v8  ;;  %v8765_v42 = vpop.xlane.xlu0 %8764 }
0x3dbc   : > { %16454 = vrcp.f32 %v8765_v42 }
0x3dbe   : > { %v16015_v5 = vpop.permute.xlu1 %16014 }
0x3dbf   : > { %v16010_v23 = vpop.permute.xlu0 %16009  ;;  %v16017_v21 = vunpack.i.h.bf16 %v16015_v5  ;;  %v16016_v54 = vunpack.i.l.bf16 %v16015_v5 }
0x3dc0   : > { %v16012_v10 = vunpack.i.h.bf16 %v16010_v23  ;;  %v16011_v44 = vunpack.i.l.bf16 %v16010_v23 }
0x3dc1   : > { %v16449_v37 = vpop.eup %16448  ;;  %v15529_v8 = vpack.c.bf16 %v16017_v21, %v16016_v54 }
0x3dc2   : > { %v16451_v43 = vpop.eup %16450  ;;  %v15523_v40 = vpack.c.bf16 %v16012_v10, %v16011_v44  ;;  %v18931_v0 = vmul.f32 %v16449_v37, %v16441_v9  ;;  %v8875_v9 = vpop.permute.xlu1 %8874 }
0x3dc3   : > { %v18929_v14 = vmul.f32 %v16451_v43, %v16443_v16 }
0x3dc4   : > { %20223 = vst [vmem:[#allocation56_spill] sm:$0xff] %v18931_v0  ;;  %15525 = vmatprep.subr.msk.bf16.mxu1 %vm16818_vm2, %v15523_v40 }
0x3dc5   : > { %20222 = vst [vmem:[#allocation55_spill] sm:$0xff] %v18929_v14  ;;  %v16453_v45 = vpop.eup %16452  ;;  %14637 = vmatprep.mubr.msk.f32.mxu1 %vm682_vm0, %v18929_v14 }
0x3dc6   : > { %v16455_v50 = vpop.eup %16454  ;;  %14638 = vmatmul.mubr.msk.f32.vlgmr.msra.gmra.mrb[112].mxu1 %vm682_vm0, %v18931_v0  ;;  %v18945_v16 = vmul.f32 %v16453_v45, %v16445_v18  ;;  %v8877_v5 = vpop.permute.xlu1 %8876 }
0x3dc7   : > { %15528 = vmatpush3.bf16.xpose.msk.msra.mxu1 %vm16818_vm2, %v15523_v40  ;;  %v18941_v42 = vmul.f32 %v16455_v50, %v16447_v61  ;;  %v8879_v61 = vpop.permute.xlu0 %8878 }
0x3dc8   : > { %15531 = vmatprep.subr.msk.bf16.mxu1 %vm16818_vm2, %v15529_v8  ;;  %20225 = vst [vmem:[#allocation58_spill] sm:$0xff] %v18945_v16 }
0x3dc9   : > { %20224 = vst [vmem:[#allocation57_spill] sm:$0xff] %v18941_v42  ;;  %14640 = vmatprep.mubr.msk.f32.mxu1 %vm682_vm0, %v18941_v42 }
0x3dca   : > { %14641 = vmatmul.mubr.msk.f32.gmra.mrb[114].mxu1 %vm682_vm0, %v18945_v16  ;;  %v8881_v18 = vpop.permute.xlu1 %8880 }
0x3dcb   : > { %14651 = vmatprep.mubr.msk.f32.mxu1 %vm968_vm1, %v8875_v9 }
0x3dcf   : > { %15534 = vmatpush3.bf16.xpose.msk.msra.mxu1 %vm16818_vm2, %v15529_v8 }
0x3dd6   : > { %14652 = vmatmul.mubr.msk.f32.vlgmr.msra.gmra.mrb[116].mxu1 %vm968_vm1, %v8877_v5 }
0x3dd7   : > { %14654 = vmatprep.mubr.msk.f32.mxu1 %vm968_vm1, %v8879_v61 }
0x3dda   : > { %14655 = vmatmul.mubr.msk.f32.gmra.mrb[118].mxu1 %vm968_vm1, %v8881_v18 }
0x3e99   : > { %v18957_v23 = vpop.f32.mrb[112].mxu1 }
0x3e9a   : > { %v18959_v10 = vpop.f32.mrb[113].mxu1 }
0x3e9d   : > { %v18961_v44 = vpop.f32.mrb[114].mxu1 }
0x3e9e   : > { %v18963_v37 = vpop.f32.mrb[115].mxu1 }
0x3ea9   : > { %v14653_v43 = vpop.f32.mrb[116].mxu1 }
0x3eaa   : > { %v8992_v21 = vmul.f32 0.35355338, %v14653_v43  ;;  %v8972_v54 = vpop.f32.mrb[117].mxu1 }
0x3eab   : > { %v8991_v40 = vmul.f32 0.35355338, %v8972_v54 }
0x3eac   : > { %v8996_v45 = vadd.f32 %v18894_v12, %v8992_v21 }
0x3ead   : > { %v8995_v50 = vadd.f32 %v18898_v2, %v8991_v40  ;;  %v14656_v8 = vpop.f32.mrb[118].mxu1 }
0x3eae   : > { %v8982_v9 = vpop.f32.mrb[119].mxu1  ;;  %v9002_v5 = vsel %vm682_vm0, %v8996_v45, -inf  ;;  %v8994_v61 = vmul.f32 0.35355338, %v14656_v8 }
0x3eaf   : > { %v8993_v18 = vmul.f32 0.35355338, %v8982_v9  ;;  %9003 = vmax.xlane.f32.xlu1 %v9002_v5  ;;  %v8999_v16 = vsel %vm682_vm0, %v8995_v50, -inf }
0x3eb0   : > { %9000 = vmax.xlane.f32.xlu0 %v8999_v16  ;;  %v8998_v43 = vadd.f32 %v18904_v56, %v8994_v61 }
0x3eb1   : > { %v8997_v0 = vadd.f32 %v18908_v39, %v8993_v18 }
0x3eb2   : > { %v9008_v21 = vsel %vm682_vm0, %v8998_v43, -inf }
0x3eb3   : > { %v9005_v54 = vsel %vm682_vm0, %v8997_v0, -inf }
0x3eb4   : > { %9006 = vmax.xlane.f32.xlu0 %v9005_v54 }
0x3eb8   : > { %9009 = vmax.xlane.f32.xlu0 %v9008_v21 }
0x3f3c   : > { %v9004_v40 = vpop.xlane.xlu1 %9003 }
0x3f3d   : > { %v9012_v42 = vsub.f32 %v8996_v45, %v9004_v40  ;;  %v9001_v14 = vpop.xlane.xlu0 %9000 }
0x3f3e   : > { %v9011_v63 = vsub.f32 %v8995_v50, %v9001_v14 }
0x3f3f   : > { %v9017_v8 = vmul.f32 1.442695, %v9012_v42 }
0x3f40   : > { %v9015_v9 = vmul.f32 1.442695, %v9011_v63 }
0x3f41   : > { %16456 = vpow2.f32 %v9017_v8  ;;  %v9007_v63 = vpop.xlane.xlu0 %9006 }
0x3f42   : > { %16458 = vpow2.f32 %v9015_v9  ;;  %v9013_v14 = vsub.f32 %v8997_v0, %v9007_v63 }
0x3f44   : > { %v9019_v42 = vmul.f32 1.442695, %v9013_v14 }
0x3f45   : > { %v9010_v45 = vpop.xlane.xlu0 %9009 }
0x3f46   : > { %v9014_v50 = vsub.f32 %v8998_v43, %v9010_v45  ;;  %16460 = vpow2.f32 %v9019_v42 }
0x3f48   : > { %v9021_v54 = vmul.f32 1.442695, %v9014_v50 }
0x3f4a   : > { %16462 = vpow2.f32 %v9021_v54 }
0x3f4b   : > { %v16457_v5 = vpop.eup %16456 }
0x3f4c   : > { %v16459_v16 = vpop.eup %16458  ;;  %v9026_v18 = vsel %vm682_vm0, %v16457_v5, 0.0 }
0x3f4d   : > { %9027 = vadd.xlane.f32.xlu1 %v9026_v18  ;;  %v9023_v61 = vsel %vm682_vm0, %v16459_v16, 0.0 }
0x3f4e   : > { %9024 = vadd.xlane.f32.xlu0 %v9023_v61 }
0x3f50   : > { %v16461_v21 = vpop.eup %16460 }
0x3f51   : > { %v9029_v40 = vsel %vm682_vm0, %v16461_v21, 0.0 }
0x3f54   : > { %v16463_v8 = vpop.eup %16462 }
0x3f55   : > { %v9032_v9 = vsel %vm682_vm0, %v16463_v8, 0.0 }
0x3f5e   : > { %16024 = vrot.lane.b32.xlu1 %v18867_v29, %s20173_s0 }
0x3f62   : > { %16029 = vrot.lane.b32.xlu1 %v18869_v11, %s20178_s2 }
0x3f64   : > { %16019 = vrot.lane.b32.xlu0 %v18862_v6, %s20173_s0 }
0x3f66   : > { %16034 = vrot.lane.b32.xlu1 %v18875_v46, %s20178_s2 }
0x3f83   : > { %9030 = vadd.xlane.f32.xlu0 %v9029_v40 }
0x3f8a   : > { %9033 = vadd.xlane.f32.xlu1 %v9032_v9 }
0x3f99   : > { %9156 = vrot.lane.b32.xlu0 %v18858_v34, %s20178_s2 }
0x3f9b   : > { %9158 = vrot.lane.b32.xlu1 %v18881_v47, %s20178_s2 }
0x3f9d   : > { %9160 = vrot.lane.b32.xlu0 %v18883_v22, %s20178_s2 }
0x3f9f   : > { %9162 = vrot.lane.b32.xlu1 %v18889_v52, %s20178_s2 }
0x3fda   : > { %v9028_v0 = vpop.xlane.xlu1 %9027 }
0x3fdb   : > { %v9025_v43 = vpop.xlane.xlu0 %9024 }
0x3fdc   : > { %16464 = vrcp.f32 %v9025_v43 }
0x3fdd   : > { %16466 = vrcp.f32 %v9028_v0 }
0x3fde   : > { %v16025_v18 = vpop.permute.xlu1 %16024 }
0x3fdf   : > { %v16020_v61 = vpop.permute.xlu0 %16019  ;;  %v16027_v63 = vunpack.i.h.bf16 %v16025_v18  ;;  %v16026_v14 = vunpack.i.l.bf16 %v16025_v18 }
0x3fe0   : > { %v16022_v42 = vunpack.i.h.bf16 %v16020_v61  ;;  %v16021_v45 = vunpack.i.l.bf16 %v16020_v61 }
0x3fe1   : > { %v15539_v57 = vpack.c.bf16 %v16027_v63, %v16026_v14 }
0x3fe2   : > { %v16030_v50 = vpop.permute.xlu1 %16029  ;;  %v15535_v54 = vpack.c.bf16 %v16022_v42, %v16021_v45 }
0x3fe3   : > { %v16032_v40 = vunpack.i.h.bf16 %v16030_v50  ;;  %v16031_v9 = vunpack.i.l.bf16 %v16030_v50 }
0x3fe4   : > { %15536 = vmatprep.subr.bf16.mxu0 %v15535_v54 }
0x3fe5   : > { %15538 = vmatpush3.bf16.msra.mxu0 %v15535_v54  ;;  %v15543_v43 = vpack.c.bf16 %v16032_v40, %v16031_v9 }
0x3fe6   : > { %v16465_v13 = vpop.eup %16464  ;;  %15540 = vmatprep.subr.bf16.mxu0 %v15539_v57  ;;  %v16035_v18 = vpop.permute.xlu1 %16034 }
0x3fe7   : > { %v16467_v7 = vpop.eup %16466  ;;  %v18993_v53 = vmul.f32 %v16465_v13, %v16459_v16  ;;  %v16037_v61 = vunpack.i.h.bf16 %v16035_v18  ;;  %v16036_v63 = vunpack.i.l.bf16 %v16035_v18 }
0x3fe8   : > { %v18997_v0 = vmul.f32 %v16467_v7, %v16457_v5 }
0x3fe9   : > { %20226 = vst [vmem:[#allocation59_spill] sm:$0xff] %v18993_v53  ;;  %15542 = vmatpush3.bf16.msra.mxu0 %v15539_v57  ;;  %14665 = vmatprep.mubr.msk.f32.mxu0 %vm682_vm0, %v18993_v53  ;;  %v15549_v14 = vpack.c.bf16 %v16037_v61, %v16036_v63 }
0x3fea   : > { %20227 = vst [vmem:[#allocation60_spill] sm:$0xff] %v18997_v0  ;;  %15545 = vmatprep.subr.msk.bf16.mxu0 %vm16818_vm2, %v15543_v43 }
0x3fec   : > { %14666 = vmatmul.mubr.msk.f32.vlgmr.msra.gmra.mrb[120].mxu0 %vm682_vm0, %v18997_v0 }
0x3ff2   : > { %15548 = vmatpush3.bf16.xpose.msk.msra.mxu0 %vm16818_vm2, %v15543_v43 }
0x3ff3   : > { %15551 = vmatprep.subr.msk.bf16.mxu0 %vm16818_vm2, %v15549_v14 }
0x3ffa   : > { %15554 = vmatpush3.bf16.xpose.msk.msra.mxu0 %vm16818_vm2, %v15549_v14 }
0x4010   : > { %v9031_v7 = vpop.xlane.xlu0 %9030 }
0x4011   : > { %16468 = vrcp.f32 %v9031_v7 }
0x4014   : > { %v9157_v42 = vpop.permute.xlu0 %9156 }
0x4017   : > { %v9034_v13 = vpop.xlane.xlu1 %9033 }
0x4018   : > { %16470 = vrcp.f32 %v9034_v13  ;;  %v9161_v54 = vpop.permute.xlu0 %9160 }
0x401b   : > { %v16469_v57 = vpop.eup %16468  ;;  %v9159_v50 = vpop.permute.xlu1 %9158 }
0x401c   : > { %v19009_v5 = vmul.f32 %v16469_v57, %v16461_v21 }
0x401e   : > { %20228 = vst [vmem:[#allocation61_spill] sm:$0xff] %v19009_v5  ;;  %14668 = vmatprep.mubr.msk.f32.mxu0 %vm682_vm0, %v19009_v5 }
0x401f   : > { %v9163_v21 = vpop.permute.xlu1 %9162 }
0x4022   : > { %v16471_v16 = vpop.eup %16470 }
0x4023   : > { %v19013_v45 = vmul.f32 %v16471_v16, %v16463_v8 }
0x4025   : > { %20229 = vst [vmem:[#allocation62_spill] sm:$0xff] %v19013_v45  ;;  %14669 = vmatmul.mubr.msk.f32.gmra.mrb[122].mxu0 %vm682_vm0, %v19013_v45 }
0x4026   : > { %14679 = vmatprep.mubr.msk.f32.mxu0 %vm968_vm1, %v9157_v42 }
0x4029   : > { %14680 = vmatmul.mubr.msk.f32.vlgmr.msra.gmra.mrb[124].mxu0 %vm968_vm1, %v9159_v50 }
0x402a   : > { %14682 = vmatprep.mubr.msk.f32.mxu0 %vm968_vm1, %v9161_v54 }
0x402d   : > { %14683 = vmatmul.mubr.msk.f32.gmra.mrb[126].mxu0 %vm968_vm1, %v9163_v21 }
0x40bf   : > { %v19021_v40 = vpop.f32.mrb[120].mxu0 }
0x40c0   : > { %v19023_v9 = vpop.f32.mrb[121].mxu0 }
0x40f8   : > { %v19025_v8 = vpop.f32.mrb[122].mxu0 }
0x40f9   : > { %v19027_v43 = vpop.f32.mrb[123].mxu0 }
0x40fc   : > { %v14681_v18 = vpop.f32.mrb[124].mxu0 }
0x40fd   : > { %v9274_v61 = vmul.f32 0.35355338, %v14681_v18  ;;  %v9254_v63 = vpop.f32.mrb[125].mxu0 }
0x40fe   : > { %v9273_v14 = vmul.f32 0.35355338, %v9254_v63 }
0x40ff   : > { %v9278_v7 = vadd.f32 %v18894_v12, %v9274_v61 }
0x4100   : > { %v9277_v13 = vadd.f32 %v18898_v2, %v9273_v14  ;;  %v14684_v57 = vpop.f32.mrb[126].mxu0 }
0x4101   : > { %v9264_v16 = vpop.f32.mrb[127].mxu0  ;;  %v9284_v42 = vsel %vm682_vm0, %v9278_v7, -inf  ;;  %v9276_v50 = vmul.f32 0.35355338, %v14684_v57 }
0x4102   : > { %v9275_v54 = vmul.f32 0.35355338, %v9264_v16  ;;  %9285 = vmax.xlane.f32.xlu1 %v9284_v42  ;;  %v9281_v21 = vsel %vm682_vm0, %v9277_v13, -inf }
0x4103   : > { %9282 = vmax.xlane.f32.xlu0 %v9281_v21  ;;  %v9280_v18 = vadd.f32 %v18904_v56, %v9276_v50 }
0x4104   : > { %v9279_v45 = vadd.f32 %v18908_v39, %v9275_v54 }
0x4105   : > { %v9290_v61 = vsel %vm682_vm0, %v9280_v18, -inf }
0x4106   : > { %v9287_v63 = vsel %vm682_vm0, %v9279_v45, -inf }
0x4107   : > { %9288 = vmax.xlane.f32.xlu0 %v9287_v63 }
0x410b   : > { %9291 = vmax.xlane.f32.xlu0 %v9290_v61 }
0x418f   : > { %v9286_v14 = vpop.xlane.xlu1 %9285 }
0x4190   : > { %v9294_v5 = vsub.f32 %v9278_v7, %v9286_v14  ;;  %v9283_v0 = vpop.xlane.xlu0 %9282 }
0x4191   : > { %v9293_v53 = vsub.f32 %v9277_v13, %v9283_v0 }
0x4192   : > { %v9299_v57 = vmul.f32 1.442695, %v9294_v5 }
0x4193   : > { %v9297_v16 = vmul.f32 1.442695, %v9293_v53 }
0x4194   : > { %16472 = vpow2.f32 %v9299_v57  ;;  %v9289_v53 = vpop.xlane.xlu0 %9288 }
0x4195   : > { %16474 = vpow2.f32 %v9297_v16  ;;  %v9295_v0 = vsub.f32 %v9279_v45, %v9289_v53 }
0x4197   : > { %v9301_v5 = vmul.f32 1.442695, %v9295_v0 }
0x4198   : > { %v9292_v7 = vpop.xlane.xlu0 %9291 }
0x4199   : > { %v9296_v13 = vsub.f32 %v9280_v18, %v9292_v7  ;;  %16476 = vpow2.f32 %v9301_v5 }
0x419b   : > { %v9303_v63 = vmul.f32 1.442695, %v9296_v13 }
0x419d   : > { %16478 = vpow2.f32 %v9303_v63 }
0x419e   : > { %v16473_v42 = vpop.eup %16472 }
0x419f   : > { %v16475_v21 = vpop.eup %16474  ;;  %v9308_v54 = vsel %vm682_vm0, %v16473_v42, 0.0 }
0x41a0   : > { %9309 = vadd.xlane.f32.xlu1 %v9308_v54  ;;  %v9305_v50 = vsel %vm682_vm0, %v16475_v21, 0.0 }
0x41a1   : > { %9306 = vadd.xlane.f32.xlu0 %v9305_v50 }
0x41a3   : > { %v16477_v61 = vpop.eup %16476 }
0x41a4   : > { %v9311_v14 = vsel %vm682_vm0, %v16477_v61, 0.0 }
0x41a7   : > { %v16479_v57 = vpop.eup %16478 }
0x41b1   : > { %16044 = vrot.lane.b32.xlu1 %v18867_v29, %s20178_s2 }
0x41b5   : > { %16049 = vrot.lane.b32.xlu1 %v18869_v11, %s20179_s1  ;;  %v9314_v11 = vsel %vm682_vm0, %v16479_v57, 0.0 }
0x41b7   : > { %16039 = vrot.lane.b32.xlu0 %v18862_v6, %s20178_s2 }
0x41b9   : > { %16054 = vrot.lane.b32.xlu1 %v18875_v46, %s20179_s1 }
0x41d6   : > { %9312 = vadd.xlane.f32.xlu0 %v9311_v14 }
0x41dd   : > { %9315 = vadd.xlane.f32.xlu1 %v9314_v11 }
0x41ec   : > { %9434 = vrot.lane.b32.xlu0 %v18858_v34, %s20179_s1 }
0x41ee   : > { %9436 = vrot.lane.b32.xlu1 %v18881_v47, %s20179_s1 }
0x41f0   : > { %9438 = vrot.lane.b32.xlu0 %v18883_v22, %s20179_s1 }
0x41f2   : > { %9440 = vrot.lane.b32.xlu1 %v18889_v52, %s20179_s1 }
0x422d   : > { %v9310_v46 = vpop.xlane.xlu1 %9309 }
0x422e   : > { %v9307_v45 = vpop.xlane.xlu0 %9306 }
0x422f   : > { %16480 = vrcp.f32 %v9307_v45 }
0x4230   : > { %16482 = vrcp.f32 %v9310_v46 }
0x4231   : > { %v16045_v18 = vpop.permute.xlu1 %16044 }
0x4232   : > { %v16040_v16 = vpop.permute.xlu0 %16039  ;;  %v16047_v54 = vunpack.i.h.bf16 %v16045_v18  ;;  %v16046_v50 = vunpack.i.l.bf16 %v16045_v18 }
0x4233   : > { %v16042_v53 = vunpack.i.h.bf16 %v16040_v16  ;;  %v16041_v0 = vunpack.i.l.bf16 %v16040_v16 }
0x4234   : > { %v15559_v13 = vpack.c.bf16 %v16047_v54, %v16046_v50 }
0x4235   : > { %v16050_v34 = vpop.permute.xlu1 %16049  ;;  %v15555_v5 = vpack.c.bf16 %v16042_v53, %v16041_v0 }
0x4236   : > { %v16052_v7 = vunpack.i.h.bf16 %v16050_v34  ;;  %v16051_v47 = vunpack.i.l.bf16 %v16050_v34 }
0x4237   : > { %15556 = vmatprep.subr.bf16.mxu1 %v15555_v5 }
0x4238   : > { %15558 = vmatpush3.bf16.msra.mxu1 %v15555_v5  ;;  %v15563_v14 = vpack.c.bf16 %v16052_v7, %v16051_v47 }
0x4239   : > { %v16481_v22 = vpop.eup %16480  ;;  %15560 = vmatprep.subr.bf16.mxu1 %v15559_v13  ;;  %v16055_v46 = vpop.permute.xlu1 %16054 }
0x423a   : > { %v16483_v52 = vpop.eup %16482  ;;  %v19057_v63 = vmul.f32 %v16481_v22, %v16475_v21  ;;  %v16057_v45 = vunpack.i.h.bf16 %v16055_v46  ;;  %v16056_v18 = vunpack.i.l.bf16 %v16055_v46 }
0x423b   : > { %v19061_v11 = vmul.f32 %v16483_v52, %v16473_v42 }
0x423c   : > { %20230 = vst [vmem:[#allocation63_spill] sm:$0xff] %v19057_v63  ;;  %15562 = vmatpush3.bf16.msra.mxu1 %v15559_v13  ;;  %14693 = vmatprep.mubr.msk.f32.mxu1 %vm682_vm0, %v19057_v63  ;;  %v15569_v16 = vpack.c.bf16 %v16057_v45, %v16056_v18 }
0x423d   : > { %20231 = vst [vmem:[#allocation64_spill] sm:$0xff] %v19061_v11  ;;  %15565 = vmatprep.subr.msk.bf16.mxu1 %vm16818_vm2, %v15563_v14 }
0x423f   : > { %14694 = vmatmul.mubr.msk.f32.vlgmr.msra.gmra.mrb[120].mxu1 %vm682_vm0, %v19061_v11 }
0x4245   : > { %15568 = vmatpush3.bf16.xpose.msk.msra.mxu1 %vm16818_vm2, %v15563_v14 }
0x4246   : > { %15571 = vmatprep.subr.msk.bf16.mxu1 %vm16818_vm2, %v15569_v16 }
0x424d   : > { %15574 = vmatpush3.bf16.xpose.msk.msra.mxu1 %vm16818_vm2, %v15569_v16 }
0x4263   : > { %v9313_v42 = vpop.xlane.xlu0 %9312 }
0x4264   : > { %16484 = vrcp.f32 %v9313_v42 }
0x4267   : > { %v9435_v0 = vpop.permute.xlu0 %9434 }
0x426a   : > { %v9316_v21 = vpop.xlane.xlu1 %9315 }
0x426b   : > { %16486 = vrcp.f32 %v9316_v21  ;;  %v9439_v7 = vpop.permute.xlu0 %9438 }
0x426e   : > { %v16485_v54 = vpop.eup %16484  ;;  %v9437_v5 = vpop.permute.xlu1 %9436 }
0x426f   : > { %v19073_v50 = vmul.f32 %v16485_v54, %v16477_v61 }
0x4271   : > { %20232 = vst [vmem:[#allocation65_spill] sm:$0xff] %v19073_v50  ;;  %14696 = vmatprep.mubr.msk.f32.mxu1 %vm682_vm0, %v19073_v50 }
0x4272   : > { %v9441_v61 = vpop.permute.xlu1 %9440 }
0x4275   : > { %v16487_v53 = vpop.eup %16486 }
0x4276   : > { %v19077_v34 = vmul.f32 %v16487_v53, %v16479_v57 }
0x4278   : > { %20233 = vst [vmem:[#allocation66_spill] sm:$0xff] %v19077_v34  ;;  %14697 = vmatmul.mubr.msk.f32.gmra.mrb[122].mxu1 %vm682_vm0, %v19077_v34 }
0x4279   : > { %14707 = vmatprep.mubr.msk.f32.mxu1 %vm968_vm1, %v9435_v0 }
0x427c   : > { %14708 = vmatmul.mubr.msk.f32.vlgmr.msra.gmra.mrb[124].mxu1 %vm968_vm1, %v9437_v5 }
0x427d   : > { %14710 = vmatprep.mubr.msk.f32.mxu1 %vm968_vm1, %v9439_v7 }
0x4280   : > { %14711 = vmatmul.mubr.msk.f32.gmra.mrb[126].mxu1 %vm968_vm1, %v9441_v61 }
0x4312   : > { %v14695_v47 = vpop.f32.mrb[120].mxu1 }
0x4313   : > { %v9415_v13 = vpop.f32.mrb[121].mxu1 }
0x434b   : > { %v19085_v22 = vpop.f32.mrb[122].mxu1 }
0x434c   : > { %v19087_v57 = vpop.f32.mrb[123].mxu1 }
0x434f   : > { %v14709_v52 = vpop.f32.mrb[124].mxu1 }
0x4350   : > { %v9552_v14 = vmul.f32 0.35355338, %v14709_v52  ;;  %v9532_v46 = vpop.f32.mrb[125].mxu1 }
0x4351   : > { %v9551_v45 = vmul.f32 0.35355338, %v9532_v46 }
0x4352   : > { %v9556_v18 = vadd.f32 %v18894_v12, %v9552_v14 }
0x4353   : > { %v9555_v16 = vadd.f32 %v18898_v2, %v9551_v45  ;;  %v14712_v42 = vpop.f32.mrb[126].mxu1 }
0x4354   : > { %v9542_v21 = vpop.f32.mrb[127].mxu1  ;;  %v9562_v54 = vsel %vm682_vm0, %v9556_v18, -inf  ;;  %v9554_v53 = vmul.f32 0.35355338, %v14712_v42 }
0x4355   : > { %v9553_v0 = vmul.f32 0.35355338, %v9542_v21  ;;  %9563 = vmax.xlane.f32.xlu1 %v9562_v54  ;;  %v9559_v5 = vsel %vm682_vm0, %v9555_v16, -inf }
0x4356   : > { %9560 = vmax.xlane.f32.xlu0 %v9559_v5  ;;  %v9558_v61 = vadd.f32 %v18904_v56, %v9554_v53 }
0x4357   : > { %v9557_v7 = vadd.f32 %v18908_v39, %v9553_v0 }
0x4358   : > { %v9568_v12 = vsel %vm682_vm0, %v9558_v61, -inf }
0x4359   : > { %v9565_v52 = vsel %vm682_vm0, %v9557_v7, -inf }
0x435a   : > { %9566 = vmax.xlane.f32.xlu0 %v9565_v52 }
0x435e   : > { %9569 = vmax.xlane.f32.xlu0 %v9568_v12 }
0x43e2   : > { %v9564_v2 = vpop.xlane.xlu1 %9563 }
0x43e3   : > { %v9572_v14 = vsub.f32 %v9556_v18, %v9564_v2  ;;  %v9561_v46 = vpop.xlane.xlu0 %9560 }
0x43e4   : > { %v9571_v45 = vsub.f32 %v9555_v16, %v9561_v46 }
0x43e5   : > { %v9577_v42 = vmul.f32 1.442695, %v9572_v14 }
0x43e6   : > { %v9575_v21 = vmul.f32 1.442695, %v9571_v45 }
0x43e7   : > { %16488 = vpow2.f32 %v9577_v42  ;;  %v9567_v54 = vpop.xlane.xlu0 %9566 }
0x43e8   : > { %16490 = vpow2.f32 %v9575_v21  ;;  %v9573_v5 = vsub.f32 %v9557_v7, %v9567_v54 }
0x43ea   : > { %v9579_v34 = vmul.f32 1.442695, %v9573_v5 }
0x43eb   : > { %v9570_v39 = vpop.xlane.xlu0 %9569 }
0x43ec   : > { %16492 = vpow2.f32 %v9579_v34  ;;  %v9574_v56 = vsub.f32 %v9558_v61, %v9570_v39 }
0x43ee   : > { %v9581_v53 = vmul.f32 1.442695, %v9574_v56 }
0x43f0   : > { %16494 = vpow2.f32 %v9581_v53 }
0x43f1   : > { %v16489_v0 = vpop.eup %16488 }
0x43f2   : > { %v16491_v52 = vpop.eup %16490  ;;  %v9586_v12 = vsel %vm682_vm0, %v16489_v0, 0.0 }
0x43f3   : > { %9587 = vadd.xlane.f32.xlu1 %v9586_v12  ;;  %v9583_v18 = vsel %vm682_vm0, %v16491_v52, 0.0 }
0x43f4   : > { %9584 = vadd.xlane.f32.xlu0 %v9583_v18 }
0x43f6   : > { %v16493_v16 = vpop.eup %16492 }
0x43f7   : > { %v9589_v2 = vsel %vm682_vm0, %v16493_v16, 0.0 }
0x43f8   : > { %9590 = vadd.xlane.f32.xlu0 %v9589_v2  ;;  %v12979_v2 = vld [vmem:[%s20060_s8 + $0x80] sm:$0xff] }
0x43fa   : > { %v16495_v14 = vpop.eup %16494 }
0x43fb   : > { %v9592_v7 = vsel %vm682_vm0, %v16495_v14, 0.0 }
0x43fc   : > { %9593 = vadd.xlane.f32.xlu1 %v9592_v7 }
0x440d   : > { %16064 = vrot.lane.b32.xlu1 %v18867_v29, %s20179_s1 }
0x440e   : > { %16059 = vrot.lane.b32.xlu0 %v18862_v6, %s20179_s1 }
0x4411   : > { %9764 = vrot.lane.b32.xlu1 %v19023_v9, %s20181_s19 }
0x4412   : > { %9780 = vrot.lane.b32.xlu0 %v9415_v13, %s20182_s20 }
0x4415   : > { %9766 = vrot.lane.b32.xlu1 %v19021_v40, %s20181_s19 }
0x4419   : > { %9782 = vrot.lane.b32.xlu1 %v14695_v47, %s20182_s20 }
0x4480   : > { %v9588_v61 = vpop.xlane.xlu1 %9587 }
0x4481   : > { %v9585_v34 = vpop.xlane.xlu0 %9584 }
0x4482   : > { %16496 = vrcp.f32 %v9585_v34 }
0x4483   : > { %16498 = vrcp.f32 %v9588_v61  ;;  %v13003_v61 = vld [vmem:[%s20058_s6 + $0xa0] sm:$0xff] }
0x4485   : > { %v9591_v46 = vpop.xlane.xlu0 %9590 }
0x4486   : > { %16500 = vrcp.f32 %v9591_v46  ;;  %v13004_v46 = vld [vmem:[%s20058_s6 + $0xa8] sm:$0xff] }
0x4489   : > { %v9594_v29 = vpop.xlane.xlu1 %9593  ;;  %v16060_v45 = vpop.permute.xlu0 %16059 }
0x448a   : > { %v16062_v42 = vunpack.i.h.bf16 %v16060_v45  ;;  %v16061_v6 = vunpack.i.l.bf16 %v16060_v45  ;;  %16502 = vrcp.f32 %v9594_v29  ;;  %v15599_v29 = vpack.c.bf16 %v13004_v46, %v13003_v61 }
0x448c   : > { %v16497_v21 = vpop.eup %16496  ;;  %v15575_v9 = vpack.c.bf16 %v16062_v42, %v16061_v6 }
0x448d   : > { %v16065_v54 = vpop.permute.xlu1 %16064  ;;  %v19111_v13 = vmul.f32 %v16497_v21, %v16491_v52  ;;  %v16499_v39 = vpop.eup %16498 }
0x448e   : > { %v16067_v5 = vunpack.i.h.bf16 %v16065_v54  ;;  %v16066_v40 = vunpack.i.l.bf16 %v16065_v54  ;;  %15576 = vmatprep.subr.bf16.mxu0 %v15575_v9  ;;  %v19115_v53 = vmul.f32 %v16499_v39, %v16489_v0  ;;  %v12980_v0 = vld [vmem:[%s20060_s8 + $0x88] sm:$0xff] }
0x448f   : > { %20234 = vst [vmem:[#allocation67_spill] sm:$0xff] %v19111_v13  ;;  %15578 = vmatpush3.bf16.msra.mxu0 %v15575_v9  ;;  %14721 = vmatprep.mubr.msk.f32.mxu0 %vm682_vm0, %v19111_v13  ;;  %v15583_v7 = vpack.c.bf16 %v12980_v0, %v12979_v2 }
0x4490   : > { %v15579_v47 = vpack.c.bf16 %v16067_v5, %v16066_v40  ;;  %v16501_v56 = vpop.eup %16500  ;;  %20235 = vst [vmem:[#allocation68_spill] sm:$0xff] %v19115_v53  ;;  %v9781_v40 = vpop.permute.xlu0 %9780 }
0x4491   : > { %v19117_v18 = vmul.f32 %v16501_v56, %v16493_v16  ;;  %v12981_v16 = vld [vmem:[%s20060_s8 + $0x90] sm:$0xff]  ;;  %v9765_v9 = vpop.permute.xlu1 %9764 }
0x4492   : > { %15580 = vmatprep.subr.bf16.mxu0 %v15579_v47 }
0x4493   : > { %15582 = vmatpush3.bf16.msra.mxu0 %v15579_v47  ;;  %20236 = vst [vmem:[#allocation69_spill] sm:$0xff] %v19117_v18 }
0x4494   : > { %v16503_v12 = vpop.eup %16502  ;;  %15584 = vmatprep.subr.bf16.mxu0 %v15583_v7 }
0x4495   : > { %v19123_v52 = vmul.f32 %v16503_v12, %v16495_v14  ;;  %v12982_v14 = vld [vmem:[%s20060_s8 + $0x98] sm:$0xff]  ;;  %v9767_v54 = vpop.permute.xlu1 %9766 }
0x4496   : > { %14722 = vmatmul.mubr.msk.f32.vlgmr.msra.gmra.mrb[128].mxu0 %vm682_vm0, %v19115_v53  ;;  %v15587_v34 = vpack.c.bf16 %v12982_v14, %v12981_v16  ;;  %v9809_v47 = vsel %vm968_vm1, %v18957_v23, %v9767_v54 }
0x4497   : > { %14724 = vmatprep.mubr.msk.f32.mxu0 %vm682_vm0, %v19117_v18  ;;  %20237 = vst [vmem:[#allocation70_spill] sm:$0xff] %v19123_v52  ;;  %15586 = vmatpush3.bf16.msra.mxu0 %v15583_v7 }
0x4498   : > { %15588 = vmatprep.subr.bf16.mxu0 %v15587_v34 }
0x4499   : > { %v9783_v5 = vpop.permute.xlu1 %9782 }
0x449a   : > { %14725 = vmatmul.mubr.msk.f32.gmra.mrb[130].mxu0 %vm682_vm0, %v19123_v52  ;;  %v9813_v12 = vsel %vm2167_vm3, %v9809_v47, %v9783_v5 }
0x449b   : > { %15590 = vmatpush3.bf16.msra.mxu0 %v15587_v34 }
0x449c   : > { %15600 = vmatprep.subr.bf16.mxu0 %v15599_v29 }
0x4569   : > { %v14723_v45 = vpop.f32.mrb[128].mxu0 }
0x456a   : > { %9798 = vrot.lane.b32.xlu1 %v14723_v45, %s20187_s28  ;;  %v9693_v42 = vpop.f32.mrb[129].mxu0 }
0x456b   : > { %9796 = vrot.lane.b32.xlu0 %v9693_v42, %s20187_s28 }
0x456d   : > { %v14726_v6 = vpop.f32.mrb[130].mxu0 }
0x456e   : > { %9770 = vrot.lane.b32.xlu1 %v19025_v8, %s20181_s19  ;;  %v9703_v21 = vpop.f32.mrb[131].mxu0  ;;  %v9808_v8 = vsel %vm968_vm1, %v18959_v10, %v9765_v9 }
0x456f   : > { %9768 = vrot.lane.b32.xlu0 %v19027_v43, %s20181_s19  ;;  %v13005_v43 = vld [vmem:[%s20058_s6 + $0xb0] sm:$0xff]  ;;  %v9812_v39 = vsel %vm2167_vm3, %v9808_v8, %v9781_v40 }
0x4572   : > { %9786 = vrot.lane.b32.xlu1 %v19085_v22, %s20182_s20  ;;  %v13006_v22 = vld [vmem:[%s20058_s6 + $0xb8] sm:$0xff] }
0x4573   : > { %9784 = vrot.lane.b32.xlu0 %v19087_v57, %s20182_s20  ;;  %v15603_v10 = vpack.c.bf16 %v13006_v22, %v13005_v43 }
0x4576   : > { %9802 = vrot.lane.b32.xlu1 %v14726_v6, %s20187_s28 }
0x4577   : > { %9800 = vrot.lane.b32.xlu0 %v9703_v21, %s20187_s28 }
0x45dc   : > { %v9799_v57 = vpop.permute.xlu1 %9798 }
0x45dd   : > { %v9797_v56 = vpop.permute.xlu0 %9796  ;;  %v9817_v0 = vsel %vm2172_vm4, %v9813_v12, %v9799_v57  ;;  %v13007_v12 = vld [vmem:[%s20063_s11 + $0x1f] ss:$0 sm:$0xff] }
0x45de   : > { %v9816_v2 = vsel %vm2172_vm4, %v9812_v39, %v9797_v56 }
0x45df   : > { %14735 = vmatprep.mubr.msk.f32.mxu0 %vm682_vm0, %v9816_v2 }
0x45e0   : > { %v9771_v16 = vpop.permute.xlu1 %9770  ;;  %14736 = vmatmul.mubr.msk.f32.vlgmr.msra.gmra.mrb[132].mxu0 %vm682_vm0, %v9817_v0 }
0x45e1   : > { %v9769_v7 = vpop.permute.xlu0 %9768  ;;  %15602 = vmatpush3.bf16.msra.mxu0 %v15599_v29  ;;  %v9811_v46 = vsel %vm968_vm1, %v18961_v44, %v9771_v16  ;;  %v12983_v44 = vld [vmem:[%s20063_s11 + $0x1b] ss:$0 sm:$0xff] }
0x45e2   : > { %15604 = vmatprep.subr.bf16.mxu0 %v15603_v10  ;;  %v9810_v34 = vsel %vm968_vm1, %v18963_v37, %v9769_v7 }
0x45e4   : > { %v9787_v14 = vpop.permute.xlu1 %9786 }
0x45e5   : > { %v9785_v23 = vpop.permute.xlu0 %9784  ;;  %15606 = vmatpush3.bf16.msra.mxu0 %v15603_v10  ;;  %v9815_v6 = vsel %vm2167_vm3, %v9811_v46, %v9787_v14 }
0x45e6   : > { %v9814_v45 = vsel %vm2167_vm3, %v9810_v34, %v9785_v23 }
0x45e8   : > { %v9803_v61 = vpop.permute.xlu1 %9802 }
0x45e9   : > { %v9801_v42 = vpop.permute.xlu0 %9800  ;;  %v9819_v29 = vsel %vm2172_vm4, %v9815_v6, %v9803_v61 }
0x45ea   : > { %v9818_v21 = vsel %vm2172_vm4, %v9814_v45, %v9801_v42 }
0x45eb   : > { %14738 = vmatprep.mubr.msk.f32.mxu0 %vm682_vm0, %v9818_v21 }
0x45ec   : > { %14739 = vmatmul.mubr.msk.f32.gmra.mrb[134].mxu0 %vm682_vm0, %v9819_v29 }
0x45ed   : > { %14763 = vmatprep.mubr.msk.f32.mxu0 %vm682_vm0, %v18271_v38 }
0x45f0   : > { %14764 = vmatmul.mubr.msk.f32.vlgmr.msra.gmra.mrb[136].mxu0 %vm682_vm0, %v18274_v62 }
0x45f1   : > { %14766 = vmatprep.mubr.msk.f32.mxu0 %vm682_vm0, %v18286_v26 }
0x45f4   : > { %14767 = vmatmul.mubr.msk.f32.gmra.mrb[138].mxu0 %vm682_vm0, %v18288_v48 }
0x46b3   : > { %v14737_v37 = vpop.f32.mrb[132].mxu0 }
0x46b4   : > { %v9914_v9 = vadd.f32 %v14737_v37, %v12983_v44  ;;  %v9908_v54 = vpop.f32.mrb[133].mxu0 }
0x46b5   : > { %v9909_v5 = vadd.f32 %v12983_v44, %v9908_v54 }
0x46b6   : > { %v9928_v40 = vadd.f32 %v9914_v9, %v18820_v59 }
0x46b7   : > { %v9927_v8 = vadd.f32 %v9909_v5, %v18818_v28 }
0x46b8   : > { %v9936_v43 = vsel %vm682_vm0, %v9928_v40, 0.0 }
0x46b9   : > { %9937 = vadd.xlane.f32.xlu1 %v9936_v43  ;;  %v9933_v22 = vsel %vm682_vm0, %v9927_v8, 0.0 }
0x46ba   : > { %9934 = vadd.xlane.f32.xlu0 %v9933_v22 }
0x46bf   : > { %v14740_v57 = vpop.f32.mrb[134].mxu0 }
0x46c0   : > { %v9918_v47 = vpop.f32.mrb[135].mxu0  ;;  %v9924_v39 = vadd.f32 %v14740_v57, %v12983_v44 }
0x46c1   : > { %v9919_v56 = vadd.f32 %v12983_v44, %v9918_v47 }
0x46c2   : > { %v9930_v28 = vadd.f32 %v9924_v39, %v18834_v60 }
0x46c3   : > { %v9929_v2 = vadd.f32 %v9919_v56, %v18832_v55  ;;  %v14765_v10 = vpop.f32.mrb[136].mxu0 }
0x46c4   : > { %v10195_v59 = vadd.f32 %v14765_v10, %v13007_v12  ;;  %v10189_v0 = vpop.f32.mrb[137].mxu0  ;;  %v9942_v55 = vsel %vm682_vm0, %v9930_v28, 0.0 }
0x46c5   : > { %v10190_v16 = vadd.f32 %v13007_v12, %v10189_v0  ;;  %v9939_v7 = vsel %vm682_vm0, %v9929_v2, 0.0 }
0x46c6   : > { %9940 = vadd.xlane.f32.xlu0 %v9939_v7  ;;  %v12995_v7 = vld [vmem:[%s20057_s5 + $0xa8] sm:$0xff] }
0x46c7   : > { %v14768_v14 = vpop.f32.mrb[138].mxu0  ;;  %v15615_v23 = vpack.c.bf16 %v10195_v59, %v10190_v16  ;;  %v19204_v34 = vpack.i.bf16 %v10195_v59, %v10190_v16  ;;  %v12994_v16 = vld [vmem:[%s20057_s5 + $0xa0] sm:$0xff] }
0x46c8   : > { %v10205_v61 = vadd.f32 %v14768_v14, %v13007_v12  ;;  %v10199_v46 = vpop.f32.mrb[139].mxu0  ;;  %v12997_v14 = vld [vmem:[%s20057_s5 + $0xb8] sm:$0xff] }
0x46c9   : > { %v10200_v45 = vadd.f32 %v13007_v12, %v10199_v46  ;;  %15617 = vmatprep.subr.msk.bf16.mxu0 %vm16818_vm2, %v15615_v23  ;;  %v13013_v46 = vld [vmem:[%s20059_s7 + $0xa8] sm:$0xff] }
0x46ca   : > { %15620 = vmatpush3.bf16.xpose.msk.msra.mxu0 %vm16818_vm2, %v15615_v23  ;;  %9943 = vadd.xlane.f32.xlu0 %v9942_v55 }
0x46cb   : > { %v15621_v60 = vpack.c.bf16 %v10205_v61, %v10200_v45  ;;  %v19211_v42 = vpack.i.bf16 %v10205_v61, %v10200_v45  ;;  %v13012_v61 = vld [vmem:[%s20059_s7 + $0xa0] sm:$0xff] }
0x46cc   : > { %v15607_v45 = vpack.c.bf16 %v13013_v46, %v13012_v61 }
0x46cd   : > { %15623 = vmatprep.subr.msk.bf16.mxu0 %vm16818_vm2, %v15621_v60 }
0x46d2   : > { %15626 = vmatpush3.bf16.xpose.msk.msra.mxu0 %vm16818_vm2, %v15621_v60 }
0x4746   : > { %v9938_v6 = vpop.xlane.xlu1 %9937 }
0x4747   : > { %v9946_v21 = vmul.f32 0.03125, %v9938_v6  ;;  %v9935_v29 = vpop.xlane.xlu0 %9934 }
0x4748   : > { %v9945_v44 = vmul.f32 0.03125, %v9935_v29 }
0x4749   : > { %v9950_v37 = vsub.f32 %v9928_v40, %v9946_v21 }
0x474a   : > { %v9949_v9 = vsub.f32 %v9927_v8, %v9945_v44 }
0x474b   : > { %v9954_v54 = vmul.f32 %v9950_v37, %v9950_v37 }
0x474c   : > { %v9953_v5 = vmul.f32 %v9949_v9, %v9949_v9 }
0x474d   : > { %v9960_v43 = vsel %vm682_vm0, %v9954_v54, 0.0 }
0x474e   : > { %9961 = vadd.xlane.f32.xlu1 %v9960_v43  ;;  %v9957_v22 = vsel %vm682_vm0, %v9953_v5, 0.0 }
0x474f   : > { %9958 = vadd.xlane.f32.xlu0 %v9957_v22  ;;  %v12988_v22 = vld [vmem:[%s20063_s11 + $0x1c] ss:$0 sm:$0xff] }
0x4753   : > { %v9941_v57 = vpop.xlane.xlu0 %9940 }
0x4754   : > { %v9947_v47 = vmul.f32 0.03125, %v9941_v57 }
0x4756   : > { %v9951_v39 = vsub.f32 %v9929_v2, %v9947_v47  ;;  %v15591_v2 = vpack.c.bf16 %v12995_v7, %v12994_v16  ;;  %v13014_v7 = vld [vmem:[%s20059_s7 + $0xb0] sm:$0xff] }
0x4757   : > { %v9944_v56 = vpop.xlane.xlu0 %9943 }
0x4758   : > { %v9948_v12 = vmul.f32 0.03125, %v9944_v56  ;;  %v9955_v10 = vmul.f32 %v9951_v39, %v9951_v39  ;;  %15592 = vmatprep.subr.bf16.mxu1 %v15591_v2 }
0x4759   : > { %15594 = vmatpush3.bf16.msra.mxu1 %v15591_v2  ;;  %v13015_v2 = vld [vmem:[%s20059_s7 + $0xb8] sm:$0xff] }
0x475a   : > { %v9952_v59 = vsub.f32 %v9930_v28, %v9948_v12  ;;  %v9963_v0 = vsel %vm682_vm0, %v9955_v10, 0.0  ;;  %v12996_v28 = vld [vmem:[%s20057_s5 + $0xb0] sm:$0xff] }
0x475b   : > { %9964 = vadd.xlane.f32.xlu0 %v9963_v0  ;;  %v15595_v23 = vpack.c.bf16 %v12997_v14, %v12996_v28  ;;  %v15611_v14 = vpack.c.bf16 %v13015_v2, %v13014_v7 }
0x475c   : > { %v9956_v40 = vmul.f32 %v9952_v59, %v9952_v59 }
0x475d   : > { %15596 = vmatprep.subr.bf16.mxu1 %v15595_v23 }
0x475e   : > { %v9966_v8 = vsel %vm682_vm0, %v9956_v40, 0.0  ;;  %15598 = vmatpush3.bf16.msra.mxu1 %v15595_v23  ;;  %v12989_v40 = vld [vmem:[%s20063_s11 + $0x1d] ss:$0 sm:$0xff] }
0x475f   : > { %9967 = vadd.xlane.f32.xlu1 %v9966_v8  ;;  %15608 = vmatprep.subr.bf16.mxu1 %v15607_v45 }
0x47db   : > { %v9962_v55 = vpop.xlane.xlu1 %9961 }
0x47dc   : > { %v9970_v60 = vmul.f32 0.03125, %v9962_v55  ;;  %v9959_v6 = vpop.xlane.xlu0 %9958 }
0x47dd   : > { %v9969_v21 = vmul.f32 0.03125, %v9959_v6 }
0x47de   : > { %v9974_v29 = vadd.f32 1e-05, %v9970_v60 }
0x47df   : > { %v9973_v44 = vadd.f32 1e-05, %v9969_v21 }
0x47e0   : > { %16504 = vrsqrt.f32 %v9974_v29 }
0x47e1   : > { %16506 = vrsqrt.f32 %v9973_v44 }
0x47e8   : > { %v9965_v54 = vpop.xlane.xlu0 %9964 }
0x47e9   : > { %v9971_v5 = vmul.f32 0.03125, %v9965_v54 }
0x47ea   : > { %v16505_v43 = vpop.eup %16504 }
0x47eb   : > { %v16507_v57 = vpop.eup %16506  ;;  %v9982_v47 = vmul.f32 %v16505_v43, %v9950_v37  ;;  %v9975_v56 = vadd.f32 1e-05, %v9971_v5 }
0x47ec   : > { %v9968_v12 = vpop.xlane.xlu1 %9967  ;;  %v9981_v10 = vmul.f32 %v16507_v57, %v9949_v9 }
0x47ed   : > { %16508 = vrsqrt.f32 %v9975_v56  ;;  %v9972_v0 = vmul.f32 0.03125, %v9968_v12  ;;  %v9990_v8 = vmul.f32 %v12988_v22, %v9982_v47 }
0x47ee   : > { %v9989_v16 = vmul.f32 %v12988_v22, %v9981_v10 }
0x47ef   : > { %v9976_v37 = vadd.f32 1e-05, %v9972_v0  ;;  %v19253_v9 = vadd.f32 %v12989_v40, %v9990_v8 }
0x47f0   : > { %v19251_v28 = vadd.f32 %v12989_v40, %v9989_v16 }
0x47f1   : > { %16510 = vrsqrt.f32 %v9976_v37 }
0x47f2   : > { %14749 = vmatprep.mubr.msk.f32.mxu1 %vm682_vm0, %v19251_v28 }
0x47f3   : > { %14750 = vmatmul.mubr.msk.f32.vlgmr.msra.gmra.mrb[128].mxu1 %vm682_vm0, %v19253_v9 }
0x47f4   : > { %15610 = vmatpush3.bf16.msra.mxu1 %v15607_v45 }
0x47f5   : > { %15612 = vmatprep.subr.bf16.mxu1 %v15611_v14 }
0x47f7   : > { %v16509_v23 = vpop.eup %16508 }
0x47f8   : > { %v9983_v61 = vmul.f32 %v16509_v23, %v9951_v39  ;;  %15614 = vmatpush3.bf16.msra.mxu1 %v15611_v14  ;;  %v12998_v39 = vld [vmem:[%s20063_s11 + $0x1e] ss:$0 sm:$0xff] }
0x47fa   : > { %v9991_v46 = vmul.f32 %v12988_v22, %v9983_v61  ;;  %v19302_v61 = vld [vmem:[%s18385_s26 + $0x8] sm:$0xff] }
0x47fb   : > { %v16511_v55 = vpop.eup %16510 }
0x47fc   : > { %v19259_v60 = vadd.f32 %v12989_v40, %v9991_v46  ;;  %v9984_v6 = vmul.f32 %v16511_v55, %v9952_v59  ;;  %v19306_v55 = vld [vmem:[%s18385_s26] sm:$0xff] }
0x47fe   : > { %14752 = vmatprep.mubr.msk.f32.mxu1 %vm682_vm0, %v19259_v60  ;;  %v9992_v21 = vmul.f32 %v12988_v22, %v9984_v6 }
0x4800   : > { %v19263_v29 = vadd.f32 %v12989_v40, %v9992_v21 }
0x4802   : > { %14753 = vmatmul.mubr.msk.f32.gmra.mrb[130].mxu1 %vm682_vm0, %v19263_v29 }
0x4803   : > { %14777 = vmatprep.mubr.msk.f32.mxu1 %vm682_vm0, %v18271_v38 }
0x4806   : > { %14778 = vmatmul.mubr.msk.f32.vlgmr.msra.gmra.mrb[132].mxu1 %vm682_vm0, %v18274_v62 }
0x4807   : > { %14780 = vmatprep.mubr.msk.f32.mxu1 %vm682_vm0, %v18286_v26 }
0x480a   : > { %14781 = vmatmul.mubr.msk.f32.gmra.mrb[134].mxu1 %vm682_vm0, %v18288_v48  ;;  %v13016_v48 = vld [vmem:[%s20063_s11 + $0x20] ss:$0 sm:$0xff] }
0x48c6   : > { %v14751_v59 = vpop.f32.mrb[128].mxu1 }
0x48c7   : > { %v10094_v45 = vpop.f32.mrb[129].mxu1  ;;  %v19280_v54 = vadd.f32 %v14751_v59, %v12998_v39 }
0x48c8   : > { %v19278_v44 = vadd.f32 %v12998_v39, %v10094_v45 }
0x48ca   : > { %14791 = vmatprep.mubr.msk.f32.mxu0 %vm968_vm1, %v19278_v44 }
0x48cb   : > { %14792 = vmatmul.mubr.msk.f32.vlgmr.msra.gmra.mrb[140].mxu0 %vm968_vm1, %v19280_v54 }
0x48d5   : > { %v14754_v38 = vpop.f32.mrb[130].mxu1 }
0x48d6   : > { %v10104_v62 = vpop.f32.mrb[131].mxu1  ;;  %v19291_v5 = vadd.f32 %v14754_v38, %v12998_v39 }
0x48d7   : > { %v19286_v26 = vadd.f32 %v12998_v39, %v10104_v62 }
0x48d9   : > { %v14779_v43 = vpop.f32.mrb[132].mxu1  ;;  %14794 = vmatprep.mubr.msk.f32.mxu0 %vm968_vm1, %v19286_v26 }
0x48da   : > { %v10290_v22 = vadd.f32 %v14779_v43, %v13016_v48  ;;  %v10284_v57 = vpop.f32.mrb[133].mxu1  ;;  %14795 = vmatmul.mubr.msk.f32.gmra.mrb[142].mxu0 %vm968_vm1, %v19291_v5 }
0x48db   : > { %v10285_v47 = vadd.f32 %v13016_v48, %v10284_v57 }
0x48dd   : > { %v14782_v56 = vpop.f32.mrb[134].mxu1  ;;  %v15627_v12 = vpack.c.bf16 %v10290_v22, %v10285_v47  ;;  %v19297_v10 = vpack.i.bf16 %v10290_v22, %v10285_v47  ;;  %v19316_v22 = vld [vmem:[%s18385_s26 + $0x10] sm:$0xff] }
0x48de   : > { %v10300_v0 = vadd.f32 %v14782_v56, %v13016_v48  ;;  %v10294_v40 = vpop.f32.mrb[135].mxu1 }
0x48df   : > { %v10295_v8 = vadd.f32 %v13016_v48, %v10294_v40  ;;  %15628 = vmatprep.subr.bf16.mxu1 %v15627_v12  ;;  %v19312_v48 = vld [vmem:[%s18385_s26 + $0x18] sm:$0xff] }
0x48e0   : > { %15630 = vmatpush3.bf16.msra.mxu1 %v15627_v12 }
0x48e1   : > { %v15631_v16 = vpack.c.bf16 %v10300_v0, %v10295_v8  ;;  %v19299_v7 = vpack.i.bf16 %v10300_v0, %v10295_v8 }
0x48e3   : > { %15632 = vmatprep.subr.bf16.mxu1 %v15631_v16 }
0x48e4   : > { %15634 = vmatpush3.bf16.msra.mxu1 %v15631_v16 }
0x499e   : > { %v14793_v2 = vpop.f32.mrb[140].mxu0 }
0x499f   : > { %v10413_v37 = vmul.f32 0.35355338, %v14793_v2  ;;  %v10393_v14 = vpop.f32.mrb[141].mxu0 }
0x49a0   : > { %v10412_v23 = vmul.f32 0.35355338, %v10393_v14 }
0x49a1   : > { %v10417_v46 = vadd.f32 %v19302_v61, %v10413_v37 }
0x49a2   : > { %v10416_v6 = vadd.f32 %v19306_v55, %v10412_v23 }
0x49a3   : > { %v10423_v21 = vsel %vm682_vm0, %v10417_v46, -inf }
0x49a4   : > { %10424 = vmax.xlane.f32.xlu1 %v10423_v21  ;;  %v10420_v39 = vsel %vm682_vm0, %v10416_v6, -inf }
0x49a5   : > { %10421 = vmax.xlane.f32.xlu0 %v10420_v39 }
0x49ad   : > { %v14796_v59 = vpop.f32.mrb[142].mxu0 }
0x49ae   : > { %v10415_v45 = vmul.f32 0.35355338, %v14796_v59  ;;  %v10403_v38 = vpop.f32.mrb[143].mxu0 }
0x49af   : > { %v10414_v62 = vmul.f32 0.35355338, %v10403_v38 }
0x49b0   : > { %v10419_v43 = vadd.f32 %v19312_v48, %v10415_v45 }
0x49b1   : > { %v10418_v57 = vadd.f32 %v19316_v22, %v10414_v62 }
0x49b2   : > { %v10429_v47 = vsel %vm682_vm0, %v10419_v43, -inf }
0x49b3   : > { %10430 = vmax.xlane.f32.xlu1 %v10429_v47  ;;  %v10426_v56 = vsel %vm682_vm0, %v10418_v57, -inf }
0x49b4   : > { %10427 = vmax.xlane.f32.xlu0 %v10426_v56 }
0x4a31   : > { %v10425_v12 = vpop.xlane.xlu1 %10424 }
0x4a32   : > { %v10433_v0 = vsub.f32 %v10417_v46, %v10425_v12  ;;  %v10422_v40 = vpop.xlane.xlu0 %10421 }
0x4a33   : > { %v10432_v8 = vsub.f32 %v10416_v6, %v10422_v40 }
0x4a34   : > { %v10438_v16 = vmul.f32 1.442695, %v10433_v0 }
0x4a35   : > { %v10436_v2 = vmul.f32 1.442695, %v10432_v8 }
0x4a36   : > { %16512 = vpow2.f32 %v10438_v16 }
0x4a37   : > { %16514 = vpow2.f32 %v10436_v2 }
0x4a40   : > { %v16513_v37 = vpop.eup %16512  ;;  %v10431_v14 = vpop.xlane.xlu1 %10430 }
0x4a41   : > { %v16515_v23 = vpop.eup %16514  ;;  %v10435_v21 = vsub.f32 %v10419_v43, %v10431_v14  ;;  %v10428_v39 = vpop.xlane.xlu0 %10427  ;;  %v10447_v59 = vsel %vm682_vm0, %v16513_v37, 0.0 }
0x4a42   : > { %v10434_v45 = vsub.f32 %v10418_v57, %v10428_v39  ;;  %10448 = vadd.xlane.f32.xlu1 %v10447_v59  ;;  %v10444_v38 = vsel %vm682_vm0, %v16515_v23, 0.0 }
0x4a43   : > { %v10442_v62 = vmul.f32 1.442695, %v10435_v21  ;;  %10445 = vadd.xlane.f32.xlu0 %v10444_v38 }
0x4a44   : > { %v10440_v46 = vmul.f32 1.442695, %v10434_v45 }
0x4a45   : > { %16516 = vpow2.f32 %v10442_v62 }
0x4a46   : > { %16518 = vpow2.f32 %v10440_v46 }
0x4a4f   : > { %v16517_v6 = vpop.eup %16516 }
0x4a50   : > { %v16519_v47 = vpop.eup %16518  ;;  %v10453_v56 = vsel %vm682_vm0, %v16517_v6, 0.0 }
0x4a51   : > { %10454 = vadd.xlane.f32.xlu1 %v10453_v56  ;;  %v10450_v12 = vsel %vm682_vm0, %v16519_v47, 0.0 }
0x4a52   : > { %10451 = vadd.xlane.f32.xlu0 %v10450_v12 }
0x4a62   : > { %16074 = vrot.lane.b32.xlu1 %v19211_v42, %s20173_s0 }
0x4a66   : > { %10561 = vrot.lane.b32.xlu1 %v19278_v44, %s20173_s0 }
0x4a68   : > { %16069 = vrot.lane.b32.xlu0 %v19204_v34, %s20173_s0 }
0x4a6a   : > { %10563 = vrot.lane.b32.xlu1 %v19280_v54, %s20173_s0 }
0x4a6c   : > { %10565 = vrot.lane.b32.xlu0 %v19286_v26, %s20173_s0 }
0x4a6e   : > { %10567 = vrot.lane.b32.xlu1 %v19291_v5, %s20173_s0 }
0x4acf   : > { %v10449_v43 = vpop.xlane.xlu1 %10448 }
0x4ad0   : > { %16520 = vrcp.f32 %v10449_v43  ;;  %v10446_v57 = vpop.xlane.xlu0 %10445 }
0x4ad1   : > { %16522 = vrcp.f32 %v10446_v57 }
0x4ada   : > { %v16521_v0 = vpop.eup %16520 }
0x4adb   : > { %v16523_v40 = vpop.eup %16522  ;;  %v19339_v16 = vmul.f32 %v16521_v0, %v16513_v37 }
0x4adc   : > { %v19337_v8 = vmul.f32 %v16523_v40, %v16515_v23 }
0x4add   : > { %20239 = vst [vmem:[#allocation72_spill] sm:$0xff] %v19339_v16 }
0x4ade   : > { %20238 = vst [vmem:[#allocation71_spill] sm:$0xff] %v19337_v8  ;;  %v10455_v2 = vpop.xlane.xlu1 %10454  ;;  %14805 = vmatprep.mubr.msk.f32.mxu1 %vm682_vm0, %v19337_v8 }
0x4adf   : > { %16524 = vrcp.f32 %v10455_v2  ;;  %14806 = vmatmul.mubr.msk.f32.vlgmr.msra.gmra.mrb[136].mxu1 %vm682_vm0, %v19339_v16  ;;  %v10452_v14 = vpop.xlane.xlu0 %10451 }
0x4ae0   : > { %16526 = vrcp.f32 %v10452_v14 }
0x4ae2   : > { %v16075_v21 = vpop.permute.xlu1 %16074 }
0x4ae3   : > { %v16070_v39 = vpop.permute.xlu0 %16069  ;;  %v16077_v59 = vunpack.i.h.bf16 %v16075_v21  ;;  %v16076_v45 = vunpack.i.l.bf16 %v16075_v21 }
0x4ae4   : > { %v16072_v38 = vunpack.i.h.bf16 %v16070_v39  ;;  %v16071_v62 = vunpack.i.l.bf16 %v16070_v39 }
0x4ae5   : > { %v15641_v46 = vpack.c.bf16 %v16077_v59, %v16076_v45 }
0x4ae6   : > { %v15635_v23 = vpack.c.bf16 %v16072_v38, %v16071_v62  ;;  %v10562_v57 = vpop.permute.xlu1 %10561 }
0x4ae7   : > { %v10566_v40 = vpop.permute.xlu0 %10565 }
0x4ae8   : > { %15637 = vmatprep.subr.msk.bf16.mxu1 %vm16818_vm2, %v15635_v23 }
0x4ae9   : > { %v16525_v37 = vpop.eup %16524  ;;  %15640 = vmatpush3.bf16.xpose.msk.msra.mxu1 %vm16818_vm2, %v15635_v23 }
0x4aea   : > { %v16527_v56 = vpop.eup %16526  ;;  %15643 = vmatprep.subr.msk.bf16.mxu1 %vm16818_vm2, %v15641_v46  ;;  %v19353_v43 = vmul.f32 %v16525_v37, %v16517_v6  ;;  %v10564_v0 = vpop.permute.xlu1 %10563 }
0x4aeb   : > { %v19351_v12 = vmul.f32 %v16527_v56, %v16519_v47 }
0x4aec   : > { %20241 = vst [vmem:[#allocation74_spill] sm:$0xff] %v19353_v43 }
0x4aed   : > { %20240 = vst [vmem:[#allocation73_spill] sm:$0xff] %v19351_v12  ;;  %14808 = vmatprep.mubr.msk.f32.mxu1 %vm682_vm0, %v19351_v12 }
0x4aee   : > { %14809 = vmatmul.mubr.msk.f32.gmra.mrb[138].mxu1 %vm682_vm0, %v19353_v43  ;;  %v10568_v6 = vpop.permute.xlu1 %10567 }
0x4aef   : > { %14819 = vmatprep.mubr.msk.f32.mxu1 %vm968_vm1, %v10562_v57 }
0x4af1   : > { %15646 = vmatpush3.bf16.xpose.msk.msra.mxu1 %vm16818_vm2, %v15641_v46 }
0x4af8   : > { %14820 = vmatmul.mubr.msk.f32.vlgmr.msra.gmra.mrb[140].mxu1 %vm968_vm1, %v10564_v0 }
0x4af9   : > { %14822 = vmatprep.mubr.msk.f32.mxu1 %vm968_vm1, %v10566_v40 }
0x4afc   : > { %14823 = vmatmul.mubr.msk.f32.gmra.mrb[142].mxu1 %vm968_vm1, %v10568_v6 }
0x4bb2   : > { %v19365_v47 = vpop.f32.mrb[136].mxu1 }
0x4bb3   : > { %v19367_v2 = vpop.f32.mrb[137].mxu1 }
0x4bc1   : > { %v19369_v14 = vpop.f32.mrb[138].mxu1 }
0x4bc2   : > { %v19371_v21 = vpop.f32.mrb[139].mxu1 }
0x4bcb   : > { %v14821_v39 = vpop.f32.mrb[140].mxu1 }
0x4bcc   : > { %v10679_v59 = vmul.f32 0.35355338, %v14821_v39  ;;  %v10659_v45 = vpop.f32.mrb[141].mxu1 }
0x4bcd   : > { %v10678_v38 = vmul.f32 0.35355338, %v10659_v45 }
0x4bce   : > { %v10683_v62 = vadd.f32 %v19302_v61, %v10679_v59 }
0x4bcf   : > { %v10682_v23 = vadd.f32 %v19306_v55, %v10678_v38  ;;  %v14824_v46 = vpop.f32.mrb[142].mxu1 }
0x4bd0   : > { %v10669_v37 = vpop.f32.mrb[143].mxu1  ;;  %v10689_v56 = vsel %vm682_vm0, %v10683_v62, -inf  ;;  %v10681_v57 = vmul.f32 0.35355338, %v14824_v46 }
0x4bd1   : > { %v10680_v0 = vmul.f32 0.35355338, %v10669_v37  ;;  %10690 = vmax.xlane.f32.xlu1 %v10689_v56  ;;  %v10686_v40 = vsel %vm682_vm0, %v10682_v23, -inf }
0x4bd2   : > { %10687 = vmax.xlane.f32.xlu0 %v10686_v40  ;;  %v10685_v39 = vadd.f32 %v19312_v48, %v10681_v57 }
0x4bd3   : > { %v10684_v6 = vadd.f32 %v19316_v22, %v10680_v0 }
0x4bd4   : > { %v10695_v59 = vsel %vm682_vm0, %v10685_v39, -inf }
0x4bd5   : > { %v10692_v45 = vsel %vm682_vm0, %v10684_v6, -inf }
0x4bd6   : > { %10693 = vmax.xlane.f32.xlu0 %v10692_v45 }
0x4bda   : > { %10696 = vmax.xlane.f32.xlu0 %v10695_v59 }
0x4c5e   : > { %v10691_v38 = vpop.xlane.xlu1 %10690 }
0x4c5f   : > { %v10699_v43 = vsub.f32 %v10683_v62, %v10691_v38  ;;  %v10688_v16 = vpop.xlane.xlu0 %10687 }
0x4c60   : > { %v10698_v12 = vsub.f32 %v10682_v23, %v10688_v16 }
0x4c61   : > { %v10704_v46 = vmul.f32 1.442695, %v10699_v43 }
0x4c62   : > { %v10702_v37 = vmul.f32 1.442695, %v10698_v12 }
0x4c63   : > { %16528 = vpow2.f32 %v10704_v46  ;;  %v10694_v16 = vpop.xlane.xlu0 %10693 }
0x4c64   : > { %16530 = vpow2.f32 %v10702_v37  ;;  %v10700_v12 = vsub.f32 %v10684_v6, %v10694_v16 }
0x4c66   : > { %v10706_v43 = vmul.f32 1.442695, %v10700_v12 }
0x4c67   : > { %v10697_v62 = vpop.xlane.xlu0 %10696 }
0x4c68   : > { %v10701_v23 = vsub.f32 %v10685_v39, %v10697_v62  ;;  %16532 = vpow2.f32 %v10706_v43 }
0x4c6a   : > { %v10708_v45 = vmul.f32 1.442695, %v10701_v23 }
0x4c6c   : > { %16534 = vpow2.f32 %v10708_v45 }
0x4c6d   : > { %v16529_v56 = vpop.eup %16528 }
0x4c6e   : > { %v16531_v40 = vpop.eup %16530  ;;  %v10713_v0 = vsel %vm682_vm0, %v16529_v56, 0.0 }
0x4c6f   : > { %10714 = vadd.xlane.f32.xlu1 %v10713_v0  ;;  %v10710_v57 = vsel %vm682_vm0, %v16531_v40, 0.0 }
0x4c70   : > { %10711 = vadd.xlane.f32.xlu0 %v10710_v57 }
0x4c72   : > { %v16533_v59 = vpop.eup %16532 }
0x4c73   : > { %v10716_v38 = vsel %vm682_vm0, %v16533_v59, 0.0 }
0x4c76   : > { %v16535_v46 = vpop.eup %16534 }
0x4c77   : > { %v10719_v37 = vsel %vm682_vm0, %v16535_v46, 0.0 }
0x4c80   : > { %16084 = vrot.lane.b32.xlu1 %v19299_v7, %s20173_s0 }
0x4c84   : > { %16089 = vrot.lane.b32.xlu1 %v19204_v34, %s20178_s2 }
0x4c86   : > { %16079 = vrot.lane.b32.xlu0 %v19297_v10, %s20173_s0 }
0x4c88   : > { %16094 = vrot.lane.b32.xlu1 %v19211_v42, %s20178_s2 }
0x4ca5   : > { %10717 = vadd.xlane.f32.xlu0 %v10716_v38 }
0x4cac   : > { %10720 = vadd.xlane.f32.xlu1 %v10719_v37 }
0x4cbb   : > { %10843 = vrot.lane.b32.xlu0 %v19278_v44, %s20178_s2 }
0x4cbd   : > { %10845 = vrot.lane.b32.xlu1 %v19280_v54, %s20178_s2 }
0x4cbf   : > { %10847 = vrot.lane.b32.xlu0 %v19286_v26, %s20178_s2 }
0x4cc1   : > { %10849 = vrot.lane.b32.xlu1 %v19291_v5, %s20178_s2 }
0x4cfc   : > { %v10715_v6 = vpop.xlane.xlu1 %10714 }
0x4cfd   : > { %v10712_v39 = vpop.xlane.xlu0 %10711 }
0x4cfe   : > { %16536 = vrcp.f32 %v10712_v39 }
0x4cff   : > { %16538 = vrcp.f32 %v10715_v6 }
0x4d00   : > { %v16085_v0 = vpop.permute.xlu1 %16084 }
0x4d01   : > { %v16080_v57 = vpop.permute.xlu0 %16079  ;;  %v16087_v16 = vunpack.i.h.bf16 %v16085_v0  ;;  %v16086_v12 = vunpack.i.l.bf16 %v16085_v0 }
0x4d02   : > { %v16082_v43 = vunpack.i.h.bf16 %v16080_v57  ;;  %v16081_v62 = vunpack.i.l.bf16 %v16080_v57 }
0x4d03   : > { %v15651_v8 = vpack.c.bf16 %v16087_v16, %v16086_v12 }
0x4d04   : > { %v16090_v23 = vpop.permute.xlu1 %16089  ;;  %v15647_v45 = vpack.c.bf16 %v16082_v43, %v16081_v62 }
0x4d05   : > { %v16092_v38 = vunpack.i.h.bf16 %v16090_v23  ;;  %v16091_v37 = vunpack.i.l.bf16 %v16090_v23 }
0x4d06   : > { %15648 = vmatprep.subr.bf16.mxu0 %v15647_v45 }
0x4d07   : > { %15650 = vmatpush3.bf16.msra.mxu0 %v15647_v45  ;;  %v15655_v39 = vpack.c.bf16 %v16092_v38, %v16091_v37 }
0x4d08   : > { %v16537_v52 = vpop.eup %16536  ;;  %15652 = vmatprep.subr.bf16.mxu0 %v15651_v8  ;;  %v16095_v0 = vpop.permute.xlu1 %16094 }
0x4d09   : > { %v16539_v18 = vpop.eup %16538  ;;  %v19401_v53 = vmul.f32 %v16537_v52, %v16531_v40  ;;  %v16097_v57 = vunpack.i.h.bf16 %v16095_v0  ;;  %v16096_v16 = vunpack.i.l.bf16 %v16095_v0 }
0x4d0a   : > { %v19405_v6 = vmul.f32 %v16539_v18, %v16529_v56 }
0x4d0b   : > { %15654 = vmatpush3.bf16.msra.mxu0 %v15651_v8  ;;  %14833 = vmatprep.mubr.msk.f32.mxu0 %vm682_vm0, %v19401_v53  ;;  %v15661_v12 = vpack.c.bf16 %v16097_v57, %v16096_v16 }
0x4d0c   : > { %15657 = vmatprep.subr.msk.bf16.mxu0 %vm16818_vm2, %v15655_v39 }
0x4d0e   : > { %14834 = vmatmul.mubr.msk.f32.vlgmr.msra.gmra.mrb[144].mxu0 %vm682_vm0, %v19405_v6 }
0x4d14   : > { %15660 = vmatpush3.bf16.xpose.msk.msra.mxu0 %vm16818_vm2, %v15655_v39 }
0x4d15   : > { %15663 = vmatprep.subr.msk.bf16.mxu0 %vm16818_vm2, %v15661_v12 }
0x4d1c   : > { %15666 = vmatpush3.bf16.xpose.msk.msra.mxu0 %vm16818_vm2, %v15661_v12 }
0x4d32   : > { %v10718_v18 = vpop.xlane.xlu0 %10717 }
0x4d33   : > { %16540 = vrcp.f32 %v10718_v18 }
0x4d36   : > { %v10844_v43 = vpop.permute.xlu0 %10843 }
0x4d39   : > { %v10721_v52 = vpop.xlane.xlu1 %10720 }
0x4d3a   : > { %16542 = vrcp.f32 %v10721_v52  ;;  %v10848_v45 = vpop.permute.xlu0 %10847 }
0x4d3d   : > { %v16541_v8 = vpop.eup %16540  ;;  %v10846_v23 = vpop.permute.xlu1 %10845 }
0x4d3e   : > { %v19417_v56 = vmul.f32 %v16541_v8, %v16533_v59 }
0x4d40   : > { %14836 = vmatprep.mubr.msk.f32.mxu0 %vm682_vm0, %v19417_v56 }
0x4d41   : > { %v10850_v59 = vpop.permute.xlu1 %10849 }
0x4d44   : > { %v16543_v40 = vpop.eup %16542 }
0x4d45   : > { %v19421_v62 = vmul.f32 %v16543_v40, %v16535_v46 }
0x4d47   : > { %14837 = vmatmul.mubr.msk.f32.gmra.mrb[146].mxu0 %vm682_vm0, %v19421_v62 }
0x4d48   : > { %14847 = vmatprep.mubr.msk.f32.mxu0 %vm968_vm1, %v10844_v43 }
0x4d4b   : > { %14848 = vmatmul.mubr.msk.f32.vlgmr.msra.gmra.mrb[148].mxu0 %vm968_vm1, %v10846_v23 }
0x4d4c   : > { %14850 = vmatprep.mubr.msk.f32.mxu0 %vm968_vm1, %v10848_v45 }
0x4d4f   : > { %14851 = vmatmul.mubr.msk.f32.gmra.mrb[150].mxu0 %vm968_vm1, %v10850_v59 }
0x4de1   : > { %v19429_v38 = vpop.f32.mrb[144].mxu0 }
0x4de2   : > { %v19431_v37 = vpop.f32.mrb[145].mxu0 }
0x4e1a   : > { %v19433_v46 = vpop.f32.mrb[146].mxu0 }
0x4e1b   : > { %v19435_v39 = vpop.f32.mrb[147].mxu0 }
0x4e1e   : > { %v14849_v0 = vpop.f32.mrb[148].mxu0 }
0x4e1f   : > { %v10961_v57 = vmul.f32 0.35355338, %v14849_v0  ;;  %v10941_v16 = vpop.f32.mrb[149].mxu0 }
0x4e20   : > { %v10960_v12 = vmul.f32 0.35355338, %v10941_v16 }
0x4e21   : > { %v10965_v18 = vadd.f32 %v19302_v61, %v10961_v57 }
0x4e22   : > { %v10964_v52 = vadd.f32 %v19306_v55, %v10960_v12  ;;  %v14852_v8 = vpop.f32.mrb[150].mxu0 }
0x4e23   : > { %v10951_v40 = vpop.f32.mrb[151].mxu0  ;;  %v10971_v43 = vsel %vm682_vm0, %v10965_v18, -inf  ;;  %v10963_v23 = vmul.f32 0.35355338, %v14852_v8 }
0x4e24   : > { %v10962_v45 = vmul.f32 0.35355338, %v10951_v40  ;;  %10972 = vmax.xlane.f32.xlu1 %v10971_v43  ;;  %v10968_v59 = vsel %vm682_vm0, %v10964_v52, -inf }
0x4e25   : > { %10969 = vmax.xlane.f32.xlu0 %v10968_v59  ;;  %v10967_v0 = vadd.f32 %v19312_v48, %v10963_v23 }
0x4e26   : > { %v10966_v13 = vadd.f32 %v19316_v22, %v10962_v45 }
0x4e27   : > { %v10977_v57 = vsel %vm682_vm0, %v10967_v0, -inf }
0x4e28   : > { %v10974_v16 = vsel %vm682_vm0, %v10966_v13, -inf }
0x4e29   : > { %10975 = vmax.xlane.f32.xlu0 %v10974_v16 }
0x4e2d   : > { %10978 = vmax.xlane.f32.xlu0 %v10977_v57 }
0x4eb1   : > { %v10973_v12 = vpop.xlane.xlu1 %10972 }
0x4eb2   : > { %v10981_v50 = vsub.f32 %v10965_v18, %v10973_v12  ;;  %v10970_v11 = vpop.xlane.xlu0 %10969 }
0x4eb3   : > { %v10980_v63 = vsub.f32 %v10964_v52, %v10970_v11 }
0x4eb4   : > { %v10986_v8 = vmul.f32 1.442695, %v10981_v50 }
0x4eb5   : > { %v10984_v40 = vmul.f32 1.442695, %v10980_v63 }
0x4eb6   : > { %16544 = vpow2.f32 %v10986_v8  ;;  %v10976_v63 = vpop.xlane.xlu0 %10975 }
0x4eb7   : > { %16546 = vpow2.f32 %v10984_v40  ;;  %v10982_v11 = vsub.f32 %v10966_v13, %v10976_v63 }
0x4eb9   : > { %v10988_v50 = vmul.f32 1.442695, %v10982_v11 }
0x4eba   : > { %v10979_v18 = vpop.xlane.xlu0 %10978 }
0x4ebb   : > { %v10983_v52 = vsub.f32 %v10967_v0, %v10979_v18  ;;  %16548 = vpow2.f32 %v10988_v50 }
0x4ebd   : > { %v10990_v16 = vmul.f32 1.442695, %v10983_v52 }
0x4ebf   : > { %16550 = vpow2.f32 %v10990_v16 }
0x4ec0   : > { %v16545_v43 = vpop.eup %16544 }
0x4ec1   : > { %v16547_v59 = vpop.eup %16546  ;;  %v10995_v45 = vsel %vm682_vm0, %v16545_v43, 0.0 }
0x4ec2   : > { %10996 = vadd.xlane.f32.xlu1 %v10995_v45  ;;  %v10992_v23 = vsel %vm682_vm0, %v16547_v59, 0.0 }
0x4ec3   : > { %10993 = vadd.xlane.f32.xlu0 %v10992_v23 }
0x4ec5   : > { %v16549_v57 = vpop.eup %16548 }
0x4ec6   : > { %v10998_v12 = vsel %vm682_vm0, %v16549_v57, 0.0 }
0x4ec9   : > { %v16551_v8 = vpop.eup %16550 }
0x4ed3   : > { %16104 = vrot.lane.b32.xlu1 %v19299_v7, %s20178_s2 }
0x4ed7   : > { %16109 = vrot.lane.b32.xlu1 %v19204_v34, %s20179_s1  ;;  %v11001_v34 = vsel %vm682_vm0, %v16551_v8, 0.0 }
0x4ed9   : > { %16099 = vrot.lane.b32.xlu0 %v19297_v10, %s20178_s2  ;;  %s605_s2 = sand.u32 1, %s16626_s24  }
0x4edb   : > { %16114 = vrot.lane.b32.xlu1 %v19211_v42, %s20179_s1 }
0x4ef8   : > { %10999 = vadd.xlane.f32.xlu0 %v10998_v12 }
0x4eff   : > { %11002 = vadd.xlane.f32.xlu1 %v11001_v34 }
0x4f0e   : > { %11121 = vrot.lane.b32.xlu0 %v19278_v44, %s20179_s1 }
0x4f10   : > { %11123 = vrot.lane.b32.xlu1 %v19280_v54, %s20179_s1 }
0x4f12   : > { %11125 = vrot.lane.b32.xlu0 %v19286_v26, %s20179_s1 }
0x4f14   : > { %11127 = vrot.lane.b32.xlu1 %v19291_v5, %s20179_s1 }
0x4f4f   : > { %v10997_v13 = vpop.xlane.xlu1 %10996 }
0x4f50   : > { %v10994_v42 = vpop.xlane.xlu0 %10993 }
0x4f51   : > { %16552 = vrcp.f32 %v10994_v42 }
0x4f52   : > { %16554 = vrcp.f32 %v10997_v13 }
0x4f53   : > { %v16105_v0 = vpop.permute.xlu1 %16104 }
0x4f54   : > { %v16100_v40 = vpop.permute.xlu0 %16099  ;;  %v16107_v45 = vunpack.i.h.bf16 %v16105_v0  ;;  %v16106_v23 = vunpack.i.l.bf16 %v16105_v0 }
0x4f55   : > { %v16102_v63 = vunpack.i.h.bf16 %v16100_v40  ;;  %v16101_v11 = vunpack.i.l.bf16 %v16100_v40 }
0x4f56   : > { %v15671_v52 = vpack.c.bf16 %v16107_v45, %v16106_v23 }
0x4f57   : > { %v16110_v44 = vpop.permute.xlu1 %16109  ;;  %v15667_v50 = vpack.c.bf16 %v16102_v63, %v16101_v11 }
0x4f58   : > { %v16112_v18 = vunpack.i.h.bf16 %v16110_v44  ;;  %v16111_v54 = vunpack.i.l.bf16 %v16110_v44 }
0x4f59   : > { %15668 = vmatprep.subr.bf16.mxu1 %v15667_v50 }
0x4f5a   : > { %15670 = vmatpush3.bf16.msra.mxu1 %v15667_v50  ;;  %v15675_v12 = vpack.c.bf16 %v16112_v18, %v16111_v54 }
0x4f5b   : > { %v16553_v26 = vpop.eup %16552  ;;  %15672 = vmatprep.subr.bf16.mxu1 %v15671_v52  ;;  %v16115_v13 = vpop.permute.xlu1 %16114 }
0x4f5c   : > { %v16555_v5 = vpop.eup %16554  ;;  %v19465_v16 = vmul.f32 %v16553_v26, %v16547_v59  ;;  %v16117_v42 = vunpack.i.h.bf16 %v16115_v13  ;;  %v16116_v0 = vunpack.i.l.bf16 %v16115_v13 }
0x4f5d   : > { %v19469_v34 = vmul.f32 %v16555_v5, %v16545_v43 }
0x4f5e   : > { %15674 = vmatpush3.bf16.msra.mxu1 %v15671_v52  ;;  %14861 = vmatprep.mubr.msk.f32.mxu1 %vm682_vm0, %v19465_v16  ;;  %v15681_v40 = vpack.c.bf16 %v16117_v42, %v16116_v0 }
0x4f5f   : > { %15677 = vmatprep.subr.msk.bf16.mxu1 %vm16818_vm2, %v15675_v12 }
0x4f61   : > { %14862 = vmatmul.mubr.msk.f32.vlgmr.msra.gmra.mrb[144].mxu1 %vm682_vm0, %v19469_v34 }
0x4f67   : > { %15680 = vmatpush3.bf16.xpose.msk.msra.mxu1 %vm16818_vm2, %v15675_v12 }
0x4f68   : > { %15683 = vmatprep.subr.msk.bf16.mxu1 %vm16818_vm2, %v15681_v40 }
0x4f6f   : > { %15686 = vmatpush3.bf16.xpose.msk.msra.mxu1 %vm16818_vm2, %v15681_v40 }
0x4f85   : > { %v11000_v43 = vpop.xlane.xlu0 %10999 }
0x4f86   : > { %16556 = vrcp.f32 %v11000_v43 }
0x4f89   : > { %v11122_v11 = vpop.permute.xlu0 %11121 }
0x4f8c   : > { %v11003_v59 = vpop.xlane.xlu1 %11002 }
0x4f8d   : > { %16558 = vrcp.f32 %v11003_v59  ;;  %v11126_v24 = vpop.permute.xlu0 %11125 }
0x4f90   : > { %v16557_v45 = vpop.eup %16556  ;;  %v11124_v50 = vpop.permute.xlu1 %11123 }
0x4f91   : > { %v19481_v23 = vmul.f32 %v16557_v45, %v16549_v57 }
0x4f93   : > { %14864 = vmatprep.mubr.msk.f32.mxu1 %vm682_vm0, %v19481_v23 }
0x4f94   : > { %v11128_v57 = vpop.permute.xlu1 %11127 }
0x4f97   : > { %v16559_v63 = vpop.eup %16558 }
0x4f98   : > { %v19485_v44 = vmul.f32 %v16559_v63, %v16551_v8 }
0x4f9a   : > { %14865 = vmatmul.mubr.msk.f32.gmra.mrb[146].mxu1 %vm682_vm0, %v19485_v44 }
0x4f9b   : > { %14875 = vmatprep.mubr.msk.f32.mxu1 %vm968_vm1, %v11122_v11 }
0x4f9e   : > { %14876 = vmatmul.mubr.msk.f32.vlgmr.msra.gmra.mrb[148].mxu1 %vm968_vm1, %v11124_v50 }
0x4f9f   : > { %14878 = vmatprep.mubr.msk.f32.mxu1 %vm968_vm1, %v11126_v24 }
0x4fa2   : > { %14879 = vmatmul.mubr.msk.f32.gmra.mrb[150].mxu1 %vm968_vm1, %v11128_v57 }
0x5034   : > { %v14863_v18 = vpop.f32.mrb[144].mxu1 }
0x5035   : > { %v11102_v54 = vpop.f32.mrb[145].mxu1 }
0x506d   : > { %v14866_v52 = vpop.f32.mrb[146].mxu1 }
0x506e   : > { %v11112_v26 = vpop.f32.mrb[147].mxu1 }
0x5071   : > { %v14877_v8 = vpop.f32.mrb[148].mxu1 }
0x5072   : > { %v11239_v5 = vmul.f32 0.35355338, %v14877_v8  ;;  %v11219_v12 = vpop.f32.mrb[149].mxu1 }
0x5073   : > { %v11238_v13 = vmul.f32 0.35355338, %v11219_v12 }
0x5074   : > { %v11243_v42 = vadd.f32 %v19302_v61, %v11239_v5 }
0x5075   : > { %v11242_v0 = vadd.f32 %v19306_v55, %v11238_v13  ;;  %v14880_v40 = vpop.f32.mrb[150].mxu1 }
0x5076   : > { %v11229_v43 = vpop.f32.mrb[151].mxu1  ;;  %v11249_v59 = vsel %vm682_vm0, %v11243_v42, -inf  ;;  %v11241_v45 = vmul.f32 0.35355338, %v14880_v40 }
0x5077   : > { %v11240_v63 = vmul.f32 0.35355338, %v11229_v43  ;;  %11250 = vmax.xlane.f32.xlu1 %v11249_v59  ;;  %v11246_v11 = vsel %vm682_vm0, %v11242_v0, -inf }
0x5078   : > { %11247 = vmax.xlane.f32.xlu0 %v11246_v11  ;;  %v11245_v24 = vadd.f32 %v19312_v48, %v11241_v45 }
0x5079   : > { %v11244_v50 = vadd.f32 %v19316_v22, %v11240_v63 }
0x507a   : > { %v11255_v61 = vsel %vm682_vm0, %v11245_v24, -inf }
0x507b   : > { %v11252_v57 = vsel %vm682_vm0, %v11244_v50, -inf }
0x507c   : > { %11253 = vmax.xlane.f32.xlu0 %v11252_v57 }
0x5080   : > { %11256 = vmax.xlane.f32.xlu0 %v11255_v61 }
0x5104   : > { %v11251_v55 = vpop.xlane.xlu1 %11250 }
0x5105   : > { %v11259_v8 = vsub.f32 %v11243_v42, %v11251_v55  ;;  %v11248_v5 = vpop.xlane.xlu0 %11247 }
0x5106   : > { %v11258_v12 = vsub.f32 %v11242_v0, %v11248_v5 }
0x5107   : > { %v11264_v13 = vmul.f32 1.442695, %v11259_v8 }
0x5108   : > { %v11262_v40 = vmul.f32 1.442695, %v11258_v12 }
0x5109   : > { %16560 = vpow2.f32 %v11264_v13  ;;  %v11254_v43 = vpop.xlane.xlu0 %11253 }
0x510a   : > { %16562 = vpow2.f32 %v11262_v40  ;;  %v11260_v59 = vsub.f32 %v11244_v50, %v11254_v43 }
0x510c   : > { %v11266_v11 = vmul.f32 1.442695, %v11260_v59 }
0x510d   : > { %v11257_v22 = vpop.xlane.xlu0 %11256 }
0x510e   : > { %16564 = vpow2.f32 %v11266_v11  ;;  %v11261_v48 = vsub.f32 %v11245_v24, %v11257_v22 }
0x5110   : > { %v11268_v45 = vmul.f32 1.442695, %v11261_v48 }
0x5112   : > { %16566 = vpow2.f32 %v11268_v45  ;;  %v13069_v45 = vld [vmem:[%s20060_s8 + $0xa0] sm:$0xff] }
0x5113   : > { %v16561_v63 = vpop.eup %16560 }
0x5114   : > { %v16563_v57 = vpop.eup %16562  ;;  %v11273_v61 = vsel %vm682_vm0, %v16561_v63, 0.0 }
0x5115   : > { %11274 = vadd.xlane.f32.xlu1 %v11273_v61  ;;  %v11270_v42 = vsel %vm682_vm0, %v16563_v57, 0.0 }
0x5116   : > { %11271 = vadd.xlane.f32.xlu0 %v11270_v42  ;;  %v13072_v42 = vld [vmem:[%s20060_s8 + $0xb8] sm:$0xff] }
0x5118   : > { %v16565_v0 = vpop.eup %16564 }
0x5119   : > { %v11276_v55 = vsel %vm682_vm0, %v16565_v0, 0.0 }
0x511a   : > { %11277 = vadd.xlane.f32.xlu0 %v11276_v55 }
0x511c   : > { %v16567_v8 = vpop.eup %16566 }
0x511d   : > { %v11279_v50 = vsel %vm682_vm0, %v16567_v8, 0.0 }
0x511e   : > { %11280 = vadd.xlane.f32.xlu1 %v11279_v50 }
0x512f   : > { %16124 = vrot.lane.b32.xlu1 %v19299_v7, %s20179_s1 }
0x5130   : > { %16119 = vrot.lane.b32.xlu0 %v19297_v10, %s20179_s1 }
0x5133   : > { %11451 = vrot.lane.b32.xlu1 %v19431_v37, %s20181_s19 }
0x5134   : > { %11467 = vrot.lane.b32.xlu0 %v11102_v54, %s20182_s20 }
0x5137   : > { %11453 = vrot.lane.b32.xlu1 %v19429_v38, %s20181_s19 }
0x5138   : > { %11455 = vrot.lane.b32.xlu0 %v19435_v39, %s20181_s19 }
0x513b   : > { %11469 = vrot.lane.b32.xlu1 %v14863_v18, %s20182_s20 }
0x513c   : > { %11471 = vrot.lane.b32.xlu0 %v11112_v26, %s20182_s20 }
0x513f   : > { %11457 = vrot.lane.b32.xlu1 %v19433_v46, %s20181_s19 }
0x5143   : > { %11473 = vrot.lane.b32.xlu1 %v14866_v52, %s20182_s20  ;;  %s19845_s20 = sshll.u32 %s605_s2, 6 }
0x5144   : > { %s19862_s24 = scalar_lea.vmem [#allocation2], %s19845_s20  ;;  %s19909_s26 = scalar_lea.vmem [#allocation3], %s19845_s20 }
0x51a2   : > { %v11275_v7 = vpop.xlane.xlu1 %11274 }
0x51a3   : > { %v11272_v10 = vpop.xlane.xlu0 %11271 }
0x51a4   : > { %16568 = vrcp.f32 %v11272_v10 }
0x51a5   : > { %16570 = vrcp.f32 %v11275_v7 }
0x51a7   : > { %v11278_v37 = vpop.xlane.xlu0 %11277 }
0x51a8   : > { %16572 = vrcp.f32 %v11278_v37 }
0x51ab   : > { %v11281_v54 = vpop.xlane.xlu1 %11280  ;;  %v16120_v38 = vpop.permute.xlu0 %16119 }
0x51ac   : > { %v16122_v24 = vunpack.i.h.bf16 %v16120_v38  ;;  %v16121_v5 = vunpack.i.l.bf16 %v16120_v38  ;;  %16574 = vrcp.f32 %v11281_v54 }
0x51ae   : > { %v16569_v39 = vpop.eup %16568  ;;  %v15687_v18 = vpack.c.bf16 %v16122_v24, %v16121_v5 }
0x51af   : > { %v16125_v12 = vpop.permute.xlu1 %16124  ;;  %v19521_v26 = vmul.f32 %v16569_v39, %v16563_v57  ;;  %v16571_v40 = vpop.eup %16570  ;;  %v13071_v57 = vld [vmem:[%s20060_s8 + $0xb0] sm:$0xff] }
0x51b0   : > { %v16127_v13 = vunpack.i.h.bf16 %v16125_v12  ;;  %v16126_v46 = vunpack.i.l.bf16 %v16125_v12  ;;  %15688 = vmatprep.subr.bf16.mxu0 %v15687_v18  ;;  %v19525_v59 = vmul.f32 %v16571_v40, %v16561_v63  ;;  %v13070_v63 = vld [vmem:[%s20060_s8 + $0xa8] sm:$0xff]  ;;  %v11468_v38 = vpop.permute.xlu0 %11467 }
0x51b1   : > { %15690 = vmatpush3.bf16.msra.mxu0 %v15687_v18  ;;  %14889 = vmatprep.mubr.msk.f32.mxu0 %vm682_vm0, %v19521_v26  ;;  %v15695_v61 = vpack.c.bf16 %v13070_v63, %v13069_v45 }
0x51b2   : > { %v15691_v52 = vpack.c.bf16 %v16127_v13, %v16126_v46  ;;  %v16573_v43 = vpop.eup %16572 }
0x51b3   : > { %v19527_v22 = vmul.f32 %v16573_v43, %v16565_v0  ;;  %v15699_v0 = vpack.c.bf16 %v13072_v42, %v13071_v57  ;;  %v11452_v7 = vpop.permute.xlu1 %11451 }
0x51b4   : > { %15692 = vmatprep.subr.bf16.mxu0 %v15691_v52  ;;  %v11456_v5 = vpop.permute.xlu0 %11455  ;;  %v11495_v12 = vsel %vm968_vm1, %v19367_v2, %v11452_v7 }
0x51b5   : > { %15694 = vmatpush3.bf16.msra.mxu0 %v15691_v52  ;;  %v11499_v52 = vsel %vm2167_vm3, %v11495_v12, %v11468_v38  ;;  %v11497_v63 = vsel %vm968_vm1, %v19371_v21, %v11456_v5  ;;  %v13073_v21 = vld [vmem:[%s20063_s11 + $0x21] ss:$0 sm:$0xff] }
0x51b6   : > { %v16575_v11 = vpop.eup %16574  ;;  %15696 = vmatprep.subr.bf16.mxu0 %v15695_v61 }
0x51b7   : > { %v19533_v48 = vmul.f32 %v16575_v11, %v16567_v8  ;;  %v11454_v37 = vpop.permute.xlu1 %11453 }
0x51b8   : > { %14890 = vmatmul.mubr.msk.f32.vlgmr.msra.gmra.mrb[152].mxu0 %vm682_vm0, %v19525_v59  ;;  %v11472_v18 = vpop.permute.xlu0 %11471  ;;  %v11496_v46 = vsel %vm968_vm1, %v19365_v47, %v11454_v37 }
0x51b9   : > { %14892 = vmatprep.mubr.msk.f32.mxu0 %vm682_vm0, %v19527_v22  ;;  %15698 = vmatpush3.bf16.msra.mxu0 %v15695_v61  ;;  %v11501_v57 = vsel %vm2167_vm3, %v11497_v63, %v11472_v18 }
0x51ba   : > { %15700 = vmatprep.subr.bf16.mxu0 %v15699_v0 }
0x51bb   : > { %v11470_v54 = vpop.permute.xlu1 %11469 }
0x51bc   : > { %14893 = vmatmul.mubr.msk.f32.gmra.mrb[154].mxu0 %vm682_vm0, %v19533_v48  ;;  %v11500_v43 = vsel %vm2167_vm3, %v11496_v46, %v11470_v54 }
0x51bd   : > { %15702 = vmatpush3.bf16.msra.mxu0 %v15699_v0 }
0x51bf   : > { %v11458_v24 = vpop.permute.xlu1 %11457 }
0x51c0   : > { %v11498_v47 = vsel %vm968_vm1, %v19369_v14, %v11458_v24 }
0x51c3   : > { %v11474_v39 = vpop.permute.xlu1 %11473 }
0x51c4   : > { %v11502_v42 = vsel %vm2167_vm3, %v11498_v47, %v11474_v39 }
0x528b   : > { %v14891_v55 = vpop.f32.mrb[152].mxu0 }
0x528c   : > { %11485 = vrot.lane.b32.xlu1 %v14891_v55, %s20187_s28  ;;  %v11380_v8 = vpop.f32.mrb[153].mxu0 }
0x528d   : > { %11483 = vrot.lane.b32.xlu0 %v11380_v8, %s20187_s28 }
0x528f   : > { %v14894_v50 = vpop.f32.mrb[154].mxu0 }
0x5290   : > { %11489 = vrot.lane.b32.xlu1 %v14894_v50, %s20187_s28  ;;  %v11390_v10 = vpop.f32.mrb[155].mxu0 }
0x5291   : > { %11487 = vrot.lane.b32.xlu0 %v11390_v10, %s20187_s28 }
0x52fe   : > { %v11486_v13 = vpop.permute.xlu1 %11485 }
0x52ff   : > { %v11484_v40 = vpop.permute.xlu0 %11483  ;;  %v11504_v45 = vsel %vm2172_vm4, %v11500_v43, %v11486_v13 }
0x5300   : > { %v11503_v11 = vsel %vm2172_vm4, %v11499_v52, %v11484_v40 }
0x5301   : > { %14903 = vmatprep.mubr.msk.f32.mxu0 %vm682_vm0, %v11503_v11 }
0x5302   : > { %14904 = vmatmul.mubr.msk.f32.vlgmr.msra.gmra.mrb[156].mxu0 %vm682_vm0, %v11504_v45  ;;  %v11490_v2 = vpop.permute.xlu1 %11489 }
0x5303   : > { %v11488_v61 = vpop.permute.xlu0 %11487  ;;  %v11506_v55 = vsel %vm2172_vm4, %v11502_v42, %v11490_v2 }
0x5304   : > { %v11505_v0 = vsel %vm2172_vm4, %v11501_v57, %v11488_v61 }
0x5305   : > { %14906 = vmatprep.mubr.msk.f32.mxu0 %vm682_vm0, %v11505_v0 }
0x5306   : > { %14907 = vmatmul.mubr.msk.f32.gmra.mrb[158].mxu0 %vm682_vm0, %v11506_v55 }
0x53d5   : > { %v14905_v8 = vpop.f32.mrb[156].mxu0 }
0x53d6   : > { %v11601_v50 = vadd.f32 %v14905_v8, %v13073_v21  ;;  %v11595_v10 = vpop.f32.mrb[157].mxu0 }
0x53d7   : > { %v11596_v7 = vadd.f32 %v13073_v21, %v11595_v10 }
0x53d8   : > { %v11615_v14 = vadd.f32 %v11601_v50, %v19253_v9 }
0x53d9   : > { %v11614_v37 = vadd.f32 %v11596_v7, %v19251_v28  ;;  %v14908_v54 = vpop.f32.mrb[158].mxu0  ;;  %v13084_v7 = vld [vmem:[%s20061_s9 + $0x60] sm:$0xff] }
0x53da   : > { %v11605_v38 = vpop.f32.mrb[159].mxu0  ;;  %v11623_v24 = vsel %vm682_vm0, %v11615_v14, 0.0  ;;  %v11611_v5 = vadd.f32 %v14908_v54, %v13073_v21  ;;  %v13086_v54 = vld [vmem:[%s20061_s9 + $0x70] sm:$0xff] }
0x53db   : > { %v11606_v39 = vadd.f32 %v13073_v21, %v11605_v38  ;;  %11624 = vadd.xlane.f32.xlu1 %v11623_v24  ;;  %v11620_v18 = vsel %vm682_vm0, %v11614_v37, 0.0  ;;  %v13087_v38 = vld [vmem:[%s20061_s9 + $0x78] sm:$0xff] }
0x53dc   : > { %11621 = vadd.xlane.f32.xlu0 %v11620_v18  ;;  %v11617_v13 = vadd.f32 %v11611_v5, %v19263_v29  ;;  %v15707_v24 = vpack.c.bf16 %v13087_v38, %v13086_v54  ;;  %v13093_v5 = vld [vmem:[%s20062_s10 + $0xc0] sm:$0xff]  ;;  %v13095_v18 = vld [vmem:[%s20062_s10 + $0xd0] sm:$0xff] }
0x53dd   : > { %v11616_v12 = vadd.f32 %v11606_v39, %v19259_v60  ;;  %v13094_v39 = vld [vmem:[%s20062_s10 + $0xc8] sm:$0xff]  ;;  %v13079_v54 = vld [vmem:[%s20063_s11 + $0x23] ss:$0 sm:$0xff] }
0x53de   : > { %v11629_v9 = vsel %vm682_vm0, %v11617_v13, 0.0 }
0x53df   : > { %v11626_v46 = vsel %vm682_vm0, %v11616_v12, 0.0 }
0x53e0   : > { %11627 = vadd.xlane.f32.xlu0 %v11626_v46 }
0x53e4   : > { %11630 = vadd.xlane.f32.xlu0 %v11629_v9  ;;  %v13097_v9 = vld [vmem:[%s20062_s10 + $0xe0] sm:$0xff] }
0x5468   : > { %v11625_v28 = vpop.xlane.xlu1 %11624 }
0x5469   : > { %v11633_v52 = vmul.f32 0.03125, %v11625_v28  ;;  %v11622_v40 = vpop.xlane.xlu0 %11621  ;;  %v13098_v28 = vld [vmem:[%s20062_s10 + $0xe8] sm:$0xff] }
0x546a   : > { %v11632_v43 = vmul.f32 0.03125, %v11622_v40 }
0x546b   : > { %v19584_v11 = vsub.f32 %v11615_v14, %v11633_v52  ;;  %v13085_v14 = vld [vmem:[%s20061_s9 + $0x68] sm:$0xff]  ;;  %v15719_v52 = vpack.c.bf16 %v13098_v28, %v13097_v9 }
0x546c   : > { %v19586_v45 = vsub.f32 %v11614_v37, %v11632_v43  ;;  %v15703_v37 = vpack.c.bf16 %v13085_v14, %v13084_v7 }
0x546d   : > { %v11628_v63 = vpop.xlane.xlu0 %11627  ;;  %v11641_v60 = vmul.f32 %v19584_v11, %v19584_v11 }
0x546e   : > { %v11634_v2 = vmul.f32 0.03125, %v11628_v63  ;;  %v11640_v29 = vmul.f32 %v19586_v45, %v19586_v45  ;;  %15704 = vmatprep.subr.bf16.mxu1 %v15703_v37 }
0x546f   : > { %v11647_v57 = vsel %vm682_vm0, %v11641_v60, 0.0  ;;  %15706 = vmatpush3.bf16.msra.mxu1 %v15703_v37 }
0x5470   : > { %v19593_v47 = vsub.f32 %v11616_v12, %v11634_v2  ;;  %11648 = vadd.xlane.f32.xlu1 %v11647_v57  ;;  %v11644_v61 = vsel %vm682_vm0, %v11640_v29, 0.0  ;;  %15708 = vmatprep.subr.bf16.mxu1 %v15707_v24  ;;  %v15711_v12 = vpack.c.bf16 %v13094_v39, %v13093_v5 }
0x5471   : > { %11645 = vadd.xlane.f32.xlu0 %v11644_v61  ;;  %v11631_v42 = vpop.xlane.xlu0 %11630 }
0x5472   : > { %v11635_v0 = vmul.f32 0.03125, %v11631_v42  ;;  %v11642_v55 = vmul.f32 %v19593_v47, %v19593_v47  ;;  %15712 = vmatprep.subr.bf16.mxu0 %v15711_v12 }
0x5473   : > { %15710 = vmatpush3.bf16.msra.mxu1 %v15707_v24  ;;  %15714 = vmatpush3.bf16.msra.mxu0 %v15711_v12 }
0x5474   : > { %v19598_v21 = vsub.f32 %v11617_v13, %v11635_v0  ;;  %v11650_v8 = vsel %vm682_vm0, %v11642_v55, 0.0  ;;  %v13096_v13 = vld [vmem:[%s20062_s10 + $0xd8] sm:$0xff] }
0x5475   : > { %11651 = vadd.xlane.f32.xlu0 %v11650_v8  ;;  %v15715_v46 = vpack.c.bf16 %v13096_v13, %v13095_v18 }
0x5476   : > { %v11643_v50 = vmul.f32 %v19598_v21, %v19598_v21 }
0x5477   : > { %15716 = vmatprep.subr.bf16.mxu0 %v15715_v46 }
0x5478   : > { %v11653_v10 = vsel %vm682_vm0, %v11643_v50, 0.0  ;;  %15718 = vmatpush3.bf16.msra.mxu0 %v15715_v46 }
0x5479   : > { %11654 = vadd.xlane.f32.xlu1 %v11653_v10  ;;  %15720 = vmatprep.subr.bf16.mxu0 %v15719_v52  ;;  %v13078_v10 = vld [vmem:[%s20063_s11 + $0x22] ss:$0 sm:$0xff] }
0x547c   : > { %15722 = vmatpush3.bf16.msra.mxu0 %v15719_v52  ;;  %v13100_v52 = vld [vmem:[%s20062_s10 + $0xf8] sm:$0xff] }
0x54fd   : > { %v11649_v40 = vpop.xlane.xlu1 %11648 }
0x54fe   : > { %v11657_v43 = vmul.f32 0.03125, %v11649_v40  ;;  %v11646_v63 = vpop.xlane.xlu0 %11645 }
0x54ff   : > { %v11656_v60 = vmul.f32 0.03125, %v11646_v63 }
0x5500   : > { %v11661_v2 = vadd.f32 1e-05, %v11657_v43 }
0x5501   : > { %v11660_v29 = vadd.f32 1e-05, %v11656_v60 }
0x5502   : > { %16576 = vrsqrt.f32 %v11661_v2  ;;  %v11652_v57 = vpop.xlane.xlu0 %11651 }
0x5503   : > { %16578 = vrsqrt.f32 %v11660_v29  ;;  %v11658_v61 = vmul.f32 0.03125, %v11652_v57 }
0x5505   : > { %v11662_v42 = vadd.f32 1e-05, %v11658_v61 }
0x5506   : > { %v11655_v0 = vpop.xlane.xlu1 %11654 }
0x5507   : > { %16580 = vrsqrt.f32 %v11662_v42  ;;  %v11659_v55 = vmul.f32 0.03125, %v11655_v0 }
0x5509   : > { %v11663_v8 = vadd.f32 1e-05, %v11659_v55 }
0x550b   : > { %16582 = vrsqrt.f32 %v11663_v8 }
0x550c   : > { %v16577_v50 = vpop.eup %16576 }
0x550d   : > { %v16579_v7 = vpop.eup %16578  ;;  %v11669_v14 = vmul.f32 %v16577_v50, %v19584_v11 }
0x550e   : > { %v11668_v37 = vmul.f32 %v16579_v7, %v19586_v45 }
0x550f   : > { %v11677_v38 = vmul.f32 %v13078_v10, %v11669_v14 }
0x5510   : > { %v11676_v24 = vmul.f32 %v13078_v10, %v11668_v37 }
0x5511   : > { %v16581_v5 = vpop.eup %16580  ;;  %v11685_v12 = vadd.f32 %v13079_v54, %v11677_v38 }
0x5512   : > { %v11684_v39 = vadd.f32 %v13079_v54, %v11676_v24  ;;  %v11670_v18 = vmul.f32 %v16581_v5, %v19593_v47  ;;  %v13099_v47 = vld [vmem:[%s20062_s10 + $0xf0] sm:$0xff] }
0x5513   : > { %v15723_v40 = vpack.c.bf16 %v13100_v52, %v13099_v47 }
0x5514   : > { %14917 = vmatprep.mubr.msk.f32.mxu1 %vm682_vm0, %v11684_v39  ;;  %v11678_v13 = vmul.f32 %v13078_v10, %v11670_v18 }
0x5515   : > { %v16583_v46 = vpop.eup %16582  ;;  %14918 = vmatmul.mubr.msk.f32.vlgmr.msra.gmra.mrb[152].mxu1 %vm682_vm0, %v11685_v12  ;;  %15724 = vmatprep.subr.bf16.mxu0 %v15723_v40 }
0x5516   : > { %v11686_v11 = vadd.f32 %v13079_v54, %v11678_v13  ;;  %v11671_v45 = vmul.f32 %v16583_v46, %v19598_v21  ;;  %15726 = vmatpush3.bf16.msra.mxu0 %v15723_v40  ;;  %v13088_v21 = vld [vmem:[%s20064_s12 + $0x3] ss:$0 sm:$0xff] }
0x5518   : > { %14920 = vmatprep.mubr.msk.f32.mxu1 %vm682_vm0, %v11686_v11  ;;  %v11679_v9 = vmul.f32 %v13078_v10, %v11671_v45  ;;  %v13101_v10 = vld [vmem:[%s20063_s11 + $0x2d] ss:$0 sm:$0xff] }
0x551a   : > { %v11687_v28 = vadd.f32 %v13079_v54, %v11679_v9 }
0x551c   : > { %14921 = vmatmul.mubr.msk.f32.gmra.mrb[154].mxu1 %vm682_vm0, %v11687_v28 }
0x55e8   : > { %v14919_v43 = vpop.f32.mrb[152].mxu1 }
0x55e9   : > { %v11787_v63 = vadd.f32 %v14919_v43, %v13088_v21  ;;  %v11781_v60 = vpop.f32.mrb[153].mxu1 }
0x55ea   : > { %v11782_v2 = vadd.f32 %v13088_v21, %v11781_v60 }
0x55eb   : > { %v11801_v57 = vmax.f32 %v11787_v63, 0.0 }
0x55ec   : > { %v11800_v29 = vmax.f32 %v11782_v2, 0.0 }
0x55ee   : > { %14939 = vmatprep.mubr.msk.f32.mxu0 %vm2105_vm5, %v11800_v29 }
0x55ef   : > { %v14922_v61 = vpop.f32.mrb[154].mxu1  ;;  %14940 = vmatmul.mubr.msk.f32.vlgmr.msra.gmra.mrb[160].mxu0 %vm2105_vm5, %v11801_v57 }
0x55f0   : > { %v11797_v42 = vadd.f32 %v14922_v61, %v13088_v21  ;;  %v11791_v0 = vpop.f32.mrb[155].mxu1 }
0x55f1   : > { %v11792_v55 = vadd.f32 %v13088_v21, %v11791_v0 }
0x55f2   : > { %v11803_v50 = vmax.f32 %v11797_v42, 0.0 }
0x55f3   : > { %v11802_v8 = vmax.f32 %v11792_v55, 0.0 }
0x55f5   : > { %14942 = vmatprep.mubr.msk.f32.mxu0 %vm2105_vm5, %v11802_v8 }
0x55f6   : > { %14943 = vmatmul.mubr.msk.f32.gmra.mrb[162].mxu0 %vm2105_vm5, %v11803_v50 }
0x56c2   : > { %v14941_v7 = vpop.f32.mrb[160].mxu0 }
0x56c3   : > { %v11902_v14 = vadd.f32 %v14941_v7, %v13101_v10  ;;  %v11896_v37 = vpop.f32.mrb[161].mxu0 }
0x56c4   : > { %v11897_v54 = vadd.f32 %v13101_v10, %v11896_v37 }
0x56c5   : > { %v11916_v38 = vadd.f32 %v11902_v14, %v11685_v12 }
0x56c6   : > { %v11915_v24 = vadd.f32 %v11897_v54, %v11684_v39  ;;  %v11989_v54 = vld [vmem:[%s20065_s13] sm:$0xff] }
0x56c7   : > { %v11924_v5 = vsel %vm682_vm0, %v11916_v38, 0.0 }
0x56c8   : > { %11925 = vadd.xlane.f32.xlu1 %v11924_v5  ;;  %v11921_v18 = vsel %vm682_vm0, %v11915_v24, 0.0  ;;  %v11992_v5 = vld [vmem:[%s20065_s13 + $0x18] sm:$0xff] }
0x56c9   : > { %11922 = vadd.xlane.f32.xlu0 %v11921_v18  ;;  %v14944_v13 = vpop.f32.mrb[162].mxu0 }
0x56ca   : > { %v11912_v46 = vadd.f32 %v14944_v13, %v13101_v10  ;;  %v11906_v45 = vpop.f32.mrb[163].mxu0  ;;  %v20260_v13 = vld [vmem:[#allocation44_spill] sm:$0xff] }
0x56cb   : > { %v11907_v9 = vadd.f32 %v13101_v10, %v11906_v45  ;;  %v20262_v45 = vld [vmem:[#allocation46_spill] sm:$0xff] }
0x56cc   : > { %v11918_v47 = vadd.f32 %v11912_v46, %v11687_v28  ;;  %v20261_v46 = vld [vmem:[#allocation45_spill] sm:$0xff] }
0x56cd   : > { %v11917_v52 = vadd.f32 %v11907_v9, %v11686_v11  ;;  %v20263_v9 = vld [vmem:[#allocation59_spill] sm:$0xff] }
0x56ce   : > { %v11930_v40 = vsel %vm682_vm0, %v11918_v47, 0.0 }
0x56cf   : > { %11931 = vadd.xlane.f32.xlu1 %v11930_v40  ;;  %v11927_v21 = vsel %vm682_vm0, %v11917_v52, 0.0  ;;  %v20266_v40 = vld [vmem:[#allocation62_spill] sm:$0xff] }
0x56d0   : > { %11928 = vadd.xlane.f32.xlu0 %v11927_v21  ;;  %v20267_v21 = vld [vmem:[#allocation47_spill] sm:$0xff] }
0x5755   : > { %v11926_v12 = vpop.xlane.xlu1 %11925 }
0x5756   : > { %v11934_v39 = vmul.f32 0.03125, %v11926_v12  ;;  %v11923_v43 = vpop.xlane.xlu0 %11922  ;;  %v20268_v12 = vld [vmem:[#allocation48_spill] sm:$0xff] }
0x5757   : > { %v11933_v63 = vmul.f32 0.03125, %v11923_v43  ;;  %v20274_v43 = vld [vmem:[#allocation66_spill] sm:$0xff] }
0x5758   : > { %v19668_v60 = vsub.f32 %v11916_v38, %v11934_v39  ;;  %v11990_v38 = vld [vmem:[%s20065_s13 + $0x8] sm:$0xff]  ;;  %v20269_v39 = vld [vmem:[#allocation49_spill] sm:$0xff] }
0x5759   : > { %v19670_v2 = vsub.f32 %v11915_v24, %v11933_v63  ;;  %v15727_v24 = vpack.c.bf16 %v11990_v38, %v11989_v54  ;;  %v20279_v38 = vld [vmem:[#allocation67_spill] sm:$0xff] }
0x575a   : > { %v11942_v29 = vmul.f32 %v19668_v60, %v19668_v60 }
0x575b   : > { %v11941_v11 = vmul.f32 %v19670_v2, %v19670_v2  ;;  %15728 = vmatprep.subr.bf16.mxu1 %v15727_v24 }
0x575c   : > { %v11932_v28 = vpop.xlane.xlu1 %11931  ;;  %v11948_v57 = vsel %vm682_vm0, %v11942_v29, 0.0  ;;  %15730 = vmatpush3.bf16.msra.mxu1 %v15727_v24 }
0x575d   : > { %v11936_v61 = vmul.f32 0.03125, %v11932_v28  ;;  %11949 = vadd.xlane.f32.xlu1 %v11948_v57  ;;  %v11929_v42 = vpop.xlane.xlu0 %11928  ;;  %v11945_v0 = vsel %vm682_vm0, %v11941_v11, 0.0 }
0x575e   : > { %v11935_v55 = vmul.f32 0.03125, %v11929_v42  ;;  %11946 = vadd.xlane.f32.xlu0 %v11945_v0  ;;  %v20275_v42 = vld [vmem:[#allocation51_spill] sm:$0xff] }
0x575f   : > { %v19678_v8 = vsub.f32 %v11918_v47, %v11936_v61  ;;  %v20264_v47 = vld [vmem:[#allocation60_spill] sm:$0xff] }
0x5760   : > { %v19680_v50 = vsub.f32 %v11917_v52, %v11935_v55  ;;  %v20265_v52 = vld [vmem:[#allocation61_spill] sm:$0xff] }
0x5761   : > { %v11944_v10 = vmul.f32 %v19678_v8, %v19678_v8 }
0x5762   : > { %v11943_v7 = vmul.f32 %v19680_v50, %v19680_v50 }
0x5763   : > { %v11954_v14 = vsel %vm682_vm0, %v11944_v10, 0.0 }
0x5764   : > { %11955 = vadd.xlane.f32.xlu1 %v11954_v14  ;;  %v11951_v37 = vsel %vm682_vm0, %v11943_v7, 0.0 }
0x5765   : > { %11952 = vadd.xlane.f32.xlu0 %v11951_v37 }
0x5775   : > { %2067 = vrot.lane.b32.xlu1 %v16986_v19, %s16642_s15  ;;  %v11991_v19 = vld [vmem:[%s20065_s13 + $0x10] sm:$0xff] }
0x5776   : > { %v15731_v18 = vpack.c.bf16 %v11992_v5, %v11991_v19  ;;  %v20280_v19 = vld [vmem:[#allocation68_spill] sm:$0xff] }
0x5778   : > { %15732 = vmatprep.subr.bf16.mxu1 %v15731_v18 }
0x5779   : > { %2069 = vrot.lane.b32.xlu1 %v16998_v30, %s16642_s15  ;;  %15734 = vmatpush3.bf16.msra.mxu1 %v15731_v18  ;;  %v20243_v30 = vld [vmem:[#allocation19_spill] sm:$0xff] }
0x577a   : > { %v13106_v18 = vld [vmem:[%s20063_s11 + $0x2e] ss:$0 sm:$0xff] }
0x577b   : > { %2065 = vrot.lane.b32.xlu0 %v16982_v17, %s16642_s15  ;;  %v20242_v17 = vld [vmem:[#allocation18_spill] sm:$0xff] }
0x577d   : > { %2071 = vrot.lane.b32.xlu1 %v17002_v33, %s16642_s15  ;;  %v20244_v33 = vld [vmem:[#allocation20_spill] sm:$0xff] }
0x577f   : > { %2077 = vrot.lane.b32.xlu0 %v17046_v1, %s16643_s16  ;;  %v20245_v1 = vld [vmem:[#allocation21_spill] sm:$0xff] }
0x5781   : > { %2079 = vrot.lane.b32.xlu1 %v17050_v3, %s16643_s16  ;;  %v20246_v3 = vld [vmem:[#allocation22_spill] sm:$0xff] }
0x5783   : > { %2081 = vrot.lane.b32.xlu0 %v17062_v15, %s16643_s16  ;;  %v20247_v15 = vld [vmem:[#allocation27_spill] sm:$0xff] }
0x5785   : > { %2083 = vrot.lane.b32.xlu1 %v17066_v20, %s16643_s16  ;;  %v20248_v20 = vld [vmem:[#allocation28_spill] sm:$0xff] }
0x5787   : > { %2089 = vrot.lane.b32.xlu0 %v17102_v31, %s16644_s21  ;;  %v20249_v31 = vld [vmem:[#allocation29_spill] sm:$0xff] }
0x5789   : > { %2091 = vrot.lane.b32.xlu1 %v17106_v35, %s16644_s21  ;;  %v20250_v35 = vld [vmem:[#allocation30_spill] sm:$0xff] }
0x578b   : > { %2093 = vrot.lane.b32.xlu0 %v17108_v49, %s16644_s21  ;;  %v20251_v49 = vld [vmem:[#allocation31_spill] sm:$0xff] }
0x578d   : > { %2095 = vrot.lane.b32.xlu1 %v17114_v51, %s16644_s21  ;;  %v20252_v51 = vld [vmem:[#allocation32_spill] sm:$0xff] }
0x578f   : > { %4049 = vrot.lane.b32.xlu0 %v17488_v32, %s16642_s15  ;;  %v20253_v32 = vld [vmem:[#allocation33_spill] sm:$0xff] }
0x5791   : > { %4051 = vrot.lane.b32.xlu1 %v17492_v41, %s16642_s15  ;;  %v20254_v41 = vld [vmem:[#allocation34_spill] sm:$0xff] }
0x5793   : > { %4053 = vrot.lane.b32.xlu0 %v17504_v58, %s16642_s15  ;;  %v20255_v58 = vld [vmem:[#allocation35_spill] sm:$0xff] }
0x5795   : > { %4055 = vrot.lane.b32.xlu1 %v17508_v36, %s16642_s15  ;;  %v20256_v36 = vld [vmem:[#allocation36_spill] sm:$0xff] }
0x5797   : > { %4061 = vrot.lane.b32.xlu0 %v17552_v27, %s16643_s16  ;;  %v20257_v27 = vld [vmem:[#allocation37_spill] sm:$0xff] }
0x5799   : > { %4063 = vrot.lane.b32.xlu1 %v17556_v4, %s16643_s16  ;;  %v20258_v4 = vld [vmem:[#allocation38_spill] sm:$0xff] }
0x579b   : > { %4065 = vrot.lane.b32.xlu0 %v17568_v25, %s16643_s16  ;;  %v20259_v25 = vld [vmem:[#allocation43_spill] sm:$0xff] }
0x579d   : > { %4067 = vrot.lane.b32.xlu1 %v20242_v17, %s16643_s16 }
0x579f   : > { %4073 = vrot.lane.b32.xlu0 %v20243_v30, %s16644_s21 }
0x57a1   : > { %4075 = vrot.lane.b32.xlu1 %v20244_v33, %s16644_s21 }
0x57a3   : > { %4077 = vrot.lane.b32.xlu0 %v20245_v1, %s16644_s21  ;;  %v20281_v1 = vld [vmem:[#allocation69_spill] sm:$0xff] }
0x57a5   : > { %4079 = vrot.lane.b32.xlu1 %v20246_v3, %s16644_s21 }
0x57a7   : > { %6032 = vrot.lane.b32.xlu0 %v20247_v15, %s16642_s15  ;;  %v13107_v15 = vld [vmem:[%s20063_s11 + $0x2f] ss:$0 sm:$0xff] }
0x57a9   : > { %6034 = vrot.lane.b32.xlu1 %v20248_v20, %s16642_s15 }
0x57ab   : > { %6036 = vrot.lane.b32.xlu0 %v20249_v31, %s16642_s15  ;;  %v20282_v31 = vld [vmem:[#allocation70_spill] sm:$0xff] }
0x57ad   : > { %6038 = vrot.lane.b32.xlu1 %v20250_v35, %s16642_s15 }
0x57af   : > { %6044 = vrot.lane.b32.xlu0 %v20251_v49, %s16643_s16 }
0x57b1   : > { %6046 = vrot.lane.b32.xlu1 %v20252_v51, %s16643_s16 }
0x57b3   : > { %6048 = vrot.lane.b32.xlu0 %v20253_v32, %s16643_s16 }
0x57b5   : > { %6050 = vrot.lane.b32.xlu1 %v20254_v41, %s16643_s16 }
0x57b7   : > { %6056 = vrot.lane.b32.xlu0 %v20255_v58, %s16644_s21  ;;  %v20283_v58 = vld [vmem:[#allocation10_spill] sm:$0xff] }
0x57b9   : > { %6058 = vrot.lane.b32.xlu1 %v20256_v36, %s16644_s21 }
0x57bb   : > { %6060 = vrot.lane.b32.xlu0 %v20257_v27, %s16644_s21 }
0x57bd   : > { %6062 = vrot.lane.b32.xlu1 %v20258_v4, %s16644_s21 }
0x57bf   : > { %7730 = vrot.lane.b32.xlu0 %v20259_v25, %s16642_s15 }
0x57c1   : > { %7732 = vrot.lane.b32.xlu1 %v20260_v13, %s16642_s15 }
0x57c3   : > { %7734 = vrot.lane.b32.xlu0 %v20261_v46, %s16642_s15 }
0x57c5   : > { %7736 = vrot.lane.b32.xlu1 %v20262_v45, %s16642_s15 }
0x57c7   : > { %9712 = vrot.lane.b32.xlu0 %v20263_v9, %s16642_s15 }
0x57c9   : > { %9714 = vrot.lane.b32.xlu1 %v20264_v47, %s16642_s15 }
0x57cb   : > { %9716 = vrot.lane.b32.xlu0 %v20265_v52, %s16642_s15 }
0x57cd   : > { %9718 = vrot.lane.b32.xlu1 %v20266_v40, %s16642_s15 }
0x57cf   : > { %11399 = vrot.lane.b32.xlu0 %v19401_v53, %s16642_s15  ;;  %v20270_v53 = vld [vmem:[#allocation50_spill] sm:$0xff] }
0x57d1   : > { %11401 = vrot.lane.b32.xlu1 %v19405_v6, %s16642_s15  ;;  %v20271_v6 = vld [vmem:[#allocation63_spill] sm:$0xff] }
0x57d3   : > { %11403 = vrot.lane.b32.xlu0 %v19417_v56, %s16642_s15  ;;  %v20272_v56 = vld [vmem:[#allocation64_spill] sm:$0xff] }
0x57d5   : > { %11405 = vrot.lane.b32.xlu1 %v19421_v62, %s16642_s15  ;;  %v20273_v62 = vld [vmem:[#allocation65_spill] sm:$0xff]  ;;  %s19936_s15 = scalar_lea.vmem [#allocation4], %s19845_s20 }
0x57d7   : > { %7742 = vrot.lane.b32.xlu0 %v20267_v21, %s16643_s16 }
0x57d9   : > { %7744 = vrot.lane.b32.xlu1 %v20268_v12, %s16643_s16  ;;  %v20285_v12 = vld [vmem:[#allocation11_spill] sm:$0xff] }
0x57db   : > { %7746 = vrot.lane.b32.xlu0 %v20269_v39, %s16643_s16 }
0x57dd   : > { %7748 = vrot.lane.b32.xlu1 %v20270_v53, %s16643_s16 }
0x57df   : > { %9724 = vrot.lane.b32.xlu0 %v20271_v6, %s16643_s16 }
0x57e1   : > { %9726 = vrot.lane.b32.xlu1 %v20272_v56, %s16643_s16 }
0x57e3   : > { %9728 = vrot.lane.b32.xlu0 %v20273_v62, %s16643_s16  ;;  %v20286_v62 = vld [vmem:[#allocation13_spill] sm:$0xff] }
0x57e5   : > { %9730 = vrot.lane.b32.xlu1 %v20274_v43, %s16643_s16 }
0x57e7   : > { %11411 = vrot.lane.b32.xlu0 %v19465_v16, %s16643_s16  ;;  %v20276_v16 = vld [vmem:[#allocation52_spill] sm:$0xff] }
0x57e9   : > { %11413 = vrot.lane.b32.xlu1 %v19469_v34, %s16643_s16 }
0x57ea   : > { %v11950_v63 = vpop.xlane.xlu1 %11949 }
0x57eb   : > { %v11958_v29 = vmul.f32 0.03125, %v11950_v63  ;;  %11415 = vrot.lane.b32.xlu0 %v19481_v23, %s16643_s16  ;;  %v11947_v11 = vpop.xlane.xlu0 %11946  ;;  %v20277_v23 = vld [vmem:[#allocation53_spill] sm:$0xff] }
0x57ec   : > { %v11957_v28 = vmul.f32 0.03125, %v11947_v11 }
0x57ed   : > { %v11962_v57 = vadd.f32 1e-05, %v11958_v29  ;;  %11417 = vrot.lane.b32.xlu1 %v19485_v44, %s16643_s16  ;;  %v20278_v44 = vld [vmem:[#allocation54_spill] sm:$0xff]  ;;  %s12120_s16 = scalar_lea.vmem (%p16760_p4), %s20309_s29, %s13126_s25 }
0x57ee   : > { %v11961_v61 = vadd.f32 1e-05, %v11957_v28 }
0x57ef   : > { %16584 = vrsqrt.f32 %v11962_v57  ;;  %7754 = vrot.lane.b32.xlu0 %v20275_v42, %s16644_s21 }
0x57f0   : > { %16586 = vrsqrt.f32 %v11961_v61 }
0x57f1   : > { %7756 = vrot.lane.b32.xlu1 %v20276_v16, %s16644_s21  ;;  %v11956_v34 = vpop.xlane.xlu1 %11955 }
0x57f2   : > { %v11960_v0 = vmul.f32 0.03125, %v11956_v34  ;;  %v11953_v55 = vpop.xlane.xlu0 %11952  ;;  %v20287_v34 = vld [vmem:[#allocation14_spill] sm:$0xff] }
0x57f3   : > { %v11959_v10 = vmul.f32 0.03125, %v11953_v55  ;;  %7758 = vrot.lane.b32.xlu0 %v20277_v23, %s16644_s21 }
0x57f4   : > { %v11964_v7 = vadd.f32 1e-05, %v11960_v0 }
0x57f5   : > { %v11963_v14 = vadd.f32 1e-05, %v11959_v10  ;;  %7760 = vrot.lane.b32.xlu1 %v20278_v44, %s16644_s21  ;;  %v2068_v37 = vpop.permute.xlu1 %2067 }
0x57f6   : > { %16588 = vrsqrt.f32 %v11964_v7  ;;  %v2066_v54 = vpop.permute.xlu0 %2065  ;;  %v2102_v39 = vsel %vm682_vm0, %v20285_v12, %v2068_v37 }
0x57f7   : > { %16590 = vrsqrt.f32 %v11963_v14  ;;  %9736 = vrot.lane.b32.xlu0 %v20279_v38, %s16644_s21  ;;  %v2101_v36 = vsel %vm682_vm0, %v20283_v58, %v2066_v54  ;;  %v20288_v14 = vld [vmem:[#allocation16_spill] sm:$0xff] }
0x57f9   : > { %v16585_v24 = vpop.eup %16584  ;;  %9738 = vrot.lane.b32.xlu1 %v20280_v19, %s16644_s21  ;;  %v2070_v5 = vpop.permute.xlu1 %2069  ;;  %v20289_v19 = vld [vmem:[#allocation15_spill] sm:$0xff] }
0x57fa   : > { %v16587_v17 = vpop.eup %16586  ;;  %v11970_v30 = vmul.f32 %v16585_v24, %v19668_v60  ;;  %v2078_v33 = vpop.permute.xlu0 %2077 }
0x57fb   : > { %9740 = vrot.lane.b32.xlu0 %v20281_v1, %s16644_s21  ;;  %v11969_v3 = vmul.f32 %v16587_v17, %v19670_v2  ;;  %v2106_v25 = vsel %vm2105_vm5, %v2101_v36, %v2078_v33  ;;  %v20290_v1 = vld [vmem:[#allocation17_spill] sm:$0xff] }
0x57fc   : > { %v11978_v20 = vmul.f32 %v13106_v18, %v11970_v30 }
0x57fd   : > { %9742 = vrot.lane.b32.xlu1 %v20282_v31, %s16644_s21  ;;  %v2072_v35 = vpop.permute.xlu1 %2071  ;;  %v11977_v49 = vmul.f32 %v13106_v18, %v11969_v3 }
0x57fe   : > { %v2082_v51 = vpop.permute.xlu0 %2081  ;;  %v11986_v2 = vadd.f32 %v13107_v15, %v11978_v20  ;;  %v2104_v43 = vsel %vm682_vm0, %v20286_v62, %v2072_v35 }
0x57ff   : > { %11423 = vrot.lane.b32.xlu0 %v19521_v26, %s16644_s21  ;;  %v11985_v60 = vadd.f32 %v13107_v15, %v11977_v49 }
0x5800   : > { %v16589_v32 = vpop.eup %16588 }
0x5801   : > { %v16591_v41 = vpop.eup %16590  ;;  %11425 = vrot.lane.b32.xlu1 %v19525_v59, %s16644_s21  ;;  %v2080_v27 = vpop.permute.xlu1 %2079  ;;  %14953 = vmatprep.mubr.msk.f32.mxu1 %vm682_vm0, %v11985_v60  ;;  %v11972_v4 = vmul.f32 %v16589_v32, %v19678_v8  ;;  %v20284_v8 = vld [vmem:[#allocation12_spill] sm:$0xff] }
0x5802   : > { %14954 = vmatmul.mubr.msk.f32.vlgmr.msra.gmra.mrb[156].mxu1 %vm682_vm0, %v11986_v2  ;;  %v2090_v26 = vpop.permute.xlu0 %2089  ;;  %v11971_v13 = vmul.f32 %v16591_v41, %v19680_v50  ;;  %v2103_v9 = vsel %vm682_vm0, %v20284_v8, %v2070_v5  ;;  %v2107_v53 = vsel %vm2105_vm5, %v2102_v39, %v2080_v27  ;;  %v20291_v2 = vld [vmem:[#allocation23_spill] sm:$0xff]  ;;  %v20293_v8 = vld [vmem:[#allocation24_spill] sm:$0xff] }
0x5803   : > { %v2111_v46 = vsel %vm2110_vm6, %v2106_v25, %v2090_v26  ;;  %11427 = vrot.lane.b32.xlu0 %v19527_v22, %s16644_s21  ;;  %v11980_v45 = vmul.f32 %v13106_v18, %v11972_v4  ;;  %v2108_v47 = vsel %vm2105_vm5, %v2103_v9, %v2082_v51  ;;  %v20292_v25 = vld [vmem:[#allocation25_spill] sm:$0xff] }
0x5804   : > { %2358 = vst [vmem:[%s19862_s24] sm:$0xff] %v2111_v46  ;;  %v11979_v59 = vmul.f32 %v13106_v18, %v11971_v13 }
0x5805   : > { %11429 = vrot.lane.b32.xlu1 %v19533_v48, %s16644_s21  ;;  %v2084_v50 = vpop.permute.xlu1 %2083  ;;  %v11988_v21 = vadd.f32 %v13107_v15, %v11980_v45 }
0x5806   : > { %v2094_v52 = vpop.permute.xlu0 %2093  ;;  %v11987_v40 = vadd.f32 %v13107_v15, %v11979_v59  ;;  %v2109_v63 = vsel %vm2105_vm5, %v2104_v43, %v2084_v50 }
0x5807   : > { %v2113_v22 = vsel %vm2110_vm6, %v2108_v47, %v2094_v52 }
0x5808   : > { %2360 = vst [vmem:[%s19862_s24 + $0x10] sm:$0xff] %v2113_v22  ;;  %14956 = vmatprep.mubr.msk.f32.mxu1 %vm682_vm0, %v11987_v40  ;;  %v20294_v22 = vld [vmem:[#allocation26_spill] sm:$0xff] }
0x5809   : > { %v2092_v6 = vpop.permute.xlu1 %2091  ;;  %14957 = vmatmul.mubr.msk.f32.gmra.mrb[158].mxu1 %vm682_vm0, %v11988_v21 }
0x580a   : > { %v2112_v48 = vsel %vm2110_vm6, %v2107_v53, %v2092_v6  ;;  %v4050_v56 = vpop.permute.xlu0 %4049 }
0x580b   : > { %2359 = vst [vmem:[%s19862_s24 + $0x8] sm:$0xff] %v2112_v48  ;;  %v4085_v0 = vsel %vm682_vm0, %v20287_v34, %v4050_v56 }
0x580d   : > { %v2096_v29 = vpop.permute.xlu1 %2095 }
0x580e   : > { %v2114_v11 = vsel %vm2110_vm6, %v2109_v63, %v2096_v29  ;;  %v4054_v28 = vpop.permute.xlu0 %4053 }
0x580f   : > { %2361 = vst [vmem:[%s19862_s24 + $0x18] sm:$0xff] %v2114_v11  ;;  %v4087_v44 = vsel %vm682_vm0, %v20288_v14, %v4054_v28 }
0x5811   : > { %v4052_v57 = vpop.permute.xlu1 %4051 }
0x5812   : > { %v4062_v61 = vpop.permute.xlu0 %4061  ;;  %v4086_v5 = vsel %vm682_vm0, %v20289_v19, %v4052_v57 }
0x5813   : > { %v4089_v10 = vsel %vm2105_vm5, %v4085_v0, %v4062_v61 }
0x5815   : > { %v4056_v42 = vpop.permute.xlu1 %4055 }
0x5816   : > { %v4066_v16 = vpop.permute.xlu0 %4065  ;;  %v4088_v3 = vsel %vm682_vm0, %v20290_v1, %v4056_v42 }
0x5817   : > { %v4091_v54 = vsel %vm2105_vm5, %v4087_v44, %v4066_v16 }
0x5819   : > { %v4064_v55 = vpop.permute.xlu1 %4063 }
0x581a   : > { %v4074_v23 = vpop.permute.xlu0 %4073  ;;  %v4090_v18 = vsel %vm2105_vm5, %v4086_v5, %v4064_v55 }
0x581b   : > { %v4093_v7 = vsel %vm2110_vm6, %v4089_v10, %v4074_v23 }
0x581c   : > { %12680 = vst [vmem:[%s19862_s24 + $0x20] sm:$0xff] %v4093_v7 }
0x581d   : > { %v4068_v37 = vpop.permute.xlu1 %4067 }
0x581e   : > { %v4078_v38 = vpop.permute.xlu0 %4077  ;;  %v4092_v15 = vsel %vm2105_vm5, %v4088_v3, %v4068_v37  ;;  %v20295_v37 = vld [vmem:[#allocation39_spill] sm:$0xff] }
0x581f   : > { %v4095_v24 = vsel %vm2110_vm6, %v4091_v54, %v4078_v38 }
0x5820   : > { %12682 = vst [vmem:[%s19862_s24 + $0x30] sm:$0xff] %v4095_v24 }
0x5821   : > { %v4076_v17 = vpop.permute.xlu1 %4075 }
0x5822   : > { %v4094_v30 = vsel %vm2110_vm6, %v4090_v18, %v4076_v17  ;;  %v6033_v33 = vpop.permute.xlu0 %6032  ;;  %v20296_v18 = vld [vmem:[#allocation41_spill] sm:$0xff] }
0x5823   : > { %12681 = vst [vmem:[%s19862_s24 + $0x28] sm:$0xff] %v4094_v30  ;;  %v6068_v41 = vsel %vm682_vm0, %v20291_v2, %v6033_v33 }
0x5825   : > { %v4080_v20 = vpop.permute.xlu1 %4079 }
0x5826   : > { %v4096_v31 = vsel %vm2110_vm6, %v4092_v15, %v4080_v20  ;;  %v6037_v35 = vpop.permute.xlu0 %6036  ;;  %v20297_v15 = vld [vmem:[#allocation40_spill] sm:$0xff] }
0x5827   : > { %12683 = vst [vmem:[%s19862_s24 + $0x38] sm:$0xff] %v4096_v31  ;;  %v6070_v26 = vsel %vm682_vm0, %v20292_v25, %v6037_v35  ;;  %v20298_v31 = vld [vmem:[#allocation55_spill] sm:$0xff] }
0x5829   : > { %v6035_v49 = vpop.permute.xlu1 %6034 }
0x582a   : > { %v6045_v51 = vpop.permute.xlu0 %6044  ;;  %v6069_v9 = vsel %vm682_vm0, %v20293_v8, %v6035_v49  ;;  %v20301_v8 = vld [vmem:[#allocation56_spill] sm:$0xff] }
0x582b   : > { %v6072_v36 = vsel %vm2105_vm5, %v6068_v41, %v6045_v51 }
0x582d   : > { %v6039_v60 = vpop.permute.xlu1 %6038 }
0x582e   : > { %v6049_v32 = vpop.permute.xlu0 %6048  ;;  %v6071_v21 = vsel %vm682_vm0, %v20294_v22, %v6039_v60 }
0x582f   : > { %v6074_v46 = vsel %vm2105_vm5, %v6070_v26, %v6049_v32 }
0x5831   : > { %v6047_v58 = vpop.permute.xlu1 %6046 }
0x5832   : > { %v6057_v27 = vpop.permute.xlu0 %6056  ;;  %v6073_v50 = vsel %vm2105_vm5, %v6069_v9, %v6047_v58  ;;  %v20299_v58 = vld [vmem:[#allocation42_spill] sm:$0xff] }
0x5833   : > { %v6076_v4 = vsel %vm2110_vm6, %v6072_v36, %v6057_v27  ;;  %v20300_v27 = vld [vmem:[#allocation57_spill] sm:$0xff] }
0x5834   : > { %6321 = vst [vmem:[%s19909_s26] sm:$0xff] %v6076_v4 }
0x5835   : > { %v6051_v13 = vpop.permute.xlu1 %6050 }
0x5836   : > { %v6061_v45 = vpop.permute.xlu0 %6060  ;;  %v6075_v12 = vsel %vm2105_vm5, %v6071_v21, %v6051_v13 }
0x5837   : > { %v6078_v59 = vsel %vm2110_vm6, %v6074_v46, %v6061_v45 }
0x5838   : > { %6323 = vst [vmem:[%s19909_s26 + $0x10] sm:$0xff] %v6078_v59 }
0x5839   : > { %v6059_v47 = vpop.permute.xlu1 %6058 }
0x583a   : > { %v6077_v52 = vsel %vm2110_vm6, %v6073_v50, %v6059_v47  ;;  %v7731_v40 = vpop.permute.xlu0 %7730  ;;  %v20302_v50 = vld [vmem:[#allocation71_spill] sm:$0xff] }
0x583b   : > { %6322 = vst [vmem:[%s19909_s26 + $0x8] sm:$0xff] %v6077_v52  ;;  %v7766_v54 = vsel %vm682_vm0, %v20295_v37, %v7731_v40 }
0x583d   : > { %v6063_v39 = vpop.permute.xlu1 %6062 }
0x583e   : > { %v6079_v53 = vsel %vm2110_vm6, %v6075_v12, %v6063_v39  ;;  %v7735_v6 = vpop.permute.xlu0 %7734 }
0x583f   : > { %6324 = vst [vmem:[%s19909_s26 + $0x18] sm:$0xff] %v6079_v53  ;;  %v7768_v17 = vsel %vm682_vm0, %v20296_v18, %v7735_v6  ;;  %v20303_v53 = vld [vmem:[#allocation58_spill] sm:$0xff] }
0x5840   : > { %v12170_v18 = vld [vmem:[%s19862_s24 + $0x20] sm:$0xff] (%p16760_p4) }
0x5841   : > { %v7733_v48 = vpop.permute.xlu1 %7732  ;;  %12171 = vst [vmem:[%s12120_s16 + $0x40] sm:$0xff] (%p16760_p4), %v12170_v18 }
0x5842   : > { %v9713_v56 = vpop.permute.xlu0 %9712  ;;  %v7767_v20 = vsel %vm682_vm0, %v20297_v15, %v7733_v48  ;;  %v20304_v48 = vld [vmem:[#allocation73_spill] sm:$0xff] }
0x5843   : > { %v9748_v35 = vsel %vm682_vm0, %v20298_v31, %v9713_v56 }
0x5845   : > { %v7737_v62 = vpop.permute.xlu1 %7736 }
0x5846   : > { %v9717_v43 = vpop.permute.xlu0 %9716  ;;  %v7769_v36 = vsel %vm682_vm0, %v20299_v58, %v7737_v62 }
0x5847   : > { %v9750_v4 = vsel %vm682_vm0, %v20300_v27, %v9717_v43 }
0x5849   : > { %v9715_v63 = vpop.permute.xlu1 %9714 }
0x584a   : > { %v11400_v29 = vpop.permute.xlu0 %11399  ;;  %v9749_v9 = vsel %vm682_vm0, %v20301_v8, %v9715_v63 }
0x584b   : > { %v11435_v47 = vsel %vm682_vm0, %v20302_v50, %v11400_v29 }
0x584d   : > { %v9719_v11 = vpop.permute.xlu1 %9718 }
0x584e   : > { %v11404_v28 = vpop.permute.xlu0 %11403  ;;  %v9751_v6 = vsel %vm682_vm0, %v20303_v53, %v9719_v11 }
0x584f   : > { %v11437_v56 = vsel %vm682_vm0, %v20304_v48, %v11404_v28 }
0x5851   : > { %v19927_v57 = vpop.permute.xlu1 %11401 }
0x5852   : > { %v7743_v61 = vpop.permute.xlu0 %7742 }
0x5853   : > { %v7770_v24 = vsel %vm2105_vm5, %v7766_v54, %v7743_v61 }
0x5855   : > { %v19929_v42 = vpop.permute.xlu1 %11405 }
0x5856   : > { %v7747_v16 = vpop.permute.xlu0 %7746 }
0x5857   : > { %v7772_v33 = vsel %vm2105_vm5, %v7768_v17, %v7747_v16  ;;  %v12172_v17 = vld [vmem:[%s19862_s24 + $0x28] sm:$0xff] (%p16760_p4) }
0x5858   : > { %12173 = vst [vmem:[%s12120_s16 + $0x48] sm:$0xff] (%p16760_p4), %v12172_v17 }
0x5859   : > { %v7745_v34 = vpop.permute.xlu1 %7744 }
0x585a   : > { %v9725_v0 = vpop.permute.xlu0 %9724  ;;  %v7771_v49 = vsel %vm2105_vm5, %v7767_v20, %v7745_v34  ;;  %v20305_v34 = vld [vmem:[#allocation72_spill] sm:$0xff] }
0x585b   : > { %v9752_v60 = vsel %vm2105_vm5, %v9748_v35, %v9725_v0  ;;  %v11436_v11 = vsel %vm682_vm0, %v20305_v34, %v19927_v57 }
0x585d   : > { %v7749_v55 = vpop.permute.xlu1 %7748 }
0x585e   : > { %v9729_v10 = vpop.permute.xlu0 %9728  ;;  %v7773_v25 = vsel %vm2105_vm5, %v7769_v36, %v7749_v55 }
0x585f   : > { %v9754_v13 = vsel %vm2105_vm5, %v9750_v4, %v9729_v10  ;;  %v20306_v10 = vld [vmem:[#allocation74_spill] sm:$0xff] }
0x5861   : > { %v9727_v23 = vpop.permute.xlu1 %9726 }
0x5862   : > { %v11412_v7 = vpop.permute.xlu0 %11411  ;;  %v9753_v52 = vsel %vm2105_vm5, %v9749_v9, %v9727_v23  ;;  %v11438_v23 = vsel %vm682_vm0, %v20306_v10, %v19929_v42  ;;  %v12162_v42 = vld [vmem:[%s19862_s24] sm:$0xff] (%p16760_p4) }
0x5863   : > { %v11439_v22 = vsel %vm2105_vm5, %v11435_v47, %v11412_v7  ;;  %12163 = vst [vmem:[%s12120_s16] sm:$0xff] (%p16760_p4), %v12162_v42 }
0x5865   : > { %v9731_v14 = vpop.permute.xlu1 %9730 }
0x5866   : > { %v11416_v44 = vpop.permute.xlu0 %11415  ;;  %v9755_v62 = vsel %vm2105_vm5, %v9751_v6, %v9731_v14 }
0x5867   : > { %v11441_v63 = vsel %vm2105_vm5, %v11437_v56, %v11416_v44 }
0x5869   : > { %v11414_v38 = vpop.permute.xlu1 %11413 }
0x586a   : > { %v7755_v19 = vpop.permute.xlu0 %7754  ;;  %v11440_v28 = vsel %vm2105_vm5, %v11436_v11, %v11414_v38 }
0x586b   : > { %v7774_v5 = vsel %vm2110_vm6, %v7770_v24, %v7755_v19  ;;  %v12164_v24 = vld [vmem:[%s19862_s24 + $0x8] sm:$0xff] (%p16760_p4)  ;;  %v12166_v19 = vld [vmem:[%s19862_s24 + $0x10] sm:$0xff] (%p16760_p4) }
0x586c   : > { %8019 = vst [vmem:[%s19936_s15] sm:$0xff] %v7774_v5  ;;  %v12168_v5 = vld [vmem:[%s19862_s24 + $0x18] sm:$0xff] (%p16760_p4)  ;;  %12165 = vst [vmem:[%s12120_s16 + $0x8] sm:$0xff] (%p16760_p4), %v12164_v24 }
0x586d   : > { %v11418_v30 = vpop.permute.xlu1 %11417  ;;  %12167 = vst [vmem:[%s12120_s16 + $0x10] sm:$0xff] (%p16760_p4), %v12166_v19  ;;  %12169 = vst [vmem:[%s12120_s16 + $0x18] sm:$0xff] (%p16760_p4), %v12168_v5 }
0x586e   : > { %v7759_v1 = vpop.permute.xlu0 %7758  ;;  %v11442_v7 = vsel %vm2105_vm5, %v11438_v23, %v11418_v30  ;;  %v12174_v30 = vld [vmem:[%s19862_s24 + $0x30] sm:$0xff] (%p16760_p4) }
0x586f   : > { %v7776_v3 = vsel %vm2110_vm6, %v7772_v33, %v7759_v1  ;;  %v12176_v33 = vld [vmem:[%s19862_s24 + $0x38] sm:$0xff] (%p16760_p4)  ;;  %12175 = vst [vmem:[%s12120_s16 + $0x50] sm:$0xff] (%p16760_p4), %v12174_v30 }
0x5870   : > { %8021 = vst [vmem:[%s19936_s15 + $0x10] sm:$0xff] %v7776_v3  ;;  %12177 = vst [vmem:[%s12120_s16 + $0x58] sm:$0xff] (%p16760_p4), %v12176_v33 }
0x5871   : > { %v7757_v51 = vpop.permute.xlu1 %7756 }
0x5872   : > { %v7775_v32 = vsel %vm2110_vm6, %v7771_v49, %v7757_v51  ;;  %v9737_v2 = vpop.permute.xlu0 %9736 }
0x5873   : > { %8020 = vst [vmem:[%s19936_s15 + $0x8] sm:$0xff] %v7775_v32  ;;  %v9756_v41 = vsel %vm2110_vm6, %v9752_v60, %v9737_v2 }
0x5874   : > { %12990 = vst [vmem:[%s19909_s26 + $0x20] sm:$0xff] %v9756_v41 }
0x5875   : > { %v7761_v26 = vpop.permute.xlu1 %7760 }
0x5876   : > { %v7777_v46 = vsel %vm2110_vm6, %v7773_v25, %v7761_v26  ;;  %v9741_v45 = vpop.permute.xlu0 %9740 }
0x5877   : > { %8022 = vst [vmem:[%s19936_s15 + $0x18] sm:$0xff] %v7777_v46  ;;  %v9758_v59 = vsel %vm2110_vm6, %v9754_v13, %v9741_v45 }
0x5878   : > { %12992 = vst [vmem:[%s19909_s26 + $0x30] sm:$0xff] %v9758_v59 }
0x5879   : > { %v9739_v40 = vpop.permute.xlu1 %9738 }
0x587a   : > { %v9757_v21 = vsel %vm2110_vm6, %v9753_v52, %v9739_v40  ;;  %v11424_v12 = vpop.permute.xlu0 %11423 }
0x587b   : > { %12991 = vst [vmem:[%s19909_s26 + $0x28] sm:$0xff] %v9757_v21  ;;  %v11443_v39 = vsel %vm2110_vm6, %v11439_v22, %v11424_v12 }
0x587c   : > { %13080 = vst [vmem:[%s19936_s15 + $0x20] sm:$0xff] %v11443_v39 }
0x587d   : > { %v9743_v43 = vpop.permute.xlu1 %9742 }
0x587e   : > { %v9759_v29 = vsel %vm2110_vm6, %v9755_v62, %v9743_v43  ;;  %v11428_v61 = vpop.permute.xlu0 %11427 }
0x587f   : > { %12993 = vst [vmem:[%s19909_s26 + $0x38] sm:$0xff] %v9759_v29  ;;  %v11445_v16 = vsel %vm2110_vm6, %v11441_v63, %v11428_v61 }
0x5880   : > { %13082 = vst [vmem:[%s19936_s15 + $0x30] sm:$0xff] %v11445_v16 }
0x5881   : > { %v11426_v0 = vpop.permute.xlu1 %11425 }
0x5882   : > { %v11444_v55 = vsel %vm2110_vm6, %v11440_v28, %v11426_v0 }
0x5883   : > { %13081 = vst [vmem:[%s19936_s15 + $0x28] sm:$0xff] %v11444_v55 }
0x5885   : > { %v11430_v14 = vpop.permute.xlu1 %11429 }
0x5886   : > { %v11446_v44 = vsel %vm2110_vm6, %v11442_v7, %v11430_v14 }
0x5887   : > { %13083 = vst [vmem:[%s19936_s15 + $0x38] sm:$0xff] %v11446_v44 }
0x58d5   : > { %v14955_v57 = vpop.f32.mrb[156].mxu1 }
0x58d6   : > { %v12071_v37 = vpop.f32.mrb[157].mxu1  ;;  %12091 = vst [vmem:[%s651_s17 + $0x8] sm:$0xff] %v14955_v57 }
0x58d7   : > { %12090 = vst [vmem:[%s651_s17] sm:$0xff] %v12071_v37 }
0x58d8   : > { %12117 = sbr.rel (!%p16760_p4) target bundleno = 22751 (0x58df), region = 84 }
0x58dc   : > { %v14958_v54 = vpop.f32.mrb[158].mxu1 }
0x58dd   : > { %v12081_v38 = vpop.f32.mrb[159].mxu1  ;;  %12093 = vst [vmem:[%s651_s17 + $0x18] sm:$0xff] %v14958_v54 }
0x58de   : > { %12092 = vst [vmem:[%s651_s17 + $0x10] sm:$0xff] %v12081_v38 }
0x58df PF: > { %12183 = sbr.rel (!%p16760_p4) target bundleno = 22763 (0x58eb), region = 122  ;;  %s20311_s27 = sld [smem:[#allocation6_spill]] (%p16760_p4)  ;;  %v12228_v1 = vld [vmem:[%s19909_s26] sm:$0xff] (%p16760_p4)  ;;  %v12230_v3 = vld [vmem:[%s19909_s26 + $0x8] sm:$0xff] (%p16760_p4)  ;;  %v12232_v15 = vld [vmem:[%s19909_s26 + $0x10] sm:$0xff] (%p16760_p4) }
0x58e0   : > { %s20312_s19 = sld [smem:[#allocation80_spill]] (%p16760_p4)  ;;  %v12234_v20 = vld [vmem:[%s19909_s26 + $0x18] sm:$0xff] (%p16760_p4)  ;;  %v12236_v31 = vld [vmem:[%s19909_s26 + $0x20] sm:$0xff] (%p16760_p4)  ;;  %v12238_v35 = vld [vmem:[%s19909_s26 + $0x28] sm:$0xff] (%p16760_p4) }
0x58e1   : > { %v12240_v49 = vld [vmem:[%s19909_s26 + $0x30] sm:$0xff] (%p16760_p4)  ;;  %v12242_v51 = vld [vmem:[%s19909_s26 + $0x38] sm:$0xff] (%p16760_p4) }
0x58e5   : > { %s13127_s0 = sshll.u32 (%p16760_p4), %s20311_s27, 5 }
0x58e6   : > { %s12186_s20 = scalar_lea.vmem %s20312_s19, %s13127_s0 }
0x58e7   : > { %12229 = vst [vmem:[%s12186_s20] sm:$0xff] %v12228_v1  ;;  %12231 = vst [vmem:[%s12186_s20 + $0x8] sm:$0xff] %v12230_v3 }
0x58e8   : > { %12233 = vst [vmem:[%s12186_s20 + $0x10] sm:$0xff] %v12232_v15  ;;  %12235 = vst [vmem:[%s12186_s20 + $0x18] sm:$0xff] %v12234_v20 }
0x58e9   : > { %12237 = vst [vmem:[%s12186_s20 + $0x40] sm:$0xff] %v12236_v31  ;;  %12239 = vst [vmem:[%s12186_s20 + $0x48] sm:$0xff] %v12238_v35 }
0x58ea   : > { %12241 = vst [vmem:[%s12186_s20 + $0x50] sm:$0xff] %v12240_v49  ;;  %12243 = vst [vmem:[%s12186_s20 + $0x58] sm:$0xff] %v12242_v51 }
0x58eb PF: > { %12249 = sbr.rel (!%p16760_p4) target bundleno = 22775 (0x58f7), region = 160  ;;  %s20314_s18 = sld [smem:[#allocation6_spill]] (%p16760_p4)  ;;  %v12294_v60 = vld [vmem:[%s19936_s15] sm:$0xff] (%p16760_p4)  ;;  %v12296_v32 = vld [vmem:[%s19936_s15 + $0x8] sm:$0xff] (%p16760_p4)  ;;  %v12298_v2 = vld [vmem:[%s19936_s15 + $0x10] sm:$0xff] (%p16760_p4) }
0x58ec   : > { %s20315_s22 = sld [smem:[#allocation81_spill]] (%p16760_p4)  ;;  %v12300_v41 = vld [vmem:[%s19936_s15 + $0x18] sm:$0xff] (%p16760_p4)  ;;  %v12302_v58 = vld [vmem:[%s19936_s15 + $0x20] sm:$0xff] (%p16760_p4)  ;;  %v12304_v36 = vld [vmem:[%s19936_s15 + $0x28] sm:$0xff] (%p16760_p4) }
0x58ed   : > { %v12306_v27 = vld [vmem:[%s19936_s15 + $0x30] sm:$0xff] (%p16760_p4)  ;;  %v12308_v4 = vld [vmem:[%s19936_s15 + $0x38] sm:$0xff] (%p16760_p4) }
0x58f1   : > { %s13128_s28 = sshll.u32 (%p16760_p4), %s20314_s18, 5 }
0x58f2   : > { %s12252_s23 = scalar_lea.vmem %s20315_s22, %s13128_s28 }
0x58f3   : > { %12295 = vst [vmem:[%s12252_s23] sm:$0xff] %v12294_v60  ;;  %12297 = vst [vmem:[%s12252_s23 + $0x8] sm:$0xff] %v12296_v32 }
0x58f4   : > { %12299 = vst [vmem:[%s12252_s23 + $0x10] sm:$0xff] %v12298_v2  ;;  %12301 = vst [vmem:[%s12252_s23 + $0x18] sm:$0xff] %v12300_v41 }
0x58f5   : > { %12303 = vst [vmem:[%s12252_s23 + $0x40] sm:$0xff] %v12302_v58  ;;  %12305 = vst [vmem:[%s12252_s23 + $0x48] sm:$0xff] %v12304_v36 }
0x58f6   : > { %12307 = vst [vmem:[%s12252_s23 + $0x50] sm:$0xff] %v12306_v27  ;;  %12309 = vst [vmem:[%s12252_s23 + $0x58] sm:$0xff] %v12308_v4 }
0x58f7 PF: > { %s20316_s26 = sld [smem:[#allocation7_spill]]  ;;  %s20317_s24 = sld [smem:[#allocation5_spill]] }
0x58f8   : > { %s20318_s25 = sld [smem:[#allocation8_spill]] }
0x58fd   : > { %p25_p9 = scmp.ge.s32.totalorder %s20316_s26, 4  }
0x58ff   :  { %27 = sbr.rel (!%p25_p9) target bundleno = 10 (0xa), region = 297 }

</bundles_post_ra>
